<compile_context>
chip_gen: v7x
topology: tpu7x:2x2x1
jax: 0.10.0
libtpu: 0.0.40
codegen_flags: <defaults>
</compile_context>

<pallas_src>
import functools
import math

import jax
import jax.numpy as jnp
import numpy as np
from jax.experimental import pallas as pl
from jax.experimental.pallas import tpu as pltpu

# Make the XLA reference and the in-kernel f32 matmuls use the same (exact)
# algorithm so the correctness check is tight and deterministic.
jax.config.update("jax_default_matmul_precision", "highest")


def _sigmoid(x):
    # tanh-form sigmoid: mathematically exact, and tanh maps to the EUP slot.
    return 0.5 * (jnp.tanh(0.5 * x) + 1.0)


def _encoder_kernel(T, B, H, ndir, n_layers, *refs):
    """Whole PointerEncoder forward in one grid step.

    Inputs  : x (T*B, E) time-major flat;
              wih_l (ndir, D_l, 4H) per layer (pre-transposed W_ih);
              whh (L, ndir, H, 4H) (pre-transposed W_hh);
              b (L, ndir, 1, 4H) (b_ih + b_hh);
              h0, c0 (L, ndir, B, H).
    Outputs : y (ndir, T, B, H) last-layer per-timestep hidden states;
              hT, cT (L, ndir, B, H) final states.
    PyTorch gate order: [i | f | g | o].
    """
    H4 = 4 * H
    x_ref = refs[0]
    wih_refs = refs[1:1 + n_layers]
    whh_ref, b_ref, h0_ref, c0_ref = refs[1 + n_layers:5 + n_layers]
    y_ref, hT_ref, cT_ref = refs[5 + n_layers:8 + n_layers]

    prev = None                                   # prev[d][t] : (B, H) values of layer l-1

    for l in range(n_layers):                     # static layer loop
        # ---- input projections: entirely OFF the recurrent critical chain ----
        # gx[d][s] is the (B, 4H) input pre-activation that direction d consumes
        # at loop step s (direction 1 walks time in reverse).
        gx = []
        for d in range(ndir):
            wih_d = wih_refs[l][d]                # (D_l, 4H) value
            b_d = b_ref[l, d]                     # (1, 4H)
            if l == 0:
                # one fused MXU matmul for all timesteps of this direction
                big = jnp.dot(x_ref[...], wih_d,
                              preferred_element_type=jnp.float32) + b_d      # (T*B, 4H)
                rows = [big[t * B:(t + 1) * B, :] for t in range(T)]
            else:
                # next-layer input at time t is [h_fwd(t) | h_bwd(t)]; keep it as
                # per-direction matmuls (independent of the h-carry => hoistable).
                rows = []
                for t in range(T):
                    r = b_d
                    for dp in range(ndir):
                        r = r + jnp.dot(prev[dp][t],
                                        wih_d[dp * H:(dp + 1) * H, :],
                                        preferred_element_type=jnp.float32)  # (B, 4H)
                    rows.append(r)
            gx.append(rows if d == 0 else rows[::-1])

        whh = [whh_ref[l, d] for d in range(ndir)]       # (H, 4H) values, hoisted
        h = [h0_ref[l, d] for d in range(ndir)]          # (B, H) carries (values)
        c = [c0_ref[l, d] for d in range(ndir)]
        ys = [[None] * T for _ in range(ndir)]

        # ---- recurrence: both directions interleaved in one unrolled loop ----
        for s in range(T):
            for d in range(ndir):
                g = gx[d][s] + jnp.dot(h[d], whh[d],
                                       preferred_element_type=jnp.float32)   # (B, 4H)
                i_g = _sigmoid(g[:, 0 * H:1 * H])
                f_g = _sigmoid(g[:, 1 * H:2 * H])
                g_g = jnp.tanh(g[:, 2 * H:3 * H])
                o_g = _sigmoid(g[:, 3 * H:4 * H])
                c[d] = f_g * c[d] + i_g * g_g
                h[d] = o_g * jnp.tanh(c[d])
                t_d = s if d == 0 else (T - 1) - s       # reverse direction walks backwards
                ys[d][t_d] = h[d]
                if l == n_layers - 1:
                    y_ref[d, t_d] = h[d]                  # full (B, H) block store

        for d in range(ndir):
            hT_ref[l, d] = h[d]
            cT_ref[l, d] = c[d]
        prev = ys
        # TODO(synk): inter-layer dropout (training-mode only) is not applied here.


def _pointer_encoder_forward(embedded_inputs, hidden, layer_params, *, bidir):
    """Mirrors PointerEncoder.forward: returns (outputs, (h_n, c_n))."""
    h0_all, c0_all = hidden
    ndir = 2 if bidir else 1
    B, T, E = embedded_inputs.shape
    H = h0_all.shape[-1]
    n_layers = len(layer_params)

    # Time-major, flattened input (row = t*B + b).
    x_flat = jnp.transpose(embedded_inputs, (1, 0, 2)).reshape(T * B, E)

    # Pre-transpose weights / pre-fuse biases (no in-kernel .T, single bias add).
    wih_list, whh_all, b_all = [], [], []
    for dirs in layer_params:
        wih_list.append(jnp.stack([w_ih.T for (w_ih, _, _, _) in dirs]))           # (ndir, D_l, 4H)
        whh_all.append(jnp.stack([w_hh.T for (_, w_hh, _, _) in dirs]))            # (ndir, H, 4H)
        b_all.append(jnp.stack([(b_ih + b_hh)[None, :]
                                for (_, _, b_ih, b_hh) in dirs]))                  # (ndir, 1, 4H)
    whh_all = jnp.stack(whh_all)                          # (L, ndir, H, 4H)
    b_all = jnp.stack(b_all)                              # (L, ndir, 1, 4H)
    h0 = h0_all.reshape(n_layers, ndir, B, H)
    c0 = c0_all.reshape(n_layers, ndir, B, H)

    def full(shape):
        return pl.BlockSpec(shape, lambda i: (0,) * len(shape))

    in_arrays = [x_flat, *wih_list, whh_all, b_all, h0, c0]
    kernel = functools.partial(_encoder_kernel, T, B, H, ndir, n_layers)

    y, hT, cT = pl.pallas_call(
        kernel,
        out_shape=(
            jax.ShapeDtypeStruct((ndir, T, B, H), jnp.float32),          # last-layer h(t)
            jax.ShapeDtypeStruct((n_layers, ndir, B, H), jnp.float32),   # h_T
            jax.ShapeDtypeStruct((n_layers, ndir, B, H), jnp.float32),   # c_T
        ),
        grid_spec=pltpu.PrefetchScalarGridSpec(
            num_scalar_prefetch=0,
            grid=(1,),                                   # whole encoder in one grid step
            in_specs=[full(a.shape) for a in in_arrays],
            out_specs=(
                full((ndir, T, B, H)),
                full((n_layers, ndir, B, H)),
                full((n_layers, ndir, B, H)),
            ),
        ),
        compiler_params=pltpu.CompilerParams(
            dimension_semantics=("arbitrary",)),
    )(*in_arrays)

    # Wrapper-side layout plumbing to the torch layout.
    outputs = jnp.transpose(y, (2, 1, 0, 3)).reshape(B, T, ndir * H)     # (B, T, ndir*H)
    h_n = hT.reshape(n_layers * ndir, B, H)
    c_n = cT.reshape(n_layers * ndir, B, H)
    return outputs, (h_n, c_n)


pointer_encoder_forward = jax.jit(_pointer_encoder_forward, static_argnames=("bidir",))


def pointer_encoder_reference(embedded_inputs, hidden, layer_params, *, bidir):
    """Pure-JAX mirror of nn.LSTM(batch_first=True) as used by PointerEncoder."""
    h0_all, c0_all = hidden
    ndir = 2 if bidir else 1
    B, T, _ = embedded_inputs.shape
    H = h0_all.shape[-1]

    x = embedded_inputs
    h_fin, c_fin = [], []
    for l, dirs in enumerate(layer_params):
        outs = []
        for d, (w_ih, w_hh, b_ih, b_hh) in enumerate(dirs):
            h = h0_all[l * ndir + d]
            c = c0_all[l * ndir + d]
            ys = [None] * T
            order = range(T) if d == 0 else range(T - 1, -1, -1)
            for t in order:
                g = x[:, t, :] @ w_ih.T + b_ih + h @ w_hh.T + b_hh
                i_g = jax.nn.sigmoid(g[:, 0 * H:1 * H])
                f_g = jax.nn.sigmoid(g[:, 1 * H:2 * H])
                g_g = jnp.tanh(g[:, 2 * H:3 * H])
                o_g = jax.nn.sigmoid(g[:, 3 * H:4 * H])
                c = f_g * c + i_g * g_g
                h = o_g * jnp.tanh(c)
                ys[t] = h
            outs.append(jnp.stack(ys, axis=1))        # (B, T, H)
            h_fin.append(h)
            c_fin.append(c)
        x = jnp.concatenate(outs, axis=-1)            # (B, T, ndir*H)
    return x, (jnp.stack(h_fin, axis=0), jnp.stack(c_fin, axis=0))


def init_lstm_params(key, input_size, hidden_size, n_layers, ndir):
    # torch.nn.LSTM default init: U(-1/sqrt(hidden_size), 1/sqrt(hidden_size))
    bound = 1.0 / math.sqrt(hidden_size)
    layers = []
    for l in range(n_layers):
        d_in = input_size if l == 0 else hidden_size * ndir
        dirs = []
        for _ in range(ndir):
            key, k1, k2, k3, k4 = jax.random.split(key, 5)
            w_ih = jax.random.uniform(k1, (4 * hidden_size, d_in), jnp.float32, -bound, bound)
            w_hh = jax.random.uniform(k2, (4 * hidden_size, hidden_size), jnp.float32, -bound, bound)
            b_ih = jax.random.uniform(k3, (4 * hidden_size,), jnp.float32, -bound, bound)
            b_hh = jax.random.uniform(k4, (4 * hidden_size,), jnp.float32, -bound, bound)
            dirs.append((w_ih, w_hh, b_ih, b_hh))
        layers.append(tuple(dirs))
    return tuple(layers)


if __name__ == "__main__":
    # PointerEncoder(embedding_dim=32, hidden_dim=64, n_layers=2, dropout=0.0, bidir=True)
    B, T = 2, 8
    embedding_dim, hidden_dim, n_layers, bidir = 32, 64, 2, True
    ndir = 2 if bidir else 1
    H = hidden_dim // 2 if bidir else hidden_dim          # per-direction hidden size

    key = jax.random.PRNGKey(0)
    kx, kh, kc, kp = jax.random.split(key, 4)
    embedded_inputs = jax.random.normal(kx, (B, T, embedding_dim), jnp.float32)
    # init_hidden() would give zeros; use small random states to also exercise
    # the (h, c) plumbing.
    h0 = 0.1 * jax.random.normal(kh, (n_layers * ndir, B, H), jnp.float32)
    c0 = 0.1 * jax.random.normal(kc, (n_layers * ndir, B, H), jnp.float32)
    params = init_lstm_params(kp, embedding_dim, H, n_layers, ndir)

    out, (h_n, c_n) = pointer_encoder_forward(embedded_inputs, (h0, c0), params, bidir=bidir)
    out, h_n, c_n = jax.block_until_ready((out, h_n, c_n))

    ref_out, (ref_h, ref_c) = pointer_encoder_reference(
        embedded_inputs, (h0, c0), params, bidir=bidir)
    np.testing.assert_allclose(np.asarray(out), np.asarray(ref_out), rtol=5e-3, atol=5e-3)
    np.testing.assert_allclose(np.asarray(h_n), np.asarray(ref_h), rtol=5e-3, atol=5e-3)
    np.testing.assert_allclose(np.asarray(c_n), np.asarray(ref_c), rtol=5e-3, atol=5e-3)

    print("KERNEL_OK")
</pallas_src>

<mosaic_0001>
module attributes {stable_mosaic.version = 11 : i64} {
  func.func @_encoder_kernel(%arg0: i32, %arg1: memref<16x32xf32, #tpu.memory_space<vmem>>, %arg2: memref<2x32x128xf32, #tpu.memory_space<vmem>>, %arg3: memref<2x64x128xf32, #tpu.memory_space<vmem>>, %arg4: memref<2x2x32x128xf32, #tpu.memory_space<vmem>>, %arg5: memref<2x2x1x128xf32, #tpu.memory_space<vmem>>, %arg6: memref<2x2x2x32xf32, #tpu.memory_space<vmem>>, %arg7: memref<2x2x2x32xf32, #tpu.memory_space<vmem>>, %arg8: memref<2x8x2x32xf32, #tpu.memory_space<vmem>>, %arg9: memref<2x2x2x32xf32, #tpu.memory_space<vmem>>, %arg10: memref<2x2x2x32xf32, #tpu.memory_space<vmem>>) attributes {dimension_semantics = [#tpu.dimension_semantics<arbitrary>], iteration_bounds = array<i64: 1>, scalar_prefetch = 0 : i64, scratch_operands = 0 : i64, tpu.core_type = #tpu.core_type<tc>, window_params = [{pipeline_mode = #tpu.pipeline_mode<synchronous>, transform_indices = @transform_0, window_bounds = array<i64: 16, 32>}, {pipeline_mode = #tpu.pipeline_mode<synchronous>, transform_indices = @transform_1, window_bounds = array<i64: 2, 32, 128>}, {pipeline_mode = #tpu.pipeline_mode<synchronous>, transform_indices = @transform_2, window_bounds = array<i64: 2, 64, 128>}, {pipeline_mode = #tpu.pipeline_mode<synchronous>, transform_indices = @transform_3, window_bounds = array<i64: 2, 2, 32, 128>}, {pipeline_mode = #tpu.pipeline_mode<synchronous>, transform_indices = @transform_4, window_bounds = array<i64: 2, 2, 1, 128>}, {pipeline_mode = #tpu.pipeline_mode<synchronous>, transform_indices = @transform_5, window_bounds = array<i64: 2, 2, 2, 32>}, {pipeline_mode = #tpu.pipeline_mode<synchronous>, transform_indices = @transform_6, window_bounds = array<i64: 2, 2, 2, 32>}, {pipeline_mode = #tpu.pipeline_mode<synchronous>, transform_indices = @transform_7, window_bounds = array<i64: 2, 8, 2, 32>}, {pipeline_mode = #tpu.pipeline_mode<synchronous>, transform_indices = @transform_8, window_bounds = array<i64: 2, 2, 2, 32>}, {pipeline_mode = #tpu.pipeline_mode<synchronous>, transform_indices = @transform_9, window_bounds = array<i64: 2, 2, 2, 32>}]} {
    %c0 = arith.constant 0 : index
    %c0_0 = arith.constant 0 : index
    %c0_1 = arith.constant 0 : index
    %0 = vector.load %arg2[%c0, %c0_0, %c0_1] : memref<2x32x128xf32, #tpu.memory_space<vmem>>, vector<1x32x128xf32>
    %1 = vector.shape_cast %0 : vector<1x32x128xf32> to vector<32x128xf32>
    %c0_2 = arith.constant 0 : index
    %c0_3 = arith.constant 0 : index
    %c0_4 = arith.constant 0 : index
    %c0_5 = arith.constant 0 : index
    %2 = vector.load %arg5[%c0_2, %c0_3, %c0_4, %c0_5] : memref<2x2x1x128xf32, #tpu.memory_space<vmem>>, vector<1x1x1x128xf32>
    %3 = vector.shape_cast %2 : vector<1x1x1x128xf32> to vector<1x128xf32>
    %c0_6 = arith.constant 0 : index
    %c0_7 = arith.constant 0 : index
    %4 = vector.load %arg1[%c0_6, %c0_7] : memref<16x32xf32, #tpu.memory_space<vmem>>, vector<16x32xf32>
    %cst = arith.constant dense<0.000000e+00> : vector<16x128xf32>
    %5 = tpu.matmul %4, %1, %cst {dimension_numbers = #tpu.dot_dimension_numbers<[1], [0], [0], [1], [0, 0, 1, 1], [], []>, precision = #tpu.contract_precision<fp32>} : vector<16x32xf32>, vector<32x128xf32>, vector<16x128xf32> -> vector<16x128xf32>
    %6 = vector.broadcast %3 : vector<1x128xf32> to vector<16x128xf32>
    %7 = arith.addf %5, %6 : vector<16x128xf32>
    %8 = vector.extract_strided_slice %7 {offsets = [0, 0], sizes = [2, 128], strides = [1, 1]} : vector<16x128xf32> to vector<2x128xf32>
    %9 = vector.extract_strided_slice %7 {offsets = [2, 0], sizes = [2, 128], strides = [1, 1]} : vector<16x128xf32> to vector<2x128xf32>
    %10 = vector.extract_strided_slice %7 {offsets = [4, 0], sizes = [2, 128], strides = [1, 1]} : vector<16x128xf32> to vector<2x128xf32>
    %11 = vector.extract_strided_slice %7 {offsets = [6, 0], sizes = [2, 128], strides = [1, 1]} : vector<16x128xf32> to vector<2x128xf32>
    %12 = vector.extract_strided_slice %7 {offsets = [8, 0], sizes = [2, 128], strides = [1, 1]} : vector<16x128xf32> to vector<2x128xf32>
    %13 = vector.extract_strided_slice %7 {offsets = [10, 0], sizes = [2, 128], strides = [1, 1]} : vector<16x128xf32> to vector<2x128xf32>
    %14 = vector.extract_strided_slice %7 {offsets = [12, 0], sizes = [2, 128], strides = [1, 1]} : vector<16x128xf32> to vector<2x128xf32>
    %15 = vector.extract_strided_slice %7 {offsets = [14, 0], sizes = [2, 128], strides = [1, 1]} : vector<16x128xf32> to vector<2x128xf32>
    %c1 = arith.constant 1 : index
    %c0_8 = arith.constant 0 : index
    %c0_9 = arith.constant 0 : index
    %16 = vector.load %arg2[%c1, %c0_8, %c0_9] : memref<2x32x128xf32, #tpu.memory_space<vmem>>, vector<1x32x128xf32>
    %17 = vector.shape_cast %16 : vector<1x32x128xf32> to vector<32x128xf32>
    %c0_10 = arith.constant 0 : index
    %c1_11 = arith.constant 1 : index
    %c0_12 = arith.constant 0 : index
    %c0_13 = arith.constant 0 : index
    %18 = vector.load %arg5[%c0_10, %c1_11, %c0_12, %c0_13] : memref<2x2x1x128xf32, #tpu.memory_space<vmem>>, vector<1x1x1x128xf32>
    %19 = vector.shape_cast %18 : vector<1x1x1x128xf32> to vector<1x128xf32>
    %c0_14 = arith.constant 0 : index
    %c0_15 = arith.constant 0 : index
    %20 = vector.load %arg1[%c0_14, %c0_15] : memref<16x32xf32, #tpu.memory_space<vmem>>, vector<16x32xf32>
    %cst_16 = arith.constant dense<0.000000e+00> : vector<16x128xf32>
    %21 = tpu.matmul %20, %17, %cst_16 {dimension_numbers = #tpu.dot_dimension_numbers<[1], [0], [0], [1], [0, 0, 1, 1], [], []>, precision = #tpu.contract_precision<fp32>} : vector<16x32xf32>, vector<32x128xf32>, vector<16x128xf32> -> vector<16x128xf32>
    %22 = vector.broadcast %19 : vector<1x128xf32> to vector<16x128xf32>
    %23 = arith.addf %21, %22 : vector<16x128xf32>
    %24 = vector.extract_strided_slice %23 {offsets = [0, 0], sizes = [2, 128], strides = [1, 1]} : vector<16x128xf32> to vector<2x128xf32>
    %25 = vector.extract_strided_slice %23 {offsets = [2, 0], sizes = [2, 128], strides = [1, 1]} : vector<16x128xf32> to vector<2x128xf32>
    %26 = vector.extract_strided_slice %23 {offsets = [4, 0], sizes = [2, 128], strides = [1, 1]} : vector<16x128xf32> to vector<2x128xf32>
    %27 = vector.extract_strided_slice %23 {offsets = [6, 0], sizes = [2, 128], strides = [1, 1]} : vector<16x128xf32> to vector<2x128xf32>
    %28 = vector.extract_strided_slice %23 {offsets = [8, 0], sizes = [2, 128], strides = [1, 1]} : vector<16x128xf32> to vector<2x128xf32>
    %29 = vector.extract_strided_slice %23 {offsets = [10, 0], sizes = [2, 128], strides = [1, 1]} : vector<16x128xf32> to vector<2x128xf32>
    %30 = vector.extract_strided_slice %23 {offsets = [12, 0], sizes = [2, 128], strides = [1, 1]} : vector<16x128xf32> to vector<2x128xf32>
    %31 = vector.extract_strided_slice %23 {offsets = [14, 0], sizes = [2, 128], strides = [1, 1]} : vector<16x128xf32> to vector<2x128xf32>
    %c0_17 = arith.constant 0 : index
    %c0_18 = arith.constant 0 : index
    %c0_19 = arith.constant 0 : index
    %c0_20 = arith.constant 0 : index
    %32 = vector.load %arg4[%c0_17, %c0_18, %c0_19, %c0_20] : memref<2x2x32x128xf32, #tpu.memory_space<vmem>>, vector<1x1x32x128xf32>
    %33 = vector.shape_cast %32 : vector<1x1x32x128xf32> to vector<32x128xf32>
    %c0_21 = arith.constant 0 : index
    %c1_22 = arith.constant 1 : index
    %c0_23 = arith.constant 0 : index
    %c0_24 = arith.constant 0 : index
    %34 = vector.load %arg4[%c0_21, %c1_22, %c0_23, %c0_24] : memref<2x2x32x128xf32, #tpu.memory_space<vmem>>, vector<1x1x32x128xf32>
    %35 = vector.shape_cast %34 : vector<1x1x32x128xf32> to vector<32x128xf32>
    %c0_25 = arith.constant 0 : index
    %c0_26 = arith.constant 0 : index
    %c0_27 = arith.constant 0 : index
    %c0_28 = arith.constant 0 : index
    %36 = vector.load %arg6[%c0_25, %c0_26, %c0_27, %c0_28] : memref<2x2x2x32xf32, #tpu.memory_space<vmem>>, vector<1x1x2x32xf32>
    %37 = vector.shape_cast %36 : vector<1x1x2x32xf32> to vector<2x32xf32>
    %c0_29 = arith.constant 0 : index
    %c1_30 = arith.constant 1 : index
    %c0_31 = arith.constant 0 : index
    %c0_32 = arith.constant 0 : index
    %38 = vector.load %arg6[%c0_29, %c1_30, %c0_31, %c0_32] : memref<2x2x2x32xf32, #tpu.memory_space<vmem>>, vector<1x1x2x32xf32>
    %39 = vector.shape_cast %38 : vector<1x1x2x32xf32> to vector<2x32xf32>
    %c0_33 = arith.constant 0 : index
    %c0_34 = arith.constant 0 : index
    %c0_35 = arith.constant 0 : index
    %c0_36 = arith.constant 0 : index
    %40 = vector.load %arg7[%c0_33, %c0_34, %c0_35, %c0_36] : memref<2x2x2x32xf32, #tpu.memory_space<vmem>>, vector<1x1x2x32xf32>
    %41 = vector.shape_cast %40 : vector<1x1x2x32xf32> to vector<2x32xf32>
    %c0_37 = arith.constant 0 : index
    %c1_38 = arith.constant 1 : index
    %c0_39 = arith.constant 0 : index
    %c0_40 = arith.constant 0 : index
    %42 = vector.load %arg7[%c0_37, %c1_38, %c0_39, %c0_40] : memref<2x2x2x32xf32, #tpu.memory_space<vmem>>, vector<1x1x2x32xf32>
    %43 = vector.shape_cast %42 : vector<1x1x2x32xf32> to vector<2x32xf32>
    %cst_41 = arith.constant dense<0.000000e+00> : vector<2x128xf32>
    %44 = tpu.matmul %37, %33, %cst_41 {dimension_numbers = #tpu.dot_dimension_numbers<[1], [0], [0], [1], [0, 0, 1, 1], [], []>, precision = #tpu.contract_precision<fp32>} : vector<2x32xf32>, vector<32x128xf32>, vector<2x128xf32> -> vector<2x128xf32>
    %45 = arith.addf %8, %44 : vector<2x128xf32>
    %46 = vector.extract_strided_slice %45 {offsets = [0, 0], sizes = [2, 32], strides = [1, 1]} : vector<2x128xf32> to vector<2x32xf32>
    %cst_42 = arith.constant 5.000000e-01 : f32
    %47 = vector.broadcast %cst_42 : f32 to vector<2x32xf32>
    %48 = arith.mulf %47, %46 : vector<2x32xf32>
    %49 = math.tanh %48 : vector<2x32xf32>
    %cst_43 = arith.constant 1.000000e+00 : f32
    %50 = vector.broadcast %cst_43 : f32 to vector<2x32xf32>
    %51 = arith.addf %49, %50 : vector<2x32xf32>
    %cst_44 = arith.constant 5.000000e-01 : f32
    %52 = vector.broadcast %cst_44 : f32 to vector<2x32xf32>
    %53 = arith.mulf %52, %51 : vector<2x32xf32>
    %54 = vector.extract_strided_slice %45 {offsets = [0, 32], sizes = [2, 32], strides = [1, 1]} : vector<2x128xf32> to vector<2x32xf32>
    %cst_45 = arith.constant 5.000000e-01 : f32
    %55 = vector.broadcast %cst_45 : f32 to vector<2x32xf32>
    %56 = arith.mulf %55, %54 : vector<2x32xf32>
    %57 = math.tanh %56 : vector<2x32xf32>
    %cst_46 = arith.constant 1.000000e+00 : f32
    %58 = vector.broadcast %cst_46 : f32 to vector<2x32xf32>
    %59 = arith.addf %57, %58 : vector<2x32xf32>
    %cst_47 = arith.constant 5.000000e-01 : f32
    %60 = vector.broadcast %cst_47 : f32 to vector<2x32xf32>
    %61 = arith.mulf %60, %59 : vector<2x32xf32>
    %62 = vector.extract_strided_slice %45 {offsets = [0, 64], sizes = [2, 32], strides = [1, 1]} : vector<2x128xf32> to vector<2x32xf32>
    %63 = math.tanh %62 : vector<2x32xf32>
    %64 = vector.extract_strided_slice %45 {offsets = [0, 96], sizes = [2, 32], strides = [1, 1]} : vector<2x128xf32> to vector<2x32xf32>
    %cst_48 = arith.constant 5.000000e-01 : f32
    %65 = vector.broadcast %cst_48 : f32 to vector<2x32xf32>
    %66 = arith.mulf %65, %64 : vector<2x32xf32>
    %67 = math.tanh %66 : vector<2x32xf32>
    %cst_49 = arith.constant 1.000000e+00 : f32
    %68 = vector.broadcast %cst_49 : f32 to vector<2x32xf32>
    %69 = arith.addf %67, %68 : vector<2x32xf32>
    %cst_50 = arith.constant 5.000000e-01 : f32
    %70 = vector.broadcast %cst_50 : f32 to vector<2x32xf32>
    %71 = arith.mulf %70, %69 : vector<2x32xf32>
    %72 = arith.mulf %61, %41 : vector<2x32xf32>
    %73 = arith.mulf %53, %63 : vector<2x32xf32>
    %74 = arith.addf %72, %73 : vector<2x32xf32>
    %75 = math.tanh %74 : vector<2x32xf32>
    %76 = arith.mulf %71, %75 : vector<2x32xf32>
    %cst_51 = arith.constant dense<0.000000e+00> : vector<2x128xf32>
    %77 = tpu.matmul %39, %35, %cst_51 {dimension_numbers = #tpu.dot_dimension_numbers<[1], [0], [0], [1], [0, 0, 1, 1], [], []>, precision = #tpu.contract_precision<fp32>} : vector<2x32xf32>, vector<32x128xf32>, vector<2x128xf32> -> vector<2x128xf32>
    %78 = arith.addf %31, %77 : vector<2x128xf32>
    %79 = vector.extract_strided_slice %78 {offsets = [0, 0], sizes = [2, 32], strides = [1, 1]} : vector<2x128xf32> to vector<2x32xf32>
    %cst_52 = arith.constant 5.000000e-01 : f32
    %80 = vector.broadcast %cst_52 : f32 to vector<2x32xf32>
    %81 = arith.mulf %80, %79 : vector<2x32xf32>
    %82 = math.tanh %81 : vector<2x32xf32>
    %cst_53 = arith.constant 1.000000e+00 : f32
    %83 = vector.broadcast %cst_53 : f32 to vector<2x32xf32>
    %84 = arith.addf %82, %83 : vector<2x32xf32>
    %cst_54 = arith.constant 5.000000e-01 : f32
    %85 = vector.broadcast %cst_54 : f32 to vector<2x32xf32>
    %86 = arith.mulf %85, %84 : vector<2x32xf32>
    %87 = vector.extract_strided_slice %78 {offsets = [0, 32], sizes = [2, 32], strides = [1, 1]} : vector<2x128xf32> to vector<2x32xf32>
    %cst_55 = arith.constant 5.000000e-01 : f32
    %88 = vector.broadcast %cst_55 : f32 to vector<2x32xf32>
    %89 = arith.mulf %88, %87 : vector<2x32xf32>
    %90 = math.tanh %89 : vector<2x32xf32>
    %cst_56 = arith.constant 1.000000e+00 : f32
    %91 = vector.broadcast %cst_56 : f32 to vector<2x32xf32>
    %92 = arith.addf %90, %91 : vector<2x32xf32>
    %cst_57 = arith.constant 5.000000e-01 : f32
    %93 = vector.broadcast %cst_57 : f32 to vector<2x32xf32>
    %94 = arith.mulf %93, %92 : vector<2x32xf32>
    %95 = vector.extract_strided_slice %78 {offsets = [0, 64], sizes = [2, 32], strides = [1, 1]} : vector<2x128xf32> to vector<2x32xf32>
    %96 = math.tanh %95 : vector<2x32xf32>
    %97 = vector.extract_strided_slice %78 {offsets = [0, 96], sizes = [2, 32], strides = [1, 1]} : vector<2x128xf32> to vector<2x32xf32>
    %cst_58 = arith.constant 5.000000e-01 : f32
    %98 = vector.broadcast %cst_58 : f32 to vector<2x32xf32>
    %99 = arith.mulf %98, %97 : vector<2x32xf32>
    %100 = math.tanh %99 : vector<2x32xf32>
    %cst_59 = arith.constant 1.000000e+00 : f32
    %101 = vector.broadcast %cst_59 : f32 to vector<2x32xf32>
    %102 = arith.addf %100, %101 : vector<2x32xf32>
    %cst_60 = arith.constant 5.000000e-01 : f32
    %103 = vector.broadcast %cst_60 : f32 to vector<2x32xf32>
    %104 = arith.mulf %103, %102 : vector<2x32xf32>
    %105 = arith.mulf %94, %43 : vector<2x32xf32>
    %106 = arith.mulf %86, %96 : vector<2x32xf32>
    %107 = arith.addf %105, %106 : vector<2x32xf32>
    %108 = math.tanh %107 : vector<2x32xf32>
    %109 = arith.mulf %104, %108 : vector<2x32xf32>
    %cst_61 = arith.constant dense<0.000000e+00> : vector<2x128xf32>
    %110 = tpu.matmul %76, %33, %cst_61 {dimension_numbers = #tpu.dot_dimension_numbers<[1], [0], [0], [1], [0, 0, 1, 1], [], []>, precision = #tpu.contract_precision<fp32>} : vector<2x32xf32>, vector<32x128xf32>, vector<2x128xf32> -> vector<2x128xf32>
    %111 = arith.addf %9, %110 : vector<2x128xf32>
    %112 = vector.extract_strided_slice %111 {offsets = [0, 0], sizes = [2, 32], strides = [1, 1]} : vector<2x128xf32> to vector<2x32xf32>
    %cst_62 = arith.constant 5.000000e-01 : f32
    %113 = vector.broadcast %cst_62 : f32 to vector<2x32xf32>
    %114 = arith.mulf %113, %112 : vector<2x32xf32>
    %115 = math.tanh %114 : vector<2x32xf32>
    %cst_63 = arith.constant 1.000000e+00 : f32
    %116 = vector.broadcast %cst_63 : f32 to vector<2x32xf32>
    %117 = arith.addf %115, %116 : vector<2x32xf32>
    %cst_64 = arith.constant 5.000000e-01 : f32
    %118 = vector.broadcast %cst_64 : f32 to vector<2x32xf32>
    %119 = arith.mulf %118, %117 : vector<2x32xf32>
    %120 = vector.extract_strided_slice %111 {offsets = [0, 32], sizes = [2, 32], strides = [1, 1]} : vector<2x128xf32> to vector<2x32xf32>
    %cst_65 = arith.constant 5.000000e-01 : f32
    %121 = vector.broadcast %cst_65 : f32 to vector<2x32xf32>
    %122 = arith.mulf %121, %120 : vector<2x32xf32>
    %123 = math.tanh %122 : vector<2x32xf32>
    %cst_66 = arith.constant 1.000000e+00 : f32
    %124 = vector.broadcast %cst_66 : f32 to vector<2x32xf32>
    %125 = arith.addf %123, %124 : vector<2x32xf32>
    %cst_67 = arith.constant 5.000000e-01 : f32
    %126 = vector.broadcast %cst_67 : f32 to vector<2x32xf32>
    %127 = arith.mulf %126, %125 : vector<2x32xf32>
    %128 = vector.extract_strided_slice %111 {offsets = [0, 64], sizes = [2, 32], strides = [1, 1]} : vector<2x128xf32> to vector<2x32xf32>
    %129 = math.tanh %128 : vector<2x32xf32>
    %130 = vector.extract_strided_slice %111 {offsets = [0, 96], sizes = [2, 32], strides = [1, 1]} : vector<2x128xf32> to vector<2x32xf32>
    %cst_68 = arith.constant 5.000000e-01 : f32
    %131 = vector.broadcast %cst_68 : f32 to vector<2x32xf32>
    %132 = arith.mulf %131, %130 : vector<2x32xf32>
    %133 = math.tanh %132 : vector<2x32xf32>
    %cst_69 = arith.constant 1.000000e+00 : f32
    %134 = vector.broadcast %cst_69 : f32 to vector<2x32xf32>
    %135 = arith.addf %133, %134 : vector<2x32xf32>
    %cst_70 = arith.constant 5.000000e-01 : f32
    %136 = vector.broadcast %cst_70 : f32 to vector<2x32xf32>
    %137 = arith.mulf %136, %135 : vector<2x32xf32>
    %138 = arith.mulf %127, %74 : vector<2x32xf32>
    %139 = arith.mulf %119, %129 : vector<2x32xf32>
    %140 = arith.addf %138, %139 : vector<2x32xf32>
    %141 = math.tanh %140 : vector<2x32xf32>
    %142 = arith.mulf %137, %141 : vector<2x32xf32>
    %cst_71 = arith.constant dense<0.000000e+00> : vector<2x128xf32>
    %143 = tpu.matmul %109, %35, %cst_71 {dimension_numbers = #tpu.dot_dimension_numbers<[1], [0], [0], [1], [0, 0, 1, 1], [], []>, precision = #tpu.contract_precision<fp32>} : vector<2x32xf32>, vector<32x128xf32>, vector<2x128xf32> -> vector<2x128xf32>
    %144 = arith.addf %30, %143 : vector<2x128xf32>
    %145 = vector.extract_strided_slice %144 {offsets = [0, 0], sizes = [2, 32], strides = [1, 1]} : vector<2x128xf32> to vector<2x32xf32>
    %cst_72 = arith.constant 5.000000e-01 : f32
    %146 = vector.broadcast %cst_72 : f32 to vector<2x32xf32>
    %147 = arith.mulf %146, %145 : vector<2x32xf32>
    %148 = math.tanh %147 : vector<2x32xf32>
    %cst_73 = arith.constant 1.000000e+00 : f32
    %149 = vector.broadcast %cst_73 : f32 to vector<2x32xf32>
    %150 = arith.addf %148, %149 : vector<2x32xf32>
    %cst_74 = arith.constant 5.000000e-01 : f32
    %151 = vector.broadcast %cst_74 : f32 to vector<2x32xf32>
    %152 = arith.mulf %151, %150 : vector<2x32xf32>
    %153 = vector.extract_strided_slice %144 {offsets = [0, 32], sizes = [2, 32], strides = [1, 1]} : vector<2x128xf32> to vector<2x32xf32>
    %cst_75 = arith.constant 5.000000e-01 : f32
    %154 = vector.broadcast %cst_75 : f32 to vector<2x32xf32>
    %155 = arith.mulf %154, %153 : vector<2x32xf32>
    %156 = math.tanh %155 : vector<2x32xf32>
    %cst_76 = arith.constant 1.000000e+00 : f32
    %157 = vector.broadcast %cst_76 : f32 to vector<2x32xf32>
    %158 = arith.addf %156, %157 : vector<2x32xf32>
    %cst_77 = arith.constant 5.000000e-01 : f32
    %159 = vector.broadcast %cst_77 : f32 to vector<2x32xf32>
    %160 = arith.mulf %159, %158 : vector<2x32xf32>
    %161 = vector.extract_strided_slice %144 {offsets = [0, 64], sizes = [2, 32], strides = [1, 1]} : vector<2x128xf32> to vector<2x32xf32>
    %162 = math.tanh %161 : vector<2x32xf32>
    %163 = vector.extract_strided_slice %144 {offsets = [0, 96], sizes = [2, 32], strides = [1, 1]} : vector<2x128xf32> to vector<2x32xf32>
    %cst_78 = arith.constant 5.000000e-01 : f32
    %164 = vector.broadcast %cst_78 : f32 to vector<2x32xf32>
    %165 = arith.mulf %164, %163 : vector<2x32xf32>
    %166 = math.tanh %165 : vector<2x32xf32>
    %cst_79 = arith.constant 1.000000e+00 : f32
    %167 = vector.broadcast %cst_79 : f32 to vector<2x32xf32>
    %168 = arith.addf %166, %167 : vector<2x32xf32>
    %cst_80 = arith.constant 5.000000e-01 : f32
    %169 = vector.broadcast %cst_80 : f32 to vector<2x32xf32>
    %170 = arith.mulf %169, %168 : vector<2x32xf32>
    %171 = arith.mulf %160, %107 : vector<2x32xf32>
    %172 = arith.mulf %152, %162 : vector<2x32xf32>
    %173 = arith.addf %171, %172 : vector<2x32xf32>
    %174 = math.tanh %173 : vector<2x32xf32>
    %175 = arith.mulf %170, %174 : vector<2x32xf32>
    %cst_81 = arith.constant dense<0.000000e+00> : vector<2x128xf32>
    %176 = tpu.matmul %142, %33, %cst_81 {dimension_numbers = #tpu.dot_dimension_numbers<[1], [0], [0], [1], [0, 0, 1, 1], [], []>, precision = #tpu.contract_precision<fp32>} : vector<2x32xf32>, vector<32x128xf32>, vector<2x128xf32> -> vector<2x128xf32>
    %177 = arith.addf %10, %176 : vector<2x128xf32>
    %178 = vector.extract_strided_slice %177 {offsets = [0, 0], sizes = [2, 32], strides = [1, 1]} : vector<2x128xf32> to vector<2x32xf32>
    %cst_82 = arith.constant 5.000000e-01 : f32
    %179 = vector.broadcast %cst_82 : f32 to vector<2x32xf32>
    %180 = arith.mulf %179, %178 : vector<2x32xf32>
    %181 = math.tanh %180 : vector<2x32xf32>
    %cst_83 = arith.constant 1.000000e+00 : f32
    %182 = vector.broadcast %cst_83 : f32 to vector<2x32xf32>
    %183 = arith.addf %181, %182 : vector<2x32xf32>
    %cst_84 = arith.constant 5.000000e-01 : f32
    %184 = vector.broadcast %cst_84 : f32 to vector<2x32xf32>
    %185 = arith.mulf %184, %183 : vector<2x32xf32>
    %186 = vector.extract_strided_slice %177 {offsets = [0, 32], sizes = [2, 32], strides = [1, 1]} : vector<2x128xf32> to vector<2x32xf32>
    %cst_85 = arith.constant 5.000000e-01 : f32
    %187 = vector.broadcast %cst_85 : f32 to vector<2x32xf32>
    %188 = arith.mulf %187, %186 : vector<2x32xf32>
    %189 = math.tanh %188 : vector<2x32xf32>
    %cst_86 = arith.constant 1.000000e+00 : f32
    %190 = vector.broadcast %cst_86 : f32 to vector<2x32xf32>
    %191 = arith.addf %189, %190 : vector<2x32xf32>
    %cst_87 = arith.constant 5.000000e-01 : f32
    %192 = vector.broadcast %cst_87 : f32 to vector<2x32xf32>
    %193 = arith.mulf %192, %191 : vector<2x32xf32>
    %194 = vector.extract_strided_slice %177 {offsets = [0, 64], sizes = [2, 32], strides = [1, 1]} : vector<2x128xf32> to vector<2x32xf32>
    %195 = math.tanh %194 : vector<2x32xf32>
    %196 = vector.extract_strided_slice %177 {offsets = [0, 96], sizes = [2, 32], strides = [1, 1]} : vector<2x128xf32> to vector<2x32xf32>
    %cst_88 = arith.constant 5.000000e-01 : f32
    %197 = vector.broadcast %cst_88 : f32 to vector<2x32xf32>
    %198 = arith.mulf %197, %196 : vector<2x32xf32>
    %199 = math.tanh %198 : vector<2x32xf32>
    %cst_89 = arith.constant 1.000000e+00 : f32
    %200 = vector.broadcast %cst_89 : f32 to vector<2x32xf32>
    %201 = arith.addf %199, %200 : vector<2x32xf32>
    %cst_90 = arith.constant 5.000000e-01 : f32
    %202 = vector.broadcast %cst_90 : f32 to vector<2x32xf32>
    %203 = arith.mulf %202, %201 : vector<2x32xf32>
    %204 = arith.mulf %193, %140 : vector<2x32xf32>
    %205 = arith.mulf %185, %195 : vector<2x32xf32>
    %206 = arith.addf %204, %205 : vector<2x32xf32>
    %207 = math.tanh %206 : vector<2x32xf32>
    %208 = arith.mulf %203, %207 : vector<2x32xf32>
    %cst_91 = arith.constant dense<0.000000e+00> : vector<2x128xf32>
    %209 = tpu.matmul %175, %35, %cst_91 {dimension_numbers = #tpu.dot_dimension_numbers<[1], [0], [0], [1], [0, 0, 1, 1], [], []>, precision = #tpu.contract_precision<fp32>} : vector<2x32xf32>, vector<32x128xf32>, vector<2x128xf32> -> vector<2x128xf32>
    %210 = arith.addf %29, %209 : vector<2x128xf32>
    %211 = vector.extract_strided_slice %210 {offsets = [0, 0], sizes = [2, 32], strides = [1, 1]} : vector<2x128xf32> to vector<2x32xf32>
    %cst_92 = arith.constant 5.000000e-01 : f32
    %212 = vector.broadcast %cst_92 : f32 to vector<2x32xf32>
    %213 = arith.mulf %212, %211 : vector<2x32xf32>
    %214 = math.tanh %213 : vector<2x32xf32>
    %cst_93 = arith.constant 1.000000e+00 : f32
    %215 = vector.broadcast %cst_93 : f32 to vector<2x32xf32>
    %216 = arith.addf %214, %215 : vector<2x32xf32>
    %cst_94 = arith.constant 5.000000e-01 : f32
    %217 = vector.broadcast %cst_94 : f32 to vector<2x32xf32>
    %218 = arith.mulf %217, %216 : vector<2x32xf32>
    %219 = vector.extract_strided_slice %210 {offsets = [0, 32], sizes = [2, 32], strides = [1, 1]} : vector<2x128xf32> to vector<2x32xf32>
    %cst_95 = arith.constant 5.000000e-01 : f32
    %220 = vector.broadcast %cst_95 : f32 to vector<2x32xf32>
    %221 = arith.mulf %220, %219 : vector<2x32xf32>
    %222 = math.tanh %221 : vector<2x32xf32>
    %cst_96 = arith.constant 1.000000e+00 : f32
    %223 = vector.broadcast %cst_96 : f32 to vector<2x32xf32>
    %224 = arith.addf %222, %223 : vector<2x32xf32>
    %cst_97 = arith.constant 5.000000e-01 : f32
    %225 = vector.broadcast %cst_97 : f32 to vector<2x32xf32>
    %226 = arith.mulf %225, %224 : vector<2x32xf32>
    %227 = vector.extract_strided_slice %210 {offsets = [0, 64], sizes = [2, 32], strides = [1, 1]} : vector<2x128xf32> to vector<2x32xf32>
    %228 = math.tanh %227 : vector<2x32xf32>
    %229 = vector.extract_strided_slice %210 {offsets = [0, 96], sizes = [2, 32], strides = [1, 1]} : vector<2x128xf32> to vector<2x32xf32>
    %cst_98 = arith.constant 5.000000e-01 : f32
    %230 = vector.broadcast %cst_98 : f32 to vector<2x32xf32>
    %231 = arith.mulf %230, %229 : vector<2x32xf32>
    %232 = math.tanh %231 : vector<2x32xf32>
    %cst_99 = arith.constant 1.000000e+00 : f32
    %233 = vector.broadcast %cst_99 : f32 to vector<2x32xf32>
    %234 = arith.addf %232, %233 : vector<2x32xf32>
    %cst_100 = arith.constant 5.000000e-01 : f32
    %235 = vector.broadcast %cst_100 : f32 to vector<2x32xf32>
    %236 = arith.mulf %235, %234 : vector<2x32xf32>
    %237 = arith.mulf %226, %173 : vector<2x32xf32>
    %238 = arith.mulf %218, %228 : vector<2x32xf32>
    %239 = arith.addf %237, %238 : vector<2x32xf32>
    %240 = math.tanh %239 : vector<2x32xf32>
    %241 = arith.mulf %236, %240 : vector<2x32xf32>
    %cst_101 = arith.constant dense<0.000000e+00> : vector<2x128xf32>
    %242 = tpu.matmul %208, %33, %cst_101 {dimension_numbers = #tpu.dot_dimension_numbers<[1], [0], [0], [1], [0, 0, 1, 1], [], []>, precision = #tpu.contract_precision<fp32>} : vector<2x32xf32>, vector<32x128xf32>, vector<2x128xf32> -> vector<2x128xf32>
    %243 = arith.addf %11, %242 : vector<2x128xf32>
    %244 = vector.extract_strided_slice %243 {offsets = [0, 0], sizes = [2, 32], strides = [1, 1]} : vector<2x128xf32> to vector<2x32xf32>
    %cst_102 = arith.constant 5.000000e-01 : f32
    %245 = vector.broadcast %cst_102 : f32 to vector<2x32xf32>
    %246 = arith.mulf %245, %244 : vector<2x32xf32>
    %247 = math.tanh %246 : vector<2x32xf32>
    %cst_103 = arith.constant 1.000000e+00 : f32
    %248 = vector.broadcast %cst_103 : f32 to vector<2x32xf32>
    %249 = arith.addf %247, %248 : vector<2x32xf32>
    %cst_104 = arith.constant 5.000000e-01 : f32
    %250 = vector.broadcast %cst_104 : f32 to vector<2x32xf32>
    %251 = arith.mulf %250, %249 : vector<2x32xf32>
    %252 = vector.extract_strided_slice %243 {offsets = [0, 32], sizes = [2, 32], strides = [1, 1]} : vector<2x128xf32> to vector<2x32xf32>
    %cst_105 = arith.constant 5.000000e-01 : f32
    %253 = vector.broadcast %cst_105 : f32 to vector<2x32xf32>
    %254 = arith.mulf %253, %252 : vector<2x32xf32>
    %255 = math.tanh %254 : vector<2x32xf32>
    %cst_106 = arith.constant 1.000000e+00 : f32
    %256 = vector.broadcast %cst_106 : f32 to vector<2x32xf32>
    %257 = arith.addf %255, %256 : vector<2x32xf32>
    %cst_107 = arith.constant 5.000000e-01 : f32
    %258 = vector.broadcast %cst_107 : f32 to vector<2x32xf32>
    %259 = arith.mulf %258, %257 : vector<2x32xf32>
    %260 = vector.extract_strided_slice %243 {offsets = [0, 64], sizes = [2, 32], strides = [1, 1]} : vector<2x128xf32> to vector<2x32xf32>
    %261 = math.tanh %260 : vector<2x32xf32>
    %262 = vector.extract_strided_slice %243 {offsets = [0, 96], sizes = [2, 32], strides = [1, 1]} : vector<2x128xf32> to vector<2x32xf32>
    %cst_108 = arith.constant 5.000000e-01 : f32
    %263 = vector.broadcast %cst_108 : f32 to vector<2x32xf32>
    %264 = arith.mulf %263, %262 : vector<2x32xf32>
    %265 = math.tanh %264 : vector<2x32xf32>
    %cst_109 = arith.constant 1.000000e+00 : f32
    %266 = vector.broadcast %cst_109 : f32 to vector<2x32xf32>
    %267 = arith.addf %265, %266 : vector<2x32xf32>
    %cst_110 = arith.constant 5.000000e-01 : f32
    %268 = vector.broadcast %cst_110 : f32 to vector<2x32xf32>
    %269 = arith.mulf %268, %267 : vector<2x32xf32>
    %270 = arith.mulf %259, %206 : vector<2x32xf32>
    %271 = arith.mulf %251, %261 : vector<2x32xf32>
    %272 = arith.addf %270, %271 : vector<2x32xf32>
    %273 = math.tanh %272 : vector<2x32xf32>
    %274 = arith.mulf %269, %273 : vector<2x32xf32>
    %cst_111 = arith.constant dense<0.000000e+00> : vector<2x128xf32>
    %275 = tpu.matmul %241, %35, %cst_111 {dimension_numbers = #tpu.dot_dimension_numbers<[1], [0], [0], [1], [0, 0, 1, 1], [], []>, precision = #tpu.contract_precision<fp32>} : vector<2x32xf32>, vector<32x128xf32>, vector<2x128xf32> -> vector<2x128xf32>
    %276 = arith.addf %28, %275 : vector<2x128xf32>
    %277 = vector.extract_strided_slice %276 {offsets = [0, 0], sizes = [2, 32], strides = [1, 1]} : vector<2x128xf32> to vector<2x32xf32>
    %cst_112 = arith.constant 5.000000e-01 : f32
    %278 = vector.broadcast %cst_112 : f32 to vector<2x32xf32>
    %279 = arith.mulf %278, %277 : vector<2x32xf32>
    %280 = math.tanh %279 : vector<2x32xf32>
    %cst_113 = arith.constant 1.000000e+00 : f32
    %281 = vector.broadcast %cst_113 : f32 to vector<2x32xf32>
    %282 = arith.addf %280, %281 : vector<2x32xf32>
    %cst_114 = arith.constant 5.000000e-01 : f32
    %283 = vector.broadcast %cst_114 : f32 to vector<2x32xf32>
    %284 = arith.mulf %283, %282 : vector<2x32xf32>
    %285 = vector.extract_strided_slice %276 {offsets = [0, 32], sizes = [2, 32], strides = [1, 1]} : vector<2x128xf32> to vector<2x32xf32>
    %cst_115 = arith.constant 5.000000e-01 : f32
    %286 = vector.broadcast %cst_115 : f32 to vector<2x32xf32>
    %287 = arith.mulf %286, %285 : vector<2x32xf32>
    %288 = math.tanh %287 : vector<2x32xf32>
    %cst_116 = arith.constant 1.000000e+00 : f32
    %289 = vector.broadcast %cst_116 : f32 to vector<2x32xf32>
    %290 = arith.addf %288, %289 : vector<2x32xf32>
    %cst_117 = arith.constant 5.000000e-01 : f32
    %291 = vector.broadcast %cst_117 : f32 to vector<2x32xf32>
    %292 = arith.mulf %291, %290 : vector<2x32xf32>
    %293 = vector.extract_strided_slice %276 {offsets = [0, 64], sizes = [2, 32], strides = [1, 1]} : vector<2x128xf32> to vector<2x32xf32>
    %294 = math.tanh %293 : vector<2x32xf32>
    %295 = vector.extract_strided_slice %276 {offsets = [0, 96], sizes = [2, 32], strides = [1, 1]} : vector<2x128xf32> to vector<2x32xf32>
    %cst_118 = arith.constant 5.000000e-01 : f32
    %296 = vector.broadcast %cst_118 : f32 to vector<2x32xf32>
    %297 = arith.mulf %296, %295 : vector<2x32xf32>
    %298 = math.tanh %297 : vector<2x32xf32>
    %cst_119 = arith.constant 1.000000e+00 : f32
    %299 = vector.broadcast %cst_119 : f32 to vector<2x32xf32>
    %300 = arith.addf %298, %299 : vector<2x32xf32>
    %cst_120 = arith.constant 5.000000e-01 : f32
    %301 = vector.broadcast %cst_120 : f32 to vector<2x32xf32>
    %302 = arith.mulf %301, %300 : vector<2x32xf32>
    %303 = arith.mulf %292, %239 : vector<2x32xf32>
    %304 = arith.mulf %284, %294 : vector<2x32xf32>
    %305 = arith.addf %303, %304 : vector<2x32xf32>
    %306 = math.tanh %305 : vector<2x32xf32>
    %307 = arith.mulf %302, %306 : vector<2x32xf32>
    %cst_121 = arith.constant dense<0.000000e+00> : vector<2x128xf32>
    %308 = tpu.matmul %274, %33, %cst_121 {dimension_numbers = #tpu.dot_dimension_numbers<[1], [0], [0], [1], [0, 0, 1, 1], [], []>, precision = #tpu.contract_precision<fp32>} : vector<2x32xf32>, vector<32x128xf32>, vector<2x128xf32> -> vector<2x128xf32>
    %309 = arith.addf %12, %308 : vector<2x128xf32>
    %310 = vector.extract_strided_slice %309 {offsets = [0, 0], sizes = [2, 32], strides = [1, 1]} : vector<2x128xf32> to vector<2x32xf32>
    %cst_122 = arith.constant 5.000000e-01 : f32
    %311 = vector.broadcast %cst_122 : f32 to vector<2x32xf32>
    %312 = arith.mulf %311, %310 : vector<2x32xf32>
    %313 = math.tanh %312 : vector<2x32xf32>
    %cst_123 = arith.constant 1.000000e+00 : f32
    %314 = vector.broadcast %cst_123 : f32 to vector<2x32xf32>
    %315 = arith.addf %313, %314 : vector<2x32xf32>
    %cst_124 = arith.constant 5.000000e-01 : f32
    %316 = vector.broadcast %cst_124 : f32 to vector<2x32xf32>
    %317 = arith.mulf %316, %315 : vector<2x32xf32>
    %318 = vector.extract_strided_slice %309 {offsets = [0, 32], sizes = [2, 32], strides = [1, 1]} : vector<2x128xf32> to vector<2x32xf32>
    %cst_125 = arith.constant 5.000000e-01 : f32
    %319 = vector.broadcast %cst_125 : f32 to vector<2x32xf32>
    %320 = arith.mulf %319, %318 : vector<2x32xf32>
    %321 = math.tanh %320 : vector<2x32xf32>
    %cst_126 = arith.constant 1.000000e+00 : f32
    %322 = vector.broadcast %cst_126 : f32 to vector<2x32xf32>
    %323 = arith.addf %321, %322 : vector<2x32xf32>
    %cst_127 = arith.constant 5.000000e-01 : f32
    %324 = vector.broadcast %cst_127 : f32 to vector<2x32xf32>
    %325 = arith.mulf %324, %323 : vector<2x32xf32>
    %326 = vector.extract_strided_slice %309 {offsets = [0, 64], sizes = [2, 32], strides = [1, 1]} : vector<2x128xf32> to vector<2x32xf32>
    %327 = math.tanh %326 : vector<2x32xf32>
    %328 = vector.extract_strided_slice %309 {offsets = [0, 96], sizes = [2, 32], strides = [1, 1]} : vector<2x128xf32> to vector<2x32xf32>
    %cst_128 = arith.constant 5.000000e-01 : f32
    %329 = vector.broadcast %cst_128 : f32 to vector<2x32xf32>
    %330 = arith.mulf %329, %328 : vector<2x32xf32>
    %331 = math.tanh %330 : vector<2x32xf32>
    %cst_129 = arith.constant 1.000000e+00 : f32
    %332 = vector.broadcast %cst_129 : f32 to vector<2x32xf32>
    %333 = arith.addf %331, %332 : vector<2x32xf32>
    %cst_130 = arith.constant 5.000000e-01 : f32
    %334 = vector.broadcast %cst_130 : f32 to vector<2x32xf32>
    %335 = arith.mulf %334, %333 : vector<2x32xf32>
    %336 = arith.mulf %325, %272 : vector<2x32xf32>
    %337 = arith.mulf %317, %327 : vector<2x32xf32>
    %338 = arith.addf %336, %337 : vector<2x32xf32>
    %339 = math.tanh %338 : vector<2x32xf32>
    %340 = arith.mulf %335, %339 : vector<2x32xf32>
    %cst_131 = arith.constant dense<0.000000e+00> : vector<2x128xf32>
    %341 = tpu.matmul %307, %35, %cst_131 {dimension_numbers = #tpu.dot_dimension_numbers<[1], [0], [0], [1], [0, 0, 1, 1], [], []>, precision = #tpu.contract_precision<fp32>} : vector<2x32xf32>, vector<32x128xf32>, vector<2x128xf32> -> vector<2x128xf32>
    %342 = arith.addf %27, %341 : vector<2x128xf32>
    %343 = vector.extract_strided_slice %342 {offsets = [0, 0], sizes = [2, 32], strides = [1, 1]} : vector<2x128xf32> to vector<2x32xf32>
    %cst_132 = arith.constant 5.000000e-01 : f32
    %344 = vector.broadcast %cst_132 : f32 to vector<2x32xf32>
    %345 = arith.mulf %344, %343 : vector<2x32xf32>
    %346 = math.tanh %345 : vector<2x32xf32>
    %cst_133 = arith.constant 1.000000e+00 : f32
    %347 = vector.broadcast %cst_133 : f32 to vector<2x32xf32>
    %348 = arith.addf %346, %347 : vector<2x32xf32>
    %cst_134 = arith.constant 5.000000e-01 : f32
    %349 = vector.broadcast %cst_134 : f32 to vector<2x32xf32>
    %350 = arith.mulf %349, %348 : vector<2x32xf32>
    %351 = vector.extract_strided_slice %342 {offsets = [0, 32], sizes = [2, 32], strides = [1, 1]} : vector<2x128xf32> to vector<2x32xf32>
    %cst_135 = arith.constant 5.000000e-01 : f32
    %352 = vector.broadcast %cst_135 : f32 to vector<2x32xf32>
    %353 = arith.mulf %352, %351 : vector<2x32xf32>
    %354 = math.tanh %353 : vector<2x32xf32>
    %cst_136 = arith.constant 1.000000e+00 : f32
    %355 = vector.broadcast %cst_136 : f32 to vector<2x32xf32>
    %356 = arith.addf %354, %355 : vector<2x32xf32>
    %cst_137 = arith.constant 5.000000e-01 : f32
    %357 = vector.broadcast %cst_137 : f32 to vector<2x32xf32>
    %358 = arith.mulf %357, %356 : vector<2x32xf32>
    %359 = vector.extract_strided_slice %342 {offsets = [0, 64], sizes = [2, 32], strides = [1, 1]} : vector<2x128xf32> to vector<2x32xf32>
    %360 = math.tanh %359 : vector<2x32xf32>
    %361 = vector.extract_strided_slice %342 {offsets = [0, 96], sizes = [2, 32], strides = [1, 1]} : vector<2x128xf32> to vector<2x32xf32>
    %cst_138 = arith.constant 5.000000e-01 : f32
    %362 = vector.broadcast %cst_138 : f32 to vector<2x32xf32>
    %363 = arith.mulf %362, %361 : vector<2x32xf32>
    %364 = math.tanh %363 : vector<2x32xf32>
    %cst_139 = arith.constant 1.000000e+00 : f32
    %365 = vector.broadcast %cst_139 : f32 to vector<2x32xf32>
    %366 = arith.addf %364, %365 : vector<2x32xf32>
    %cst_140 = arith.constant 5.000000e-01 : f32
    %367 = vector.broadcast %cst_140 : f32 to vector<2x32xf32>
    %368 = arith.mulf %367, %366 : vector<2x32xf32>
    %369 = arith.mulf %358, %305 : vector<2x32xf32>
    %370 = arith.mulf %350, %360 : vector<2x32xf32>
    %371 = arith.addf %369, %370 : vector<2x32xf32>
    %372 = math.tanh %371 : vector<2x32xf32>
    %373 = arith.mulf %368, %372 : vector<2x32xf32>
    %cst_141 = arith.constant dense<0.000000e+00> : vector<2x128xf32>
    %374 = tpu.matmul %340, %33, %cst_141 {dimension_numbers = #tpu.dot_dimension_numbers<[1], [0], [0], [1], [0, 0, 1, 1], [], []>, precision = #tpu.contract_precision<fp32>} : vector<2x32xf32>, vector<32x128xf32>, vector<2x128xf32> -> vector<2x128xf32>
    %375 = arith.addf %13, %374 : vector<2x128xf32>
    %376 = vector.extract_strided_slice %375 {offsets = [0, 0], sizes = [2, 32], strides = [1, 1]} : vector<2x128xf32> to vector<2x32xf32>
    %cst_142 = arith.constant 5.000000e-01 : f32
    %377 = vector.broadcast %cst_142 : f32 to vector<2x32xf32>
    %378 = arith.mulf %377, %376 : vector<2x32xf32>
    %379 = math.tanh %378 : vector<2x32xf32>
    %cst_143 = arith.constant 1.000000e+00 : f32
    %380 = vector.broadcast %cst_143 : f32 to vector<2x32xf32>
    %381 = arith.addf %379, %380 : vector<2x32xf32>
    %cst_144 = arith.constant 5.000000e-01 : f32
    %382 = vector.broadcast %cst_144 : f32 to vector<2x32xf32>
    %383 = arith.mulf %382, %381 : vector<2x32xf32>
    %384 = vector.extract_strided_slice %375 {offsets = [0, 32], sizes = [2, 32], strides = [1, 1]} : vector<2x128xf32> to vector<2x32xf32>
    %cst_145 = arith.constant 5.000000e-01 : f32
    %385 = vector.broadcast %cst_145 : f32 to vector<2x32xf32>
    %386 = arith.mulf %385, %384 : vector<2x32xf32>
    %387 = math.tanh %386 : vector<2x32xf32>
    %cst_146 = arith.constant 1.000000e+00 : f32
    %388 = vector.broadcast %cst_146 : f32 to vector<2x32xf32>
    %389 = arith.addf %387, %388 : vector<2x32xf32>
    %cst_147 = arith.constant 5.000000e-01 : f32
    %390 = vector.broadcast %cst_147 : f32 to vector<2x32xf32>
    %391 = arith.mulf %390, %389 : vector<2x32xf32>
    %392 = vector.extract_strided_slice %375 {offsets = [0, 64], sizes = [2, 32], strides = [1, 1]} : vector<2x128xf32> to vector<2x32xf32>
    %393 = math.tanh %392 : vector<2x32xf32>
    %394 = vector.extract_strided_slice %375 {offsets = [0, 96], sizes = [2, 32], strides = [1, 1]} : vector<2x128xf32> to vector<2x32xf32>
    %cst_148 = arith.constant 5.000000e-01 : f32
    %395 = vector.broadcast %cst_148 : f32 to vector<2x32xf32>
    %396 = arith.mulf %395, %394 : vector<2x32xf32>
    %397 = math.tanh %396 : vector<2x32xf32>
    %cst_149 = arith.constant 1.000000e+00 : f32
    %398 = vector.broadcast %cst_149 : f32 to vector<2x32xf32>
    %399 = arith.addf %397, %398 : vector<2x32xf32>
    %cst_150 = arith.constant 5.000000e-01 : f32
    %400 = vector.broadcast %cst_150 : f32 to vector<2x32xf32>
    %401 = arith.mulf %400, %399 : vector<2x32xf32>
    %402 = arith.mulf %391, %338 : vector<2x32xf32>
    %403 = arith.mulf %383, %393 : vector<2x32xf32>
    %404 = arith.addf %402, %403 : vector<2x32xf32>
    %405 = math.tanh %404 : vector<2x32xf32>
    %406 = arith.mulf %401, %405 : vector<2x32xf32>
    %cst_151 = arith.constant dense<0.000000e+00> : vector<2x128xf32>
    %407 = tpu.matmul %373, %35, %cst_151 {dimension_numbers = #tpu.dot_dimension_numbers<[1], [0], [0], [1], [0, 0, 1, 1], [], []>, precision = #tpu.contract_precision<fp32>} : vector<2x32xf32>, vector<32x128xf32>, vector<2x128xf32> -> vector<2x128xf32>
    %408 = arith.addf %26, %407 : vector<2x128xf32>
    %409 = vector.extract_strided_slice %408 {offsets = [0, 0], sizes = [2, 32], strides = [1, 1]} : vector<2x128xf32> to vector<2x32xf32>
    %cst_152 = arith.constant 5.000000e-01 : f32
    %410 = vector.broadcast %cst_152 : f32 to vector<2x32xf32>
    %411 = arith.mulf %410, %409 : vector<2x32xf32>
    %412 = math.tanh %411 : vector<2x32xf32>
    %cst_153 = arith.constant 1.000000e+00 : f32
    %413 = vector.broadcast %cst_153 : f32 to vector<2x32xf32>
    %414 = arith.addf %412, %413 : vector<2x32xf32>
    %cst_154 = arith.constant 5.000000e-01 : f32
    %415 = vector.broadcast %cst_154 : f32 to vector<2x32xf32>
    %416 = arith.mulf %415, %414 : vector<2x32xf32>
    %417 = vector.extract_strided_slice %408 {offsets = [0, 32], sizes = [2, 32], strides = [1, 1]} : vector<2x128xf32> to vector<2x32xf32>
    %cst_155 = arith.constant 5.000000e-01 : f32
    %418 = vector.broadcast %cst_155 : f32 to vector<2x32xf32>
    %419 = arith.mulf %418, %417 : vector<2x32xf32>
    %420 = math.tanh %419 : vector<2x32xf32>
    %cst_156 = arith.constant 1.000000e+00 : f32
    %421 = vector.broadcast %cst_156 : f32 to vector<2x32xf32>
    %422 = arith.addf %420, %421 : vector<2x32xf32>
    %cst_157 = arith.constant 5.000000e-01 : f32
    %423 = vector.broadcast %cst_157 : f32 to vector<2x32xf32>
    %424 = arith.mulf %423, %422 : vector<2x32xf32>
    %425 = vector.extract_strided_slice %408 {offsets = [0, 64], sizes = [2, 32], strides = [1, 1]} : vector<2x128xf32> to vector<2x32xf32>
    %426 = math.tanh %425 : vector<2x32xf32>
    %427 = vector.extract_strided_slice %408 {offsets = [0, 96], sizes = [2, 32], strides = [1, 1]} : vector<2x128xf32> to vector<2x32xf32>
    %cst_158 = arith.constant 5.000000e-01 : f32
    %428 = vector.broadcast %cst_158 : f32 to vector<2x32xf32>
    %429 = arith.mulf %428, %427 : vector<2x32xf32>
    %430 = math.tanh %429 : vector<2x32xf32>
    %cst_159 = arith.constant 1.000000e+00 : f32
    %431 = vector.broadcast %cst_159 : f32 to vector<2x32xf32>
    %432 = arith.addf %430, %431 : vector<2x32xf32>
    %cst_160 = arith.constant 5.000000e-01 : f32
    %433 = vector.broadcast %cst_160 : f32 to vector<2x32xf32>
    %434 = arith.mulf %433, %432 : vector<2x32xf32>
    %435 = arith.mulf %424, %371 : vector<2x32xf32>
    %436 = arith.mulf %416, %426 : vector<2x32xf32>
    %437 = arith.addf %435, %436 : vector<2x32xf32>
    %438 = math.tanh %437 : vector<2x32xf32>
    %439 = arith.mulf %434, %438 : vector<2x32xf32>
    %cst_161 = arith.constant dense<0.000000e+00> : vector<2x128xf32>
    %440 = tpu.matmul %406, %33, %cst_161 {dimension_numbers = #tpu.dot_dimension_numbers<[1], [0], [0], [1], [0, 0, 1, 1], [], []>, precision = #tpu.contract_precision<fp32>} : vector<2x32xf32>, vector<32x128xf32>, vector<2x128xf32> -> vector<2x128xf32>
    %441 = arith.addf %14, %440 : vector<2x128xf32>
    %442 = vector.extract_strided_slice %441 {offsets = [0, 0], sizes = [2, 32], strides = [1, 1]} : vector<2x128xf32> to vector<2x32xf32>
    %cst_162 = arith.constant 5.000000e-01 : f32
    %443 = vector.broadcast %cst_162 : f32 to vector<2x32xf32>
    %444 = arith.mulf %443, %442 : vector<2x32xf32>
    %445 = math.tanh %444 : vector<2x32xf32>
    %cst_163 = arith.constant 1.000000e+00 : f32
    %446 = vector.broadcast %cst_163 : f32 to vector<2x32xf32>
    %447 = arith.addf %445, %446 : vector<2x32xf32>
    %cst_164 = arith.constant 5.000000e-01 : f32
    %448 = vector.broadcast %cst_164 : f32 to vector<2x32xf32>
    %449 = arith.mulf %448, %447 : vector<2x32xf32>
    %450 = vector.extract_strided_slice %441 {offsets = [0, 32], sizes = [2, 32], strides = [1, 1]} : vector<2x128xf32> to vector<2x32xf32>
    %cst_165 = arith.constant 5.000000e-01 : f32
    %451 = vector.broadcast %cst_165 : f32 to vector<2x32xf32>
    %452 = arith.mulf %451, %450 : vector<2x32xf32>
    %453 = math.tanh %452 : vector<2x32xf32>
    %cst_166 = arith.constant 1.000000e+00 : f32
    %454 = vector.broadcast %cst_166 : f32 to vector<2x32xf32>
    %455 = arith.addf %453, %454 : vector<2x32xf32>
    %cst_167 = arith.constant 5.000000e-01 : f32
    %456 = vector.broadcast %cst_167 : f32 to vector<2x32xf32>
    %457 = arith.mulf %456, %455 : vector<2x32xf32>
    %458 = vector.extract_strided_slice %441 {offsets = [0, 64], sizes = [2, 32], strides = [1, 1]} : vector<2x128xf32> to vector<2x32xf32>
    %459 = math.tanh %458 : vector<2x32xf32>
    %460 = vector.extract_strided_slice %441 {offsets = [0, 96], sizes = [2, 32], strides = [1, 1]} : vector<2x128xf32> to vector<2x32xf32>
    %cst_168 = arith.constant 5.000000e-01 : f32
    %461 = vector.broadcast %cst_168 : f32 to vector<2x32xf32>
    %462 = arith.mulf %461, %460 : vector<2x32xf32>
    %463 = math.tanh %462 : vector<2x32xf32>
    %cst_169 = arith.constant 1.000000e+00 : f32
    %464 = vector.broadcast %cst_169 : f32 to vector<2x32xf32>
    %465 = arith.addf %463, %464 : vector<2x32xf32>
    %cst_170 = arith.constant 5.000000e-01 : f32
    %466 = vector.broadcast %cst_170 : f32 to vector<2x32xf32>
    %467 = arith.mulf %466, %465 : vector<2x32xf32>
    %468 = arith.mulf %457, %404 : vector<2x32xf32>
    %469 = arith.mulf %449, %459 : vector<2x32xf32>
    %470 = arith.addf %468, %469 : vector<2x32xf32>
    %471 = math.tanh %470 : vector<2x32xf32>
    %472 = arith.mulf %467, %471 : vector<2x32xf32>
    %cst_171 = arith.constant dense<0.000000e+00> : vector<2x128xf32>
    %473 = tpu.matmul %439, %35, %cst_171 {dimension_numbers = #tpu.dot_dimension_numbers<[1], [0], [0], [1], [0, 0, 1, 1], [], []>, precision = #tpu.contract_precision<fp32>} : vector<2x32xf32>, vector<32x128xf32>, vector<2x128xf32> -> vector<2x128xf32>
    %474 = arith.addf %25, %473 : vector<2x128xf32>
    %475 = vector.extract_strided_slice %474 {offsets = [0, 0], sizes = [2, 32], strides = [1, 1]} : vector<2x128xf32> to vector<2x32xf32>
    %cst_172 = arith.constant 5.000000e-01 : f32
    %476 = vector.broadcast %cst_172 : f32 to vector<2x32xf32>
    %477 = arith.mulf %476, %475 : vector<2x32xf32>
    %478 = math.tanh %477 : vector<2x32xf32>
    %cst_173 = arith.constant 1.000000e+00 : f32
    %479 = vector.broadcast %cst_173 : f32 to vector<2x32xf32>
    %480 = arith.addf %478, %479 : vector<2x32xf32>
    %cst_174 = arith.constant 5.000000e-01 : f32
    %481 = vector.broadcast %cst_174 : f32 to vector<2x32xf32>
    %482 = arith.mulf %481, %480 : vector<2x32xf32>
    %483 = vector.extract_strided_slice %474 {offsets = [0, 32], sizes = [2, 32], strides = [1, 1]} : vector<2x128xf32> to vector<2x32xf32>
    %cst_175 = arith.constant 5.000000e-01 : f32
    %484 = vector.broadcast %cst_175 : f32 to vector<2x32xf32>
    %485 = arith.mulf %484, %483 : vector<2x32xf32>
    %486 = math.tanh %485 : vector<2x32xf32>
    %cst_176 = arith.constant 1.000000e+00 : f32
    %487 = vector.broadcast %cst_176 : f32 to vector<2x32xf32>
    %488 = arith.addf %486, %487 : vector<2x32xf32>
    %cst_177 = arith.constant 5.000000e-01 : f32
    %489 = vector.broadcast %cst_177 : f32 to vector<2x32xf32>
    %490 = arith.mulf %489, %488 : vector<2x32xf32>
    %491 = vector.extract_strided_slice %474 {offsets = [0, 64], sizes = [2, 32], strides = [1, 1]} : vector<2x128xf32> to vector<2x32xf32>
    %492 = math.tanh %491 : vector<2x32xf32>
    %493 = vector.extract_strided_slice %474 {offsets = [0, 96], sizes = [2, 32], strides = [1, 1]} : vector<2x128xf32> to vector<2x32xf32>
    %cst_178 = arith.constant 5.000000e-01 : f32
    %494 = vector.broadcast %cst_178 : f32 to vector<2x32xf32>
    %495 = arith.mulf %494, %493 : vector<2x32xf32>
    %496 = math.tanh %495 : vector<2x32xf32>
    %cst_179 = arith.constant 1.000000e+00 : f32
    %497 = vector.broadcast %cst_179 : f32 to vector<2x32xf32>
    %498 = arith.addf %496, %497 : vector<2x32xf32>
    %cst_180 = arith.constant 5.000000e-01 : f32
    %499 = vector.broadcast %cst_180 : f32 to vector<2x32xf32>
    %500 = arith.mulf %499, %498 : vector<2x32xf32>
    %501 = arith.mulf %490, %437 : vector<2x32xf32>
    %502 = arith.mulf %482, %492 : vector<2x32xf32>
    %503 = arith.addf %501, %502 : vector<2x32xf32>
    %504 = math.tanh %503 : vector<2x32xf32>
    %505 = arith.mulf %500, %504 : vector<2x32xf32>
    %cst_181 = arith.constant dense<0.000000e+00> : vector<2x128xf32>
    %506 = tpu.matmul %472, %33, %cst_181 {dimension_numbers = #tpu.dot_dimension_numbers<[1], [0], [0], [1], [0, 0, 1, 1], [], []>, precision = #tpu.contract_precision<fp32>} : vector<2x32xf32>, vector<32x128xf32>, vector<2x128xf32> -> vector<2x128xf32>
    %507 = arith.addf %15, %506 : vector<2x128xf32>
    %508 = vector.extract_strided_slice %507 {offsets = [0, 0], sizes = [2, 32], strides = [1, 1]} : vector<2x128xf32> to vector<2x32xf32>
    %cst_182 = arith.constant 5.000000e-01 : f32
    %509 = vector.broadcast %cst_182 : f32 to vector<2x32xf32>
    %510 = arith.mulf %509, %508 : vector<2x32xf32>
    %511 = math.tanh %510 : vector<2x32xf32>
    %cst_183 = arith.constant 1.000000e+00 : f32
    %512 = vector.broadcast %cst_183 : f32 to vector<2x32xf32>
    %513 = arith.addf %511, %512 : vector<2x32xf32>
    %cst_184 = arith.constant 5.000000e-01 : f32
    %514 = vector.broadcast %cst_184 : f32 to vector<2x32xf32>
    %515 = arith.mulf %514, %513 : vector<2x32xf32>
    %516 = vector.extract_strided_slice %507 {offsets = [0, 32], sizes = [2, 32], strides = [1, 1]} : vector<2x128xf32> to vector<2x32xf32>
    %cst_185 = arith.constant 5.000000e-01 : f32
    %517 = vector.broadcast %cst_185 : f32 to vector<2x32xf32>
    %518 = arith.mulf %517, %516 : vector<2x32xf32>
    %519 = math.tanh %518 : vector<2x32xf32>
    %cst_186 = arith.constant 1.000000e+00 : f32
    %520 = vector.broadcast %cst_186 : f32 to vector<2x32xf32>
    %521 = arith.addf %519, %520 : vector<2x32xf32>
    %cst_187 = arith.constant 5.000000e-01 : f32
    %522 = vector.broadcast %cst_187 : f32 to vector<2x32xf32>
    %523 = arith.mulf %522, %521 : vector<2x32xf32>
    %524 = vector.extract_strided_slice %507 {offsets = [0, 64], sizes = [2, 32], strides = [1, 1]} : vector<2x128xf32> to vector<2x32xf32>
    %525 = math.tanh %524 : vector<2x32xf32>
    %526 = vector.extract_strided_slice %507 {offsets = [0, 96], sizes = [2, 32], strides = [1, 1]} : vector<2x128xf32> to vector<2x32xf32>
    %cst_188 = arith.constant 5.000000e-01 : f32
    %527 = vector.broadcast %cst_188 : f32 to vector<2x32xf32>
    %528 = arith.mulf %527, %526 : vector<2x32xf32>
    %529 = math.tanh %528 : vector<2x32xf32>
    %cst_189 = arith.constant 1.000000e+00 : f32
    %530 = vector.broadcast %cst_189 : f32 to vector<2x32xf32>
    %531 = arith.addf %529, %530 : vector<2x32xf32>
    %cst_190 = arith.constant 5.000000e-01 : f32
    %532 = vector.broadcast %cst_190 : f32 to vector<2x32xf32>
    %533 = arith.mulf %532, %531 : vector<2x32xf32>
    %534 = arith.mulf %523, %470 : vector<2x32xf32>
    %535 = arith.mulf %515, %525 : vector<2x32xf32>
    %536 = arith.addf %534, %535 : vector<2x32xf32>
    %537 = math.tanh %536 : vector<2x32xf32>
    %538 = arith.mulf %533, %537 : vector<2x32xf32>
    %cst_191 = arith.constant dense<0.000000e+00> : vector<2x128xf32>
    %539 = tpu.matmul %505, %35, %cst_191 {dimension_numbers = #tpu.dot_dimension_numbers<[1], [0], [0], [1], [0, 0, 1, 1], [], []>, precision = #tpu.contract_precision<fp32>} : vector<2x32xf32>, vector<32x128xf32>, vector<2x128xf32> -> vector<2x128xf32>
    %540 = arith.addf %24, %539 : vector<2x128xf32>
    %541 = vector.extract_strided_slice %540 {offsets = [0, 0], sizes = [2, 32], strides = [1, 1]} : vector<2x128xf32> to vector<2x32xf32>
    %cst_192 = arith.constant 5.000000e-01 : f32
    %542 = vector.broadcast %cst_192 : f32 to vector<2x32xf32>
    %543 = arith.mulf %542, %541 : vector<2x32xf32>
    %544 = math.tanh %543 : vector<2x32xf32>
    %cst_193 = arith.constant 1.000000e+00 : f32
    %545 = vector.broadcast %cst_193 : f32 to vector<2x32xf32>
    %546 = arith.addf %544, %545 : vector<2x32xf32>
    %cst_194 = arith.constant 5.000000e-01 : f32
    %547 = vector.broadcast %cst_194 : f32 to vector<2x32xf32>
    %548 = arith.mulf %547, %546 : vector<2x32xf32>
    %549 = vector.extract_strided_slice %540 {offsets = [0, 32], sizes = [2, 32], strides = [1, 1]} : vector<2x128xf32> to vector<2x32xf32>
    %cst_195 = arith.constant 5.000000e-01 : f32
    %550 = vector.broadcast %cst_195 : f32 to vector<2x32xf32>
    %551 = arith.mulf %550, %549 : vector<2x32xf32>
    %552 = math.tanh %551 : vector<2x32xf32>
    %cst_196 = arith.constant 1.000000e+00 : f32
    %553 = vector.broadcast %cst_196 : f32 to vector<2x32xf32>
    %554 = arith.addf %552, %553 : vector<2x32xf32>
    %cst_197 = arith.constant 5.000000e-01 : f32
    %555 = vector.broadcast %cst_197 : f32 to vector<2x32xf32>
    %556 = arith.mulf %555, %554 : vector<2x32xf32>
    %557 = vector.extract_strided_slice %540 {offsets = [0, 64], sizes = [2, 32], strides = [1, 1]} : vector<2x128xf32> to vector<2x32xf32>
    %558 = math.tanh %557 : vector<2x32xf32>
    %559 = vector.extract_strided_slice %540 {offsets = [0, 96], sizes = [2, 32], strides = [1, 1]} : vector<2x128xf32> to vector<2x32xf32>
    %cst_198 = arith.constant 5.000000e-01 : f32
    %560 = vector.broadcast %cst_198 : f32 to vector<2x32xf32>
    %561 = arith.mulf %560, %559 : vector<2x32xf32>
    %562 = math.tanh %561 : vector<2x32xf32>
    %cst_199 = arith.constant 1.000000e+00 : f32
    %563 = vector.broadcast %cst_199 : f32 to vector<2x32xf32>
    %564 = arith.addf %562, %563 : vector<2x32xf32>
    %cst_200 = arith.constant 5.000000e-01 : f32
    %565 = vector.broadcast %cst_200 : f32 to vector<2x32xf32>
    %566 = arith.mulf %565, %564 : vector<2x32xf32>
    %567 = arith.mulf %556, %503 : vector<2x32xf32>
    %568 = arith.mulf %548, %558 : vector<2x32xf32>
    %569 = arith.addf %567, %568 : vector<2x32xf32>
    %570 = math.tanh %569 : vector<2x32xf32>
    %571 = arith.mulf %566, %570 : vector<2x32xf32>
    %c0_201 = arith.constant 0 : index
    %c0_202 = arith.constant 0 : index
    %c0_203 = arith.constant 0 : index
    %c0_204 = arith.constant 0 : index
    %572 = vector.load %arg9[%c0_201, %c0_202, %c0_203, %c0_204] : memref<2x2x2x32xf32, #tpu.memory_space<vmem>>, vector<1x1x2x32xf32>
    %573 = vector.shape_cast %572 : vector<1x1x2x32xf32> to vector<2x32xf32>
    %574 = vector.shape_cast %538 : vector<2x32xf32> to vector<1x1x2x32xf32>
    tpu.vector_store %arg9[%c0_201, %c0_202, %c0_203, %c0_204], %574 {strides = array<i32>} : memref<2x2x2x32xf32, #tpu.memory_space<vmem>>, vector<1x1x2x32xf32>,
    %c0_205 = arith.constant 0 : index
    %c0_206 = arith.constant 0 : index
    %c0_207 = arith.constant 0 : index
    %c0_208 = arith.constant 0 : index
    %575 = vector.load %arg10[%c0_205, %c0_206, %c0_207, %c0_208] : memref<2x2x2x32xf32, #tpu.memory_space<vmem>>, vector<1x1x2x32xf32>
    %576 = vector.shape_cast %575 : vector<1x1x2x32xf32> to vector<2x32xf32>
    %577 = vector.shape_cast %536 : vector<2x32xf32> to vector<1x1x2x32xf32>
    tpu.vector_store %arg10[%c0_205, %c0_206, %c0_207, %c0_208], %577 {strides = array<i32>} : memref<2x2x2x32xf32, #tpu.memory_space<vmem>>, vector<1x1x2x32xf32>,
    %c0_209 = arith.constant 0 : index
    %c1_210 = arith.constant 1 : index
    %c0_211 = arith.constant 0 : index
    %c0_212 = arith.constant 0 : index
    %578 = vector.load %arg9[%c0_209, %c1_210, %c0_211, %c0_212] : memref<2x2x2x32xf32, #tpu.memory_space<vmem>>, vector<1x1x2x32xf32>
    %579 = vector.shape_cast %578 : vector<1x1x2x32xf32> to vector<2x32xf32>
    %580 = vector.shape_cast %571 : vector<2x32xf32> to vector<1x1x2x32xf32>
    tpu.vector_store %arg9[%c0_209, %c1_210, %c0_211, %c0_212], %580 {strides = array<i32>} : memref<2x2x2x32xf32, #tpu.memory_space<vmem>>, vector<1x1x2x32xf32>,
    %c0_213 = arith.constant 0 : index
    %c1_214 = arith.constant 1 : index
    %c0_215 = arith.constant 0 : index
    %c0_216 = arith.constant 0 : index
    %581 = vector.load %arg10[%c0_213, %c1_214, %c0_215, %c0_216] : memref<2x2x2x32xf32, #tpu.memory_space<vmem>>, vector<1x1x2x32xf32>
    %582 = vector.shape_cast %581 : vector<1x1x2x32xf32> to vector<2x32xf32>
    %583 = vector.shape_cast %569 : vector<2x32xf32> to vector<1x1x2x32xf32>
    tpu.vector_store %arg10[%c0_213, %c1_214, %c0_215, %c0_216], %583 {strides = array<i32>} : memref<2x2x2x32xf32, #tpu.memory_space<vmem>>, vector<1x1x2x32xf32>,
    %c0_217 = arith.constant 0 : index
    %c0_218 = arith.constant 0 : index
    %c0_219 = arith.constant 0 : index
    %584 = vector.load %arg3[%c0_217, %c0_218, %c0_219] : memref<2x64x128xf32, #tpu.memory_space<vmem>>, vector<1x64x128xf32>
    %585 = vector.shape_cast %584 : vector<1x64x128xf32> to vector<64x128xf32>
    %c1_220 = arith.constant 1 : index
    %c0_221 = arith.constant 0 : index
    %c0_222 = arith.constant 0 : index
    %c0_223 = arith.constant 0 : index
    %586 = vector.load %arg5[%c1_220, %c0_221, %c0_222, %c0_223] : memref<2x2x1x128xf32, #tpu.memory_space<vmem>>, vector<1x1x1x128xf32>
    %587 = vector.shape_cast %586 : vector<1x1x1x128xf32> to vector<1x128xf32>
    %588 = vector.extract_strided_slice %585 {offsets = [0, 0], sizes = [32, 128], strides = [1, 1]} : vector<64x128xf32> to vector<32x128xf32>
    %cst_224 = arith.constant dense<0.000000e+00> : vector<2x128xf32>
    %589 = tpu.matmul %76, %588, %cst_224 {dimension_numbers = #tpu.dot_dimension_numbers<[1], [0], [0], [1], [0, 0, 1, 1], [], []>, precision = #tpu.contract_precision<fp32>} : vector<2x32xf32>, vector<32x128xf32>, vector<2x128xf32> -> vector<2x128xf32>
    %590 = vector.broadcast %587 : vector<1x128xf32> to vector<2x128xf32>
    %591 = arith.addf %590, %589 : vector<2x128xf32>
    %592 = vector.extract_strided_slice %585 {offsets = [32, 0], sizes = [32, 128], strides = [1, 1]} : vector<64x128xf32> to vector<32x128xf32>
    %cst_225 = arith.constant dense<0.000000e+00> : vector<2x128xf32>
    %593 = tpu.matmul %571, %592, %cst_225 {dimension_numbers = #tpu.dot_dimension_numbers<[1], [0], [0], [1], [0, 0, 1, 1], [], []>, precision = #tpu.contract_precision<fp32>} : vector<2x32xf32>, vector<32x128xf32>, vector<2x128xf32> -> vector<2x128xf32>
    %594 = arith.addf %591, %593 : vector<2x128xf32>
    %595 = vector.extract_strided_slice %585 {offsets = [0, 0], sizes = [32, 128], strides = [1, 1]} : vector<64x128xf32> to vector<32x128xf32>
    %cst_226 = arith.constant dense<0.000000e+00> : vector<2x128xf32>
    %596 = tpu.matmul %142, %595, %cst_226 {dimension_numbers = #tpu.dot_dimension_numbers<[1], [0], [0], [1], [0, 0, 1, 1], [], []>, precision = #tpu.contract_precision<fp32>} : vector<2x32xf32>, vector<32x128xf32>, vector<2x128xf32> -> vector<2x128xf32>
    %597 = vector.broadcast %587 : vector<1x128xf32> to vector<2x128xf32>
    %598 = arith.addf %597, %596 : vector<2x128xf32>
    %599 = vector.extract_strided_slice %585 {offsets = [32, 0], sizes = [32, 128], strides = [1, 1]} : vector<64x128xf32> to vector<32x128xf32>
    %cst_227 = arith.constant dense<0.000000e+00> : vector<2x128xf32>
    %600 = tpu.matmul %505, %599, %cst_227 {dimension_numbers = #tpu.dot_dimension_numbers<[1], [0], [0], [1], [0, 0, 1, 1], [], []>, precision = #tpu.contract_precision<fp32>} : vector<2x32xf32>, vector<32x128xf32>, vector<2x128xf32> -> vector<2x128xf32>
    %601 = arith.addf %598, %600 : vector<2x128xf32>
    %602 = vector.extract_strided_slice %585 {offsets = [0, 0], sizes = [32, 128], strides = [1, 1]} : vector<64x128xf32> to vector<32x128xf32>
    %cst_228 = arith.constant dense<0.000000e+00> : vector<2x128xf32>
    %603 = tpu.matmul %208, %602, %cst_228 {dimension_numbers = #tpu.dot_dimension_numbers<[1], [0], [0], [1], [0, 0, 1, 1], [], []>, precision = #tpu.contract_precision<fp32>} : vector<2x32xf32>, vector<32x128xf32>, vector<2x128xf32> -> vector<2x128xf32>
    %604 = vector.broadcast %587 : vector<1x128xf32> to vector<2x128xf32>
    %605 = arith.addf %604, %603 : vector<2x128xf32>
    %606 = vector.extract_strided_slice %585 {offsets = [32, 0], sizes = [32, 128], strides = [1, 1]} : vector<64x128xf32> to vector<32x128xf32>
    %cst_229 = arith.constant dense<0.000000e+00> : vector<2x128xf32>
    %607 = tpu.matmul %439, %606, %cst_229 {dimension_numbers = #tpu.dot_dimension_numbers<[1], [0], [0], [1], [0, 0, 1, 1], [], []>, precision = #tpu.contract_precision<fp32>} : vector<2x32xf32>, vector<32x128xf32>, vector<2x128xf32> -> vector<2x128xf32>
    %608 = arith.addf %605, %607 : vector<2x128xf32>
    %609 = vector.extract_strided_slice %585 {offsets = [0, 0], sizes = [32, 128], strides = [1, 1]} : vector<64x128xf32> to vector<32x128xf32>
    %cst_230 = arith.constant dense<0.000000e+00> : vector<2x128xf32>
    %610 = tpu.matmul %274, %609, %cst_230 {dimension_numbers = #tpu.dot_dimension_numbers<[1], [0], [0], [1], [0, 0, 1, 1], [], []>, precision = #tpu.contract_precision<fp32>} : vector<2x32xf32>, vector<32x128xf32>, vector<2x128xf32> -> vector<2x128xf32>
    %611 = vector.broadcast %587 : vector<1x128xf32> to vector<2x128xf32>
    %612 = arith.addf %611, %610 : vector<2x128xf32>
    %613 = vector.extract_strided_slice %585 {offsets = [32, 0], sizes = [32, 128], strides = [1, 1]} : vector<64x128xf32> to vector<32x128xf32>
    %cst_231 = arith.constant dense<0.000000e+00> : vector<2x128xf32>
    %614 = tpu.matmul %373, %613, %cst_231 {dimension_numbers = #tpu.dot_dimension_numbers<[1], [0], [0], [1], [0, 0, 1, 1], [], []>, precision = #tpu.contract_precision<fp32>} : vector<2x32xf32>, vector<32x128xf32>, vector<2x128xf32> -> vector<2x128xf32>
    %615 = arith.addf %612, %614 : vector<2x128xf32>
    %616 = vector.extract_strided_slice %585 {offsets = [0, 0], sizes = [32, 128], strides = [1, 1]} : vector<64x128xf32> to vector<32x128xf32>
    %cst_232 = arith.constant dense<0.000000e+00> : vector<2x128xf32>
    %617 = tpu.matmul %340, %616, %cst_232 {dimension_numbers = #tpu.dot_dimension_numbers<[1], [0], [0], [1], [0, 0, 1, 1], [], []>, precision = #tpu.contract_precision<fp32>} : vector<2x32xf32>, vector<32x128xf32>, vector<2x128xf32> -> vector<2x128xf32>
    %618 = vector.broadcast %587 : vector<1x128xf32> to vector<2x128xf32>
    %619 = arith.addf %618, %617 : vector<2x128xf32>
    %620 = vector.extract_strided_slice %585 {offsets = [32, 0], sizes = [32, 128], strides = [1, 1]} : vector<64x128xf32> to vector<32x128xf32>
    %cst_233 = arith.constant dense<0.000000e+00> : vector<2x128xf32>
    %621 = tpu.matmul %307, %620, %cst_233 {dimension_numbers = #tpu.dot_dimension_numbers<[1], [0], [0], [1], [0, 0, 1, 1], [], []>, precision = #tpu.contract_precision<fp32>} : vector<2x32xf32>, vector<32x128xf32>, vector<2x128xf32> -> vector<2x128xf32>
    %622 = arith.addf %619, %621 : vector<2x128xf32>
    %623 = vector.extract_strided_slice %585 {offsets = [0, 0], sizes = [32, 128], strides = [1, 1]} : vector<64x128xf32> to vector<32x128xf32>
    %cst_234 = arith.constant dense<0.000000e+00> : vector<2x128xf32>
    %624 = tpu.matmul %406, %623, %cst_234 {dimension_numbers = #tpu.dot_dimension_numbers<[1], [0], [0], [1], [0, 0, 1, 1], [], []>, precision = #tpu.contract_precision<fp32>} : vector<2x32xf32>, vector<32x128xf32>, vector<2x128xf32> -> vector<2x128xf32>
    %625 = vector.broadcast %587 : vector<1x128xf32> to vector<2x128xf32>
    %626 = arith.addf %625, %624 : vector<2x128xf32>
    %627 = vector.extract_strided_slice %585 {offsets = [32, 0], sizes = [32, 128], strides = [1, 1]} : vector<64x128xf32> to vector<32x128xf32>
    %cst_235 = arith.constant dense<0.000000e+00> : vector<2x128xf32>
    %628 = tpu.matmul %241, %627, %cst_235 {dimension_numbers = #tpu.dot_dimension_numbers<[1], [0], [0], [1], [0, 0, 1, 1], [], []>, precision = #tpu.contract_precision<fp32>} : vector<2x32xf32>, vector<32x128xf32>, vector<2x128xf32> -> vector<2x128xf32>
    %629 = arith.addf %626, %628 : vector<2x128xf32>
    %630 = vector.extract_strided_slice %585 {offsets = [0, 0], sizes = [32, 128], strides = [1, 1]} : vector<64x128xf32> to vector<32x128xf32>
    %cst_236 = arith.constant dense<0.000000e+00> : vector<2x128xf32>
    %631 = tpu.matmul %472, %630, %cst_236 {dimension_numbers = #tpu.dot_dimension_numbers<[1], [0], [0], [1], [0, 0, 1, 1], [], []>, precision = #tpu.contract_precision<fp32>} : vector<2x32xf32>, vector<32x128xf32>, vector<2x128xf32> -> vector<2x128xf32>
    %632 = vector.broadcast %587 : vector<1x128xf32> to vector<2x128xf32>
    %633 = arith.addf %632, %631 : vector<2x128xf32>
    %634 = vector.extract_strided_slice %585 {offsets = [32, 0], sizes = [32, 128], strides = [1, 1]} : vector<64x128xf32> to vector<32x128xf32>
    %cst_237 = arith.constant dense<0.000000e+00> : vector<2x128xf32>
    %635 = tpu.matmul %175, %634, %cst_237 {dimension_numbers = #tpu.dot_dimension_numbers<[1], [0], [0], [1], [0, 0, 1, 1], [], []>, precision = #tpu.contract_precision<fp32>} : vector<2x32xf32>, vector<32x128xf32>, vector<2x128xf32> -> vector<2x128xf32>
    %636 = arith.addf %633, %635 : vector<2x128xf32>
    %637 = vector.extract_strided_slice %585 {offsets = [0, 0], sizes = [32, 128], strides = [1, 1]} : vector<64x128xf32> to vector<32x128xf32>
    %cst_238 = arith.constant dense<0.000000e+00> : vector<2x128xf32>
    %638 = tpu.matmul %538, %637, %cst_238 {dimension_numbers = #tpu.dot_dimension_numbers<[1], [0], [0], [1], [0, 0, 1, 1], [], []>, precision = #tpu.contract_precision<fp32>} : vector<2x32xf32>, vector<32x128xf32>, vector<2x128xf32> -> vector<2x128xf32>
    %639 = vector.broadcast %587 : vector<1x128xf32> to vector<2x128xf32>
    %640 = arith.addf %639, %638 : vector<2x128xf32>
    %641 = vector.extract_strided_slice %585 {offsets = [32, 0], sizes = [32, 128], strides = [1, 1]} : vector<64x128xf32> to vector<32x128xf32>
    %cst_239 = arith.constant dense<0.000000e+00> : vector<2x128xf32>
    %642 = tpu.matmul %109, %641, %cst_239 {dimension_numbers = #tpu.dot_dimension_numbers<[1], [0], [0], [1], [0, 0, 1, 1], [], []>, precision = #tpu.contract_precision<fp32>} : vector<2x32xf32>, vector<32x128xf32>, vector<2x128xf32> -> vector<2x128xf32>
    %643 = arith.addf %640, %642 : vector<2x128xf32>
    %c1_240 = arith.constant 1 : index
    %c0_241 = arith.constant 0 : index
    %c0_242 = arith.constant 0 : index
    %644 = vector.load %arg3[%c1_240, %c0_241, %c0_242] : memref<2x64x128xf32, #tpu.memory_space<vmem>>, vector<1x64x128xf32>
    %645 = vector.shape_cast %644 : vector<1x64x128xf32> to vector<64x128xf32>
    %c1_243 = arith.constant 1 : index
    %c1_244 = arith.constant 1 : index
    %c0_245 = arith.constant 0 : index
    %c0_246 = arith.constant 0 : index
    %646 = vector.load %arg5[%c1_243, %c1_244, %c0_245, %c0_246] : memref<2x2x1x128xf32, #tpu.memory_space<vmem>>, vector<1x1x1x128xf32>
    %647 = vector.shape_cast %646 : vector<1x1x1x128xf32> to vector<1x128xf32>
    %648 = vector.extract_strided_slice %645 {offsets = [0, 0], sizes = [32, 128], strides = [1, 1]} : vector<64x128xf32> to vector<32x128xf32>
    %cst_247 = arith.constant dense<0.000000e+00> : vector<2x128xf32>
    %649 = tpu.matmul %76, %648, %cst_247 {dimension_numbers = #tpu.dot_dimension_numbers<[1], [0], [0], [1], [0, 0, 1, 1], [], []>, precision = #tpu.contract_precision<fp32>} : vector<2x32xf32>, vector<32x128xf32>, vector<2x128xf32> -> vector<2x128xf32>
    %650 = vector.broadcast %647 : vector<1x128xf32> to vector<2x128xf32>
    %651 = arith.addf %650, %649 : vector<2x128xf32>
    %652 = vector.extract_strided_slice %645 {offsets = [32, 0], sizes = [32, 128], strides = [1, 1]} : vector<64x128xf32> to vector<32x128xf32>
    %cst_248 = arith.constant dense<0.000000e+00> : vector<2x128xf32>
    %653 = tpu.matmul %571, %652, %cst_248 {dimension_numbers = #tpu.dot_dimension_numbers<[1], [0], [0], [1], [0, 0, 1, 1], [], []>, precision = #tpu.contract_precision<fp32>} : vector<2x32xf32>, vector<32x128xf32>, vector<2x128xf32> -> vector<2x128xf32>
    %654 = arith.addf %651, %653 : vector<2x128xf32>
    %655 = vector.extract_strided_slice %645 {offsets = [0, 0], sizes = [32, 128], strides = [1, 1]} : vector<64x128xf32> to vector<32x128xf32>
    %cst_249 = arith.constant dense<0.000000e+00> : vector<2x128xf32>
    %656 = tpu.matmul %142, %655, %cst_249 {dimension_numbers = #tpu.dot_dimension_numbers<[1], [0], [0], [1], [0, 0, 1, 1], [], []>, precision = #tpu.contract_precision<fp32>} : vector<2x32xf32>, vector<32x128xf32>, vector<2x128xf32> -> vector<2x128xf32>
    %657 = vector.broadcast %647 : vector<1x128xf32> to vector<2x128xf32>
    %658 = arith.addf %657, %656 : vector<2x128xf32>
    %659 = vector.extract_strided_slice %645 {offsets = [32, 0], sizes = [32, 128], strides = [1, 1]} : vector<64x128xf32> to vector<32x128xf32>
    %cst_250 = arith.constant dense<0.000000e+00> : vector<2x128xf32>
    %660 = tpu.matmul %505, %659, %cst_250 {dimension_numbers = #tpu.dot_dimension_numbers<[1], [0], [0], [1], [0, 0, 1, 1], [], []>, precision = #tpu.contract_precision<fp32>} : vector<2x32xf32>, vector<32x128xf32>, vector<2x128xf32> -> vector<2x128xf32>
    %661 = arith.addf %658, %660 : vector<2x128xf32>
    %662 = vector.extract_strided_slice %645 {offsets = [0, 0], sizes = [32, 128], strides = [1, 1]} : vector<64x128xf32> to vector<32x128xf32>
    %cst_251 = arith.constant dense<0.000000e+00> : vector<2x128xf32>
    %663 = tpu.matmul %208, %662, %cst_251 {dimension_numbers = #tpu.dot_dimension_numbers<[1], [0], [0], [1], [0, 0, 1, 1], [], []>, precision = #tpu.contract_precision<fp32>} : vector<2x32xf32>, vector<32x128xf32>, vector<2x128xf32> -> vector<2x128xf32>
    %664 = vector.broadcast %647 : vector<1x128xf32> to vector<2x128xf32>
    %665 = arith.addf %664, %663 : vector<2x128xf32>
    %666 = vector.extract_strided_slice %645 {offsets = [32, 0], sizes = [32, 128], strides = [1, 1]} : vector<64x128xf32> to vector<32x128xf32>
    %cst_252 = arith.constant dense<0.000000e+00> : vector<2x128xf32>
    %667 = tpu.matmul %439, %666, %cst_252 {dimension_numbers = #tpu.dot_dimension_numbers<[1], [0], [0], [1], [0, 0, 1, 1], [], []>, precision = #tpu.contract_precision<fp32>} : vector<2x32xf32>, vector<32x128xf32>, vector<2x128xf32> -> vector<2x128xf32>
    %668 = arith.addf %665, %667 : vector<2x128xf32>
    %669 = vector.extract_strided_slice %645 {offsets = [0, 0], sizes = [32, 128], strides = [1, 1]} : vector<64x128xf32> to vector<32x128xf32>
    %cst_253 = arith.constant dense<0.000000e+00> : vector<2x128xf32>
    %670 = tpu.matmul %274, %669, %cst_253 {dimension_numbers = #tpu.dot_dimension_numbers<[1], [0], [0], [1], [0, 0, 1, 1], [], []>, precision = #tpu.contract_precision<fp32>} : vector<2x32xf32>, vector<32x128xf32>, vector<2x128xf32> -> vector<2x128xf32>
    %671 = vector.broadcast %647 : vector<1x128xf32> to vector<2x128xf32>
    %672 = arith.addf %671, %670 : vector<2x128xf32>
    %673 = vector.extract_strided_slice %645 {offsets = [32, 0], sizes = [32, 128], strides = [1, 1]} : vector<64x128xf32> to vector<32x128xf32>
    %cst_254 = arith.constant dense<0.000000e+00> : vector<2x128xf32>
    %674 = tpu.matmul %373, %673, %cst_254 {dimension_numbers = #tpu.dot_dimension_numbers<[1], [0], [0], [1], [0, 0, 1, 1], [], []>, precision = #tpu.contract_precision<fp32>} : vector<2x32xf32>, vector<32x128xf32>, vector<2x128xf32> -> vector<2x128xf32>
    %675 = arith.addf %672, %674 : vector<2x128xf32>
    %676 = vector.extract_strided_slice %645 {offsets = [0, 0], sizes = [32, 128], strides = [1, 1]} : vector<64x128xf32> to vector<32x128xf32>
    %cst_255 = arith.constant dense<0.000000e+00> : vector<2x128xf32>
    %677 = tpu.matmul %340, %676, %cst_255 {dimension_numbers = #tpu.dot_dimension_numbers<[1], [0], [0], [1], [0, 0, 1, 1], [], []>, precision = #tpu.contract_precision<fp32>} : vector<2x32xf32>, vector<32x128xf32>, vector<2x128xf32> -> vector<2x128xf32>
    %678 = vector.broadcast %647 : vector<1x128xf32> to vector<2x128xf32>
    %679 = arith.addf %678, %677 : vector<2x128xf32>
    %680 = vector.extract_strided_slice %645 {offsets = [32, 0], sizes = [32, 128], strides = [1, 1]} : vector<64x128xf32> to vector<32x128xf32>
    %cst_256 = arith.constant dense<0.000000e+00> : vector<2x128xf32>
    %681 = tpu.matmul %307, %680, %cst_256 {dimension_numbers = #tpu.dot_dimension_numbers<[1], [0], [0], [1], [0, 0, 1, 1], [], []>, precision = #tpu.contract_precision<fp32>} : vector<2x32xf32>, vector<32x128xf32>, vector<2x128xf32> -> vector<2x128xf32>
    %682 = arith.addf %679, %681 : vector<2x128xf32>
    %683 = vector.extract_strided_slice %645 {offsets = [0, 0], sizes = [32, 128], strides = [1, 1]} : vector<64x128xf32> to vector<32x128xf32>
    %cst_257 = arith.constant dense<0.000000e+00> : vector<2x128xf32>
    %684 = tpu.matmul %406, %683, %cst_257 {dimension_numbers = #tpu.dot_dimension_numbers<[1], [0], [0], [1], [0, 0, 1, 1], [], []>, precision = #tpu.contract_precision<fp32>} : vector<2x32xf32>, vector<32x128xf32>, vector<2x128xf32> -> vector<2x128xf32>
    %685 = vector.broadcast %647 : vector<1x128xf32> to vector<2x128xf32>
    %686 = arith.addf %685, %684 : vector<2x128xf32>
    %687 = vector.extract_strided_slice %645 {offsets = [32, 0], sizes = [32, 128], strides = [1, 1]} : vector<64x128xf32> to vector<32x128xf32>
    %cst_258 = arith.constant dense<0.000000e+00> : vector<2x128xf32>
    %688 = tpu.matmul %241, %687, %cst_258 {dimension_numbers = #tpu.dot_dimension_numbers<[1], [0], [0], [1], [0, 0, 1, 1], [], []>, precision = #tpu.contract_precision<fp32>} : vector<2x32xf32>, vector<32x128xf32>, vector<2x128xf32> -> vector<2x128xf32>
    %689 = arith.addf %686, %688 : vector<2x128xf32>
    %690 = vector.extract_strided_slice %645 {offsets = [0, 0], sizes = [32, 128], strides = [1, 1]} : vector<64x128xf32> to vector<32x128xf32>
    %cst_259 = arith.constant dense<0.000000e+00> : vector<2x128xf32>
    %691 = tpu.matmul %472, %690, %cst_259 {dimension_numbers = #tpu.dot_dimension_numbers<[1], [0], [0], [1], [0, 0, 1, 1], [], []>, precision = #tpu.contract_precision<fp32>} : vector<2x32xf32>, vector<32x128xf32>, vector<2x128xf32> -> vector<2x128xf32>
    %692 = vector.broadcast %647 : vector<1x128xf32> to vector<2x128xf32>
    %693 = arith.addf %692, %691 : vector<2x128xf32>
    %694 = vector.extract_strided_slice %645 {offsets = [32, 0], sizes = [32, 128], strides = [1, 1]} : vector<64x128xf32> to vector<32x128xf32>
    %cst_260 = arith.constant dense<0.000000e+00> : vector<2x128xf32>
    %695 = tpu.matmul %175, %694, %cst_260 {dimension_numbers = #tpu.dot_dimension_numbers<[1], [0], [0], [1], [0, 0, 1, 1], [], []>, precision = #tpu.contract_precision<fp32>} : vector<2x32xf32>, vector<32x128xf32>, vector<2x128xf32> -> vector<2x128xf32>
    %696 = arith.addf %693, %695 : vector<2x128xf32>
    %697 = vector.extract_strided_slice %645 {offsets = [0, 0], sizes = [32, 128], strides = [1, 1]} : vector<64x128xf32> to vector<32x128xf32>
    %cst_261 = arith.constant dense<0.000000e+00> : vector<2x128xf32>
    %698 = tpu.matmul %538, %697, %cst_261 {dimension_numbers = #tpu.dot_dimension_numbers<[1], [0], [0], [1], [0, 0, 1, 1], [], []>, precision = #tpu.contract_precision<fp32>} : vector<2x32xf32>, vector<32x128xf32>, vector<2x128xf32> -> vector<2x128xf32>
    %699 = vector.broadcast %647 : vector<1x128xf32> to vector<2x128xf32>
    %700 = arith.addf %699, %698 : vector<2x128xf32>
    %701 = vector.extract_strided_slice %645 {offsets = [32, 0], sizes = [32, 128], strides = [1, 1]} : vector<64x128xf32> to vector<32x128xf32>
    %cst_262 = arith.constant dense<0.000000e+00> : vector<2x128xf32>
    %702 = tpu.matmul %109, %701, %cst_262 {dimension_numbers = #tpu.dot_dimension_numbers<[1], [0], [0], [1], [0, 0, 1, 1], [], []>, precision = #tpu.contract_precision<fp32>} : vector<2x32xf32>, vector<32x128xf32>, vector<2x128xf32> -> vector<2x128xf32>
    %703 = arith.addf %700, %702 : vector<2x128xf32>
    %c1_263 = arith.constant 1 : index
    %c0_264 = arith.constant 0 : index
    %c0_265 = arith.constant 0 : index
    %c0_266 = arith.constant 0 : index
    %704 = vector.load %arg4[%c1_263, %c0_264, %c0_265, %c0_266] : memref<2x2x32x128xf32, #tpu.memory_space<vmem>>, vector<1x1x32x128xf32>
    %705 = vector.shape_cast %704 : vector<1x1x32x128xf32> to vector<32x128xf32>
    %c1_267 = arith.constant 1 : index
    %c1_268 = arith.constant 1 : index
    %c0_269 = arith.constant 0 : index
    %c0_270 = arith.constant 0 : index
    %706 = vector.load %arg4[%c1_267, %c1_268, %c0_269, %c0_270] : memref<2x2x32x128xf32, #tpu.memory_space<vmem>>, vector<1x1x32x128xf32>
    %707 = vector.shape_cast %706 : vector<1x1x32x128xf32> to vector<32x128xf32>
    %c1_271 = arith.constant 1 : index
    %c0_272 = arith.constant 0 : index
    %c0_273 = arith.constant 0 : index
    %c0_274 = arith.constant 0 : index
    %708 = vector.load %arg6[%c1_271, %c0_272, %c0_273, %c0_274] : memref<2x2x2x32xf32, #tpu.memory_space<vmem>>, vector<1x1x2x32xf32>
    %709 = vector.shape_cast %708 : vector<1x1x2x32xf32> to vector<2x32xf32>
    %c1_275 = arith.constant 1 : index
    %c1_276 = arith.constant 1 : index
    %c0_277 = arith.constant 0 : index
    %c0_278 = arith.constant 0 : index
    %710 = vector.load %arg6[%c1_275, %c1_276, %c0_277, %c0_278] : memref<2x2x2x32xf32, #tpu.memory_space<vmem>>, vector<1x1x2x32xf32>
    %711 = vector.shape_cast %710 : vector<1x1x2x32xf32> to vector<2x32xf32>
    %c1_279 = arith.constant 1 : index
    %c0_280 = arith.constant 0 : index
    %c0_281 = arith.constant 0 : index
    %c0_282 = arith.constant 0 : index
    %712 = vector.load %arg7[%c1_279, %c0_280, %c0_281, %c0_282] : memref<2x2x2x32xf32, #tpu.memory_space<vmem>>, vector<1x1x2x32xf32>
    %713 = vector.shape_cast %712 : vector<1x1x2x32xf32> to vector<2x32xf32>
    %c1_283 = arith.constant 1 : index
    %c1_284 = arith.constant 1 : index
    %c0_285 = arith.constant 0 : index
    %c0_286 = arith.constant 0 : index
    %714 = vector.load %arg7[%c1_283, %c1_284, %c0_285, %c0_286] : memref<2x2x2x32xf32, #tpu.memory_space<vmem>>, vector<1x1x2x32xf32>
    %715 = vector.shape_cast %714 : vector<1x1x2x32xf32> to vector<2x32xf32>
    %cst_287 = arith.constant dense<0.000000e+00> : vector<2x128xf32>
    %716 = tpu.matmul %709, %705, %cst_287 {dimension_numbers = #tpu.dot_dimension_numbers<[1], [0], [0], [1], [0, 0, 1, 1], [], []>, precision = #tpu.contract_precision<fp32>} : vector<2x32xf32>, vector<32x128xf32>, vector<2x128xf32> -> vector<2x128xf32>
    %717 = arith.addf %594, %716 : vector<2x128xf32>
    %718 = vector.extract_strided_slice %717 {offsets = [0, 0], sizes = [2, 32], strides = [1, 1]} : vector<2x128xf32> to vector<2x32xf32>
    %cst_288 = arith.constant 5.000000e-01 : f32
    %719 = vector.broadcast %cst_288 : f32 to vector<2x32xf32>
    %720 = arith.mulf %719, %718 : vector<2x32xf32>
    %721 = math.tanh %720 : vector<2x32xf32>
    %cst_289 = arith.constant 1.000000e+00 : f32
    %722 = vector.broadcast %cst_289 : f32 to vector<2x32xf32>
    %723 = arith.addf %721, %722 : vector<2x32xf32>
    %cst_290 = arith.constant 5.000000e-01 : f32
    %724 = vector.broadcast %cst_290 : f32 to vector<2x32xf32>
    %725 = arith.mulf %724, %723 : vector<2x32xf32>
    %726 = vector.extract_strided_slice %717 {offsets = [0, 32], sizes = [2, 32], strides = [1, 1]} : vector<2x128xf32> to vector<2x32xf32>
    %cst_291 = arith.constant 5.000000e-01 : f32
    %727 = vector.broadcast %cst_291 : f32 to vector<2x32xf32>
    %728 = arith.mulf %727, %726 : vector<2x32xf32>
    %729 = math.tanh %728 : vector<2x32xf32>
    %cst_292 = arith.constant 1.000000e+00 : f32
    %730 = vector.broadcast %cst_292 : f32 to vector<2x32xf32>
    %731 = arith.addf %729, %730 : vector<2x32xf32>
    %cst_293 = arith.constant 5.000000e-01 : f32
    %732 = vector.broadcast %cst_293 : f32 to vector<2x32xf32>
    %733 = arith.mulf %732, %731 : vector<2x32xf32>
    %734 = vector.extract_strided_slice %717 {offsets = [0, 64], sizes = [2, 32], strides = [1, 1]} : vector<2x128xf32> to vector<2x32xf32>
    %735 = math.tanh %734 : vector<2x32xf32>
    %736 = vector.extract_strided_slice %717 {offsets = [0, 96], sizes = [2, 32], strides = [1, 1]} : vector<2x128xf32> to vector<2x32xf32>
    %cst_294 = arith.constant 5.000000e-01 : f32
    %737 = vector.broadcast %cst_294 : f32 to vector<2x32xf32>
    %738 = arith.mulf %737, %736 : vector<2x32xf32>
    %739 = math.tanh %738 : vector<2x32xf32>
    %cst_295 = arith.constant 1.000000e+00 : f32
    %740 = vector.broadcast %cst_295 : f32 to vector<2x32xf32>
    %741 = arith.addf %739, %740 : vector<2x32xf32>
    %cst_296 = arith.constant 5.000000e-01 : f32
    %742 = vector.broadcast %cst_296 : f32 to vector<2x32xf32>
    %743 = arith.mulf %742, %741 : vector<2x32xf32>
    %744 = arith.mulf %733, %713 : vector<2x32xf32>
    %745 = arith.mulf %725, %735 : vector<2x32xf32>
    %746 = arith.addf %744, %745 : vector<2x32xf32>
    %747 = math.tanh %746 : vector<2x32xf32>
    %748 = arith.mulf %743, %747 : vector<2x32xf32>
    %c0_297 = arith.constant 0 : index
    %c0_298 = arith.constant 0 : index
    %c0_299 = arith.constant 0 : index
    %c0_300 = arith.constant 0 : index
    %749 = vector.load %arg8[%c0_297, %c0_298, %c0_299, %c0_300] : memref<2x8x2x32xf32, #tpu.memory_space<vmem>>, vector<1x1x2x32xf32>
    %750 = vector.shape_cast %749 : vector<1x1x2x32xf32> to vector<2x32xf32>
    %751 = vector.shape_cast %748 : vector<2x32xf32> to vector<1x1x2x32xf32>
    tpu.vector_store %arg8[%c0_297, %c0_298, %c0_299, %c0_300], %751 {strides = array<i32>} : memref<2x8x2x32xf32, #tpu.memory_space<vmem>>, vector<1x1x2x32xf32>,
    %cst_301 = arith.constant dense<0.000000e+00> : vector<2x128xf32>
    %752 = tpu.matmul %711, %707, %cst_301 {dimension_numbers = #tpu.dot_dimension_numbers<[1], [0], [0], [1], [0, 0, 1, 1], [], []>, precision = #tpu.contract_precision<fp32>} : vector<2x32xf32>, vector<32x128xf32>, vector<2x128xf32> -> vector<2x128xf32>
    %753 = arith.addf %703, %752 : vector<2x128xf32>
    %754 = vector.extract_strided_slice %753 {offsets = [0, 0], sizes = [2, 32], strides = [1, 1]} : vector<2x128xf32> to vector<2x32xf32>
    %cst_302 = arith.constant 5.000000e-01 : f32
    %755 = vector.broadcast %cst_302 : f32 to vector<2x32xf32>
    %756 = arith.mulf %755, %754 : vector<2x32xf32>
    %757 = math.tanh %756 : vector<2x32xf32>
    %cst_303 = arith.constant 1.000000e+00 : f32
    %758 = vector.broadcast %cst_303 : f32 to vector<2x32xf32>
    %759 = arith.addf %757, %758 : vector<2x32xf32>
    %cst_304 = arith.constant 5.000000e-01 : f32
    %760 = vector.broadcast %cst_304 : f32 to vector<2x32xf32>
    %761 = arith.mulf %760, %759 : vector<2x32xf32>
    %762 = vector.extract_strided_slice %753 {offsets = [0, 32], sizes = [2, 32], strides = [1, 1]} : vector<2x128xf32> to vector<2x32xf32>
    %cst_305 = arith.constant 5.000000e-01 : f32
    %763 = vector.broadcast %cst_305 : f32 to vector<2x32xf32>
    %764 = arith.mulf %763, %762 : vector<2x32xf32>
    %765 = math.tanh %764 : vector<2x32xf32>
    %cst_306 = arith.constant 1.000000e+00 : f32
    %766 = vector.broadcast %cst_306 : f32 to vector<2x32xf32>
    %767 = arith.addf %765, %766 : vector<2x32xf32>
    %cst_307 = arith.constant 5.000000e-01 : f32
    %768 = vector.broadcast %cst_307 : f32 to vector<2x32xf32>
    %769 = arith.mulf %768, %767 : vector<2x32xf32>
    %770 = vector.extract_strided_slice %753 {offsets = [0, 64], sizes = [2, 32], strides = [1, 1]} : vector<2x128xf32> to vector<2x32xf32>
    %771 = math.tanh %770 : vector<2x32xf32>
    %772 = vector.extract_strided_slice %753 {offsets = [0, 96], sizes = [2, 32], strides = [1, 1]} : vector<2x128xf32> to vector<2x32xf32>
    %cst_308 = arith.constant 5.000000e-01 : f32
    %773 = vector.broadcast %cst_308 : f32 to vector<2x32xf32>
    %774 = arith.mulf %773, %772 : vector<2x32xf32>
    %775 = math.tanh %774 : vector<2x32xf32>
    %cst_309 = arith.constant 1.000000e+00 : f32
    %776 = vector.broadcast %cst_309 : f32 to vector<2x32xf32>
    %777 = arith.addf %775, %776 : vector<2x32xf32>
    %cst_310 = arith.constant 5.000000e-01 : f32
    %778 = vector.broadcast %cst_310 : f32 to vector<2x32xf32>
    %779 = arith.mulf %778, %777 : vector<2x32xf32>
    %780 = arith.mulf %769, %715 : vector<2x32xf32>
    %781 = arith.mulf %761, %771 : vector<2x32xf32>
    %782 = arith.addf %780, %781 : vector<2x32xf32>
    %783 = math.tanh %782 : vector<2x32xf32>
    %784 = arith.mulf %779, %783 : vector<2x32xf32>
    %c1_311 = arith.constant 1 : index
    %c7 = arith.constant 7 : index
    %c0_312 = arith.constant 0 : index
    %c0_313 = arith.constant 0 : index
    %785 = vector.load %arg8[%c1_311, %c7, %c0_312, %c0_313] : memref<2x8x2x32xf32, #tpu.memory_space<vmem>>, vector<1x1x2x32xf32>
    %786 = vector.shape_cast %785 : vector<1x1x2x32xf32> to vector<2x32xf32>
    %787 = vector.shape_cast %784 : vector<2x32xf32> to vector<1x1x2x32xf32>
    tpu.vector_store %arg8[%c1_311, %c7, %c0_312, %c0_313], %787 {strides = array<i32>} : memref<2x8x2x32xf32, #tpu.memory_space<vmem>>, vector<1x1x2x32xf32>,
    %cst_314 = arith.constant dense<0.000000e+00> : vector<2x128xf32>
    %788 = tpu.matmul %748, %705, %cst_314 {dimension_numbers = #tpu.dot_dimension_numbers<[1], [0], [0], [1], [0, 0, 1, 1], [], []>, precision = #tpu.contract_precision<fp32>} : vector<2x32xf32>, vector<32x128xf32>, vector<2x128xf32> -> vector<2x128xf32>
    %789 = arith.addf %601, %788 : vector<2x128xf32>
    %790 = vector.extract_strided_slice %789 {offsets = [0, 0], sizes = [2, 32], strides = [1, 1]} : vector<2x128xf32> to vector<2x32xf32>
    %cst_315 = arith.constant 5.000000e-01 : f32
    %791 = vector.broadcast %cst_315 : f32 to vector<2x32xf32>
    %792 = arith.mulf %791, %790 : vector<2x32xf32>
    %793 = math.tanh %792 : vector<2x32xf32>
    %cst_316 = arith.constant 1.000000e+00 : f32
    %794 = vector.broadcast %cst_316 : f32 to vector<2x32xf32>
    %795 = arith.addf %793, %794 : vector<2x32xf32>
    %cst_317 = arith.constant 5.000000e-01 : f32
    %796 = vector.broadcast %cst_317 : f32 to vector<2x32xf32>
    %797 = arith.mulf %796, %795 : vector<2x32xf32>
    %798 = vector.extract_strided_slice %789 {offsets = [0, 32], sizes = [2, 32], strides = [1, 1]} : vector<2x128xf32> to vector<2x32xf32>
    %cst_318 = arith.constant 5.000000e-01 : f32
    %799 = vector.broadcast %cst_318 : f32 to vector<2x32xf32>
    %800 = arith.mulf %799, %798 : vector<2x32xf32>
    %801 = math.tanh %800 : vector<2x32xf32>
    %cst_319 = arith.constant 1.000000e+00 : f32
    %802 = vector.broadcast %cst_319 : f32 to vector<2x32xf32>
    %803 = arith.addf %801, %802 : vector<2x32xf32>
    %cst_320 = arith.constant 5.000000e-01 : f32
    %804 = vector.broadcast %cst_320 : f32 to vector<2x32xf32>
    %805 = arith.mulf %804, %803 : vector<2x32xf32>
    %806 = vector.extract_strided_slice %789 {offsets = [0, 64], sizes = [2, 32], strides = [1, 1]} : vector<2x128xf32> to vector<2x32xf32>
    %807 = math.tanh %806 : vector<2x32xf32>
    %808 = vector.extract_strided_slice %789 {offsets = [0, 96], sizes = [2, 32], strides = [1, 1]} : vector<2x128xf32> to vector<2x32xf32>
    %cst_321 = arith.constant 5.000000e-01 : f32
    %809 = vector.broadcast %cst_321 : f32 to vector<2x32xf32>
    %810 = arith.mulf %809, %808 : vector<2x32xf32>
    %811 = math.tanh %810 : vector<2x32xf32>
    %cst_322 = arith.constant 1.000000e+00 : f32
    %812 = vector.broadcast %cst_322 : f32 to vector<2x32xf32>
    %813 = arith.addf %811, %812 : vector<2x32xf32>
    %cst_323 = arith.constant 5.000000e-01 : f32
    %814 = vector.broadcast %cst_323 : f32 to vector<2x32xf32>
    %815 = arith.mulf %814, %813 : vector<2x32xf32>
    %816 = arith.mulf %805, %746 : vector<2x32xf32>
    %817 = arith.mulf %797, %807 : vector<2x32xf32>
    %818 = arith.addf %816, %817 : vector<2x32xf32>
    %819 = math.tanh %818 : vector<2x32xf32>
    %820 = arith.mulf %815, %819 : vector<2x32xf32>
    %c0_324 = arith.constant 0 : index
    %c1_325 = arith.constant 1 : index
    %c0_326 = arith.constant 0 : index
    %c0_327 = arith.constant 0 : index
    %821 = vector.load %arg8[%c0_324, %c1_325, %c0_326, %c0_327] : memref<2x8x2x32xf32, #tpu.memory_space<vmem>>, vector<1x1x2x32xf32>
    %822 = vector.shape_cast %821 : vector<1x1x2x32xf32> to vector<2x32xf32>
    %823 = vector.shape_cast %820 : vector<2x32xf32> to vector<1x1x2x32xf32>
    tpu.vector_store %arg8[%c0_324, %c1_325, %c0_326, %c0_327], %823 {strides = array<i32>} : memref<2x8x2x32xf32, #tpu.memory_space<vmem>>, vector<1x1x2x32xf32>,
    %cst_328 = arith.constant dense<0.000000e+00> : vector<2x128xf32>
    %824 = tpu.matmul %784, %707, %cst_328 {dimension_numbers = #tpu.dot_dimension_numbers<[1], [0], [0], [1], [0, 0, 1, 1], [], []>, precision = #tpu.contract_precision<fp32>} : vector<2x32xf32>, vector<32x128xf32>, vector<2x128xf32> -> vector<2x128xf32>
    %825 = arith.addf %696, %824 : vector<2x128xf32>
    %826 = vector.extract_strided_slice %825 {offsets = [0, 0], sizes = [2, 32], strides = [1, 1]} : vector<2x128xf32> to vector<2x32xf32>
    %cst_329 = arith.constant 5.000000e-01 : f32
    %827 = vector.broadcast %cst_329 : f32 to vector<2x32xf32>
    %828 = arith.mulf %827, %826 : vector<2x32xf32>
    %829 = math.tanh %828 : vector<2x32xf32>
    %cst_330 = arith.constant 1.000000e+00 : f32
    %830 = vector.broadcast %cst_330 : f32 to vector<2x32xf32>
    %831 = arith.addf %829, %830 : vector<2x32xf32>
    %cst_331 = arith.constant 5.000000e-01 : f32
    %832 = vector.broadcast %cst_331 : f32 to vector<2x32xf32>
    %833 = arith.mulf %832, %831 : vector<2x32xf32>
    %834 = vector.extract_strided_slice %825 {offsets = [0, 32], sizes = [2, 32], strides = [1, 1]} : vector<2x128xf32> to vector<2x32xf32>
    %cst_332 = arith.constant 5.000000e-01 : f32
    %835 = vector.broadcast %cst_332 : f32 to vector<2x32xf32>
    %836 = arith.mulf %835, %834 : vector<2x32xf32>
    %837 = math.tanh %836 : vector<2x32xf32>
    %cst_333 = arith.constant 1.000000e+00 : f32
    %838 = vector.broadcast %cst_333 : f32 to vector<2x32xf32>
    %839 = arith.addf %837, %838 : vector<2x32xf32>
    %cst_334 = arith.constant 5.000000e-01 : f32
    %840 = vector.broadcast %cst_334 : f32 to vector<2x32xf32>
    %841 = arith.mulf %840, %839 : vector<2x32xf32>
    %842 = vector.extract_strided_slice %825 {offsets = [0, 64], sizes = [2, 32], strides = [1, 1]} : vector<2x128xf32> to vector<2x32xf32>
    %843 = math.tanh %842 : vector<2x32xf32>
    %844 = vector.extract_strided_slice %825 {offsets = [0, 96], sizes = [2, 32], strides = [1, 1]} : vector<2x128xf32> to vector<2x32xf32>
    %cst_335 = arith.constant 5.000000e-01 : f32
    %845 = vector.broadcast %cst_335 : f32 to vector<2x32xf32>
    %846 = arith.mulf %845, %844 : vector<2x32xf32>
    %847 = math.tanh %846 : vector<2x32xf32>
    %cst_336 = arith.constant 1.000000e+00 : f32
    %848 = vector.broadcast %cst_336 : f32 to vector<2x32xf32>
    %849 = arith.addf %847, %848 : vector<2x32xf32>
    %cst_337 = arith.constant 5.000000e-01 : f32
    %850 = vector.broadcast %cst_337 : f32 to vector<2x32xf32>
    %851 = arith.mulf %850, %849 : vector<2x32xf32>
    %852 = arith.mulf %841, %782 : vector<2x32xf32>
    %853 = arith.mulf %833, %843 : vector<2x32xf32>
    %854 = arith.addf %852, %853 : vector<2x32xf32>
    %855 = math.tanh %854 : vector<2x32xf32>
    %856 = arith.mulf %851, %855 : vector<2x32xf32>
    %c1_338 = arith.constant 1 : index
    %c6 = arith.constant 6 : index
    %c0_339 = arith.constant 0 : index
    %c0_340 = arith.constant 0 : index
    %857 = vector.load %arg8[%c1_338, %c6, %c0_339, %c0_340] : memref<2x8x2x32xf32, #tpu.memory_space<vmem>>, vector<1x1x2x32xf32>
    %858 = vector.shape_cast %857 : vector<1x1x2x32xf32> to vector<2x32xf32>
    %859 = vector.shape_cast %856 : vector<2x32xf32> to vector<1x1x2x32xf32>
    tpu.vector_store %arg8[%c1_338, %c6, %c0_339, %c0_340], %859 {strides = array<i32>} : memref<2x8x2x32xf32, #tpu.memory_space<vmem>>, vector<1x1x2x32xf32>,
    %cst_341 = arith.constant dense<0.000000e+00> : vector<2x128xf32>
    %860 = tpu.matmul %820, %705, %cst_341 {dimension_numbers = #tpu.dot_dimension_numbers<[1], [0], [0], [1], [0, 0, 1, 1], [], []>, precision = #tpu.contract_precision<fp32>} : vector<2x32xf32>, vector<32x128xf32>, vector<2x128xf32> -> vector<2x128xf32>
    %861 = arith.addf %608, %860 : vector<2x128xf32>
    %862 = vector.extract_strided_slice %861 {offsets = [0, 0], sizes = [2, 32], strides = [1, 1]} : vector<2x128xf32> to vector<2x32xf32>
    %cst_342 = arith.constant 5.000000e-01 : f32
    %863 = vector.broadcast %cst_342 : f32 to vector<2x32xf32>
    %864 = arith.mulf %863, %862 : vector<2x32xf32>
    %865 = math.tanh %864 : vector<2x32xf32>
    %cst_343 = arith.constant 1.000000e+00 : f32
    %866 = vector.broadcast %cst_343 : f32 to vector<2x32xf32>
    %867 = arith.addf %865, %866 : vector<2x32xf32>
    %cst_344 = arith.constant 5.000000e-01 : f32
    %868 = vector.broadcast %cst_344 : f32 to vector<2x32xf32>
    %869 = arith.mulf %868, %867 : vector<2x32xf32>
    %870 = vector.extract_strided_slice %861 {offsets = [0, 32], sizes = [2, 32], strides = [1, 1]} : vector<2x128xf32> to vector<2x32xf32>
    %cst_345 = arith.constant 5.000000e-01 : f32
    %871 = vector.broadcast %cst_345 : f32 to vector<2x32xf32>
    %872 = arith.mulf %871, %870 : vector<2x32xf32>
    %873 = math.tanh %872 : vector<2x32xf32>
    %cst_346 = arith.constant 1.000000e+00 : f32
    %874 = vector.broadcast %cst_346 : f32 to vector<2x32xf32>
    %875 = arith.addf %873, %874 : vector<2x32xf32>
    %cst_347 = arith.constant 5.000000e-01 : f32
    %876 = vector.broadcast %cst_347 : f32 to vector<2x32xf32>
    %877 = arith.mulf %876, %875 : vector<2x32xf32>
    %878 = vector.extract_strided_slice %861 {offsets = [0, 64], sizes = [2, 32], strides = [1, 1]} : vector<2x128xf32> to vector<2x32xf32>
    %879 = math.tanh %878 : vector<2x32xf32>
    %880 = vector.extract_strided_slice %861 {offsets = [0, 96], sizes = [2, 32], strides = [1, 1]} : vector<2x128xf32> to vector<2x32xf32>
    %cst_348 = arith.constant 5.000000e-01 : f32
    %881 = vector.broadcast %cst_348 : f32 to vector<2x32xf32>
    %882 = arith.mulf %881, %880 : vector<2x32xf32>
    %883 = math.tanh %882 : vector<2x32xf32>
    %cst_349 = arith.constant 1.000000e+00 : f32
    %884 = vector.broadcast %cst_349 : f32 to vector<2x32xf32>
    %885 = arith.addf %883, %884 : vector<2x32xf32>
    %cst_350 = arith.constant 5.000000e-01 : f32
    %886 = vector.broadcast %cst_350 : f32 to vector<2x32xf32>
    %887 = arith.mulf %886, %885 : vector<2x32xf32>
    %888 = arith.mulf %877, %818 : vector<2x32xf32>
    %889 = arith.mulf %869, %879 : vector<2x32xf32>
    %890 = arith.addf %888, %889 : vector<2x32xf32>
    %891 = math.tanh %890 : vector<2x32xf32>
    %892 = arith.mulf %887, %891 : vector<2x32xf32>
    %c0_351 = arith.constant 0 : index
    %c2 = arith.constant 2 : index
    %c0_352 = arith.constant 0 : index
    %c0_353 = arith.constant 0 : index
    %893 = vector.load %arg8[%c0_351, %c2, %c0_352, %c0_353] : memref<2x8x2x32xf32, #tpu.memory_space<vmem>>, vector<1x1x2x32xf32>
    %894 = vector.shape_cast %893 : vector<1x1x2x32xf32> to vector<2x32xf32>
    %895 = vector.shape_cast %892 : vector<2x32xf32> to vector<1x1x2x32xf32>
    tpu.vector_store %arg8[%c0_351, %c2, %c0_352, %c0_353], %895 {strides = array<i32>} : memref<2x8x2x32xf32, #tpu.memory_space<vmem>>, vector<1x1x2x32xf32>,
    %cst_354 = arith.constant dense<0.000000e+00> : vector<2x128xf32>
    %896 = tpu.matmul %856, %707, %cst_354 {dimension_numbers = #tpu.dot_dimension_numbers<[1], [0], [0], [1], [0, 0, 1, 1], [], []>, precision = #tpu.contract_precision<fp32>} : vector<2x32xf32>, vector<32x128xf32>, vector<2x128xf32> -> vector<2x128xf32>
    %897 = arith.addf %689, %896 : vector<2x128xf32>
    %898 = vector.extract_strided_slice %897 {offsets = [0, 0], sizes = [2, 32], strides = [1, 1]} : vector<2x128xf32> to vector<2x32xf32>
    %cst_355 = arith.constant 5.000000e-01 : f32
    %899 = vector.broadcast %cst_355 : f32 to vector<2x32xf32>
    %900 = arith.mulf %899, %898 : vector<2x32xf32>
    %901 = math.tanh %900 : vector<2x32xf32>
    %cst_356 = arith.constant 1.000000e+00 : f32
    %902 = vector.broadcast %cst_356 : f32 to vector<2x32xf32>
    %903 = arith.addf %901, %902 : vector<2x32xf32>
    %cst_357 = arith.constant 5.000000e-01 : f32
    %904 = vector.broadcast %cst_357 : f32 to vector<2x32xf32>
    %905 = arith.mulf %904, %903 : vector<2x32xf32>
    %906 = vector.extract_strided_slice %897 {offsets = [0, 32], sizes = [2, 32], strides = [1, 1]} : vector<2x128xf32> to vector<2x32xf32>
    %cst_358 = arith.constant 5.000000e-01 : f32
    %907 = vector.broadcast %cst_358 : f32 to vector<2x32xf32>
    %908 = arith.mulf %907, %906 : vector<2x32xf32>
    %909 = math.tanh %908 : vector<2x32xf32>
    %cst_359 = arith.constant 1.000000e+00 : f32
    %910 = vector.broadcast %cst_359 : f32 to vector<2x32xf32>
    %911 = arith.addf %909, %910 : vector<2x32xf32>
    %cst_360 = arith.constant 5.000000e-01 : f32
    %912 = vector.broadcast %cst_360 : f32 to vector<2x32xf32>
    %913 = arith.mulf %912, %911 : vector<2x32xf32>
    %914 = vector.extract_strided_slice %897 {offsets = [0, 64], sizes = [2, 32], strides = [1, 1]} : vector<2x128xf32> to vector<2x32xf32>
    %915 = math.tanh %914 : vector<2x32xf32>
    %916 = vector.extract_strided_slice %897 {offsets = [0, 96], sizes = [2, 32], strides = [1, 1]} : vector<2x128xf32> to vector<2x32xf32>
    %cst_361 = arith.constant 5.000000e-01 : f32
    %917 = vector.broadcast %cst_361 : f32 to vector<2x32xf32>
    %918 = arith.mulf %917, %916 : vector<2x32xf32>
    %919 = math.tanh %918 : vector<2x32xf32>
    %cst_362 = arith.constant 1.000000e+00 : f32
    %920 = vector.broadcast %cst_362 : f32 to vector<2x32xf32>
    %921 = arith.addf %919, %920 : vector<2x32xf32>
    %cst_363 = arith.constant 5.000000e-01 : f32
    %922 = vector.broadcast %cst_363 : f32 to vector<2x32xf32>
    %923 = arith.mulf %922, %921 : vector<2x32xf32>
    %924 = arith.mulf %913, %854 : vector<2x32xf32>
    %925 = arith.mulf %905, %915 : vector<2x32xf32>
    %926 = arith.addf %924, %925 : vector<2x32xf32>
    %927 = math.tanh %926 : vector<2x32xf32>
    %928 = arith.mulf %923, %927 : vector<2x32xf32>
    %c1_364 = arith.constant 1 : index
    %c5 = arith.constant 5 : index
    %c0_365 = arith.constant 0 : index
    %c0_366 = arith.constant 0 : index
    %929 = vector.load %arg8[%c1_364, %c5, %c0_365, %c0_366] : memref<2x8x2x32xf32, #tpu.memory_space<vmem>>, vector<1x1x2x32xf32>
    %930 = vector.shape_cast %929 : vector<1x1x2x32xf32> to vector<2x32xf32>
    %931 = vector.shape_cast %928 : vector<2x32xf32> to vector<1x1x2x32xf32>
    tpu.vector_store %arg8[%c1_364, %c5, %c0_365, %c0_366], %931 {strides = array<i32>} : memref<2x8x2x32xf32, #tpu.memory_space<vmem>>, vector<1x1x2x32xf32>,
    %cst_367 = arith.constant dense<0.000000e+00> : vector<2x128xf32>
    %932 = tpu.matmul %892, %705, %cst_367 {dimension_numbers = #tpu.dot_dimension_numbers<[1], [0], [0], [1], [0, 0, 1, 1], [], []>, precision = #tpu.contract_precision<fp32>} : vector<2x32xf32>, vector<32x128xf32>, vector<2x128xf32> -> vector<2x128xf32>
    %933 = arith.addf %615, %932 : vector<2x128xf32>
    %934 = vector.extract_strided_slice %933 {offsets = [0, 0], sizes = [2, 32], strides = [1, 1]} : vector<2x128xf32> to vector<2x32xf32>
    %cst_368 = arith.constant 5.000000e-01 : f32
    %935 = vector.broadcast %cst_368 : f32 to vector<2x32xf32>
    %936 = arith.mulf %935, %934 : vector<2x32xf32>
    %937 = math.tanh %936 : vector<2x32xf32>
    %cst_369 = arith.constant 1.000000e+00 : f32
    %938 = vector.broadcast %cst_369 : f32 to vector<2x32xf32>
    %939 = arith.addf %937, %938 : vector<2x32xf32>
    %cst_370 = arith.constant 5.000000e-01 : f32
    %940 = vector.broadcast %cst_370 : f32 to vector<2x32xf32>
    %941 = arith.mulf %940, %939 : vector<2x32xf32>
    %942 = vector.extract_strided_slice %933 {offsets = [0, 32], sizes = [2, 32], strides = [1, 1]} : vector<2x128xf32> to vector<2x32xf32>
    %cst_371 = arith.constant 5.000000e-01 : f32
    %943 = vector.broadcast %cst_371 : f32 to vector<2x32xf32>
    %944 = arith.mulf %943, %942 : vector<2x32xf32>
    %945 = math.tanh %944 : vector<2x32xf32>
    %cst_372 = arith.constant 1.000000e+00 : f32
    %946 = vector.broadcast %cst_372 : f32 to vector<2x32xf32>
    %947 = arith.addf %945, %946 : vector<2x32xf32>
    %cst_373 = arith.constant 5.000000e-01 : f32
    %948 = vector.broadcast %cst_373 : f32 to vector<2x32xf32>
    %949 = arith.mulf %948, %947 : vector<2x32xf32>
    %950 = vector.extract_strided_slice %933 {offsets = [0, 64], sizes = [2, 32], strides = [1, 1]} : vector<2x128xf32> to vector<2x32xf32>
    %951 = math.tanh %950 : vector<2x32xf32>
    %952 = vector.extract_strided_slice %933 {offsets = [0, 96], sizes = [2, 32], strides = [1, 1]} : vector<2x128xf32> to vector<2x32xf32>
    %cst_374 = arith.constant 5.000000e-01 : f32
    %953 = vector.broadcast %cst_374 : f32 to vector<2x32xf32>
    %954 = arith.mulf %953, %952 : vector<2x32xf32>
    %955 = math.tanh %954 : vector<2x32xf32>
    %cst_375 = arith.constant 1.000000e+00 : f32
    %956 = vector.broadcast %cst_375 : f32 to vector<2x32xf32>
    %957 = arith.addf %955, %956 : vector<2x32xf32>
    %cst_376 = arith.constant 5.000000e-01 : f32
    %958 = vector.broadcast %cst_376 : f32 to vector<2x32xf32>
    %959 = arith.mulf %958, %957 : vector<2x32xf32>
    %960 = arith.mulf %949, %890 : vector<2x32xf32>
    %961 = arith.mulf %941, %951 : vector<2x32xf32>
    %962 = arith.addf %960, %961 : vector<2x32xf32>
    %963 = math.tanh %962 : vector<2x32xf32>
    %964 = arith.mulf %959, %963 : vector<2x32xf32>
    %c0_377 = arith.constant 0 : index
    %c3 = arith.constant 3 : index
    %c0_378 = arith.constant 0 : index
    %c0_379 = arith.constant 0 : index
    %965 = vector.load %arg8[%c0_377, %c3, %c0_378, %c0_379] : memref<2x8x2x32xf32, #tpu.memory_space<vmem>>, vector<1x1x2x32xf32>
    %966 = vector.shape_cast %965 : vector<1x1x2x32xf32> to vector<2x32xf32>
    %967 = vector.shape_cast %964 : vector<2x32xf32> to vector<1x1x2x32xf32>
    tpu.vector_store %arg8[%c0_377, %c3, %c0_378, %c0_379], %967 {strides = array<i32>} : memref<2x8x2x32xf32, #tpu.memory_space<vmem>>, vector<1x1x2x32xf32>,
    %cst_380 = arith.constant dense<0.000000e+00> : vector<2x128xf32>
    %968 = tpu.matmul %928, %707, %cst_380 {dimension_numbers = #tpu.dot_dimension_numbers<[1], [0], [0], [1], [0, 0, 1, 1], [], []>, precision = #tpu.contract_precision<fp32>} : vector<2x32xf32>, vector<32x128xf32>, vector<2x128xf32> -> vector<2x128xf32>
    %969 = arith.addf %682, %968 : vector<2x128xf32>
    %970 = vector.extract_strided_slice %969 {offsets = [0, 0], sizes = [2, 32], strides = [1, 1]} : vector<2x128xf32> to vector<2x32xf32>
    %cst_381 = arith.constant 5.000000e-01 : f32
    %971 = vector.broadcast %cst_381 : f32 to vector<2x32xf32>
    %972 = arith.mulf %971, %970 : vector<2x32xf32>
    %973 = math.tanh %972 : vector<2x32xf32>
    %cst_382 = arith.constant 1.000000e+00 : f32
    %974 = vector.broadcast %cst_382 : f32 to vector<2x32xf32>
    %975 = arith.addf %973, %974 : vector<2x32xf32>
    %cst_383 = arith.constant 5.000000e-01 : f32
    %976 = vector.broadcast %cst_383 : f32 to vector<2x32xf32>
    %977 = arith.mulf %976, %975 : vector<2x32xf32>
    %978 = vector.extract_strided_slice %969 {offsets = [0, 32], sizes = [2, 32], strides = [1, 1]} : vector<2x128xf32> to vector<2x32xf32>
    %cst_384 = arith.constant 5.000000e-01 : f32
    %979 = vector.broadcast %cst_384 : f32 to vector<2x32xf32>
    %980 = arith.mulf %979, %978 : vector<2x32xf32>
    %981 = math.tanh %980 : vector<2x32xf32>
    %cst_385 = arith.constant 1.000000e+00 : f32
    %982 = vector.broadcast %cst_385 : f32 to vector<2x32xf32>
    %983 = arith.addf %981, %982 : vector<2x32xf32>
    %cst_386 = arith.constant 5.000000e-01 : f32
    %984 = vector.broadcast %cst_386 : f32 to vector<2x32xf32>
    %985 = arith.mulf %984, %983 : vector<2x32xf32>
    %986 = vector.extract_strided_slice %969 {offsets = [0, 64], sizes = [2, 32], strides = [1, 1]} : vector<2x128xf32> to vector<2x32xf32>
    %987 = math.tanh %986 : vector<2x32xf32>
    %988 = vector.extract_strided_slice %969 {offsets = [0, 96], sizes = [2, 32], strides = [1, 1]} : vector<2x128xf32> to vector<2x32xf32>
    %cst_387 = arith.constant 5.000000e-01 : f32
    %989 = vector.broadcast %cst_387 : f32 to vector<2x32xf32>
    %990 = arith.mulf %989, %988 : vector<2x32xf32>
    %991 = math.tanh %990 : vector<2x32xf32>
    %cst_388 = arith.constant 1.000000e+00 : f32
    %992 = vector.broadcast %cst_388 : f32 to vector<2x32xf32>
    %993 = arith.addf %991, %992 : vector<2x32xf32>
    %cst_389 = arith.constant 5.000000e-01 : f32
    %994 = vector.broadcast %cst_389 : f32 to vector<2x32xf32>
    %995 = arith.mulf %994, %993 : vector<2x32xf32>
    %996 = arith.mulf %985, %926 : vector<2x32xf32>
    %997 = arith.mulf %977, %987 : vector<2x32xf32>
    %998 = arith.addf %996, %997 : vector<2x32xf32>
    %999 = math.tanh %998 : vector<2x32xf32>
    %1000 = arith.mulf %995, %999 : vector<2x32xf32>
    %c1_390 = arith.constant 1 : index
    %c4 = arith.constant 4 : index
    %c0_391 = arith.constant 0 : index
    %c0_392 = arith.constant 0 : index
    %1001 = vector.load %arg8[%c1_390, %c4, %c0_391, %c0_392] : memref<2x8x2x32xf32, #tpu.memory_space<vmem>>, vector<1x1x2x32xf32>
    %1002 = vector.shape_cast %1001 : vector<1x1x2x32xf32> to vector<2x32xf32>
    %1003 = vector.shape_cast %1000 : vector<2x32xf32> to vector<1x1x2x32xf32>
    tpu.vector_store %arg8[%c1_390, %c4, %c0_391, %c0_392], %1003 {strides = array<i32>} : memref<2x8x2x32xf32, #tpu.memory_space<vmem>>, vector<1x1x2x32xf32>,
    %cst_393 = arith.constant dense<0.000000e+00> : vector<2x128xf32>
    %1004 = tpu.matmul %964, %705, %cst_393 {dimension_numbers = #tpu.dot_dimension_numbers<[1], [0], [0], [1], [0, 0, 1, 1], [], []>, precision = #tpu.contract_precision<fp32>} : vector<2x32xf32>, vector<32x128xf32>, vector<2x128xf32> -> vector<2x128xf32>
    %1005 = arith.addf %622, %1004 : vector<2x128xf32>
    %1006 = vector.extract_strided_slice %1005 {offsets = [0, 0], sizes = [2, 32], strides = [1, 1]} : vector<2x128xf32> to vector<2x32xf32>
    %cst_394 = arith.constant 5.000000e-01 : f32
    %1007 = vector.broadcast %cst_394 : f32 to vector<2x32xf32>
    %1008 = arith.mulf %1007, %1006 : vector<2x32xf32>
    %1009 = math.tanh %1008 : vector<2x32xf32>
    %cst_395 = arith.constant 1.000000e+00 : f32
    %1010 = vector.broadcast %cst_395 : f32 to vector<2x32xf32>
    %1011 = arith.addf %1009, %1010 : vector<2x32xf32>
    %cst_396 = arith.constant 5.000000e-01 : f32
    %1012 = vector.broadcast %cst_396 : f32 to vector<2x32xf32>
    %1013 = arith.mulf %1012, %1011 : vector<2x32xf32>
    %1014 = vector.extract_strided_slice %1005 {offsets = [0, 32], sizes = [2, 32], strides = [1, 1]} : vector<2x128xf32> to vector<2x32xf32>
    %cst_397 = arith.constant 5.000000e-01 : f32
    %1015 = vector.broadcast %cst_397 : f32 to vector<2x32xf32>
    %1016 = arith.mulf %1015, %1014 : vector<2x32xf32>
    %1017 = math.tanh %1016 : vector<2x32xf32>
    %cst_398 = arith.constant 1.000000e+00 : f32
    %1018 = vector.broadcast %cst_398 : f32 to vector<2x32xf32>
    %1019 = arith.addf %1017, %1018 : vector<2x32xf32>
    %cst_399 = arith.constant 5.000000e-01 : f32
    %1020 = vector.broadcast %cst_399 : f32 to vector<2x32xf32>
    %1021 = arith.mulf %1020, %1019 : vector<2x32xf32>
    %1022 = vector.extract_strided_slice %1005 {offsets = [0, 64], sizes = [2, 32], strides = [1, 1]} : vector<2x128xf32> to vector<2x32xf32>
    %1023 = math.tanh %1022 : vector<2x32xf32>
    %1024 = vector.extract_strided_slice %1005 {offsets = [0, 96], sizes = [2, 32], strides = [1, 1]} : vector<2x128xf32> to vector<2x32xf32>
    %cst_400 = arith.constant 5.000000e-01 : f32
    %1025 = vector.broadcast %cst_400 : f32 to vector<2x32xf32>
    %1026 = arith.mulf %1025, %1024 : vector<2x32xf32>
    %1027 = math.tanh %1026 : vector<2x32xf32>
    %cst_401 = arith.constant 1.000000e+00 : f32
    %1028 = vector.broadcast %cst_401 : f32 to vector<2x32xf32>
    %1029 = arith.addf %1027, %1028 : vector<2x32xf32>
    %cst_402 = arith.constant 5.000000e-01 : f32
    %1030 = vector.broadcast %cst_402 : f32 to vector<2x32xf32>
    %1031 = arith.mulf %1030, %1029 : vector<2x32xf32>
    %1032 = arith.mulf %1021, %962 : vector<2x32xf32>
    %1033 = arith.mulf %1013, %1023 : vector<2x32xf32>
    %1034 = arith.addf %1032, %1033 : vector<2x32xf32>
    %1035 = math.tanh %1034 : vector<2x32xf32>
    %1036 = arith.mulf %1031, %1035 : vector<2x32xf32>
    %c0_403 = arith.constant 0 : index
    %c4_404 = arith.constant 4 : index
    %c0_405 = arith.constant 0 : index
    %c0_406 = arith.constant 0 : index
    %1037 = vector.load %arg8[%c0_403, %c4_404, %c0_405, %c0_406] : memref<2x8x2x32xf32, #tpu.memory_space<vmem>>, vector<1x1x2x32xf32>
    %1038 = vector.shape_cast %1037 : vector<1x1x2x32xf32> to vector<2x32xf32>
    %1039 = vector.shape_cast %1036 : vector<2x32xf32> to vector<1x1x2x32xf32>
    tpu.vector_store %arg8[%c0_403, %c4_404, %c0_405, %c0_406], %1039 {strides = array<i32>} : memref<2x8x2x32xf32, #tpu.memory_space<vmem>>, vector<1x1x2x32xf32>,
    %cst_407 = arith.constant dense<0.000000e+00> : vector<2x128xf32>
    %1040 = tpu.matmul %1000, %707, %cst_407 {dimension_numbers = #tpu.dot_dimension_numbers<[1], [0], [0], [1], [0, 0, 1, 1], [], []>, precision = #tpu.contract_precision<fp32>} : vector<2x32xf32>, vector<32x128xf32>, vector<2x128xf32> -> vector<2x128xf32>
    %1041 = arith.addf %675, %1040 : vector<2x128xf32>
    %1042 = vector.extract_strided_slice %1041 {offsets = [0, 0], sizes = [2, 32], strides = [1, 1]} : vector<2x128xf32> to vector<2x32xf32>
    %cst_408 = arith.constant 5.000000e-01 : f32
    %1043 = vector.broadcast %cst_408 : f32 to vector<2x32xf32>
    %1044 = arith.mulf %1043, %1042 : vector<2x32xf32>
    %1045 = math.tanh %1044 : vector<2x32xf32>
    %cst_409 = arith.constant 1.000000e+00 : f32
    %1046 = vector.broadcast %cst_409 : f32 to vector<2x32xf32>
    %1047 = arith.addf %1045, %1046 : vector<2x32xf32>
    %cst_410 = arith.constant 5.000000e-01 : f32
    %1048 = vector.broadcast %cst_410 : f32 to vector<2x32xf32>
    %1049 = arith.mulf %1048, %1047 : vector<2x32xf32>
    %1050 = vector.extract_strided_slice %1041 {offsets = [0, 32], sizes = [2, 32], strides = [1, 1]} : vector<2x128xf32> to vector<2x32xf32>
    %cst_411 = arith.constant 5.000000e-01 : f32
    %1051 = vector.broadcast %cst_411 : f32 to vector<2x32xf32>
    %1052 = arith.mulf %1051, %1050 : vector<2x32xf32>
    %1053 = math.tanh %1052 : vector<2x32xf32>
    %cst_412 = arith.constant 1.000000e+00 : f32
    %1054 = vector.broadcast %cst_412 : f32 to vector<2x32xf32>
    %1055 = arith.addf %1053, %1054 : vector<2x32xf32>
    %cst_413 = arith.constant 5.000000e-01 : f32
    %1056 = vector.broadcast %cst_413 : f32 to vector<2x32xf32>
    %1057 = arith.mulf %1056, %1055 : vector<2x32xf32>
    %1058 = vector.extract_strided_slice %1041 {offsets = [0, 64], sizes = [2, 32], strides = [1, 1]} : vector<2x128xf32> to vector<2x32xf32>
    %1059 = math.tanh %1058 : vector<2x32xf32>
    %1060 = vector.extract_strided_slice %1041 {offsets = [0, 96], sizes = [2, 32], strides = [1, 1]} : vector<2x128xf32> to vector<2x32xf32>
    %cst_414 = arith.constant 5.000000e-01 : f32
    %1061 = vector.broadcast %cst_414 : f32 to vector<2x32xf32>
    %1062 = arith.mulf %1061, %1060 : vector<2x32xf32>
    %1063 = math.tanh %1062 : vector<2x32xf32>
    %cst_415 = arith.constant 1.000000e+00 : f32
    %1064 = vector.broadcast %cst_415 : f32 to vector<2x32xf32>
    %1065 = arith.addf %1063, %1064 : vector<2x32xf32>
    %cst_416 = arith.constant 5.000000e-01 : f32
    %1066 = vector.broadcast %cst_416 : f32 to vector<2x32xf32>
    %1067 = arith.mulf %1066, %1065 : vector<2x32xf32>
    %1068 = arith.mulf %1057, %998 : vector<2x32xf32>
    %1069 = arith.mulf %1049, %1059 : vector<2x32xf32>
    %1070 = arith.addf %1068, %1069 : vector<2x32xf32>
    %1071 = math.tanh %1070 : vector<2x32xf32>
    %1072 = arith.mulf %1067, %1071 : vector<2x32xf32>
    %c1_417 = arith.constant 1 : index
    %c3_418 = arith.constant 3 : index
    %c0_419 = arith.constant 0 : index
    %c0_420 = arith.constant 0 : index
    %1073 = vector.load %arg8[%c1_417, %c3_418, %c0_419, %c0_420] : memref<2x8x2x32xf32, #tpu.memory_space<vmem>>, vector<1x1x2x32xf32>
    %1074 = vector.shape_cast %1073 : vector<1x1x2x32xf32> to vector<2x32xf32>
    %1075 = vector.shape_cast %1072 : vector<2x32xf32> to vector<1x1x2x32xf32>
    tpu.vector_store %arg8[%c1_417, %c3_418, %c0_419, %c0_420], %1075 {strides = array<i32>} : memref<2x8x2x32xf32, #tpu.memory_space<vmem>>, vector<1x1x2x32xf32>,
    %cst_421 = arith.constant dense<0.000000e+00> : vector<2x128xf32>
    %1076 = tpu.matmul %1036, %705, %cst_421 {dimension_numbers = #tpu.dot_dimension_numbers<[1], [0], [0], [1], [0, 0, 1, 1], [], []>, precision = #tpu.contract_precision<fp32>} : vector<2x32xf32>, vector<32x128xf32>, vector<2x128xf32> -> vector<2x128xf32>
    %1077 = arith.addf %629, %1076 : vector<2x128xf32>
    %1078 = vector.extract_strided_slice %1077 {offsets = [0, 0], sizes = [2, 32], strides = [1, 1]} : vector<2x128xf32> to vector<2x32xf32>
    %cst_422 = arith.constant 5.000000e-01 : f32
    %1079 = vector.broadcast %cst_422 : f32 to vector<2x32xf32>
    %1080 = arith.mulf %1079, %1078 : vector<2x32xf32>
    %1081 = math.tanh %1080 : vector<2x32xf32>
    %cst_423 = arith.constant 1.000000e+00 : f32
    %1082 = vector.broadcast %cst_423 : f32 to vector<2x32xf32>
    %1083 = arith.addf %1081, %1082 : vector<2x32xf32>
    %cst_424 = arith.constant 5.000000e-01 : f32
    %1084 = vector.broadcast %cst_424 : f32 to vector<2x32xf32>
    %1085 = arith.mulf %1084, %1083 : vector<2x32xf32>
    %1086 = vector.extract_strided_slice %1077 {offsets = [0, 32], sizes = [2, 32], strides = [1, 1]} : vector<2x128xf32> to vector<2x32xf32>
    %cst_425 = arith.constant 5.000000e-01 : f32
    %1087 = vector.broadcast %cst_425 : f32 to vector<2x32xf32>
    %1088 = arith.mulf %1087, %1086 : vector<2x32xf32>
    %1089 = math.tanh %1088 : vector<2x32xf32>
    %cst_426 = arith.constant 1.000000e+00 : f32
    %1090 = vector.broadcast %cst_426 : f32 to vector<2x32xf32>
    %1091 = arith.addf %1089, %1090 : vector<2x32xf32>
    %cst_427 = arith.constant 5.000000e-01 : f32
    %1092 = vector.broadcast %cst_427 : f32 to vector<2x32xf32>
    %1093 = arith.mulf %1092, %1091 : vector<2x32xf32>
    %1094 = vector.extract_strided_slice %1077 {offsets = [0, 64], sizes = [2, 32], strides = [1, 1]} : vector<2x128xf32> to vector<2x32xf32>
    %1095 = math.tanh %1094 : vector<2x32xf32>
    %1096 = vector.extract_strided_slice %1077 {offsets = [0, 96], sizes = [2, 32], strides = [1, 1]} : vector<2x128xf32> to vector<2x32xf32>
    %cst_428 = arith.constant 5.000000e-01 : f32
    %1097 = vector.broadcast %cst_428 : f32 to vector<2x32xf32>
    %1098 = arith.mulf %1097, %1096 : vector<2x32xf32>
    %1099 = math.tanh %1098 : vector<2x32xf32>
    %cst_429 = arith.constant 1.000000e+00 : f32
    %1100 = vector.broadcast %cst_429 : f32 to vector<2x32xf32>
    %1101 = arith.addf %1099, %1100 : vector<2x32xf32>
    %cst_430 = arith.constant 5.000000e-01 : f32
    %1102 = vector.broadcast %cst_430 : f32 to vector<2x32xf32>
    %1103 = arith.mulf %1102, %1101 : vector<2x32xf32>
    %1104 = arith.mulf %1093, %1034 : vector<2x32xf32>
    %1105 = arith.mulf %1085, %1095 : vector<2x32xf32>
    %1106 = arith.addf %1104, %1105 : vector<2x32xf32>
    %1107 = math.tanh %1106 : vector<2x32xf32>
    %1108 = arith.mulf %1103, %1107 : vector<2x32xf32>
    %c0_431 = arith.constant 0 : index
    %c5_432 = arith.constant 5 : index
    %c0_433 = arith.constant 0 : index
    %c0_434 = arith.constant 0 : index
    %1109 = vector.load %arg8[%c0_431, %c5_432, %c0_433, %c0_434] : memref<2x8x2x32xf32, #tpu.memory_space<vmem>>, vector<1x1x2x32xf32>
    %1110 = vector.shape_cast %1109 : vector<1x1x2x32xf32> to vector<2x32xf32>
    %1111 = vector.shape_cast %1108 : vector<2x32xf32> to vector<1x1x2x32xf32>
    tpu.vector_store %arg8[%c0_431, %c5_432, %c0_433, %c0_434], %1111 {strides = array<i32>} : memref<2x8x2x32xf32, #tpu.memory_space<vmem>>, vector<1x1x2x32xf32>,
    %cst_435 = arith.constant dense<0.000000e+00> : vector<2x128xf32>
    %1112 = tpu.matmul %1072, %707, %cst_435 {dimension_numbers = #tpu.dot_dimension_numbers<[1], [0], [0], [1], [0, 0, 1, 1], [], []>, precision = #tpu.contract_precision<fp32>} : vector<2x32xf32>, vector<32x128xf32>, vector<2x128xf32> -> vector<2x128xf32>
    %1113 = arith.addf %668, %1112 : vector<2x128xf32>
    %1114 = vector.extract_strided_slice %1113 {offsets = [0, 0], sizes = [2, 32], strides = [1, 1]} : vector<2x128xf32> to vector<2x32xf32>
    %cst_436 = arith.constant 5.000000e-01 : f32
    %1115 = vector.broadcast %cst_436 : f32 to vector<2x32xf32>
    %1116 = arith.mulf %1115, %1114 : vector<2x32xf32>
    %1117 = math.tanh %1116 : vector<2x32xf32>
    %cst_437 = arith.constant 1.000000e+00 : f32
    %1118 = vector.broadcast %cst_437 : f32 to vector<2x32xf32>
    %1119 = arith.addf %1117, %1118 : vector<2x32xf32>
    %cst_438 = arith.constant 5.000000e-01 : f32
    %1120 = vector.broadcast %cst_438 : f32 to vector<2x32xf32>
    %1121 = arith.mulf %1120, %1119 : vector<2x32xf32>
    %1122 = vector.extract_strided_slice %1113 {offsets = [0, 32], sizes = [2, 32], strides = [1, 1]} : vector<2x128xf32> to vector<2x32xf32>
    %cst_439 = arith.constant 5.000000e-01 : f32
    %1123 = vector.broadcast %cst_439 : f32 to vector<2x32xf32>
    %1124 = arith.mulf %1123, %1122 : vector<2x32xf32>
    %1125 = math.tanh %1124 : vector<2x32xf32>
    %cst_440 = arith.constant 1.000000e+00 : f32
    %1126 = vector.broadcast %cst_440 : f32 to vector<2x32xf32>
    %1127 = arith.addf %1125, %1126 : vector<2x32xf32>
    %cst_441 = arith.constant 5.000000e-01 : f32
    %1128 = vector.broadcast %cst_441 : f32 to vector<2x32xf32>
    %1129 = arith.mulf %1128, %1127 : vector<2x32xf32>
    %1130 = vector.extract_strided_slice %1113 {offsets = [0, 64], sizes = [2, 32], strides = [1, 1]} : vector<2x128xf32> to vector<2x32xf32>
    %1131 = math.tanh %1130 : vector<2x32xf32>
    %1132 = vector.extract_strided_slice %1113 {offsets = [0, 96], sizes = [2, 32], strides = [1, 1]} : vector<2x128xf32> to vector<2x32xf32>
    %cst_442 = arith.constant 5.000000e-01 : f32
    %1133 = vector.broadcast %cst_442 : f32 to vector<2x32xf32>
    %1134 = arith.mulf %1133, %1132 : vector<2x32xf32>
    %1135 = math.tanh %1134 : vector<2x32xf32>
    %cst_443 = arith.constant 1.000000e+00 : f32
    %1136 = vector.broadcast %cst_443 : f32 to vector<2x32xf32>
    %1137 = arith.addf %1135, %1136 : vector<2x32xf32>
    %cst_444 = arith.constant 5.000000e-01 : f32
    %1138 = vector.broadcast %cst_444 : f32 to vector<2x32xf32>
    %1139 = arith.mulf %1138, %1137 : vector<2x32xf32>
    %1140 = arith.mulf %1129, %1070 : vector<2x32xf32>
    %1141 = arith.mulf %1121, %1131 : vector<2x32xf32>
    %1142 = arith.addf %1140, %1141 : vector<2x32xf32>
    %1143 = math.tanh %1142 : vector<2x32xf32>
    %1144 = arith.mulf %1139, %1143 : vector<2x32xf32>
    %c1_445 = arith.constant 1 : index
    %c2_446 = arith.constant 2 : index
    %c0_447 = arith.constant 0 : index
    %c0_448 = arith.constant 0 : index
    %1145 = vector.load %arg8[%c1_445, %c2_446, %c0_447, %c0_448] : memref<2x8x2x32xf32, #tpu.memory_space<vmem>>, vector<1x1x2x32xf32>
    %1146 = vector.shape_cast %1145 : vector<1x1x2x32xf32> to vector<2x32xf32>
    %1147 = vector.shape_cast %1144 : vector<2x32xf32> to vector<1x1x2x32xf32>
    tpu.vector_store %arg8[%c1_445, %c2_446, %c0_447, %c0_448], %1147 {strides = array<i32>} : memref<2x8x2x32xf32, #tpu.memory_space<vmem>>, vector<1x1x2x32xf32>,
    %cst_449 = arith.constant dense<0.000000e+00> : vector<2x128xf32>
    %1148 = tpu.matmul %1108, %705, %cst_449 {dimension_numbers = #tpu.dot_dimension_numbers<[1], [0], [0], [1], [0, 0, 1, 1], [], []>, precision = #tpu.contract_precision<fp32>} : vector<2x32xf32>, vector<32x128xf32>, vector<2x128xf32> -> vector<2x128xf32>
    %1149 = arith.addf %636, %1148 : vector<2x128xf32>
    %1150 = vector.extract_strided_slice %1149 {offsets = [0, 0], sizes = [2, 32], strides = [1, 1]} : vector<2x128xf32> to vector<2x32xf32>
    %cst_450 = arith.constant 5.000000e-01 : f32
    %1151 = vector.broadcast %cst_450 : f32 to vector<2x32xf32>
    %1152 = arith.mulf %1151, %1150 : vector<2x32xf32>
    %1153 = math.tanh %1152 : vector<2x32xf32>
    %cst_451 = arith.constant 1.000000e+00 : f32
    %1154 = vector.broadcast %cst_451 : f32 to vector<2x32xf32>
    %1155 = arith.addf %1153, %1154 : vector<2x32xf32>
    %cst_452 = arith.constant 5.000000e-01 : f32
    %1156 = vector.broadcast %cst_452 : f32 to vector<2x32xf32>
    %1157 = arith.mulf %1156, %1155 : vector<2x32xf32>
    %1158 = vector.extract_strided_slice %1149 {offsets = [0, 32], sizes = [2, 32], strides = [1, 1]} : vector<2x128xf32> to vector<2x32xf32>
    %cst_453 = arith.constant 5.000000e-01 : f32
    %1159 = vector.broadcast %cst_453 : f32 to vector<2x32xf32>
    %1160 = arith.mulf %1159, %1158 : vector<2x32xf32>
    %1161 = math.tanh %1160 : vector<2x32xf32>
    %cst_454 = arith.constant 1.000000e+00 : f32
    %1162 = vector.broadcast %cst_454 : f32 to vector<2x32xf32>
    %1163 = arith.addf %1161, %1162 : vector<2x32xf32>
    %cst_455 = arith.constant 5.000000e-01 : f32
    %1164 = vector.broadcast %cst_455 : f32 to vector<2x32xf32>
    %1165 = arith.mulf %1164, %1163 : vector<2x32xf32>
    %1166 = vector.extract_strided_slice %1149 {offsets = [0, 64], sizes = [2, 32], strides = [1, 1]} : vector<2x128xf32> to vector<2x32xf32>
    %1167 = math.tanh %1166 : vector<2x32xf32>
    %1168 = vector.extract_strided_slice %1149 {offsets = [0, 96], sizes = [2, 32], strides = [1, 1]} : vector<2x128xf32> to vector<2x32xf32>
    %cst_456 = arith.constant 5.000000e-01 : f32
    %1169 = vector.broadcast %cst_456 : f32 to vector<2x32xf32>
    %1170 = arith.mulf %1169, %1168 : vector<2x32xf32>
    %1171 = math.tanh %1170 : vector<2x32xf32>
    %cst_457 = arith.constant 1.000000e+00 : f32
    %1172 = vector.broadcast %cst_457 : f32 to vector<2x32xf32>
    %1173 = arith.addf %1171, %1172 : vector<2x32xf32>
    %cst_458 = arith.constant 5.000000e-01 : f32
    %1174 = vector.broadcast %cst_458 : f32 to vector<2x32xf32>
    %1175 = arith.mulf %1174, %1173 : vector<2x32xf32>
    %1176 = arith.mulf %1165, %1106 : vector<2x32xf32>
    %1177 = arith.mulf %1157, %1167 : vector<2x32xf32>
    %1178 = arith.addf %1176, %1177 : vector<2x32xf32>
    %1179 = math.tanh %1178 : vector<2x32xf32>
    %1180 = arith.mulf %1175, %1179 : vector<2x32xf32>
    %c0_459 = arith.constant 0 : index
    %c6_460 = arith.constant 6 : index
    %c0_461 = arith.constant 0 : index
    %c0_462 = arith.constant 0 : index
    %1181 = vector.load %arg8[%c0_459, %c6_460, %c0_461, %c0_462] : memref<2x8x2x32xf32, #tpu.memory_space<vmem>>, vector<1x1x2x32xf32>
    %1182 = vector.shape_cast %1181 : vector<1x1x2x32xf32> to vector<2x32xf32>
    %1183 = vector.shape_cast %1180 : vector<2x32xf32> to vector<1x1x2x32xf32>
    tpu.vector_store %arg8[%c0_459, %c6_460, %c0_461, %c0_462], %1183 {strides = array<i32>} : memref<2x8x2x32xf32, #tpu.memory_space<vmem>>, vector<1x1x2x32xf32>,
    %cst_463 = arith.constant dense<0.000000e+00> : vector<2x128xf32>
    %1184 = tpu.matmul %1144, %707, %cst_463 {dimension_numbers = #tpu.dot_dimension_numbers<[1], [0], [0], [1], [0, 0, 1, 1], [], []>, precision = #tpu.contract_precision<fp32>} : vector<2x32xf32>, vector<32x128xf32>, vector<2x128xf32> -> vector<2x128xf32>
    %1185 = arith.addf %661, %1184 : vector<2x128xf32>
    %1186 = vector.extract_strided_slice %1185 {offsets = [0, 0], sizes = [2, 32], strides = [1, 1]} : vector<2x128xf32> to vector<2x32xf32>
    %cst_464 = arith.constant 5.000000e-01 : f32
    %1187 = vector.broadcast %cst_464 : f32 to vector<2x32xf32>
    %1188 = arith.mulf %1187, %1186 : vector<2x32xf32>
    %1189 = math.tanh %1188 : vector<2x32xf32>
    %cst_465 = arith.constant 1.000000e+00 : f32
    %1190 = vector.broadcast %cst_465 : f32 to vector<2x32xf32>
    %1191 = arith.addf %1189, %1190 : vector<2x32xf32>
    %cst_466 = arith.constant 5.000000e-01 : f32
    %1192 = vector.broadcast %cst_466 : f32 to vector<2x32xf32>
    %1193 = arith.mulf %1192, %1191 : vector<2x32xf32>
    %1194 = vector.extract_strided_slice %1185 {offsets = [0, 32], sizes = [2, 32], strides = [1, 1]} : vector<2x128xf32> to vector<2x32xf32>
    %cst_467 = arith.constant 5.000000e-01 : f32
    %1195 = vector.broadcast %cst_467 : f32 to vector<2x32xf32>
    %1196 = arith.mulf %1195, %1194 : vector<2x32xf32>
    %1197 = math.tanh %1196 : vector<2x32xf32>
    %cst_468 = arith.constant 1.000000e+00 : f32
    %1198 = vector.broadcast %cst_468 : f32 to vector<2x32xf32>
    %1199 = arith.addf %1197, %1198 : vector<2x32xf32>
    %cst_469 = arith.constant 5.000000e-01 : f32
    %1200 = vector.broadcast %cst_469 : f32 to vector<2x32xf32>
    %1201 = arith.mulf %1200, %1199 : vector<2x32xf32>
    %1202 = vector.extract_strided_slice %1185 {offsets = [0, 64], sizes = [2, 32], strides = [1, 1]} : vector<2x128xf32> to vector<2x32xf32>
    %1203 = math.tanh %1202 : vector<2x32xf32>
    %1204 = vector.extract_strided_slice %1185 {offsets = [0, 96], sizes = [2, 32], strides = [1, 1]} : vector<2x128xf32> to vector<2x32xf32>
    %cst_470 = arith.constant 5.000000e-01 : f32
    %1205 = vector.broadcast %cst_470 : f32 to vector<2x32xf32>
    %1206 = arith.mulf %1205, %1204 : vector<2x32xf32>
    %1207 = math.tanh %1206 : vector<2x32xf32>
    %cst_471 = arith.constant 1.000000e+00 : f32
    %1208 = vector.broadcast %cst_471 : f32 to vector<2x32xf32>
    %1209 = arith.addf %1207, %1208 : vector<2x32xf32>
    %cst_472 = arith.constant 5.000000e-01 : f32
    %1210 = vector.broadcast %cst_472 : f32 to vector<2x32xf32>
    %1211 = arith.mulf %1210, %1209 : vector<2x32xf32>
    %1212 = arith.mulf %1201, %1142 : vector<2x32xf32>
    %1213 = arith.mulf %1193, %1203 : vector<2x32xf32>
    %1214 = arith.addf %1212, %1213 : vector<2x32xf32>
    %1215 = math.tanh %1214 : vector<2x32xf32>
    %1216 = arith.mulf %1211, %1215 : vector<2x32xf32>
    %c1_473 = arith.constant 1 : index
    %c1_474 = arith.constant 1 : index
    %c0_475 = arith.constant 0 : index
    %c0_476 = arith.constant 0 : index
    %1217 = vector.load %arg8[%c1_473, %c1_474, %c0_475, %c0_476] : memref<2x8x2x32xf32, #tpu.memory_space<vmem>>, vector<1x1x2x32xf32>
    %1218 = vector.shape_cast %1217 : vector<1x1x2x32xf32> to vector<2x32xf32>
    %1219 = vector.shape_cast %1216 : vector<2x32xf32> to vector<1x1x2x32xf32>
    tpu.vector_store %arg8[%c1_473, %c1_474, %c0_475, %c0_476], %1219 {strides = array<i32>} : memref<2x8x2x32xf32, #tpu.memory_space<vmem>>, vector<1x1x2x32xf32>,
    %cst_477 = arith.constant dense<0.000000e+00> : vector<2x128xf32>
    %1220 = tpu.matmul %1180, %705, %cst_477 {dimension_numbers = #tpu.dot_dimension_numbers<[1], [0], [0], [1], [0, 0, 1, 1], [], []>, precision = #tpu.contract_precision<fp32>} : vector<2x32xf32>, vector<32x128xf32>, vector<2x128xf32> -> vector<2x128xf32>
    %1221 = arith.addf %643, %1220 : vector<2x128xf32>
    %1222 = vector.extract_strided_slice %1221 {offsets = [0, 0], sizes = [2, 32], strides = [1, 1]} : vector<2x128xf32> to vector<2x32xf32>
    %cst_478 = arith.constant 5.000000e-01 : f32
    %1223 = vector.broadcast %cst_478 : f32 to vector<2x32xf32>
    %1224 = arith.mulf %1223, %1222 : vector<2x32xf32>
    %1225 = math.tanh %1224 : vector<2x32xf32>
    %cst_479 = arith.constant 1.000000e+00 : f32
    %1226 = vector.broadcast %cst_479 : f32 to vector<2x32xf32>
    %1227 = arith.addf %1225, %1226 : vector<2x32xf32>
    %cst_480 = arith.constant 5.000000e-01 : f32
    %1228 = vector.broadcast %cst_480 : f32 to vector<2x32xf32>
    %1229 = arith.mulf %1228, %1227 : vector<2x32xf32>
    %1230 = vector.extract_strided_slice %1221 {offsets = [0, 32], sizes = [2, 32], strides = [1, 1]} : vector<2x128xf32> to vector<2x32xf32>
    %cst_481 = arith.constant 5.000000e-01 : f32
    %1231 = vector.broadcast %cst_481 : f32 to vector<2x32xf32>
    %1232 = arith.mulf %1231, %1230 : vector<2x32xf32>
    %1233 = math.tanh %1232 : vector<2x32xf32>
    %cst_482 = arith.constant 1.000000e+00 : f32
    %1234 = vector.broadcast %cst_482 : f32 to vector<2x32xf32>
    %1235 = arith.addf %1233, %1234 : vector<2x32xf32>
    %cst_483 = arith.constant 5.000000e-01 : f32
    %1236 = vector.broadcast %cst_483 : f32 to vector<2x32xf32>
    %1237 = arith.mulf %1236, %1235 : vector<2x32xf32>
    %1238 = vector.extract_strided_slice %1221 {offsets = [0, 64], sizes = [2, 32], strides = [1, 1]} : vector<2x128xf32> to vector<2x32xf32>
    %1239 = math.tanh %1238 : vector<2x32xf32>
    %1240 = vector.extract_strided_slice %1221 {offsets = [0, 96], sizes = [2, 32], strides = [1, 1]} : vector<2x128xf32> to vector<2x32xf32>
    %cst_484 = arith.constant 5.000000e-01 : f32
    %1241 = vector.broadcast %cst_484 : f32 to vector<2x32xf32>
    %1242 = arith.mulf %1241, %1240 : vector<2x32xf32>
    %1243 = math.tanh %1242 : vector<2x32xf32>
    %cst_485 = arith.constant 1.000000e+00 : f32
    %1244 = vector.broadcast %cst_485 : f32 to vector<2x32xf32>
    %1245 = arith.addf %1243, %1244 : vector<2x32xf32>
    %cst_486 = arith.constant 5.000000e-01 : f32
    %1246 = vector.broadcast %cst_486 : f32 to vector<2x32xf32>
    %1247 = arith.mulf %1246, %1245 : vector<2x32xf32>
    %1248 = arith.mulf %1237, %1178 : vector<2x32xf32>
    %1249 = arith.mulf %1229, %1239 : vector<2x32xf32>
    %1250 = arith.addf %1248, %1249 : vector<2x32xf32>
    %1251 = math.tanh %1250 : vector<2x32xf32>
    %1252 = arith.mulf %1247, %1251 : vector<2x32xf32>
    %c0_487 = arith.constant 0 : index
    %c7_488 = arith.constant 7 : index
    %c0_489 = arith.constant 0 : index
    %c0_490 = arith.constant 0 : index
    %1253 = vector.load %arg8[%c0_487, %c7_488, %c0_489, %c0_490] : memref<2x8x2x32xf32, #tpu.memory_space<vmem>>, vector<1x1x2x32xf32>
    %1254 = vector.shape_cast %1253 : vector<1x1x2x32xf32> to vector<2x32xf32>
    %1255 = vector.shape_cast %1252 : vector<2x32xf32> to vector<1x1x2x32xf32>
    tpu.vector_store %arg8[%c0_487, %c7_488, %c0_489, %c0_490], %1255 {strides = array<i32>} : memref<2x8x2x32xf32, #tpu.memory_space<vmem>>, vector<1x1x2x32xf32>,
    %cst_491 = arith.constant dense<0.000000e+00> : vector<2x128xf32>
    %1256 = tpu.matmul %1216, %707, %cst_491 {dimension_numbers = #tpu.dot_dimension_numbers<[1], [0], [0], [1], [0, 0, 1, 1], [], []>, precision = #tpu.contract_precision<fp32>} : vector<2x32xf32>, vector<32x128xf32>, vector<2x128xf32> -> vector<2x128xf32>
    %1257 = arith.addf %654, %1256 : vector<2x128xf32>
    %1258 = vector.extract_strided_slice %1257 {offsets = [0, 0], sizes = [2, 32], strides = [1, 1]} : vector<2x128xf32> to vector<2x32xf32>
    %cst_492 = arith.constant 5.000000e-01 : f32
    %1259 = vector.broadcast %cst_492 : f32 to vector<2x32xf32>
    %1260 = arith.mulf %1259, %1258 : vector<2x32xf32>
    %1261 = math.tanh %1260 : vector<2x32xf32>
    %cst_493 = arith.constant 1.000000e+00 : f32
    %1262 = vector.broadcast %cst_493 : f32 to vector<2x32xf32>
    %1263 = arith.addf %1261, %1262 : vector<2x32xf32>
    %cst_494 = arith.constant 5.000000e-01 : f32
    %1264 = vector.broadcast %cst_494 : f32 to vector<2x32xf32>
    %1265 = arith.mulf %1264, %1263 : vector<2x32xf32>
    %1266 = vector.extract_strided_slice %1257 {offsets = [0, 32], sizes = [2, 32], strides = [1, 1]} : vector<2x128xf32> to vector<2x32xf32>
    %cst_495 = arith.constant 5.000000e-01 : f32
    %1267 = vector.broadcast %cst_495 : f32 to vector<2x32xf32>
    %1268 = arith.mulf %1267, %1266 : vector<2x32xf32>
    %1269 = math.tanh %1268 : vector<2x32xf32>
    %cst_496 = arith.constant 1.000000e+00 : f32
    %1270 = vector.broadcast %cst_496 : f32 to vector<2x32xf32>
    %1271 = arith.addf %1269, %1270 : vector<2x32xf32>
    %cst_497 = arith.constant 5.000000e-01 : f32
    %1272 = vector.broadcast %cst_497 : f32 to vector<2x32xf32>
    %1273 = arith.mulf %1272, %1271 : vector<2x32xf32>
    %1274 = vector.extract_strided_slice %1257 {offsets = [0, 64], sizes = [2, 32], strides = [1, 1]} : vector<2x128xf32> to vector<2x32xf32>
    %1275 = math.tanh %1274 : vector<2x32xf32>
    %1276 = vector.extract_strided_slice %1257 {offsets = [0, 96], sizes = [2, 32], strides = [1, 1]} : vector<2x128xf32> to vector<2x32xf32>
    %cst_498 = arith.constant 5.000000e-01 : f32
    %1277 = vector.broadcast %cst_498 : f32 to vector<2x32xf32>
    %1278 = arith.mulf %1277, %1276 : vector<2x32xf32>
    %1279 = math.tanh %1278 : vector<2x32xf32>
    %cst_499 = arith.constant 1.000000e+00 : f32
    %1280 = vector.broadcast %cst_499 : f32 to vector<2x32xf32>
    %1281 = arith.addf %1279, %1280 : vector<2x32xf32>
    %cst_500 = arith.constant 5.000000e-01 : f32
    %1282 = vector.broadcast %cst_500 : f32 to vector<2x32xf32>
    %1283 = arith.mulf %1282, %1281 : vector<2x32xf32>
    %1284 = arith.mulf %1273, %1214 : vector<2x32xf32>
    %1285 = arith.mulf %1265, %1275 : vector<2x32xf32>
    %1286 = arith.addf %1284, %1285 : vector<2x32xf32>
    %1287 = math.tanh %1286 : vector<2x32xf32>
    %1288 = arith.mulf %1283, %1287 : vector<2x32xf32>
    %c1_501 = arith.constant 1 : index
    %c0_502 = arith.constant 0 : index
    %c0_503 = arith.constant 0 : index
    %c0_504 = arith.constant 0 : index
    %1289 = vector.load %arg8[%c1_501, %c0_502, %c0_503, %c0_504] : memref<2x8x2x32xf32, #tpu.memory_space<vmem>>, vector<1x1x2x32xf32>
    %1290 = vector.shape_cast %1289 : vector<1x1x2x32xf32> to vector<2x32xf32>
    %1291 = vector.shape_cast %1288 : vector<2x32xf32> to vector<1x1x2x32xf32>
    tpu.vector_store %arg8[%c1_501, %c0_502, %c0_503, %c0_504], %1291 {strides = array<i32>} : memref<2x8x2x32xf32, #tpu.memory_space<vmem>>, vector<1x1x2x32xf32>,
    %c1_505 = arith.constant 1 : index
    %c0_506 = arith.constant 0 : index
    %c0_507 = arith.constant 0 : index
    %c0_508 = arith.constant 0 : index
    %1292 = vector.load %arg9[%c1_505, %c0_506, %c0_507, %c0_508] : memref<2x2x2x32xf32, #tpu.memory_space<vmem>>, vector<1x1x2x32xf32>
    %1293 = vector.shape_cast %1292 : vector<1x1x2x32xf32> to vector<2x32xf32>
    %1294 = vector.shape_cast %1252 : vector<2x32xf32> to vector<1x1x2x32xf32>
    tpu.vector_store %arg9[%c1_505, %c0_506, %c0_507, %c0_508], %1294 {strides = array<i32>} : memref<2x2x2x32xf32, #tpu.memory_space<vmem>>, vector<1x1x2x32xf32>,
    %c1_509 = arith.constant 1 : index
    %c0_510 = arith.constant 0 : index
    %c0_511 = arith.constant 0 : index
    %c0_512 = arith.constant 0 : index
    %1295 = vector.load %arg10[%c1_509, %c0_510, %c0_511, %c0_512] : memref<2x2x2x32xf32, #tpu.memory_space<vmem>>, vector<1x1x2x32xf32>
    %1296 = vector.shape_cast %1295 : vector<1x1x2x32xf32> to vector<2x32xf32>
    %1297 = vector.shape_cast %1250 : vector<2x32xf32> to vector<1x1x2x32xf32>
    tpu.vector_store %arg10[%c1_509, %c0_510, %c0_511, %c0_512], %1297 {strides = array<i32>} : memref<2x2x2x32xf32, #tpu.memory_space<vmem>>, vector<1x1x2x32xf32>,
    %c1_513 = arith.constant 1 : index
    %c1_514 = arith.constant 1 : index
    %c0_515 = arith.constant 0 : index
    %c0_516 = arith.constant 0 : index
    %1298 = vector.load %arg9[%c1_513, %c1_514, %c0_515, %c0_516] : memref<2x2x2x32xf32, #tpu.memory_space<vmem>>, vector<1x1x2x32xf32>
    %1299 = vector.shape_cast %1298 : vector<1x1x2x32xf32> to vector<2x32xf32>
    %1300 = vector.shape_cast %1288 : vector<2x32xf32> to vector<1x1x2x32xf32>
    tpu.vector_store %arg9[%c1_513, %c1_514, %c0_515, %c0_516], %1300 {strides = array<i32>} : memref<2x2x2x32xf32, #tpu.memory_space<vmem>>, vector<1x1x2x32xf32>,
    %c1_517 = arith.constant 1 : index
    %c1_518 = arith.constant 1 : index
    %c0_519 = arith.constant 0 : index
    %c0_520 = arith.constant 0 : index
    %1301 = vector.load %arg10[%c1_517, %c1_518, %c0_519, %c0_520] : memref<2x2x2x32xf32, #tpu.memory_space<vmem>>, vector<1x1x2x32xf32>
    %1302 = vector.shape_cast %1301 : vector<1x1x2x32xf32> to vector<2x32xf32>
    %1303 = vector.shape_cast %1286 : vector<2x32xf32> to vector<1x1x2x32xf32>
    tpu.vector_store %arg10[%c1_517, %c1_518, %c0_519, %c0_520], %1303 {strides = array<i32>} : memref<2x2x2x32xf32, #tpu.memory_space<vmem>>, vector<1x1x2x32xf32>,
    return
  }
  func.func @transform_0(%arg0: i32) -> (i32, i32) {
    %c0_i32 = arith.constant 0 : i32
    %c0_i32_0 = arith.constant 0 : i32
    %c0_i32_1 = arith.constant 0 : i32
    return %c0_i32, %c0_i32_0 : i32, i32
  }
  func.func @transform_1(%arg0: i32) -> (i32, i32, i32) {
    %c0_i32 = arith.constant 0 : i32
    %c0_i32_0 = arith.constant 0 : i32
    %c0_i32_1 = arith.constant 0 : i32
    %c0_i32_2 = arith.constant 0 : i32
    return %c0_i32, %c0_i32_0, %c0_i32_1 : i32, i32, i32
  }
  func.func @transform_2(%arg0: i32) -> (i32, i32, i32) {
    %c0_i32 = arith.constant 0 : i32
    %c0_i32_0 = arith.constant 0 : i32
    %c0_i32_1 = arith.constant 0 : i32
    %c0_i32_2 = arith.constant 0 : i32
    return %c0_i32, %c0_i32_0, %c0_i32_1 : i32, i32, i32
  }
  func.func @transform_3(%arg0: i32) -> (i32, i32, i32, i32) {
    %c0_i32 = arith.constant 0 : i32
    %c0_i32_0 = arith.constant 0 : i32
    %c0_i32_1 = arith.constant 0 : i32
    %c0_i32_2 = arith.constant 0 : i32
    %c0_i32_3 = arith.constant 0 : i32
    return %c0_i32, %c0_i32_0, %c0_i32_1, %c0_i32_2 : i32, i32, i32, i32
  }
  func.func @transform_4(%arg0: i32) -> (i32, i32, i32, i32) {
    %c0_i32 = arith.constant 0 : i32
    %c0_i32_0 = arith.constant 0 : i32
    %c0_i32_1 = arith.constant 0 : i32
    %c0_i32_2 = arith.constant 0 : i32
    %c0_i32_3 = arith.constant 0 : i32
    return %c0_i32, %c0_i32_0, %c0_i32_1, %c0_i32_2 : i32, i32, i32, i32
  }
  func.func @transform_5(%arg0: i32) -> (i32, i32, i32, i32) {
    %c0_i32 = arith.constant 0 : i32
    %c0_i32_0 = arith.constant 0 : i32
    %c0_i32_1 = arith.constant 0 : i32
    %c0_i32_2 = arith.constant 0 : i32
    %c0_i32_3 = arith.constant 0 : i32
    return %c0_i32, %c0_i32_0, %c0_i32_1, %c0_i32_2 : i32, i32, i32, i32
  }
  func.func @transform_6(%arg0: i32) -> (i32, i32, i32, i32) {
    %c0_i32 = arith.constant 0 : i32
    %c0_i32_0 = arith.constant 0 : i32
    %c0_i32_1 = arith.constant 0 : i32
    %c0_i32_2 = arith.constant 0 : i32
    %c0_i32_3 = arith.constant 0 : i32
    return %c0_i32, %c0_i32_0, %c0_i32_1, %c0_i32_2 : i32, i32, i32, i32
  }
  func.func @transform_7(%arg0: i32) -> (i32, i32, i32, i32) {
    %c0_i32 = arith.constant 0 : i32
    %c0_i32_0 = arith.constant 0 : i32
    %c0_i32_1 = arith.constant 0 : i32
    %c0_i32_2 = arith.constant 0 : i32
    %c0_i32_3 = arith.constant 0 : i32
    return %c0_i32, %c0_i32_0, %c0_i32_1, %c0_i32_2 : i32, i32, i32, i32
  }
  func.func @transform_8(%arg0: i32) -> (i32, i32, i32, i32) {
    %c0_i32 = arith.constant 0 : i32
    %c0_i32_0 = arith.constant 0 : i32
    %c0_i32_1 = arith.constant 0 : i32
    %c0_i32_2 = arith.constant 0 : i32
    %c0_i32_3 = arith.constant 0 : i32
    return %c0_i32, %c0_i32_0, %c0_i32_1, %c0_i32_2 : i32, i32, i32, i32
  }
  func.func @transform_9(%arg0: i32) -> (i32, i32, i32, i32) {
    %c0_i32 = arith.constant 0 : i32
    %c0_i32_0 = arith.constant 0 : i32
    %c0_i32_1 = arith.constant 0 : i32
    %c0_i32_2 = arith.constant 0 : i32
    %c0_i32_3 = arith.constant 0 : i32
    return %c0_i32, %c0_i32_0, %c0_i32_1, %c0_i32_2 : i32, i32, i32, i32
  }
}

</mosaic_0001>

<bundles_post_ra>
// kernel: _pointer_encoder_forward.1
= control target key start
LH: loop header
LB: loop body
LE: loop exit
PB: predicated region body
PF: predicated region fallthrough
CT: control target
= control target key end

     0   :  { %15 = vsyncpa [#allocation3], 0  ;;  %vm44_vm0 = vcmask 261120   ;;  %s47245_s0 = inlined_call_operand.vmem [shape: f32[16,32], index: 0, kind: input, shape index: {}]   ;;  %s47246_s1 = inlined_call_operand.vmem [shape: f32[2,32,128], index: 1, kind: input, shape index: {}]   ;;  %s47247_s2 = inlined_call_operand.vmem [shape: f32[2,64,128], index: 2, kind: input, shape index: {}]   ;;  %s47248_s3 = inlined_call_operand.vmem [shape: f32[2,2,32,128], index: 3, kind: input, shape index: {}]   ;;  %s47249_s4 = inlined_call_operand.vmem [shape: f32[2,2,1,128], index: 4, kind: input, shape index: {}]   ;;  %s47250_s5 = inlined_call_operand.vmem [shape: f32[2,2,2,32], index: 5, kind: input, shape index: {}]   ;;  %s47251_s6 = inlined_call_operand.vmem [shape: f32[2,2,2,32], index: 6, kind: input, shape index: {}]   ;;  %s47252_s7 = inlined_call_operand.vmem [shape: f32[2,8,2,32], index: 7, kind: output, shape index: {0}]   ;;  %s47253_s8 = inlined_call_operand.hbm [shape: f32[2,2,2,32], index: 8, kind: output, shape index: {1}]   ;;  %s47254_s9 = inlined_call_operand.hbm [shape: f32[2,2,2,32], index: 9, kind: output, shape index: {2}]  }
   0x1   :  { %v31_v0 = vld [vmem:[%s47246_s1] sm:$0xff]  ;;  %v32_v1 = vld [vmem:[%s47246_s1 + $0x8] sm:$0xff]  ;;  %v33_v7 = vld [vmem:[%s47246_s1 + $0x10] sm:$0xff] }
   0x2   :  { %v33389_v2 = vld [vmem:[%s47246_s1 + $0x20] sm:$0xff]  ;;  %v52_v3 = vand.u32 4294901760, %v31_v0  ;;  %v55_v4 = vand.u32 4294901760, %v32_v1  ;;  %v33390_v5 = vld [vmem:[%s47246_s1 + $0x28] sm:$0xff]  ;;  %v34_v8 = vld [vmem:[%s47246_s1 + $0x18] sm:$0xff]  ;;  %v58_v10 = vand.u32 4294901760, %v33_v7 }
   0x3   :  { %v593_v6 = vand.u32 4294901760, %v33389_v2  ;;  %v596_v9 = vand.u32 4294901760, %v33390_v5  ;;  %v61_v11 = vand.u32 4294901760, %v34_v8  ;;  %v33391_v12 = vld [vmem:[%s47246_s1 + $0x30] sm:$0xff]  ;;  %v33392_v13 = vld [vmem:[%s47246_s1 + $0x38] sm:$0xff]  ;;  %v36_v14 = vld [vmem:[%s47245_s0] sm:$0xff] }
   0x4   :  { %v43229_v15 = vpack.c.bf16 %v55_v4, %v52_v3  ;;  %v599_v16 = vand.u32 4294901760, %v33391_v12  ;;  %v602_v17 = vand.u32 4294901760, %v33392_v13  ;;  %v46_v18 = vsel %vm44_vm0, %v36_v14, 0  ;;  %v37_v19 = vld [vmem:[%s47245_s0 + $0x8] sm:$0xff]  ;;  %v1132_v31 = vld [vmem:[%s47251_s6] sm:$0x3] }
   0x5   :  { %v43235_v20 = vpack.c.bf16 %v596_v9, %v593_v6  ;;  %v43237_v21 = vpack.c.bf16 %v61_v11, %v58_v10  ;;  %v43239_v22 = vand.u32 4294901760, %v46_v18  ;;  %v49_v23 = vsel %vm44_vm0, %v37_v19, 0 }
   0x6   :  { %39789 = vmatprep.subr.bf16.mxu0 %v43229_v15  ;;  %v43243_v24 = vpack.c.bf16 %v602_v17, %v599_v16  ;;  %v43245_v25 = vand.u32 4294901760, %v49_v23  ;;  %v43247_v26 = vsub.f32 %v31_v0, %v52_v3  ;;  %v43249_v27 = vsub.f32 %v32_v1, %v55_v4 }
   0x7   :  { %39837 = vmatprep.subr.bf16.mxu1 %v43235_v20  ;;  %39791 = vmatpush3.bf16.msra.mxu0 %v43229_v15  ;;  %v43254_v28 = vsub.f32 %v46_v18, %v43239_v22  ;;  %v43256_v29 = vsub.f32 %v33389_v2, %v593_v6  ;;  %v43258_v30 = vsub.f32 %v33390_v5, %v596_v9 }
   0x8   :  { %39839 = vmatpush3.bf16.msra.mxu1 %v43235_v20  ;;  %39793 = vmatprep.subr.bf16.mxu0 %v43237_v21  ;;  %v43266_v32 = vsub.f32 %v49_v23, %v43245_v25  ;;  %v143_v33 = vand.u32 4294901760, %v43247_v26  ;;  %v150_v34 = vand.u32 4294901760, %v43249_v27  ;;  %v43270_v35 = vsub.f32 %v33_v7, %v58_v10 }
   0x9   :  { %16 = vsyncpa [#allocation5], 0  ;;  %39841 = vmatprep.subr.bf16.mxu1 %v43243_v24  ;;  %v43274_v36 = vand.u32 4294901760, %v43254_v28  ;;  %v684_v37 = vand.u32 4294901760, %v43256_v29  ;;  %v691_v38 = vand.u32 4294901760, %v43258_v30  ;;  %v43278_v39 = vsub.f32 %v34_v8, %v61_v11  ;;  %s43143_s29 = smov 32  }
   0xa   :  { %1630 = vrot.lane.b32.xlu1 %v1132_v31, %s43143_s29  ;;  %v43282_v40 = vand.u32 4294901760, %v43266_v32  ;;  %v144_v41 = vsub.f32 %v43247_v26, %v143_v33  ;;  %v151_v42 = vsub.f32 %v43249_v27, %v150_v34  ;;  %v157_v43 = vand.u32 4294901760, %v43270_v35  ;;  %v1120_v11 = vld [vmem:[%s47248_s3] sm:$0xff]  ;;  %v1122_v19 = vld [vmem:[%s47248_s3 + $0x10] sm:$0xff]  ;;  %v1123_v23 = vld [vmem:[%s47248_s3 + $0x18] sm:$0xff]  ;;  %s43147_s11 = smov 64  }
   0xb   :  { %39795 = vmatpush3.bf16.msra.mxu0 %v43237_v21  ;;  %v123_v44 = vsub.f32 %v43254_v28, %v43274_v36  ;;  %v685_v45 = vsub.f32 %v43256_v29, %v684_v37  ;;  %v692_v46 = vsub.f32 %v43258_v30, %v691_v38  ;;  %v164_v47 = vand.u32 4294901760, %v43278_v39  ;;  %s43148_s12 = smov 96   ;;  %s43149_s14 = smov [#allocation2]  }
   0xc   :  { %39843 = vmatpush3.bf16.msra.mxu1 %v43243_v24  ;;  %v133_v48 = vsub.f32 %v43266_v32, %v43282_v40  ;;  %v145_v49 = vand.u32 4294901760, %v144_v41  ;;  %v152_v50 = vand.u32 4294901760, %v151_v42  ;;  %v158_v51 = vsub.f32 %v43270_v35, %v157_v43  ;;  %s33359_s15 = sshll.u32 %s43149_s14, 4  ;;  %s43150_s16 = smov [#allocation4]   ;;  %s33360_s15 = int_to_ptr.vmem [resolvable:$true] %s33359_s15 }
   0xd   :  { %v124_v52 = vand.u32 4294901760, %v123_v44  ;;  %v686_v53 = vand.u32 4294901760, %v685_v45  ;;  %v693_v54 = vand.u32 4294901760, %v692_v46  ;;  %v165_v55 = vsub.f32 %v43278_v39, %v164_v47  ;;  %s33371_s17 = sshll.u32 %s43150_s16, 4  ;;  %s43095_s19 = scalar_lea.vmem %s33360_s15, 128  ;;  %s33372_s17 = int_to_ptr.vmem [resolvable:$true] %s33371_s17 }
   0xe   :  { %v134_v56 = vand.u32 4294901760, %v133_v48  ;;  %v39796_v57 = vpack.c.bf16 %v152_v50, %v145_v49  ;;  %v159_v58 = vand.u32 4294901760, %v158_v51  ;;  %v43310_v59 = vsub.f32 %v33391_v12, %v599_v16  ;;  %v1121_v12 = vld [vmem:[%s47248_s3 + $0x8] sm:$0xff]  ;;  %p43096_p0 = scmp.ne.s32.totalorder %s33360_s15, %s43095_s19  ;;  %p43100_p1 = scmp.lt.s32.totalorder %s33360_s15, %s33360_s15 }
   0xf   :  { %35440 = vmatprep.mubr.f32.mxu0 %v124_v52  ;;  %35506 = vmatprep.mubr.f32.mxu1 %v124_v52  ;;  %v39844_v60 = vpack.c.bf16 %v693_v54, %v686_v53  ;;  %v166_v61 = vand.u32 4294901760, %v165_v55  ;;  %v43312_v62 = vsub.f32 %v33392_v13, %v602_v17  ;;  %v39804_v4 = vpack.c.bf16 %v43249_v27, %v43247_v26  ;;  %v1129_v26 = vld [vmem:[%s47250_s5] sm:$0x3]  ;;  %v33396_v54 = vld [vmem:[%s47248_s3 + $0x28] sm:$0xff]  ;;  %v33399_v55 = vld [vmem:[%s47250_s5 + $0x2] sm:$0x3]  ;;  %p43101_p2 = scmp.lt.s32.totalorder %s43095_s19, %s43095_s19 }
  0x10   :  { %35441 = vmatmul.mubr.f32.vlgmr.msra.gmra.mrb[0].mxu0 %v134_v56  ;;  %39797 = vmatprep.subr.bf16.mxu0 %v39796_v57  ;;  %v698_v63 = vand.u32 4294901760, %v43310_v59  ;;  %v39852_v8 = vpack.c.bf16 %v43258_v30, %v43256_v29  ;;  %v39808_v9 = vpack.c.bf16 %v43278_v39, %v43270_v35  ;;  %v39820_v13 = vpack.c.bf16 %v150_v34, %v143_v33 }
  0x11   :  { %35507 = vmatmul.mubr.f32.vlgmr.msra.gmra.mrb[0].mxu1 %v134_v56  ;;  %39845 = vmatprep.subr.bf16.mxu1 %v39844_v60  ;;  %v39800_v0 = vpack.c.bf16 %v166_v61, %v159_v58  ;;  %v705_v1 = vand.u32 4294901760, %v43312_v62  ;;  %v39856_v10 = vpack.c.bf16 %v43312_v62, %v43310_v59  ;;  %v1139_v14 = vand.u32 4294901760, %v1120_v11  ;;  %v33398_v61 = vld [vmem:[%s47248_s3 + $0x38] sm:$0xff]  ;;  %p43102_p3 = por %p43101_p2, %p43100_p1 }
  0x12   :  { %39799 = vmatpush3.bf16.msra.mxu0 %v39796_v57  ;;  %39847 = vmatpush3.bf16.msra.mxu1 %v39844_v60  ;;  %v699_v2 = vsub.f32 %v43310_v59, %v698_v63  ;;  %v1142_v16 = vand.u32 4294901760, %v1121_v12  ;;  %v39868_v17 = vpack.c.bf16 %v691_v38, %v684_v37  ;;  %v39824_v18 = vpack.c.bf16 %v164_v47, %v157_v43  ;;  %v33397_v60 = vld [vmem:[%s47248_s3 + $0x30] sm:$0xff] }
  0x13   :  { %39801 = vmatprep.subr.bf16.mxu0 %v39800_v0  ;;  %v706_v3 = vsub.f32 %v43312_v62, %v705_v1  ;;  %35451 = vmatprep.mubr.f32.mxu0 %v43239_v22  ;;  %v43373_v27 = vsub.f32 %v1120_v11, %v1139_v14  ;;  %v1145_v29 = vand.u32 4294901760, %v1122_v19  ;;  %v1148_v30 = vand.u32 4294901760, %v1123_v23  ;;  %p43103_p4 = pnand %p43102_p3, %p43096_p0 }
  0x14   :  { %v700_v5 = vand.u32 4294901760, %v699_v2  ;;  %35517 = vmatprep.mubr.f32.mxu1 %v43239_v22  ;;  %v1136_v31 = vsel %vm44_vm0, %v1129_v26, 0  ;;  %v47255_v48 = vmov 0.0|0.0   ;;  %vm43145_vm1 = vmmov 0  }
  0x15   :  { %v707_v6 = vand.u32 4294901760, %v706_v3  ;;  %v43383_v33 = vand.u32 4294901760, %v1136_v31  ;;  %v1220_v34 = vand.u32 4294901760, %v43373_v27  ;;  %v43389_v37 = vsub.f32 %v1123_v23, %v1148_v30 }
  0x16   :  { %39803 = vmatpush3.bf16.msra.mxu0 %v39800_v0  ;;  %v43432_v49 = vpack.c.bf16 %v1148_v30, %v1145_v29  ;;  %v1657_v58 = vand.u32 4294901760, %v33396_v54  ;;  %v1651_v59 = vsel %vm44_vm0, %v33399_v55, 0  ;;  %v1660_v0 = vand.u32 4294901760, %v33397_v60 }
  0x17   :  { %v39848_v7 = vpack.c.bf16 %v707_v6, %v700_v5  ;;  %39805 = vmatprep.subr.bf16.mxu0 %v39804_v4  ;;  %v43395_v38 = vsub.f32 %v1136_v31, %v43383_v33  ;;  %v1221_v39 = vsub.f32 %v43373_v27, %v1220_v34  ;;  %v1241_v42 = vand.u32 4294901760, %v43389_v37 }
  0x18   :  { %v43490_v3 = vsub.f32 %v33396_v54, %v1657_v58  ;;  %vm9453_vm2 = vcmask 254976   ;;  %vm9441_vm3 = vcmask 261126  }
  0x19   :  { %39849 = vmatprep.subr.bf16.mxu1 %v39848_v7  ;;  %35452 = vmatmul.mubr.f32.vlgmr.msra.gmra.mrb[0].mxu0 %v43245_v25  ;;  %v1209_v43 = vand.u32 4294901760, %v43395_v38  ;;  %v1222_v44 = vand.u32 4294901760, %v1221_v39  ;;  %v1242_v47 = vsub.f32 %v43389_v37, %v1241_v42 }
  0x1a   :  { %39851 = vmatpush3.bf16.msra.mxu1 %v39848_v7  ;;  %39807 = vmatpush3.bf16.msra.mxu0 %v39804_v4  ;;  %v1742_v7 = vand.u32 4294901760, %v43490_v3 }
  0x1b   :  { %39853 = vmatprep.subr.bf16.mxu1 %v39852_v8  ;;  %39809 = vmatprep.subr.bf16.mxu0 %v39808_v9  ;;  %v1243_v51 = vand.u32 4294901760, %v1242_v47 }
  0x1c   :  { %35462 = vmatprep.mubr.f32.mxu0 %v43254_v28 }
  0x1d   :  { %35518 = vmatmul.mubr.f32.vlgmr.msra.gmra.mrb[0].mxu1 %v43245_v25 }
  0x1e   :  { %39855 = vmatpush3.bf16.msra.mxu1 %v39852_v8  ;;  %39811 = vmatpush3.bf16.msra.mxu0 %v39808_v9  ;;  %v43510_v8 = vsub.f32 %v33397_v60, %v1660_v0 }
  0x1f   :  { %39857 = vmatprep.subr.bf16.mxu1 %v39856_v10  ;;  %35528 = vmatprep.mubr.f32.mxu1 %v43254_v28  ;;  %v43376_v28 = vsub.f32 %v1121_v12, %v1142_v16 }
  0x20   :  { %39813 = vmatprep.subr.bf16.mxu0 %v43229_v15 }
  0x21   :  { %35463 = vmatmul.mubr.f32.vlgmr.msra.gmra.mrb[0].mxu0 %v43266_v32  ;;  %v1227_v35 = vand.u32 4294901760, %v43376_v28  ;;  %v43445_v53 = vpack.c.bf16 %v43376_v28, %v43373_v27 }
  0x22   :  { %39859 = vmatpush3.bf16.msra.mxu1 %v39856_v10  ;;  %39815 = vmatpush3.bf16.msra.mxu0 %v43229_v15 }
  0x23   :  { %39861 = vmatprep.subr.bf16.mxu1 %v43235_v20  ;;  %39817 = vmatprep.subr.bf16.mxu0 %v43237_v21  ;;  %v43482_v62 = vpack.c.bf16 %v1227_v35, %v1220_v34 }
  0x24   :  { %35473 = vmatprep.mubr.f32.mxu0 %v43274_v36 }
  0x25   :  { %35529 = vmatmul.mubr.f32.vlgmr.msra.gmra.mrb[0].mxu1 %v43266_v32  ;;  %v39872_v32 = vpack.c.bf16 %v705_v1, %v698_v63  ;;  %v43484_v63 = vand.u32 4294901760, %v1651_v59  ;;  %v1663_v1 = vand.u32 4294901760, %v33398_v61 }
  0x26   :  { %39863 = vmatpush3.bf16.msra.mxu1 %v43235_v20  ;;  %39819 = vmatpush3.bf16.msra.mxu0 %v43237_v21 }
  0x27   :  { %39865 = vmatprep.subr.bf16.mxu1 %v43243_v24  ;;  %35539 = vmatprep.mubr.f32.mxu1 %v43274_v36  ;;  %v43387_v36 = vsub.f32 %v1122_v19, %v1145_v29  ;;  %v43504_v5 = vsub.f32 %v1651_v59, %v43484_v63  ;;  %v43512_v9 = vsub.f32 %v33398_v61, %v1663_v1 }
  0x28   :  { %39821 = vmatprep.subr.bf16.mxu0 %v39820_v13 }
  0x29   :  { %35474 = vmatmul.mubr.f32.vlgmr.msra.gmra.mrb[0].mxu0 %v43282_v40  ;;  %v1234_v41 = vand.u32 4294901760, %v43387_v36  ;;  %v43464_v56 = vpack.c.bf16 %v43389_v37, %v43387_v36  ;;  %v1724_v11 = vand.u32 4294901760, %v43504_v5  ;;  %v43574_v34 = vpack.c.bf16 %v43512_v9, %v43510_v8  ;;  %v33388_v37 = vld [vmem:[%s47249_s4] ss:$0 sm:$0xff] }
  0x2a   :  { %39867 = vmatpush3.bf16.msra.mxu1 %v43243_v24  ;;  %39823 = vmatpush3.bf16.msra.mxu0 %v39820_v13  ;;  %v1743_v13 = vsub.f32 %v43490_v3, %v1742_v7 }
  0x2b   :  { %39869 = vmatprep.subr.bf16.mxu1 %v39868_v17  ;;  %39825 = vmatprep.subr.bf16.mxu0 %v39824_v18  ;;  %v1235_v46 = vsub.f32 %v43387_v36, %v1234_v41  ;;  %v43501_v4 = vpack.c.bf16 %v1241_v42, %v1234_v41  ;;  %v33394_v41 = vld [vmem:[%s47249_s4 + $0x1] ss:$0 sm:$0xff] }
  0x2c   :  { %35484 = vmatprep.mubr.f32.mxu0 %v43239_v22  ;;  %v1744_v23 = vand.u32 4294901760, %v1743_v13 }
  0x2d   :  { %35540 = vmatmul.mubr.f32.vlgmr.msra.gmra.mrb[0].mxu1 %v43282_v40  ;;  %v1228_v40 = vsub.f32 %v43376_v28, %v1227_v35  ;;  %v1236_v50 = vand.u32 4294901760, %v1235_v46 }
  0x2e   :  { %39871 = vmatpush3.bf16.msra.mxu1 %v39868_v17  ;;  %39827 = vmatpush3.bf16.msra.mxu0 %v39824_v18  ;;  %v43536_v17 = vpack.c.bf16 %v1663_v1, %v1660_v0  ;;  %v1725_v18 = vsub.f32 %v43504_v5, %v1724_v11 }
  0x2f   :  { %39873 = vmatprep.subr.bf16.mxu1 %v39872_v32  ;;  %35550 = vmatprep.mubr.f32.mxu1 %v43239_v22  ;;  %v1229_v45 = vand.u32 4294901760, %v1228_v40  ;;  %v43441_v52 = vpack.c.bf16 %v1243_v51, %v1236_v50 }
  0x30   :  { %39829 = vmatprep.subr.bf16.mxu0 %v43229_v15  ;;  %v1726_v28 = vand.u32 4294901760, %v1725_v18 }
  0x31   :  { %35485 = vmatmul.mubr.f32.vlgmr.msra.gmra.mrb[0].mxu0 %v43245_v25 }
  0x32   :  { %39875 = vmatpush3.bf16.msra.mxu1 %v39872_v32  ;;  %39831 = vmatpush3.bf16.msra.mxu0 %v43229_v15  ;;  %v43410_v15 = vpack.c.bf16 %v1142_v16, %v1139_v14  ;;  %v1749_v14 = vand.u32 4294901760, %v43510_v8  ;;  %v1756_v16 = vand.u32 4294901760, %v43512_v9 }
  0x33   :  { %39877 = vmatprep.subr.bf16.mxu1 %v43235_v20  ;;  %39833 = vmatprep.subr.bf16.mxu0 %v43237_v21 }
  0x34   :  { %35495 = vmatprep.mubr.f32.mxu0 %v43239_v22  ;;  %v1750_v26 = vsub.f32 %v43510_v8, %v1749_v14  ;;  %v1757_v27 = vsub.f32 %v43512_v9, %v1756_v16  ;;  %v43593_v36 = vpack.c.bf16 %v1756_v16, %v1749_v14 }
  0x35   :  { %35551 = vmatmul.mubr.f32.vlgmr.msra.gmra.mrb[0].mxu1 %v43245_v25 }
  0x36   :  { %39879 = vmatpush3.bf16.msra.mxu1 %v43235_v20  ;;  %39835 = vmatpush3.bf16.msra.mxu0 %v43237_v21  ;;  %v1210_v20 = vsub.f32 %v43395_v38, %v1209_v43  ;;  %v43430_v21 = vpack.c.bf16 %v1229_v45, %v1222_v44  ;;  %v1751_v30 = vand.u32 4294901760, %v1750_v26  ;;  %v1758_v31 = vand.u32 4294901760, %v1757_v27 }
  0x37   :  { %39881 = vmatprep.subr.bf16.mxu1 %v43243_v24  ;;  %35561 = vmatprep.mubr.f32.mxu1 %v43239_v22  ;;  %v47257_v22 = vmov 0.0  }
  0x38   :  { %39884 = vmatprep.subr.bf16.mxu0 %v47255_v48  ;;  %v43557_v32 = vpack.c.bf16 %v1758_v31, %v1751_v30 }
  0x39   :  { %35496 = vmatmul.mubr.f32.vlgmr.msra.gmra.mrb[0].mxu0 %v43245_v25 }
  0x3a   :  { %39883 = vmatpush3.bf16.msra.mxu1 %v43243_v24  ;;  %39886 = vmatpush3.bf16.msra.mxu0 %v43410_v15  ;;  %v1211_v24 = vand.u32 4294901760, %v1210_v20 }
  0x3b   :  { %39890 = vmatprep.subr.bf16.mxu1 %v47255_v48  ;;  %39887 = vmatprep.subr.bf16.mxu0 %v47255_v48 }
  0x3c   :  { %35572 = vmatprep.mubr.msk.f32.mxu0 %vm43145_vm1, %v47257_v22 }
  0x3d   :  { %35562 = vmatmul.mubr.f32.vlgmr.msra.gmra.mrb[0].mxu1 %v43245_v25  ;;  %v33395_v25 = vld [vmem:[%s47248_s3 + $0x20] sm:$0xff] }
  0x3e   :  { %39892 = vmatpush3.bf16.msra.mxu1 %v43430_v21  ;;  %39889 = vmatpush3.bf16.msra.mxu0 %v43432_v49  ;;  %v1654_v57 = vand.u32 4294901760, %v33395_v25 }
  0x3f   :  { %39893 = vmatprep.subr.bf16.mxu1 %v47255_v48  ;;  %35583 = vmatprep.mubr.msk.f32.mxu1 %vm43145_vm1, %v47257_v22 }
  0x40   :  { %39896 = vmatprep.subr.bf16.mxu0 %v47255_v48  ;;  %v43488_v2 = vsub.f32 %v33395_v25, %v1654_v57  ;;  %v43520_v10 = vpack.c.bf16 %v1657_v58, %v1654_v57 }
  0x41   :  { %35573 = vmatmul.mubr.f32.vlgmr.msra.gmra.mrb[2].mxu0 %v1211_v24 }
  0x42   :  { %39895 = vmatpush3.bf16.msra.mxu1 %v43441_v52  ;;  %39898 = vmatpush3.bf16.msra.mxu0 %v43445_v53  ;;  %v1735_v6 = vand.u32 4294901760, %v43488_v2 }
  0x43   :  { %39902 = vmatprep.subr.bf16.mxu1 %v47255_v48  ;;  %39899 = vmatprep.subr.bf16.mxu0 %v47255_v48 }
  0x44   :  { %35594 = vmatprep.mubr.msk.f32.mxu0 %vm43145_vm1, %v47257_v22  ;;  %v1736_v12 = vsub.f32 %v43488_v2, %v1735_v6  ;;  %v43589_v35 = vpack.c.bf16 %v1742_v7, %v1735_v6 }
  0x45   :  { %35584 = vmatmul.mubr.f32.vlgmr.msra.gmra.mrb[2].mxu1 %v43383_v33 }
  0x46   :  { %39904 = vmatpush3.bf16.msra.mxu1 %v43410_v15  ;;  %39901 = vmatpush3.bf16.msra.mxu0 %v43464_v56  ;;  %v1737_v19 = vand.u32 4294901760, %v1736_v12 }
  0x47   :  { %39905 = vmatprep.subr.bf16.mxu1 %v47255_v48  ;;  %39908 = vmatprep.subr.bf16.mxu0 %v47255_v48 }
  0x48   :  { %35605 = vmatprep.mubr.msk.f32.mxu1 %vm43145_vm1, %v47257_v22  ;;  %v43549_v29 = vpack.c.bf16 %v1744_v23, %v1737_v19 }
  0x49   :  { %35595 = vmatmul.mubr.f32.vlgmr.msra.gmra.mrb[4].mxu0 %v43395_v38 }
  0x4a   :  { %39907 = vmatpush3.bf16.msra.mxu1 %v43432_v49  ;;  %39910 = vmatpush3.bf16.msra.mxu0 %v43482_v62 }
  0x4b   :  { %39914 = vmatprep.subr.bf16.mxu1 %v47255_v48  ;;  %39911 = vmatprep.subr.bf16.mxu0 %v47255_v48 }
  0x4c   :  { %35616 = vmatprep.mubr.msk.f32.mxu0 %vm43145_vm1, %v47257_v22 }
  0x4d   :  { %35606 = vmatmul.mubr.f32.vlgmr.msra.gmra.mrb[4].mxu1 %v1209_v43 }
  0x4e   :  { %39916 = vmatpush3.bf16.msra.mxu1 %v43410_v15  ;;  %39913 = vmatpush3.bf16.msra.mxu0 %v43501_v4 }
  0x4f   :  { %39917 = vmatprep.subr.bf16.mxu1 %v47255_v48  ;;  %35627 = vmatprep.mubr.msk.f32.mxu1 %vm43145_vm1, %v47257_v22 }
  0x50   :  { %39920 = vmatprep.subr.bf16.mxu0 %v47255_v48 }
  0x51   :  { %35617 = vmatmul.mubr.f32.vlgmr.msra.gmra.mrb[6].mxu0 %v43383_v33 }
  0x52   :  { %39919 = vmatpush3.bf16.msra.mxu1 %v43432_v49  ;;  %39922 = vmatpush3.bf16.msra.mxu0 %v43520_v10 }
  0x53   :  { %39923 = vmatprep.subr.bf16.mxu0 %v47255_v48  ;;  %35638 = vmatprep.mubr.msk.f32.mxu0 %vm43145_vm1, %v47257_v22 }
  0x54   :  { %39956 = vmatprep.subr.bf16.mxu1 %v47255_v48 }
  0x55   :  { %35628 = vmatmul.mubr.f32.vlgmr.msra.gmra.mrb[6].mxu1 %v43383_v33  ;;  %v43567_v33 = vpack.c.bf16 %v43490_v3, %v43488_v2 }
  0x56   :  { %39925 = vmatpush3.bf16.msra.mxu0 %v43536_v17  ;;  %39958 = vmatpush3.bf16.msra.mxu1 %v43410_v15 }
  0x57   :  { %39926 = vmatprep.subr.bf16.mxu0 %v47255_v48  ;;  %39959 = vmatprep.subr.bf16.mxu1 %v47255_v48 }
  0x58   :  { %35704 = vmatprep.mubr.msk.f32.mxu1 %vm43145_vm1, %v47257_v22 }
  0x59   :  { %35639 = vmatmul.mubr.f32.vlgmr.msra.gmra.mrb[8].mxu0 %v1726_v28 }
  0x5a   :  { %39928 = vmatpush3.bf16.msra.mxu0 %v43549_v29  ;;  %35649 = vmatprep.mubr.msk.f32.mxu0 %vm43145_vm1, %v47257_v22 }
  0x5b   :  { %39929 = vmatprep.subr.bf16.mxu0 %v47255_v48  ;;  %39961 = vmatpush3.bf16.msra.mxu1 %v43432_v49 }
  0x5c   :  { %39962 = vmatprep.subr.bf16.mxu1 %v47255_v48 }
  0x5e   :  { %39931 = vmatpush3.bf16.msra.mxu0 %v43557_v32 }
  0x5f   :  { %39932 = vmatprep.subr.bf16.mxu0 %v47255_v48 }
  0x61   :  { %35650 = vmatmul.mubr.f32.vlgmr.msra.gmra.mrb[8].mxu0 %v43484_v63 }
  0x62   :  { %39934 = vmatpush3.bf16.msra.mxu0 %v43567_v33  ;;  %35660 = vmatprep.mubr.msk.f32.mxu0 %vm43145_vm1, %v47257_v22 }
  0x63   :  { %39935 = vmatprep.subr.bf16.mxu0 %v47255_v48 }
  0x66   :  { %39937 = vmatpush3.bf16.msra.mxu0 %v43574_v34 }
  0x67   :  { %39938 = vmatprep.subr.bf16.mxu0 %v47255_v48 }
  0x69   :  { %35661 = vmatmul.mubr.f32.vlgmr.msra.gmra.mrb[8].mxu0 %v43504_v5 }
  0x6a   :  { %39940 = vmatpush3.bf16.msra.mxu0 %v43520_v10  ;;  %35671 = vmatprep.mubr.msk.f32.mxu0 %vm43145_vm1, %v47257_v22 }
  0x6b   :  { %39941 = vmatprep.subr.bf16.mxu0 %v47255_v48 }
  0x6e   :  { %39943 = vmatpush3.bf16.msra.mxu0 %v43536_v17 }
  0x6f   :  { %39944 = vmatprep.subr.bf16.mxu0 %v47255_v48 }
  0x71   :  { %35672 = vmatmul.mubr.f32.vlgmr.msra.gmra.mrb[8].mxu0 %v1724_v11  ;;  %v33400_v11 = vld [vmem:[%s47251_s6 + $0x2] sm:$0x3] }
  0x72   :  { %39946 = vmatpush3.bf16.msra.mxu0 %v43589_v35  ;;  %35682 = vmatprep.mubr.msk.f32.mxu0 %vm43145_vm1, %v47257_v22  ;;  %v2148_v13 = vrot.slane %v33400_v11, 2 }
  0x73   :  { %39947 = vmatprep.subr.bf16.mxu0 %v47255_v48 }
  0x76   :  { %39949 = vmatpush3.bf16.msra.mxu0 %v43593_v36 }
  0x77   :  { %39950 = vmatprep.subr.bf16.mxu0 %v47255_v48 }
  0x79   :  { %35683 = vmatmul.mubr.f32.vlgmr.msra.gmra.mrb[8].mxu0 %v43484_v63 }
  0x7a   :  { %39952 = vmatpush3.bf16.msra.mxu0 %v43520_v10  ;;  %35693 = vmatprep.mubr.msk.f32.mxu0 %vm43145_vm1, %v47257_v22 }
  0x7b   :  { %39953 = vmatprep.subr.bf16.mxu0 %v47255_v48 }
  0x7e   :  { %39955 = vmatpush3.bf16.msra.mxu0 %v43536_v17 }
  0x7f   :  { %39992 = vmatprep.subr.bf16.mxu0 %v47255_v48 }
  0x81   :  { %35694 = vmatmul.mubr.f32.vlgmr.msra.gmra.mrb[8].mxu0 %v43484_v63 }
  0x82   :  { %39994 = vmatpush3.bf16.msra.mxu0 %v43520_v10  ;;  %35770 = vmatprep.mubr.msk.f32.mxu0 %vm43145_vm1, %v47257_v22 }
  0x83   :  { %39995 = vmatprep.subr.bf16.mxu0 %v47255_v48 }
  0x86   :  { %39997 = vmatpush3.bf16.msra.mxu0 %v43536_v17 }
  0x87   :  { %39998 = vmatprep.subr.bf16.mxu0 %v47255_v48 }
 0x10c   :  { %v35497_v38 = vpop.f32.mrb[0].mxu0 }
 0x10d   :  { %v43617_v39 = vadd.f32 %v35497_v38, %v33388_v37  ;;  %v569_v40 = vpop.f32.mrb[1].mxu0 }
 0x10e   :  { %v43624_v63 = vadd.f32 %v33388_v37, %v569_v40  ;;  %v1631_v40 = vpop.permute.xlu1 %1630 }
 0x110   :  { %v35563_v42 = vpop.f32.mrb[0].mxu1 }
 0x111   :  { %v1110_v43 = vpop.f32.mrb[1].mxu1  ;;  %v43628_v6 = vadd.f32 %v35563_v42, %v33394_v41 }
 0x112   :  { %v43622_v44 = vadd.f32 %v33394_v41, %v1110_v43 }
 0x114   :  { %v1213_v45 = vpop.f32.mrb[2].mxu0 }
 0x115   :  { %v35574_v46 = vpop.f32.mrb[3].mxu0 }
 0x118   :  { %v1304_v47 = vpop.f32.mrb[2].mxu1 }
 0x119   :  { %v1305_v20 = vadd.f32 %v1304_v47, %v1213_v45  ;;  %v35585_v50 = vpop.f32.mrb[3].mxu1 }
 0x11c   :  { %v1384_v51 = vpop.f32.mrb[4].mxu0 }
 0x11d   :  { %v1385_v24 = vadd.f32 %v1384_v51, %v1305_v20  ;;  %v35596_v25 = vpop.f32.mrb[5].mxu0 }
 0x120   :  { %v1461_v54 = vpop.f32.mrb[4].mxu1 }
 0x121   :  { %v1462_v55 = vadd.f32 %v1461_v54, %v1385_v24  ;;  %v35607_v57 = vpop.f32.mrb[5].mxu1 }
 0x124   :  { %v1544_v58 = vpop.f32.mrb[6].mxu0 }
 0x125   :  { %v1545_v59 = vadd.f32 %v1544_v58, %v1462_v55  ;;  %v35618_v60 = vpop.f32.mrb[7].mxu0 }
 0x128   :  { %v1619_v61 = vpop.f32.mrb[6].mxu1 }
 0x129   :  { %v1620_v0 = vadd.f32 %v1619_v61, %v1545_v59  ;;  %v35629_v1 = vpop.f32.mrb[7].mxu1 }
 0x12b   :  { %v1623_v2 = vadd.f32 %v43624_v63, %v1620_v0 }
 0x12d   :  { %42901 = vtanh.f32 %v1623_v2  ;;  %v1624_v14 = vmul.f32 0.5, %v1623_v2 }
 0x137   :  { %v42902_v3 = vpop.eup %42901 }
 0x138   :  { %1635 = vrot.lane.b32.xlu0 %v42902_v3, %s43147_s11 }
 0x154   :  { %v2134_v5 = vpop.f32.mrb[8].mxu0 }
 0x155   :  { %v2139_v7 = vrot.slane %v2134_v5, 2  ;;  %v35695_v8 = vpop.f32.mrb[9].mxu0 }
 0x157   :  { %v2141_v9 = vadd.f32 %v43628_v6, %v2139_v7 }
 0x159   :  { %42903 = vtanh.f32 %v2141_v9  ;;  %v2142_v27 = vmul.f32 0.5, %v2141_v9 }
 0x15a   :  { %42905 = vtanh.f32 %v1624_v14 }
 0x15b   :  { %42907 = vtanh.f32 %v2142_v27 }
 0x163   :  { %v42904_v12 = vpop.eup %42903 }
 0x164   :  { %2154 = vrot.lane.b32.xlu0 %v42904_v12, %s43147_s11  ;;  %v42906_v16 = vpop.eup %42905 }
 0x165   :  { %v1626_v18 = vadd.f32 1.0, %v42906_v16  ;;  %v42908_v28 = vpop.eup %42907 }
 0x166   :  { %v2144_v30 = vadd.f32 1.0, %v42908_v28 }
 0x167   :  { %v1627_v19 = vmul.f32 0.5, %v1626_v18 }
 0x168   :  { %2149 = vrot.lane.b32.xlu0 %v2148_v13, %s43143_s29  ;;  %v2145_v31 = vmul.f32 0.5, %v2144_v30 }
 0x169   :  { %v1633_v41 = vmul.f32 %v1631_v40, %v1627_v19 }
 0x1aa   :  { %v1636_v23 = vpop.permute.xlu0 %1635 }
 0x1ab   :  { %v1638_v26 = vmul.f32 %v1636_v23, %v1627_v19 }
 0x1ad   :  { %1640 = vrot.lane.b32.xlu1 %v1638_v26, %s43143_s29 }
 0x1d6   :  { %v2155_v37 = vpop.permute.xlu0 %2154 }
 0x1d7   :  { %v2157_v38 = vmul.f32 %v2155_v37, %v2145_v31 }
 0x1d9   :  { %2159 = vrot.lane.b32.xlu1 %v2157_v38, %s43143_s29 }
 0x1da   :  { %v2150_v46 = vpop.permute.xlu0 %2149 }
 0x1db   :  { %v2152_v47 = vmul.f32 %v2150_v46, %v2145_v31 }
 0x21f   :  { %v1641_v42 = vpop.permute.xlu1 %1640 }
 0x220   :  { %v43638_v43 = vadd.f32 %v1641_v42, %v1633_v41 }
 0x222   :  { %42909 = vtanh.f32 %v43638_v43 }
 0x22c   :  { %v42910_v45 = vpop.eup %42909 }
 0x22d   :  { %1646 = vrot.lane.b32.xlu0 %v42910_v45, %s43147_s11 }
 0x24b   :  { %v2160_v20 = vpop.permute.xlu1 %2159 }
 0x24c   :  { %v43642_v50 = vadd.f32 %v2160_v20, %v2152_v47 }
 0x24e   :  { %42911 = vtanh.f32 %v43642_v50 }
 0x258   :  { %v42912_v51 = vpop.eup %42911 }
 0x259   :  { %2165 = vrot.lane.b32.xlu1 %v42912_v51, %s43147_s11 }
 0x29f   :  { %v1647_v24 = vpop.permute.xlu0 %1646 }
 0x2a0   :  { %v1649_v25 = vmul.f32 %v1647_v24, %v1627_v19 }
 0x2a2   :  { %2170 = vrot.lane.b32.xlu0 %v1649_v25, %s43143_s29  ;;  %v2669_v25 = vrot.slane %v43638_v43, 6 }
 0x2cb   :  { %v2166_v54 = vpop.permute.xlu1 %2165 }
 0x2cc   :  { %v2168_v55 = vmul.f32 %v2166_v54, %v2145_v31 }
 0x2ce   :  { %v2689_v57 = vrot.slane %v2168_v55, 6 }
 0x2d0   :  { %2690 = vrot.lane.b32.xlu1 %v2689_v57, %s43143_s29 }
 0x314   :  { %v2171_v58 = vpop.permute.xlu0 %2170 }
 0x315   :  { %v2172_v59 = vsel %vm44_vm0, %v2171_v58, 0 }
 0x316   :  { %v43649_v60 = vand.u32 4294901760, %v2172_v59 }
 0x318   :  { %v43652_v61 = vsub.f32 %v2172_v59, %v43649_v60  ;;  %v3189_v59 = vrot.slane %v43642_v50, 2 }
 0x31a   :  { %v43655_v0 = vand.u32 4294901760, %v43652_v61 }
 0x31c   :  { %47325 = vst [vmem:[#allocation8_spill] sm:$0xff] %v43655_v0  ;;  %v2246_v1 = vsub.f32 %v43652_v61, %v43655_v0 }
 0x31e   :  { %v43659_v2 = vand.u32 4294901760, %v2246_v1 }
 0x320   :  { %35705 = vmatmul.mubr.f32.vlgmr.msra.gmra.mrb[8].mxu1 %v43659_v2 }
 0x321   :  { %39964 = vmatpush3.bf16.msra.mxu1 %v43430_v21  ;;  %35715 = vmatprep.mubr.msk.f32.mxu1 %vm43145_vm1, %v47257_v22 }
 0x322   :  { %39965 = vmatprep.subr.bf16.mxu1 %v47255_v48 }
 0x325   :  { %39967 = vmatpush3.bf16.msra.mxu1 %v43441_v52 }
 0x326   :  { %39968 = vmatprep.subr.bf16.mxu1 %v47255_v48 }
 0x328   :  { %35716 = vmatmul.mubr.f32.vlgmr.msra.gmra.mrb[8].mxu1 %v43649_v60 }
 0x329   :  { %39970 = vmatpush3.bf16.msra.mxu1 %v43445_v53  ;;  %35726 = vmatprep.mubr.msk.f32.mxu1 %vm43145_vm1, %v47257_v22 }
 0x32a   :  { %39971 = vmatprep.subr.bf16.mxu1 %v47255_v48 }
 0x32d   :  { %39973 = vmatpush3.bf16.msra.mxu1 %v43464_v56 }
 0x32e   :  { %39974 = vmatprep.subr.bf16.mxu1 %v47255_v48 }
 0x330   :  { %35727 = vmatmul.mubr.f32.vlgmr.msra.gmra.mrb[8].mxu1 %v43652_v61 }
 0x331   :  { %39976 = vmatpush3.bf16.msra.mxu1 %v43410_v15  ;;  %35737 = vmatprep.mubr.msk.f32.mxu1 %vm43145_vm1, %v47257_v22 }
 0x332   :  { %39977 = vmatprep.subr.bf16.mxu1 %v47255_v48 }
 0x335   :  { %39979 = vmatpush3.bf16.msra.mxu1 %v43432_v49 }
 0x336   :  { %39980 = vmatprep.subr.bf16.mxu1 %v47255_v48 }
 0x338   :  { %35738 = vmatmul.mubr.f32.vlgmr.msra.gmra.mrb[8].mxu1 %v43655_v0 }
 0x339   :  { %39982 = vmatpush3.bf16.msra.mxu1 %v43482_v62  ;;  %35748 = vmatprep.mubr.msk.f32.mxu1 %vm43145_vm1, %v47257_v22 }
 0x33a   :  { %39983 = vmatprep.subr.bf16.mxu1 %v47255_v48 }
 0x33d   :  { %39985 = vmatpush3.bf16.msra.mxu1 %v43501_v4 }
 0x33e   :  { %39986 = vmatprep.subr.bf16.mxu1 %v47255_v48 }
 0x340   :  { %35749 = vmatmul.mubr.f32.vlgmr.msra.gmra.mrb[8].mxu1 %v43649_v60 }
 0x341   :  { %39988 = vmatpush3.bf16.msra.mxu1 %v43410_v15  ;;  %35759 = vmatprep.mubr.msk.f32.mxu1 %vm43145_vm1, %v47257_v22 }
 0x342   :  { %v2691_v3 = vpop.permute.xlu1 %2690  ;;  %39989 = vmatprep.subr.bf16.mxu1 %v47255_v48 }
 0x343   :  { %v2692_v5 = vsel %vm44_vm0, %v2691_v3, 0 }
 0x344   :  { %v43695_v7 = vand.u32 4294901760, %v2692_v5 }
 0x345   :  { %39991 = vmatpush3.bf16.msra.mxu1 %v43432_v49 }
 0x346   :  { %47326 = vst [vmem:[#allocation9_spill] sm:$0xff] %v43695_v7  ;;  %v43699_v8 = vsub.f32 %v2692_v5, %v43695_v7  ;;  %40028 = vmatprep.subr.bf16.mxu1 %v47255_v48 }
 0x348   :  { %47327 = vst [vmem:[#allocation10_spill] sm:$0xff] %v43699_v8  ;;  %v43703_v9 = vand.u32 4294901760, %v43699_v8  ;;  %35760 = vmatmul.mubr.f32.vlgmr.msra.gmra.mrb[8].mxu1 %v43649_v60 }
 0x349   :  { %40030 = vmatpush3.bf16.msra.mxu1 %v43410_v15  ;;  %35836 = vmatprep.mubr.msk.f32.mxu1 %vm43145_vm1, %v47257_v22 }
 0x34a   :  { %47328 = vst [vmem:[#allocation11_spill] sm:$0xff] %v43703_v9  ;;  %v2766_v11 = vsub.f32 %v43699_v8, %v43703_v9  ;;  %40031 = vmatprep.subr.bf16.mxu1 %v47255_v48 }
 0x34c   :  { %v43712_v12 = vand.u32 4294901760, %v2766_v11 }
 0x34d   :  { %40033 = vmatpush3.bf16.msra.mxu1 %v43432_v49 }
 0x34e   :  { %47329 = vst [vmem:[#allocation12_spill] sm:$0xff] %v43712_v12  ;;  %35771 = vmatmul.mubr.f32.vlgmr.msra.gmra.mrb[10].mxu0 %v43712_v12  ;;  %40034 = vmatprep.subr.bf16.mxu1 %v47255_v48 }
 0x34f   :  { %40000 = vmatpush3.bf16.msra.mxu0 %v43549_v29  ;;  %35781 = vmatprep.mubr.msk.f32.mxu0 %vm43145_vm1, %v47257_v22 }
 0x350   :  { %40001 = vmatprep.subr.bf16.mxu0 %v47255_v48 }
 0x353   :  { %40003 = vmatpush3.bf16.msra.mxu0 %v43557_v32 }
 0x354   :  { %40004 = vmatprep.subr.bf16.mxu0 %v47255_v48 }
 0x356   :  { %35782 = vmatmul.mubr.f32.vlgmr.msra.gmra.mrb[10].mxu0 %v43695_v7 }
 0x357   :  { %40006 = vmatpush3.bf16.msra.mxu0 %v43567_v33  ;;  %35792 = vmatprep.mubr.msk.f32.mxu0 %vm43145_vm1, %v47257_v22 }
 0x358   :  { %40007 = vmatprep.subr.bf16.mxu0 %v47255_v48 }
 0x35b   :  { %40009 = vmatpush3.bf16.msra.mxu0 %v43574_v34 }
 0x35c   :  { %40010 = vmatprep.subr.bf16.mxu0 %v47255_v48 }
 0x35e   :  { %35793 = vmatmul.mubr.f32.vlgmr.msra.gmra.mrb[10].mxu0 %v43699_v8 }
 0x35f   :  { %40012 = vmatpush3.bf16.msra.mxu0 %v43520_v10  ;;  %35803 = vmatprep.mubr.msk.f32.mxu0 %vm43145_vm1, %v47257_v22 }
 0x360   :  { %40013 = vmatprep.subr.bf16.mxu0 %v47255_v48 }
 0x363   :  { %40015 = vmatpush3.bf16.msra.mxu0 %v43536_v17 }
 0x364   :  { %40016 = vmatprep.subr.bf16.mxu0 %v47255_v48 }
 0x366   :  { %35804 = vmatmul.mubr.f32.vlgmr.msra.gmra.mrb[10].mxu0 %v43703_v9 }
 0x367   :  { %40018 = vmatpush3.bf16.msra.mxu0 %v43589_v35  ;;  %35814 = vmatprep.mubr.msk.f32.mxu0 %vm43145_vm1, %v47257_v22 }
 0x368   :  { %40019 = vmatprep.subr.bf16.mxu0 %v47255_v48 }
 0x36b   :  { %40021 = vmatpush3.bf16.msra.mxu0 %v43593_v36 }
 0x36c   :  { %40022 = vmatprep.subr.bf16.mxu0 %v47255_v48 }
 0x36e   :  { %35815 = vmatmul.mubr.f32.vlgmr.msra.gmra.mrb[10].mxu0 %v43695_v7 }
 0x36f   :  { %40024 = vmatpush3.bf16.msra.mxu0 %v43520_v10  ;;  %35825 = vmatprep.mubr.msk.f32.mxu0 %vm43145_vm1, %v47257_v22 }
 0x370   :  { %40025 = vmatprep.subr.bf16.mxu0 %v47255_v48 }
 0x373   :  { %40027 = vmatpush3.bf16.msra.mxu0 %v43536_v17 }
 0x374   :  { %40064 = vmatprep.subr.bf16.mxu0 %v47255_v48 }
 0x376   :  { %35826 = vmatmul.mubr.f32.vlgmr.msra.gmra.mrb[10].mxu0 %v43695_v7 }
 0x377   :  { %40066 = vmatpush3.bf16.msra.mxu0 %v43520_v10  ;;  %35902 = vmatprep.mubr.msk.f32.mxu0 %vm43145_vm1, %v47257_v22 }
 0x378   :  { %40067 = vmatprep.subr.bf16.mxu0 %v47255_v48 }
 0x37b   :  { %40069 = vmatpush3.bf16.msra.mxu0 %v43536_v17 }
 0x37c   :  { %40070 = vmatprep.subr.bf16.mxu0 %v47255_v48 }
 0x41b   :  { %v2655_v13 = vpop.f32.mrb[8].mxu1 }
 0x41c   :  { %v2660_v14 = vrot.slane %v2655_v13, 6  ;;  %v35761_v16 = vpop.f32.mrb[9].mxu1 }
 0x41e   :  { %v2662_v18 = vadd.f32 %v43624_v63, %v2660_v14 }
 0x420   :  { %42913 = vtanh.f32 %v2662_v18  ;;  %v2663_v31 = vmul.f32 0.5, %v2662_v18 }
 0x42a   :  { %v42914_v19 = vpop.eup %42913 }
 0x42b   :  { %2673 = vrot.lane.b32.xlu0 %v42914_v19, %s43147_s11 }
 0x449   :  { %v3175_v23 = vpop.f32.mrb[10].mxu0 }
 0x44a   :  { %v3180_v26 = vrot.slane %v3175_v23, 4  ;;  %v35827_v27 = vpop.f32.mrb[11].mxu0 }
 0x44c   :  { %v3182_v28 = vadd.f32 %v43628_v6, %v3180_v26 }
 0x44e   :  { %42915 = vtanh.f32 %v3182_v28  ;;  %v3183_v45 = vmul.f32 0.5, %v3182_v28 }
 0x44f   :  { %42917 = vtanh.f32 %v2663_v31 }
 0x450   :  { %42919 = vtanh.f32 %v3183_v45 }
 0x458   :  { %v42916_v30 = vpop.eup %42915 }
 0x459   :  { %3193 = vrot.lane.b32.xlu1 %v42916_v30, %s43147_s11  ;;  %v42918_v37 = vpop.eup %42917 }
 0x45a   :  { %v2665_v38 = vadd.f32 1.0, %v42918_v37  ;;  %v42920_v46 = vpop.eup %42919 }
 0x45b   :  { %v3185_v47 = vadd.f32 1.0, %v42920_v46 }
 0x45c   :  { %v2666_v40 = vmul.f32 0.5, %v2665_v38 }
 0x45d   :  { %v3186_v20 = vmul.f32 0.5, %v3185_v47 }
 0x45e   :  { %v2671_v54 = vmul.f32 %v2669_v25, %v2666_v40 }
 0x45f   :  { %v3191_v1 = vmul.f32 %v3189_v59, %v3186_v20 }
 0x49d   :  { %v2674_v41 = vpop.permute.xlu0 %2673 }
 0x49e   :  { %v2676_v42 = vmul.f32 %v2674_v41, %v2666_v40 }
 0x4a0   :  { %2678 = vrot.lane.b32.xlu0 %v2676_v42, %s43143_s29 }
 0x4cb   :  { %v3194_v51 = vpop.permute.xlu1 %3193 }
 0x4cc   :  { %v3196_v24 = vmul.f32 %v3194_v51, %v3186_v20 }
 0x4ce   :  { %3198 = vrot.lane.b32.xlu1 %v3196_v24, %s43143_s29 }
 0x512   :  { %v2679_v55 = vpop.permute.xlu0 %2678 }
 0x513   :  { %v43765_v57 = vadd.f32 %v2679_v55, %v2671_v54 }
 0x515   :  { %42921 = vtanh.f32 %v43765_v57 }
 0x51f   :  { %v42922_v58 = vpop.eup %42921 }
 0x520   :  { %2684 = vrot.lane.b32.xlu0 %v42922_v58, %s43147_s11 }
 0x540   :  { %v3199_v3 = vpop.permute.xlu1 %3198 }
 0x541   :  { %v43770_v5 = vadd.f32 %v3199_v3, %v3191_v1 }
 0x543   :  { %42923 = vtanh.f32 %v43770_v5 }
 0x54d   :  { %v42924_v11 = vpop.eup %42923 }
 0x54e   :  { %3204 = vrot.lane.b32.xlu1 %v42924_v11, %s43147_s11 }
 0x592   :  { %v2685_v43 = vpop.permute.xlu0 %2684 }
 0x593   :  { %v2687_v13 = vmul.f32 %v2685_v43, %v2666_v40 }
 0x595   :  { %v3209_v14 = vrot.slane %v2687_v13, 2 }
 0x597   :  { %3210 = vrot.lane.b32.xlu0 %v3209_v14, %s43143_s29 }
 0x5c0   :  { %v3205_v16 = vpop.permute.xlu1 %3204 }
 0x5c1   :  { %v3207_v18 = vmul.f32 %v3205_v16, %v3186_v20 }
 0x5c3   :  { %v3729_v19 = vrot.slane %v3207_v18, 4 }
 0x5c5   :  { %3730 = vrot.lane.b32.xlu1 %v3729_v19, %s43143_s29 }
 0x609   :  { %v3211_v50 = vpop.permute.xlu0 %3210 }
 0x60a   :  { %v3212_v23 = vsel %vm44_vm0, %v3211_v50, 0 }
 0x60b   :  { %v43777_v26 = vand.u32 4294901760, %v3212_v23 }
 0x60d   :  { %v43780_v27 = vsub.f32 %v3212_v23, %v43777_v26 }
 0x60f   :  { %47330 = vst [vmem:[#allocation13_spill] sm:$0xff] %v43780_v27  ;;  %v43783_v28 = vand.u32 4294901760, %v43780_v27 }
 0x611   :  { %47331 = vst [vmem:[#allocation14_spill] sm:$0xff] %v43783_v28  ;;  %v3286_v30 = vsub.f32 %v43780_v27, %v43783_v28 }
 0x613   :  { %v43787_v31 = vand.u32 4294901760, %v3286_v30 }
 0x615   :  { %35837 = vmatmul.mubr.f32.vlgmr.msra.gmra.mrb[10].mxu1 %v43787_v31 }
 0x616   :  { %40036 = vmatpush3.bf16.msra.mxu1 %v43430_v21  ;;  %35847 = vmatprep.mubr.msk.f32.mxu1 %vm43145_vm1, %v47257_v22 }
 0x617   :  { %40037 = vmatprep.subr.bf16.mxu1 %v47255_v48 }
 0x61a   :  { %40039 = vmatpush3.bf16.msra.mxu1 %v43441_v52 }
 0x61b   :  { %40040 = vmatprep.subr.bf16.mxu1 %v47255_v48 }
 0x61d   :  { %35848 = vmatmul.mubr.f32.vlgmr.msra.gmra.mrb[10].mxu1 %v43777_v26 }
 0x61e   :  { %40042 = vmatpush3.bf16.msra.mxu1 %v43445_v53  ;;  %35858 = vmatprep.mubr.msk.f32.mxu1 %vm43145_vm1, %v47257_v22 }
 0x61f   :  { %40043 = vmatprep.subr.bf16.mxu1 %v47255_v48 }
 0x622   :  { %40045 = vmatpush3.bf16.msra.mxu1 %v43464_v56 }
 0x623   :  { %40046 = vmatprep.subr.bf16.mxu1 %v47255_v48 }
 0x625   :  { %35859 = vmatmul.mubr.f32.vlgmr.msra.gmra.mrb[10].mxu1 %v43780_v27 }
 0x626   :  { %40048 = vmatpush3.bf16.msra.mxu1 %v43410_v15  ;;  %35869 = vmatprep.mubr.msk.f32.mxu1 %vm43145_vm1, %v47257_v22 }
 0x627   :  { %40049 = vmatprep.subr.bf16.mxu1 %v47255_v48 }
 0x62a   :  { %40051 = vmatpush3.bf16.msra.mxu1 %v43432_v49 }
 0x62b   :  { %40052 = vmatprep.subr.bf16.mxu1 %v47255_v48 }
 0x62d   :  { %35870 = vmatmul.mubr.f32.vlgmr.msra.gmra.mrb[10].mxu1 %v43783_v28 }
 0x62e   :  { %40054 = vmatpush3.bf16.msra.mxu1 %v43482_v62  ;;  %35880 = vmatprep.mubr.msk.f32.mxu1 %vm43145_vm1, %v47257_v22 }
 0x62f   :  { %40055 = vmatprep.subr.bf16.mxu1 %v47255_v48 }
 0x632   :  { %40057 = vmatpush3.bf16.msra.mxu1 %v43501_v4 }
 0x633   :  { %40058 = vmatprep.subr.bf16.mxu1 %v47255_v48 }
 0x635   :  { %35881 = vmatmul.mubr.f32.vlgmr.msra.gmra.mrb[10].mxu1 %v43777_v26 }
 0x636   :  { %40060 = vmatpush3.bf16.msra.mxu1 %v43410_v15  ;;  %35891 = vmatprep.mubr.msk.f32.mxu1 %vm43145_vm1, %v47257_v22 }
 0x637   :  { %v3731_v37 = vpop.permute.xlu1 %3730  ;;  %40061 = vmatprep.subr.bf16.mxu1 %v47255_v48 }
 0x638   :  { %v3732_v38 = vsel %vm44_vm0, %v3731_v37, 0 }
 0x639   :  { %v43823_v40 = vand.u32 4294901760, %v3732_v38 }
 0x63a   :  { %40063 = vmatpush3.bf16.msra.mxu1 %v43432_v49 }
 0x63b   :  { %47332 = vst [vmem:[#allocation15_spill] sm:$0xff] %v43823_v40  ;;  %v43827_v41 = vsub.f32 %v3732_v38, %v43823_v40  ;;  %40100 = vmatprep.subr.bf16.mxu1 %v47255_v48  ;;  %v3709_v38 = vrot.slane %v43765_v57, 6 }
 0x63d   :  { %47333 = vst [vmem:[#allocation16_spill] sm:$0xff] %v43827_v41  ;;  %v43831_v42 = vand.u32 4294901760, %v43827_v41  ;;  %35892 = vmatmul.mubr.f32.vlgmr.msra.gmra.mrb[10].mxu1 %v43777_v26 }
 0x63e   :  { %40102 = vmatpush3.bf16.msra.mxu1 %v43410_v15  ;;  %35968 = vmatprep.mubr.msk.f32.mxu1 %vm43145_vm1, %v47257_v22 }
 0x63f   :  { %47334 = vst [vmem:[#allocation17_spill] sm:$0xff] %v43831_v42  ;;  %v3806_v45 = vsub.f32 %v43827_v41, %v43831_v42  ;;  %40103 = vmatprep.subr.bf16.mxu1 %v47255_v48 }
 0x641   :  { %v43840_v46 = vand.u32 4294901760, %v3806_v45 }
 0x642   :  { %40105 = vmatpush3.bf16.msra.mxu1 %v43432_v49 }
 0x643   :  { %47335 = vst [vmem:[#allocation18_spill] sm:$0xff] %v43840_v46  ;;  %35903 = vmatmul.mubr.f32.vlgmr.msra.gmra.mrb[12].mxu0 %v43840_v46  ;;  %40106 = vmatprep.subr.bf16.mxu1 %v47255_v48 }
 0x644   :  { %40072 = vmatpush3.bf16.msra.mxu0 %v43549_v29  ;;  %35913 = vmatprep.mubr.msk.f32.mxu0 %vm43145_vm1, %v47257_v22 }
 0x645   :  { %40073 = vmatprep.subr.bf16.mxu0 %v47255_v48 }
 0x648   :  { %40075 = vmatpush3.bf16.msra.mxu0 %v43557_v32 }
 0x649   :  { %40076 = vmatprep.subr.bf16.mxu0 %v47255_v48 }
 0x64b   :  { %35914 = vmatmul.mubr.f32.vlgmr.msra.gmra.mrb[12].mxu0 %v43823_v40 }
 0x64c   :  { %40078 = vmatpush3.bf16.msra.mxu0 %v43567_v33  ;;  %35924 = vmatprep.mubr.msk.f32.mxu0 %vm43145_vm1, %v47257_v22 }
 0x64d   :  { %40079 = vmatprep.subr.bf16.mxu0 %v47255_v48 }
 0x650   :  { %40081 = vmatpush3.bf16.msra.mxu0 %v43574_v34 }
 0x651   :  { %40082 = vmatprep.subr.bf16.mxu0 %v47255_v48 }
 0x653   :  { %35925 = vmatmul.mubr.f32.vlgmr.msra.gmra.mrb[12].mxu0 %v43827_v41 }
 0x654   :  { %40084 = vmatpush3.bf16.msra.mxu0 %v43520_v10  ;;  %35935 = vmatprep.mubr.msk.f32.mxu0 %vm43145_vm1, %v47257_v22 }
 0x655   :  { %40085 = vmatprep.subr.bf16.mxu0 %v47255_v48 }
 0x658   :  { %40087 = vmatpush3.bf16.msra.mxu0 %v43536_v17 }
 0x659   :  { %40088 = vmatprep.subr.bf16.mxu0 %v47255_v48 }
 0x65b   :  { %35936 = vmatmul.mubr.f32.vlgmr.msra.gmra.mrb[12].mxu0 %v43831_v42 }
 0x65c   :  { %40090 = vmatpush3.bf16.msra.mxu0 %v43589_v35  ;;  %35946 = vmatprep.mubr.msk.f32.mxu0 %vm43145_vm1, %v47257_v22 }
 0x65d   :  { %40091 = vmatprep.subr.bf16.mxu0 %v47255_v48 }
 0x660   :  { %40093 = vmatpush3.bf16.msra.mxu0 %v43593_v36 }
 0x661   :  { %40094 = vmatprep.subr.bf16.mxu0 %v47255_v48 }
 0x663   :  { %35947 = vmatmul.mubr.f32.vlgmr.msra.gmra.mrb[12].mxu0 %v43823_v40 }
 0x664   :  { %40096 = vmatpush3.bf16.msra.mxu0 %v43520_v10  ;;  %35957 = vmatprep.mubr.msk.f32.mxu0 %vm43145_vm1, %v47257_v22 }
 0x665   :  { %40097 = vmatprep.subr.bf16.mxu0 %v47255_v48 }
 0x668   :  { %40099 = vmatpush3.bf16.msra.mxu0 %v43536_v17 }
 0x669   :  { %40136 = vmatprep.subr.bf16.mxu0 %v47255_v48 }
 0x66b   :  { %35958 = vmatmul.mubr.f32.vlgmr.msra.gmra.mrb[12].mxu0 %v43823_v40 }
 0x66c   :  { %40138 = vmatpush3.bf16.msra.mxu0 %v43520_v10  ;;  %36034 = vmatprep.mubr.msk.f32.mxu0 %vm43145_vm1, %v47257_v22 }
 0x66d   :  { %40139 = vmatprep.subr.bf16.mxu0 %v47255_v48 }
 0x670   :  { %40141 = vmatpush3.bf16.msra.mxu0 %v43536_v17 }
 0x671   :  { %40148 = vmatprep.subr.bf16.mxu0 %v47255_v48 }
 0x710   :  { %v3695_v47 = vpop.f32.mrb[10].mxu1 }
 0x711   :  { %v3700_v20 = vrot.slane %v3695_v47, 4  ;;  %v35893_v51 = vpop.f32.mrb[11].mxu1 }
 0x713   :  { %v3702_v24 = vadd.f32 %v43624_v63, %v3700_v20 }
 0x715   :  { %42925 = vtanh.f32 %v3702_v24  ;;  %v3703_v3 = vmul.f32 0.5, %v3702_v24  ;;  %v4229_v24 = vrot.slane %v43770_v5, 2 }
 0x71f   :  { %v42926_v25 = vpop.eup %42925 }
 0x720   :  { %3713 = vrot.lane.b32.xlu0 %v42926_v25, %s43147_s11 }
 0x73e   :  { %v4215_v54 = vpop.f32.mrb[12].mxu0 }
 0x73f   :  { %v4220_v55 = vrot.slane %v4215_v54, 6  ;;  %v35959_v58 = vpop.f32.mrb[13].mxu0 }
 0x741   :  { %v4222_v59 = vadd.f32 %v43628_v6, %v4220_v55 }
 0x743   :  { %42927 = vtanh.f32 %v4222_v59  ;;  %v4223_v18 = vmul.f32 0.5, %v4222_v59 }
 0x744   :  { %42929 = vtanh.f32 %v3703_v3 }
 0x745   :  { %42931 = vtanh.f32 %v4223_v18 }
 0x74d   :  { %v42928_v1 = vpop.eup %42927 }
 0x74e   :  { %4233 = vrot.lane.b32.xlu1 %v42928_v1, %s43147_s11  ;;  %v42930_v11 = vpop.eup %42929 }
 0x74f   :  { %v3705_v43 = vadd.f32 1.0, %v42930_v11  ;;  %v42932_v19 = vpop.eup %42931 }
 0x750   :  { %v4225_v50 = vadd.f32 1.0, %v42932_v19 }
 0x751   :  { %v3706_v13 = vmul.f32 0.5, %v3705_v43 }
 0x752   :  { %v4226_v23 = vmul.f32 0.5, %v4225_v50 }
 0x753   :  { %v3711_v45 = vmul.f32 %v3709_v38, %v3706_v13 }
 0x754   :  { %v4231_v25 = vmul.f32 %v4229_v24, %v4226_v23 }
 0x792   :  { %v3714_v14 = vpop.permute.xlu0 %3713 }
 0x793   :  { %v3716_v16 = vmul.f32 %v3714_v14, %v3706_v13 }
 0x795   :  { %3718 = vrot.lane.b32.xlu0 %v3716_v16, %s43143_s29 }
 0x7c0   :  { %v4234_v30 = vpop.permute.xlu1 %4233 }
 0x7c1   :  { %v4236_v37 = vmul.f32 %v4234_v30, %v4226_v23 }
 0x7c3   :  { %4238 = vrot.lane.b32.xlu1 %v4236_v37, %s43143_s29 }
 0x807   :  { %v3719_v47 = vpop.permute.xlu0 %3718 }
 0x808   :  { %v43893_v20 = vadd.f32 %v3719_v47, %v3711_v45 }
 0x80a   :  { %42933 = vtanh.f32 %v43893_v20 }
 0x814   :  { %v42934_v51 = vpop.eup %42933 }
 0x815   :  { %3724 = vrot.lane.b32.xlu0 %v42934_v51, %s43147_s11 }
 0x835   :  { %v4239_v54 = vpop.permute.xlu1 %4238 }
 0x836   :  { %v43898_v55 = vadd.f32 %v4239_v54, %v4231_v25 }
 0x838   :  { %42935 = vtanh.f32 %v43898_v55 }
 0x842   :  { %v42936_v58 = vpop.eup %42935 }
 0x843   :  { %4244 = vrot.lane.b32.xlu1 %v42936_v58, %s43147_s11 }
 0x887   :  { %v3725_v57 = vpop.permute.xlu0 %3724 }
 0x888   :  { %v3727_v59 = vmul.f32 %v3725_v57, %v3706_v13 }
 0x88a   :  { %v4249_v1 = vrot.slane %v3727_v59, 4 }
 0x88c   :  { %4250 = vrot.lane.b32.xlu0 %v4249_v1, %s43143_s29 }
 0x8b5   :  { %v4245_v3 = vpop.permute.xlu1 %4244 }
 0x8b6   :  { %v4247_v11 = vmul.f32 %v4245_v3, %v4226_v23 }
 0x8b8   :  { %v4769_v43 = vrot.slane %v4247_v11, 2 }
 0x8ba   :  { %4770 = vrot.lane.b32.xlu1 %v4769_v43, %s43143_s29 }
 0x8fe   :  { %v4251_v5 = vpop.permute.xlu0 %4250 }
 0x8ff   :  { %v4252_v14 = vsel %vm44_vm0, %v4251_v5, 0 }
 0x900   :  { %v43905_v16 = vand.u32 4294901760, %v4252_v14 }
 0x902   :  { %v43908_v18 = vsub.f32 %v4252_v14, %v43905_v16 }
 0x904   :  { %47336 = vst [vmem:[#allocation19_spill] sm:$0xff] %v43908_v18  ;;  %v43911_v19 = vand.u32 4294901760, %v43908_v18 }
 0x906   :  { %47337 = vst [vmem:[#allocation20_spill] sm:$0xff] %v43911_v19  ;;  %v4326_v13 = vsub.f32 %v43908_v18, %v43911_v19 }
 0x908   :  { %v43915_v50 = vand.u32 4294901760, %v4326_v13 }
 0x90a   :  { %35969 = vmatmul.mubr.f32.vlgmr.msra.gmra.mrb[12].mxu1 %v43915_v50 }
 0x90b   :  { %40108 = vmatpush3.bf16.msra.mxu1 %v43430_v21  ;;  %35979 = vmatprep.mubr.msk.f32.mxu1 %vm43145_vm1, %v47257_v22 }
 0x90c   :  { %40109 = vmatprep.subr.bf16.mxu1 %v47255_v48 }
 0x90f   :  { %40111 = vmatpush3.bf16.msra.mxu1 %v43441_v52 }
 0x910   :  { %40112 = vmatprep.subr.bf16.mxu1 %v47255_v48 }
 0x912   :  { %35980 = vmatmul.mubr.f32.vlgmr.msra.gmra.mrb[12].mxu1 %v43905_v16 }
 0x913   :  { %40114 = vmatpush3.bf16.msra.mxu1 %v43445_v53  ;;  %35990 = vmatprep.mubr.msk.f32.mxu1 %vm43145_vm1, %v47257_v22 }
 0x914   :  { %40115 = vmatprep.subr.bf16.mxu1 %v47255_v48 }
 0x917   :  { %40117 = vmatpush3.bf16.msra.mxu1 %v43464_v56 }
 0x918   :  { %40118 = vmatprep.subr.bf16.mxu1 %v47255_v48 }
 0x91a   :  { %35991 = vmatmul.mubr.f32.vlgmr.msra.gmra.mrb[12].mxu1 %v43908_v18 }
 0x91b   :  { %40120 = vmatpush3.bf16.msra.mxu1 %v43410_v15  ;;  %36001 = vmatprep.mubr.msk.f32.mxu1 %vm43145_vm1, %v47257_v22 }
 0x91c   :  { %40121 = vmatprep.subr.bf16.mxu1 %v47255_v48 }
 0x91f   :  { %40123 = vmatpush3.bf16.msra.mxu1 %v43432_v49 }
 0x920   :  { %40124 = vmatprep.subr.bf16.mxu1 %v47255_v48 }
 0x922   :  { %36002 = vmatmul.mubr.f32.vlgmr.msra.gmra.mrb[12].mxu1 %v43911_v19 }
 0x923   :  { %40126 = vmatpush3.bf16.msra.mxu1 %v43482_v62  ;;  %36012 = vmatprep.mubr.msk.f32.mxu1 %vm43145_vm1, %v47257_v22 }
 0x924   :  { %40127 = vmatprep.subr.bf16.mxu1 %v47255_v48 }
 0x927   :  { %40129 = vmatpush3.bf16.msra.mxu1 %v43501_v4 }
 0x928   :  { %40130 = vmatprep.subr.bf16.mxu1 %v47255_v48 }
 0x92a   :  { %36013 = vmatmul.mubr.f32.vlgmr.msra.gmra.mrb[12].mxu1 %v43905_v16 }
 0x92b   :  { %40132 = vmatpush3.bf16.msra.mxu1 %v43410_v15  ;;  %36023 = vmatprep.mubr.msk.f32.mxu1 %vm43145_vm1, %v47257_v22 }
 0x92c   :  { %40133 = vmatprep.subr.bf16.mxu1 %v47255_v48  ;;  %v4771_v23 = vpop.permute.xlu1 %4770 }
 0x92d   :  { %v4772_v30 = vsel %vm44_vm0, %v4771_v23, 0 }
 0x92e   :  { %v43951_v37 = vand.u32 4294901760, %v4772_v30 }
 0x92f   :  { %40135 = vmatpush3.bf16.msra.mxu1 %v43432_v49 }
 0x930   :  { %47338 = vst [vmem:[#allocation21_spill] sm:$0xff] %v43951_v37  ;;  %v43955_v38 = vsub.f32 %v4772_v30, %v43951_v37  ;;  %40142 = vmatprep.subr.bf16.mxu1 %v47255_v48 }
 0x932   :  { %47339 = vst [vmem:[#allocation22_spill] sm:$0xff] %v43955_v38  ;;  %v43959_v45 = vand.u32 4294901760, %v43955_v38  ;;  %36024 = vmatmul.mubr.f32.vlgmr.msra.gmra.mrb[12].mxu1 %v43905_v16 }
 0x933   :  { %40144 = vmatpush3.bf16.msra.mxu1 %v43549_v29  ;;  %36045 = vmatprep.mubr.msk.f32.mxu1 %vm43145_vm1, %v47257_v22 }
 0x934   :  { %47340 = vst [vmem:[#allocation23_spill] sm:$0xff] %v43959_v45  ;;  %40145 = vmatprep.subr.bf16.mxu1 %v47255_v48  ;;  %v4846_v47 = vsub.f32 %v43955_v38, %v43959_v45 }
 0x936   :  { %v43968_v51 = vand.u32 4294901760, %v4846_v47 }
 0x937   :  { %40147 = vmatpush3.bf16.msra.mxu1 %v43557_v32 }
 0x938   :  { %47341 = vst [vmem:[#allocation24_spill] sm:$0xff] %v43968_v51  ;;  %40154 = vmatprep.subr.bf16.mxu1 %v47255_v48  ;;  %36035 = vmatmul.mubr.f32.vlgmr.msra.gmra.mrb[14].mxu0 %v43968_v51 }
 0x939   :  { %40150 = vmatpush3.bf16.msra.mxu0 %v43567_v33  ;;  %36056 = vmatprep.mubr.msk.f32.mxu0 %vm43145_vm1, %v47257_v22 }
 0x93a   :  { %36046 = vmatmul.mubr.f32.vlgmr.msra.gmra.mrb[14].mxu1 %v43951_v37  ;;  %40151 = vmatprep.subr.bf16.mxu0 %v47255_v48 }
 0x93b   :  { %40156 = vmatpush3.bf16.msra.mxu1 %v43520_v10  ;;  %36067 = vmatprep.mubr.msk.f32.mxu1 %vm43145_vm1, %v47257_v22 }
 0x93c   :  { %40157 = vmatprep.subr.bf16.mxu1 %v47255_v48 }
 0x93d   :  { %40153 = vmatpush3.bf16.msra.mxu0 %v43574_v34 }
 0x93e   :  { %40160 = vmatprep.subr.bf16.mxu0 %v47255_v48 }
 0x93f   :  { %40159 = vmatpush3.bf16.msra.mxu1 %v43536_v17 }
 0x940   :  { %36057 = vmatmul.mubr.f32.vlgmr.msra.gmra.mrb[16].mxu0 %v43955_v38  ;;  %40166 = vmatprep.subr.bf16.mxu1 %v47255_v48 }
 0x941   :  { %40162 = vmatpush3.bf16.msra.mxu0 %v43589_v35  ;;  %36078 = vmatprep.mubr.msk.f32.mxu0 %vm43145_vm1, %v47257_v22 }
 0x942   :  { %36068 = vmatmul.mubr.f32.vlgmr.msra.gmra.mrb[16].mxu1 %v43959_v45  ;;  %40163 = vmatprep.subr.bf16.mxu0 %v47255_v48 }
 0x943   :  { %40168 = vmatpush3.bf16.msra.mxu1 %v43520_v10  ;;  %36089 = vmatprep.mubr.msk.f32.mxu1 %vm43145_vm1, %v47257_v22 }
 0x944   :  { %40169 = vmatprep.subr.bf16.mxu1 %v47255_v48 }
 0x945   :  { %40165 = vmatpush3.bf16.msra.mxu0 %v43593_v36 }
 0x946   :  { %40172 = vmatprep.subr.bf16.mxu0 %v47255_v48 }
 0x947   :  { %40171 = vmatpush3.bf16.msra.mxu1 %v43536_v17 }
 0x948   :  { %36079 = vmatmul.mubr.f32.vlgmr.msra.gmra.mrb[18].mxu0 %v43951_v37  ;;  %40178 = vmatprep.subr.bf16.mxu1 %v47255_v48 }
 0x949   :  { %40174 = vmatpush3.bf16.msra.mxu0 %v43410_v15  ;;  %36100 = vmatprep.mubr.msk.f32.mxu0 %vm43145_vm1, %v47257_v22 }
 0x94a   :  { %36090 = vmatmul.mubr.f32.vlgmr.msra.gmra.mrb[18].mxu1 %v43951_v37  ;;  %40175 = vmatprep.subr.bf16.mxu0 %v47255_v48 }
 0x94b   :  { %40180 = vmatpush3.bf16.msra.mxu1 %v43430_v21  ;;  %36111 = vmatprep.mubr.msk.f32.mxu1 %vm43145_vm1, %v47257_v22 }
 0x94c   :  { %40181 = vmatprep.subr.bf16.mxu1 %v47255_v48 }
 0x94d   :  { %40177 = vmatpush3.bf16.msra.mxu0 %v43432_v49 }
 0x94e   :  { %40184 = vmatprep.subr.bf16.mxu0 %v47255_v48 }
 0x94f   :  { %40183 = vmatpush3.bf16.msra.mxu1 %v43441_v52 }
 0x950   :  { %40190 = vmatprep.subr.bf16.mxu1 %v47255_v48 }
 0xa05   :  { %v4735_v24 = vpop.f32.mrb[12].mxu1 }
 0xa06   :  { %v4740_v25 = vrot.slane %v4735_v24, 2  ;;  %v36025_v54 = vpop.f32.mrb[13].mxu1 }
 0xa08   :  { %v4742_v58 = vadd.f32 %v43624_v63, %v4740_v25 }
 0xa0a   :  { %42937 = vtanh.f32 %v4742_v58 }
 0xa0b   :  { %v4849_v57 = vpop.f32.mrb[14].mxu0 }
 0xa0c   :  { %v36036_v59 = vpop.f32.mrb[15].mxu0 }
 0xa0d   :  { %v4940_v1 = vpop.f32.mrb[14].mxu1 }
 0xa0e   :  { %v4941_v3 = vadd.f32 %v4940_v1, %v4849_v57  ;;  %v36047_v11 = vpop.f32.mrb[15].mxu1  ;;  %v4743_v1 = vmul.f32 0.5, %v4742_v58 }
 0xa13   :  { %v5020_v43 = vpop.f32.mrb[16].mxu0 }
 0xa14   :  { %v42938_v5 = vpop.eup %42937  ;;  %v5021_v14 = vadd.f32 %v5020_v43, %v4941_v3  ;;  %v36058_v13 = vpop.f32.mrb[17].mxu0 }
 0xa15   :  { %v5097_v23 = vpop.f32.mrb[16].mxu1  ;;  %4753 = vrot.lane.b32.xlu0 %v42938_v5, %s43147_s11 }
 0xa16   :  { %v5098_v30 = vadd.f32 %v5097_v23, %v5021_v14  ;;  %v36069_v47 = vpop.f32.mrb[17].mxu1 }
 0xa17   :  { %v4749_v47 = vrot.slane %v43893_v20, 6 }
 0xa1b   :  { %v5180_v48 = vpop.f32.mrb[18].mxu0 }
 0xa1c   :  { %v5181_v24 = vadd.f32 %v5180_v48, %v5098_v30  ;;  %v36080_v54 = vpop.f32.mrb[19].mxu0 }
 0xa1d   :  { %v5255_v22 = vpop.f32.mrb[18].mxu1 }
 0xa1e   :  { %v5256_v63 = vadd.f32 %v5255_v22, %v5181_v24  ;;  %v36091_v25 = vpop.f32.mrb[19].mxu1 }
 0xa1f   :  { %v5266_v25 = vrot.slane %v43898_v55, 2 }
 0xa20   :  { %v5259_v59 = vadd.f32 %v43628_v6, %v5256_v63 }
 0xa22   :  { %42939 = vtanh.f32 %v5259_v59  ;;  %v5260_v13 = vmul.f32 0.5, %v5259_v59 }
 0xa23   :  { %42941 = vtanh.f32 %v4743_v1 }
 0xa24   :  { %42943 = vtanh.f32 %v5260_v13 }
 0xa2c   :  { %v42940_v57 = vpop.eup %42939 }
 0xa2d   :  { %5270 = vrot.lane.b32.xlu1 %v42940_v57, %s43147_s11  ;;  %v42942_v3 = vpop.eup %42941 }
 0xa2e   :  { %v4745_v11 = vadd.f32 1.0, %v42942_v3  ;;  %v42944_v48 = vpop.eup %42943 }
 0xa2f   :  { %v5262_v22 = vadd.f32 1.0, %v42944_v48 }
 0xa30   :  { %v4746_v43 = vmul.f32 0.5, %v4745_v11 }
 0xa31   :  { %v5263_v23 = vmul.f32 0.5, %v5262_v22 }
 0xa32   :  { %v4751_v58 = vmul.f32 %v4749_v47, %v4746_v43 }
 0xa33   :  { %v5268_v59 = vmul.f32 %v5266_v25, %v5263_v23 }
 0xa87   :  { %v4754_v5 = vpop.permute.xlu0 %4753 }
 0xa88   :  { %v4756_v14 = vmul.f32 %v4754_v5, %v4746_v43 }
 0xa8a   :  { %4758 = vrot.lane.b32.xlu0 %v4756_v14, %s43143_s29 }
 0xa9f   :  { %v5271_v30 = vpop.permute.xlu1 %5270 }
 0xaa0   :  { %v5273_v6 = vmul.f32 %v5271_v30, %v5263_v23 }
 0xaa2   :  { %5275 = vrot.lane.b32.xlu1 %v5273_v6, %s43143_s29  ;;  %v47343_v6 = vmov 0.0|0.0  }
 0xafc   :  { %v4759_v24 = vpop.permute.xlu0 %4758 }
 0xafd   :  { %v44021_v54 = vadd.f32 %v4759_v24, %v4751_v58 }
 0xaff   :  { %42945 = vtanh.f32 %v44021_v54 }
 0xb09   :  { %v42946_v63 = vpop.eup %42945 }
 0xb0a   :  { %4764 = vrot.lane.b32.xlu0 %v42946_v63, %s43147_s11 }
 0xb14   :  { %v5276_v57 = vpop.permute.xlu1 %5275 }
 0xb15   :  { %v44026_v1 = vadd.f32 %v5276_v57, %v5268_v59 }
 0xb17   :  { %42947 = vtanh.f32 %v44026_v1 }
 0xb21   :  { %v42948_v3 = vpop.eup %42947 }
 0xb22   :  { %5281 = vrot.lane.b32.xlu1 %v42948_v3, %s43147_s11 }
 0xb7c   :  { %v4765_v20 = vpop.permute.xlu0 %4764 }
 0xb7d   :  { %v4767_v11 = vmul.f32 %v4765_v20, %v4746_v43  ;;  %v47342_v43 = vmov 0.0  }
 0xb7f   :  { %v5286_v5 = vrot.slane %v4767_v11, 6 }
 0xb81   :  { %5287 = vrot.lane.b32.xlu0 %v5286_v5, %s43143_s29 }
 0xb94   :  { %v5282_v14 = vpop.permute.xlu1 %5281 }
 0xb95   :  { %v5284_v13 = vmul.f32 %v5282_v14, %v5263_v23 }
 0xb97   :  { %5803 = vrot.lane.b32.xlu1 %v5284_v13, %s43143_s29 }
 0xbf3   :  { %v5288_v48 = vpop.permute.xlu0 %5287 }
 0xbf4   :  { %v5289_v55 = vsel %vm44_vm0, %v5288_v48, 0 }
 0xbf5   :  { %v44033_v22 = vand.u32 4294901760, %v5289_v55 }
 0xbf7   :  { %v44036_v30 = vsub.f32 %v5289_v55, %v44033_v22  ;;  %36112 = vmatmul.mubr.f32.vlgmr.msra.gmra.mrb[20].mxu1 %v44033_v22 }
 0xbf8   :  { %40192 = vmatpush3.bf16.msra.mxu1 %v43410_v15  ;;  %36133 = vmatprep.mubr.msk.f32.mxu1 %vm43145_vm1, %v47342_v43 }
 0xbf9   :  { %40193 = vmatprep.subr.bf16.mxu1 %v47343_v6  ;;  %v44044_v23 = vand.u32 4294901760, %v44036_v30 }
 0xbfb   :  { %v5363_v47 = vsub.f32 %v44036_v30, %v44044_v23 }
 0xbfc   :  { %40195 = vmatpush3.bf16.msra.mxu1 %v43432_v49 }
 0xbfd   :  { %40202 = vmatprep.subr.bf16.mxu1 %v47343_v6  ;;  %v44050_v58 = vand.u32 4294901760, %v5363_v47 }
 0xbff   :  { %36134 = vmatmul.mubr.f32.vlgmr.msra.gmra.mrb[22].mxu1 %v44044_v23  ;;  %36101 = vmatmul.mubr.f32.vlgmr.msra.gmra.mrb[20].mxu0 %v44050_v58 }
 0xc00   :  { %40186 = vmatpush3.bf16.msra.mxu0 %v43445_v53  ;;  %40204 = vmatpush3.bf16.msra.mxu1 %v43410_v15 }
 0xc01   :  { %40187 = vmatprep.subr.bf16.mxu0 %v47343_v6  ;;  %40205 = vmatprep.subr.bf16.mxu1 %v47343_v6 }
 0xc02   :  { %36122 = vmatprep.mubr.msk.f32.mxu0 %vm43145_vm1, %v47342_v43  ;;  %36155 = vmatprep.mubr.msk.f32.mxu1 %vm43145_vm1, %v47342_v43 }
 0xc04   :  { %40189 = vmatpush3.bf16.msra.mxu0 %v43464_v56  ;;  %40207 = vmatpush3.bf16.msra.mxu1 %v43432_v49 }
 0xc05   :  { %40196 = vmatprep.subr.bf16.mxu0 %v47343_v6  ;;  %40244 = vmatprep.subr.bf16.mxu1 %v47343_v6 }
 0xc07   :  { %36123 = vmatmul.mubr.f32.vlgmr.msra.gmra.mrb[22].mxu0 %v44036_v30  ;;  %36156 = vmatmul.mubr.f32.vlgmr.msra.gmra.mrb[24].mxu1 %v44033_v22 }
 0xc08   :  { %40198 = vmatpush3.bf16.msra.mxu0 %v43482_v62  ;;  %36144 = vmatprep.mubr.msk.f32.mxu0 %vm43145_vm1, %v47342_v43 }
 0xc09   :  { %40199 = vmatprep.subr.bf16.mxu0 %v47343_v6  ;;  %v5804_v24 = vpop.permute.xlu1 %5803  ;;  %40246 = vmatpush3.bf16.msra.mxu1 %v43410_v15 }
 0xc0a   :  { %v5805_v63 = vsel %vm44_vm0, %v5804_v24, 0  ;;  %40247 = vmatprep.subr.bf16.mxu1 %v47343_v6  ;;  %36232 = vmatprep.mubr.msk.f32.mxu1 %vm43145_vm1, %v47342_v43 }
 0xc0b   :  { %v44077_v25 = vand.u32 4294901760, %v5805_v63 }
 0xc0c   :  { %40201 = vmatpush3.bf16.msra.mxu0 %v43501_v4 }
 0xc0d   :  { %47344 = vst [vmem:[#allocation25_spill] sm:$0xff] %v44077_v25  ;;  %v44081_v59 = vsub.f32 %v5805_v63, %v44077_v25  ;;  %40208 = vmatprep.subr.bf16.mxu0 %v47343_v6  ;;  %40249 = vmatpush3.bf16.msra.mxu1 %v43432_v49 }
 0xc0e   :  { %40250 = vmatprep.subr.bf16.mxu1 %v47343_v6 }
 0xc0f   :  { %47345 = vst [vmem:[#allocation26_spill] sm:$0xff] %v44081_v59  ;;  %v44087_v57 = vand.u32 4294901760, %v44081_v59  ;;  %36145 = vmatmul.mubr.f32.vlgmr.msra.gmra.mrb[24].mxu0 %v44033_v22 }
 0xc10   :  { %40210 = vmatpush3.bf16.msra.mxu0 %v43520_v10  ;;  %36166 = vmatprep.mubr.msk.f32.mxu0 %vm43145_vm1, %v47342_v43 }
 0xc11   :  { %47346 = vst [vmem:[#allocation27_spill] sm:$0xff] %v44087_v57  ;;  %40211 = vmatprep.subr.bf16.mxu0 %v47343_v6  ;;  %v5879_v3 = vsub.f32 %v44081_v59, %v44087_v57 }
 0xc13   :  { %v44096_v20 = vand.u32 4294901760, %v5879_v3 }
 0xc14   :  { %40213 = vmatpush3.bf16.msra.mxu0 %v43536_v17 }
 0xc15   :  { %47347 = vst [vmem:[#allocation28_spill] sm:$0xff] %v44096_v20  ;;  %40214 = vmatprep.subr.bf16.mxu0 %v47343_v6 }
 0xc17   :  { %36167 = vmatmul.mubr.f32.vlgmr.msra.gmra.mrb[26].mxu0 %v44096_v20 }
 0xc18   :  { %40216 = vmatpush3.bf16.msra.mxu0 %v43549_v29  ;;  %36177 = vmatprep.mubr.msk.f32.mxu0 %vm43145_vm1, %v47342_v43 }
 0xc19   :  { %40217 = vmatprep.subr.bf16.mxu0 %v47343_v6 }
 0xc1c   :  { %40219 = vmatpush3.bf16.msra.mxu0 %v43557_v32 }
 0xc1d   :  { %40220 = vmatprep.subr.bf16.mxu0 %v47343_v6 }
 0xc1f   :  { %36178 = vmatmul.mubr.f32.vlgmr.msra.gmra.mrb[26].mxu0 %v44077_v25 }
 0xc20   :  { %40222 = vmatpush3.bf16.msra.mxu0 %v43567_v33  ;;  %36188 = vmatprep.mubr.msk.f32.mxu0 %vm43145_vm1, %v47342_v43 }
 0xc21   :  { %40223 = vmatprep.subr.bf16.mxu0 %v47343_v6 }
 0xc24   :  { %40225 = vmatpush3.bf16.msra.mxu0 %v43574_v34 }
 0xc25   :  { %40226 = vmatprep.subr.bf16.mxu0 %v47343_v6 }
 0xc27   :  { %36189 = vmatmul.mubr.f32.vlgmr.msra.gmra.mrb[26].mxu0 %v44081_v59 }
 0xc28   :  { %40228 = vmatpush3.bf16.msra.mxu0 %v43520_v10  ;;  %36199 = vmatprep.mubr.msk.f32.mxu0 %vm43145_vm1, %v47342_v43 }
 0xc29   :  { %40229 = vmatprep.subr.bf16.mxu0 %v47343_v6 }
 0xc2c   :  { %40231 = vmatpush3.bf16.msra.mxu0 %v43536_v17 }
 0xc2d   :  { %40232 = vmatprep.subr.bf16.mxu0 %v47343_v6 }
 0xc2f   :  { %36200 = vmatmul.mubr.f32.vlgmr.msra.gmra.mrb[26].mxu0 %v44087_v57 }
 0xc30   :  { %40234 = vmatpush3.bf16.msra.mxu0 %v43589_v35  ;;  %36210 = vmatprep.mubr.msk.f32.mxu0 %vm43145_vm1, %v47342_v43 }
 0xc31   :  { %40235 = vmatprep.subr.bf16.mxu0 %v47343_v6 }
 0xc34   :  { %40237 = vmatpush3.bf16.msra.mxu0 %v43593_v36 }
 0xc35   :  { %40238 = vmatprep.subr.bf16.mxu0 %v47343_v6 }
 0xc37   :  { %36211 = vmatmul.mubr.f32.vlgmr.msra.gmra.mrb[26].mxu0 %v44077_v25 }
 0xc38   :  { %40240 = vmatpush3.bf16.msra.mxu0 %v43520_v10  ;;  %36221 = vmatprep.mubr.msk.f32.mxu0 %vm43145_vm1, %v47342_v43 }
 0xc39   :  { %40241 = vmatprep.subr.bf16.mxu0 %v47343_v6 }
 0xc3c   :  { %40243 = vmatpush3.bf16.msra.mxu0 %v43536_v17 }
 0xc3d   :  { %40280 = vmatprep.subr.bf16.mxu0 %v47343_v6 }
 0xc3f   :  { %36222 = vmatmul.mubr.f32.vlgmr.msra.gmra.mrb[26].mxu0 %v44077_v25 }
 0xc40   :  { %40282 = vmatpush3.bf16.msra.mxu0 %v43520_v10  ;;  %36298 = vmatprep.mubr.msk.f32.mxu0 %vm43145_vm1, %v47342_v43 }
 0xc41   :  { %40283 = vmatprep.subr.bf16.mxu0 %v47343_v6 }
 0xc44   :  { %40285 = vmatpush3.bf16.msra.mxu0 %v43536_v17 }
 0xc45   :  { %40286 = vmatprep.subr.bf16.mxu0 %v47343_v6 }
 0xcca   :  { %v5457_v11 = vpop.f32.mrb[20].mxu1 }
 0xccb   :  { %v36113_v5 = vpop.f32.mrb[21].mxu1 }
 0xcd2   :  { %v5614_v14 = vpop.f32.mrb[22].mxu1  ;;  %v5366_v13 = vpop.f32.mrb[20].mxu0 }
 0xcd3   :  { %v5458_v48 = vadd.f32 %v5457_v11, %v5366_v13  ;;  %v36135_v55 = vpop.f32.mrb[23].mxu1  ;;  %v36102_v47 = vpop.f32.mrb[21].mxu0 }
 0xcda   :  { %v5537_v24 = vpop.f32.mrb[22].mxu0  ;;  %v5772_v63 = vpop.f32.mrb[24].mxu1 }
 0xcdb   :  { %v5538_v3 = vadd.f32 %v5537_v24, %v5458_v48  ;;  %v36124_v9 = vpop.f32.mrb[23].mxu0  ;;  %v36157_v8 = vpop.f32.mrb[25].mxu1 }
 0xcdd   :  { %v5615_v42 = vadd.f32 %v5614_v14, %v5538_v3  ;;  %v5783_v3 = vrot.slane %v44021_v54, 6 }
 0xce2   :  { %v5697_v7 = vpop.f32.mrb[24].mxu0 }
 0xce3   :  { %v5698_v41 = vadd.f32 %v5697_v7, %v5615_v42  ;;  %v36146_v12 = vpop.f32.mrb[25].mxu0 }
 0xce5   :  { %v5773_v40 = vadd.f32 %v5772_v63, %v5698_v41 }
 0xce7   :  { %v5776_v46 = vadd.f32 %v43617_v39, %v5773_v40 }
 0xce9   :  { %42949 = vtanh.f32 %v5776_v46  ;;  %v5777_v8 = vmul.f32 0.5, %v5776_v46 }
 0xcf3   :  { %v42950_v57 = vpop.eup %42949 }
 0xcf4   :  { %5787 = vrot.lane.b32.xlu0 %v42950_v57, %s43147_s11 }
 0xd12   :  { %v6288_v5 = vpop.f32.mrb[26].mxu0 }
 0xd13   :  { %v6293_v11 = vrot.slane %v6288_v5, 2  ;;  %v36223_v13 = vpop.f32.mrb[27].mxu0 }
 0xd15   :  { %v6295_v55 = vadd.f32 %v43622_v44, %v6293_v11 }
 0xd17   :  { %42951 = vtanh.f32 %v6295_v55  ;;  %v6296_v42 = vmul.f32 0.5, %v6295_v55  ;;  %v6302_v55 = vrot.slane %v44026_v1, 2 }
 0xd18   :  { %42953 = vtanh.f32 %v5777_v8 }
 0xd19   :  { %42955 = vtanh.f32 %v6296_v42 }
 0xd21   :  { %v42952_v48 = vpop.eup %42951 }
 0xd22   :  { %6306 = vrot.lane.b32.xlu1 %v42952_v48, %s43147_s11  ;;  %v42954_v7 = vpop.eup %42953 }
 0xd23   :  { %v5779_v9 = vadd.f32 1.0, %v42954_v7  ;;  %v42956_v57 = vpop.eup %42955 }
 0xd24   :  { %v6298_v14 = vadd.f32 1.0, %v42956_v57 }
 0xd25   :  { %v5780_v12 = vmul.f32 0.5, %v5779_v9 }
 0xd26   :  { %v6299_v47 = vmul.f32 0.5, %v6298_v14 }
 0xd27   :  { %v5785_v46 = vmul.f32 %v5783_v3, %v5780_v12 }
 0xd28   :  { %v6304_v48 = vmul.f32 %v6302_v55, %v6299_v47 }
 0xd66   :  { %v5788_v41 = vpop.permute.xlu0 %5787 }
 0xd67   :  { %v5790_v40 = vmul.f32 %v5788_v41, %v5780_v12 }
 0xd69   :  { %5792 = vrot.lane.b32.xlu0 %v5790_v40, %s43143_s29 }
 0xd94   :  { %v6307_v24 = vpop.permute.xlu1 %6306 }
 0xd95   :  { %v6309_v63 = vmul.f32 %v6307_v24, %v6299_v47 }
 0xd97   :  { %6311 = vrot.lane.b32.xlu1 %v6309_v63, %s43143_s29 }
 0xddb   :  { %v5793_v5 = vpop.permute.xlu0 %5792 }
 0xddc   :  { %v44149_v11 = vadd.f32 %v5793_v5, %v5785_v46 }
 0xdde   :  { %42957 = vtanh.f32 %v44149_v11 }
 0xde8   :  { %v42958_v13 = vpop.eup %42957 }
 0xde9   :  { %5798 = vrot.lane.b32.xlu0 %v42958_v13, %s43147_s11 }
 0xe09   :  { %v6312_v8 = vpop.permute.xlu1 %6311 }
 0xe0a   :  { %v44154_v7 = vadd.f32 %v6312_v8, %v6304_v48 }
 0xe0c   :  { %42959 = vtanh.f32 %v44154_v7 }
 0xe16   :  { %v42960_v9 = vpop.eup %42959 }
 0xe17   :  { %6317 = vrot.lane.b32.xlu1 %v42960_v9, %s43147_s11 }
 0xe5b   :  { %v5799_v54 = vpop.permute.xlu0 %5798 }
 0xe5c   :  { %v5801_v41 = vmul.f32 %v5799_v54, %v5780_v12 }
 0xe5e   :  { %6322 = vrot.lane.b32.xlu0 %v5801_v41, %s43143_s29 }
 0xe89   :  { %v6318_v40 = vpop.permute.xlu1 %6317 }
 0xe8a   :  { %v6320_v42 = vmul.f32 %v6318_v40, %v6299_v47 }
 0xe8c   :  { %v6841_v57 = vrot.slane %v6320_v42, 6 }
 0xe8e   :  { %6842 = vrot.lane.b32.xlu1 %v6841_v57, %s43143_s29 }
 0xed0   :  { %v6323_v14 = vpop.permute.xlu0 %6322 }
 0xed1   :  { %v6324_v1 = vsel %vm44_vm0, %v6323_v14, 0 }
 0xed2   :  { %v44161_v24 = vand.u32 4294901760, %v6324_v1 }
 0xed4   :  { %47348 = vst [vmem:[#allocation29_spill] sm:$0xff] %v44161_v24  ;;  %v44164_v63 = vsub.f32 %v6324_v1, %v44161_v24 }
 0xed6   :  { %47349 = vst [vmem:[#allocation30_spill] sm:$0xff] %v44164_v63  ;;  %v44167_v3 = vand.u32 4294901760, %v44164_v63 }
 0xed8   :  { %47350 = vst [vmem:[#allocation31_spill] sm:$0xff] %v44167_v3  ;;  %v6398_v12 = vsub.f32 %v44164_v63, %v44167_v3 }
 0xeda   :  { %v44171_v46 = vand.u32 4294901760, %v6398_v12 }
 0xedc   :  { %47351 = vst [vmem:[#allocation32_spill] sm:$0xff] %v44171_v46  ;;  %36233 = vmatmul.mubr.f32.vlgmr.msra.gmra.mrb[26].mxu1 %v44171_v46 }
 0xedd   :  { %40252 = vmatpush3.bf16.msra.mxu1 %v43430_v21  ;;  %36243 = vmatprep.mubr.msk.f32.mxu1 %vm43145_vm1, %v47342_v43 }
 0xede   :  { %40253 = vmatprep.subr.bf16.mxu1 %v47343_v6 }
 0xee1   :  { %40255 = vmatpush3.bf16.msra.mxu1 %v43441_v52 }
 0xee2   :  { %40256 = vmatprep.subr.bf16.mxu1 %v47343_v6 }
 0xee4   :  { %36244 = vmatmul.mubr.f32.vlgmr.msra.gmra.mrb[26].mxu1 %v44161_v24 }
 0xee5   :  { %40258 = vmatpush3.bf16.msra.mxu1 %v43445_v53  ;;  %36254 = vmatprep.mubr.msk.f32.mxu1 %vm43145_vm1, %v47342_v43 }
 0xee6   :  { %40259 = vmatprep.subr.bf16.mxu1 %v47343_v6 }
 0xee9   :  { %40261 = vmatpush3.bf16.msra.mxu1 %v43464_v56 }
 0xeea   :  { %40262 = vmatprep.subr.bf16.mxu1 %v47343_v6 }
 0xeec   :  { %36255 = vmatmul.mubr.f32.vlgmr.msra.gmra.mrb[26].mxu1 %v44164_v63 }
 0xeed   :  { %40264 = vmatpush3.bf16.msra.mxu1 %v43410_v15  ;;  %36265 = vmatprep.mubr.msk.f32.mxu1 %vm43145_vm1, %v47342_v43 }
 0xeee   :  { %40265 = vmatprep.subr.bf16.mxu1 %v47343_v6 }
 0xef1   :  { %40267 = vmatpush3.bf16.msra.mxu1 %v43432_v49 }
 0xef2   :  { %40268 = vmatprep.subr.bf16.mxu1 %v47343_v6 }
 0xef4   :  { %36266 = vmatmul.mubr.f32.vlgmr.msra.gmra.mrb[26].mxu1 %v44167_v3 }
 0xef5   :  { %40270 = vmatpush3.bf16.msra.mxu1 %v43482_v62  ;;  %36276 = vmatprep.mubr.msk.f32.mxu1 %vm43145_vm1, %v47342_v43 }
 0xef6   :  { %40271 = vmatprep.subr.bf16.mxu1 %v47343_v6 }
 0xef9   :  { %40273 = vmatpush3.bf16.msra.mxu1 %v43501_v4 }
 0xefa   :  { %40274 = vmatprep.subr.bf16.mxu1 %v47343_v6 }
 0xefc   :  { %36277 = vmatmul.mubr.f32.vlgmr.msra.gmra.mrb[26].mxu1 %v44161_v24 }
 0xefd   :  { %40276 = vmatpush3.bf16.msra.mxu1 %v43410_v15  ;;  %36287 = vmatprep.mubr.msk.f32.mxu1 %vm43145_vm1, %v47342_v43 }
 0xefe   :  { %40277 = vmatprep.subr.bf16.mxu1 %v47343_v6 }
 0xf00   :  { %v6843_v47 = vpop.permute.xlu1 %6842 }
 0xf01   :  { %v6844_v5 = vsel %vm44_vm0, %v6843_v47, 0  ;;  %40279 = vmatpush3.bf16.msra.mxu1 %v43432_v49 }
 0xf02   :  { %v44208_v13 = vand.u32 4294901760, %v6844_v5  ;;  %40316 = vmatprep.subr.bf16.mxu1 %v47343_v6 }
 0xf04   :  { %v44212_v55 = vsub.f32 %v6844_v5, %v44208_v13  ;;  %36288 = vmatmul.mubr.f32.vlgmr.msra.gmra.mrb[26].mxu1 %v44161_v24 }
 0xf05   :  { %40318 = vmatpush3.bf16.msra.mxu1 %v43410_v15  ;;  %36364 = vmatprep.mubr.msk.f32.mxu1 %vm43145_vm1, %v47342_v43 }
 0xf06   :  { %v44219_v48 = vand.u32 4294901760, %v44212_v55  ;;  %40319 = vmatprep.subr.bf16.mxu1 %v47343_v6 }
 0xf08   :  { %v6918_v8 = vsub.f32 %v44212_v55, %v44219_v48 }
 0xf09   :  { %40321 = vmatpush3.bf16.msra.mxu1 %v43432_v49 }
 0xf0a   :  { %v44225_v9 = vand.u32 4294901760, %v6918_v8  ;;  %40322 = vmatprep.subr.bf16.mxu1 %v47343_v6 }
 0xf0c   :  { %36299 = vmatmul.mubr.f32.vlgmr.msra.gmra.mrb[28].mxu0 %v44225_v9 }
 0xf0d   :  { %40288 = vmatpush3.bf16.msra.mxu0 %v43549_v29  ;;  %36309 = vmatprep.mubr.msk.f32.mxu0 %vm43145_vm1, %v47342_v43 }
 0xf0e   :  { %40289 = vmatprep.subr.bf16.mxu0 %v47343_v6 }
 0xf11   :  { %40291 = vmatpush3.bf16.msra.mxu0 %v43557_v32 }
 0xf12   :  { %40292 = vmatprep.subr.bf16.mxu0 %v47343_v6 }
 0xf14   :  { %36310 = vmatmul.mubr.f32.vlgmr.msra.gmra.mrb[28].mxu0 %v44208_v13 }
 0xf15   :  { %40294 = vmatpush3.bf16.msra.mxu0 %v43567_v33  ;;  %36320 = vmatprep.mubr.msk.f32.mxu0 %vm43145_vm1, %v47342_v43 }
 0xf16   :  { %40295 = vmatprep.subr.bf16.mxu0 %v47343_v6 }
 0xf19   :  { %40297 = vmatpush3.bf16.msra.mxu0 %v43574_v34 }
 0xf1a   :  { %40298 = vmatprep.subr.bf16.mxu0 %v47343_v6 }
 0xf1c   :  { %36321 = vmatmul.mubr.f32.vlgmr.msra.gmra.mrb[28].mxu0 %v44212_v55 }
 0xf1d   :  { %40300 = vmatpush3.bf16.msra.mxu0 %v43520_v10  ;;  %36331 = vmatprep.mubr.msk.f32.mxu0 %vm43145_vm1, %v47342_v43 }
 0xf1e   :  { %40301 = vmatprep.subr.bf16.mxu0 %v47343_v6 }
 0xf21   :  { %40303 = vmatpush3.bf16.msra.mxu0 %v43536_v17 }
 0xf22   :  { %40304 = vmatprep.subr.bf16.mxu0 %v47343_v6 }
 0xf24   :  { %36332 = vmatmul.mubr.f32.vlgmr.msra.gmra.mrb[28].mxu0 %v44219_v48 }
 0xf25   :  { %40306 = vmatpush3.bf16.msra.mxu0 %v43589_v35  ;;  %36342 = vmatprep.mubr.msk.f32.mxu0 %vm43145_vm1, %v47342_v43 }
 0xf26   :  { %40307 = vmatprep.subr.bf16.mxu0 %v47343_v6 }
 0xf29   :  { %40309 = vmatpush3.bf16.msra.mxu0 %v43593_v36 }
 0xf2a   :  { %40310 = vmatprep.subr.bf16.mxu0 %v47343_v6 }
 0xf2c   :  { %36343 = vmatmul.mubr.f32.vlgmr.msra.gmra.mrb[28].mxu0 %v44208_v13 }
 0xf2d   :  { %40312 = vmatpush3.bf16.msra.mxu0 %v43520_v10  ;;  %36353 = vmatprep.mubr.msk.f32.mxu0 %vm43145_vm1, %v47342_v43 }
 0xf2e   :  { %40313 = vmatprep.subr.bf16.mxu0 %v47343_v6 }
 0xf31   :  { %40315 = vmatpush3.bf16.msra.mxu0 %v43536_v17 }
 0xf32   :  { %40352 = vmatprep.subr.bf16.mxu0 %v47343_v6 }
 0xf34   :  { %36354 = vmatmul.mubr.f32.vlgmr.msra.gmra.mrb[28].mxu0 %v44208_v13 }
 0xf35   :  { %40354 = vmatpush3.bf16.msra.mxu0 %v43520_v10  ;;  %36430 = vmatprep.mubr.msk.f32.mxu0 %vm43145_vm1, %v47342_v43 }
 0xf36   :  { %40355 = vmatprep.subr.bf16.mxu0 %v47343_v6 }
 0xf39   :  { %40357 = vmatpush3.bf16.msra.mxu0 %v43536_v17 }
 0xf3a   :  { %40358 = vmatprep.subr.bf16.mxu0 %v47343_v6 }
 0xfd7   :  { %v6807_v54 = vpop.f32.mrb[26].mxu1 }
 0xfd8   :  { %v6812_v41 = vrot.slane %v6807_v54, 6  ;;  %v36289_v40 = vpop.f32.mrb[27].mxu1 }
 0xfda   :  { %v6814_v42 = vadd.f32 %v43617_v39, %v6812_v41 }
 0xfdc   :  { %42961 = vtanh.f32 %v6814_v42  ;;  %v6815_v8 = vmul.f32 0.5, %v6814_v42 }
 0xfe6   :  { %v42962_v57 = vpop.eup %42961 }
 0xfe7   :  { %6825 = vrot.lane.b32.xlu0 %v42962_v57, %s43147_s11 }
0x1007   :  { %v7327_v14 = vpop.f32.mrb[28].mxu0 }
0x1008   :  { %v7332_v1 = vrot.slane %v7327_v14, 4  ;;  %v36355_v12 = vpop.f32.mrb[29].mxu0 }
0x100a   :  { %v7334_v47 = vadd.f32 %v43622_v44, %v7332_v1 }
0x100c   :  { %42963 = vtanh.f32 %v7334_v47  ;;  %v7335_v20 = vmul.f32 0.5, %v7334_v47 }
0x100d   :  { %42965 = vtanh.f32 %v6815_v8 }
0x100e   :  { %42967 = vtanh.f32 %v7335_v20 }
0x1016   :  { %v42964_v5 = vpop.eup %42963 }
0x1017   :  { %7345 = vrot.lane.b32.xlu1 %v42964_v5, %s43147_s11  ;;  %v42966_v59 = vpop.eup %42965  ;;  %v6821_v5 = vrot.slane %v44149_v11, 6 }
0x1018   :  { %v6817_v54 = vadd.f32 1.0, %v42966_v59  ;;  %v42968_v57 = vpop.eup %42967  ;;  %v7341_v59 = vrot.slane %v44154_v7, 2 }
0x1019   :  { %v7337_v14 = vadd.f32 1.0, %v42968_v57 }
0x101a   :  { %v6818_v40 = vmul.f32 0.5, %v6817_v54 }
0x101b   :  { %v7338_v12 = vmul.f32 0.5, %v7337_v14 }
0x101c   :  { %v6823_v42 = vmul.f32 %v6821_v5, %v6818_v40 }
0x101d   :  { %v7343_v20 = vmul.f32 %v7341_v59, %v7338_v12 }
0x1059   :  { %v6826_v25 = vpop.permute.xlu0 %6825 }
0x105a   :  { %v6828_v41 = vmul.f32 %v6826_v25, %v6818_v40 }
0x105c   :  { %6830 = vrot.lane.b32.xlu0 %v6828_v41, %s43143_s29 }
0x1089   :  { %v7346_v3 = vpop.permute.xlu1 %7345 }
0x108a   :  { %v7348_v1 = vmul.f32 %v7346_v3, %v7338_v12 }
0x108c   :  { %7350 = vrot.lane.b32.xlu1 %v7348_v1, %s43143_s29 }
0x10ce   :  { %v6831_v8 = vpop.permute.xlu0 %6830 }
0x10cf   :  { %v44277_v63 = vadd.f32 %v6831_v8, %v6823_v42 }
0x10d1   :  { %42969 = vtanh.f32 %v44277_v63 }
0x10db   :  { %v42970_v25 = vpop.eup %42969 }
0x10dc   :  { %6836 = vrot.lane.b32.xlu0 %v42970_v25, %s43147_s11 }
0x10fe   :  { %v7351_v47 = vpop.permute.xlu1 %7350 }
0x10ff   :  { %v44282_v54 = vadd.f32 %v7351_v47, %v7343_v20 }
0x1101   :  { %42971 = vtanh.f32 %v44282_v54 }
0x110b   :  { %v42972_v3 = vpop.eup %42971 }
0x110c   :  { %7356 = vrot.lane.b32.xlu1 %v42972_v3, %s43147_s11 }
0x114e   :  { %v6837_v11 = vpop.permute.xlu0 %6836 }
0x114f   :  { %v6839_v41 = vmul.f32 %v6837_v11, %v6818_v40 }
0x1151   :  { %v7361_v57 = vrot.slane %v6839_v41, 2 }
0x1153   :  { %7362 = vrot.lane.b32.xlu0 %v7361_v57, %s43143_s29 }
0x117e   :  { %v7357_v14 = vpop.permute.xlu1 %7356 }
0x117f   :  { %v7359_v1 = vmul.f32 %v7357_v14, %v7338_v12 }
0x1181   :  { %v7881_v5 = vrot.slane %v7359_v1, 4 }
0x1183   :  { %7882 = vrot.lane.b32.xlu1 %v7881_v5, %s43143_s29 }
0x11c5   :  { %v7363_v7 = vpop.permute.xlu0 %7362 }
0x11c6   :  { %v7364_v42 = vsel %vm44_vm0, %v7363_v7, 0 }
0x11c7   :  { %v44289_v8 = vand.u32 4294901760, %v7364_v42 }
0x11c9   :  { %v44292_v25 = vsub.f32 %v7364_v42, %v44289_v8 }
0x11cb   :  { %v44295_v59 = vand.u32 4294901760, %v44292_v25 }
0x11cd   :  { %v7438_v40 = vsub.f32 %v44292_v25, %v44295_v59 }
0x11cf   :  { %v44299_v20 = vand.u32 4294901760, %v7438_v40 }
0x11d1   :  { %36365 = vmatmul.mubr.f32.vlgmr.msra.gmra.mrb[28].mxu1 %v44299_v20 }
0x11d2   :  { %40324 = vmatpush3.bf16.msra.mxu1 %v43430_v21  ;;  %36375 = vmatprep.mubr.msk.f32.mxu1 %vm43145_vm1, %v47342_v43 }
0x11d3   :  { %40325 = vmatprep.subr.bf16.mxu1 %v47343_v6 }
0x11d6   :  { %40327 = vmatpush3.bf16.msra.mxu1 %v43441_v52 }
0x11d7   :  { %40328 = vmatprep.subr.bf16.mxu1 %v47343_v6 }
0x11d9   :  { %36376 = vmatmul.mubr.f32.vlgmr.msra.gmra.mrb[28].mxu1 %v44289_v8 }
0x11da   :  { %40330 = vmatpush3.bf16.msra.mxu1 %v43445_v53  ;;  %36386 = vmatprep.mubr.msk.f32.mxu1 %vm43145_vm1, %v47342_v43 }
0x11db   :  { %40331 = vmatprep.subr.bf16.mxu1 %v47343_v6 }
0x11de   :  { %40333 = vmatpush3.bf16.msra.mxu1 %v43464_v56 }
0x11df   :  { %40334 = vmatprep.subr.bf16.mxu1 %v47343_v6 }
0x11e1   :  { %36387 = vmatmul.mubr.f32.vlgmr.msra.gmra.mrb[28].mxu1 %v44292_v25 }
0x11e2   :  { %40336 = vmatpush3.bf16.msra.mxu1 %v43410_v15  ;;  %36397 = vmatprep.mubr.msk.f32.mxu1 %vm43145_vm1, %v47342_v43 }
0x11e3   :  { %40337 = vmatprep.subr.bf16.mxu1 %v47343_v6 }
0x11e6   :  { %40339 = vmatpush3.bf16.msra.mxu1 %v43432_v49 }
0x11e7   :  { %40340 = vmatprep.subr.bf16.mxu1 %v47343_v6 }
0x11e9   :  { %36398 = vmatmul.mubr.f32.vlgmr.msra.gmra.mrb[28].mxu1 %v44295_v59 }
0x11ea   :  { %40342 = vmatpush3.bf16.msra.mxu1 %v43482_v62  ;;  %36408 = vmatprep.mubr.msk.f32.mxu1 %vm43145_vm1, %v47342_v43 }
0x11eb   :  { %40343 = vmatprep.subr.bf16.mxu1 %v47343_v6 }
0x11ee   :  { %40345 = vmatpush3.bf16.msra.mxu1 %v43501_v4 }
0x11ef   :  { %40346 = vmatprep.subr.bf16.mxu1 %v47343_v6 }
0x11f1   :  { %36409 = vmatmul.mubr.f32.vlgmr.msra.gmra.mrb[28].mxu1 %v44289_v8 }
0x11f2   :  { %40348 = vmatpush3.bf16.msra.mxu1 %v43410_v15  ;;  %36419 = vmatprep.mubr.msk.f32.mxu1 %vm43145_vm1, %v47342_v43 }
0x11f3   :  { %40349 = vmatprep.subr.bf16.mxu1 %v47343_v6 }
0x11f5   :  { %v7883_v12 = vpop.permute.xlu1 %7882 }
0x11f6   :  { %v7884_v47 = vsel %vm44_vm0, %v7883_v12, 0  ;;  %40351 = vmatpush3.bf16.msra.mxu1 %v43432_v49 }
0x11f7   :  { %v44336_v3 = vand.u32 4294901760, %v7884_v47  ;;  %40388 = vmatprep.subr.bf16.mxu1 %v47343_v6 }
0x11f9   :  { %47352 = vst [vmem:[#allocation33_spill] sm:$0xff] %v44336_v3  ;;  %v44340_v11 = vsub.f32 %v7884_v47, %v44336_v3  ;;  %36420 = vmatmul.mubr.f32.vlgmr.msra.gmra.mrb[28].mxu1 %v44289_v8 }
0x11fa   :  { %40390 = vmatpush3.bf16.msra.mxu1 %v43410_v15  ;;  %36496 = vmatprep.mubr.msk.f32.mxu1 %vm43145_vm1, %v47342_v43 }
0x11fb   :  { %47353 = vst [vmem:[#allocation34_spill] sm:$0xff] %v44340_v11  ;;  %v44347_v41 = vand.u32 4294901760, %v44340_v11  ;;  %40391 = vmatprep.subr.bf16.mxu1 %v47343_v6 }
0x11fd   :  { %47354 = vst [vmem:[#allocation35_spill] sm:$0xff] %v44347_v41  ;;  %v7958_v57 = vsub.f32 %v44340_v11, %v44347_v41 }
0x11fe   :  { %40393 = vmatpush3.bf16.msra.mxu1 %v43432_v49 }
0x11ff   :  { %v44353_v14 = vand.u32 4294901760, %v7958_v57  ;;  %40394 = vmatprep.subr.bf16.mxu1 %v47343_v6 }
0x1201   :  { %47355 = vst [vmem:[#allocation36_spill] sm:$0xff] %v44353_v14  ;;  %36431 = vmatmul.mubr.f32.vlgmr.msra.gmra.mrb[30].mxu0 %v44353_v14 }
0x1202   :  { %40360 = vmatpush3.bf16.msra.mxu0 %v43549_v29  ;;  %36441 = vmatprep.mubr.msk.f32.mxu0 %vm43145_vm1, %v47342_v43 }
0x1203   :  { %40361 = vmatprep.subr.bf16.mxu0 %v47343_v6 }
0x1206   :  { %40363 = vmatpush3.bf16.msra.mxu0 %v43557_v32 }
0x1207   :  { %40364 = vmatprep.subr.bf16.mxu0 %v47343_v6 }
0x1209   :  { %36442 = vmatmul.mubr.f32.vlgmr.msra.gmra.mrb[30].mxu0 %v44336_v3 }
0x120a   :  { %40366 = vmatpush3.bf16.msra.mxu0 %v43567_v33  ;;  %36452 = vmatprep.mubr.msk.f32.mxu0 %vm43145_vm1, %v47342_v43 }
0x120b   :  { %40367 = vmatprep.subr.bf16.mxu0 %v47343_v6 }
0x120e   :  { %40369 = vmatpush3.bf16.msra.mxu0 %v43574_v34 }
0x120f   :  { %40370 = vmatprep.subr.bf16.mxu0 %v47343_v6 }
0x1211   :  { %36453 = vmatmul.mubr.f32.vlgmr.msra.gmra.mrb[30].mxu0 %v44340_v11 }
0x1212   :  { %40372 = vmatpush3.bf16.msra.mxu0 %v43520_v10  ;;  %36463 = vmatprep.mubr.msk.f32.mxu0 %vm43145_vm1, %v47342_v43 }
0x1213   :  { %40373 = vmatprep.subr.bf16.mxu0 %v47343_v6 }
0x1216   :  { %40375 = vmatpush3.bf16.msra.mxu0 %v43536_v17 }
0x1217   :  { %40376 = vmatprep.subr.bf16.mxu0 %v47343_v6 }
0x1219   :  { %36464 = vmatmul.mubr.f32.vlgmr.msra.gmra.mrb[30].mxu0 %v44347_v41 }
0x121a   :  { %40378 = vmatpush3.bf16.msra.mxu0 %v43589_v35  ;;  %36474 = vmatprep.mubr.msk.f32.mxu0 %vm43145_vm1, %v47342_v43 }
0x121b   :  { %40379 = vmatprep.subr.bf16.mxu0 %v47343_v6 }
0x121e   :  { %40381 = vmatpush3.bf16.msra.mxu0 %v43593_v36 }
0x121f   :  { %40382 = vmatprep.subr.bf16.mxu0 %v47343_v6 }
0x1221   :  { %36475 = vmatmul.mubr.f32.vlgmr.msra.gmra.mrb[30].mxu0 %v44336_v3 }
0x1222   :  { %40384 = vmatpush3.bf16.msra.mxu0 %v43520_v10  ;;  %36485 = vmatprep.mubr.msk.f32.mxu0 %vm43145_vm1, %v47342_v43 }
0x1223   :  { %40385 = vmatprep.subr.bf16.mxu0 %v47343_v6 }
0x1226   :  { %40387 = vmatpush3.bf16.msra.mxu0 %v43536_v17 }
0x1227   :  { %40424 = vmatprep.subr.bf16.mxu0 %v47343_v6 }
0x1229   :  { %36486 = vmatmul.mubr.f32.vlgmr.msra.gmra.mrb[30].mxu0 %v44336_v3 }
0x122a   :  { %40426 = vmatpush3.bf16.msra.mxu0 %v43520_v10  ;;  %36562 = vmatprep.mubr.msk.f32.mxu0 %vm43145_vm1, %v47342_v43 }
0x122b   :  { %40427 = vmatprep.subr.bf16.mxu0 %v47343_v6 }
0x122e   :  { %40429 = vmatpush3.bf16.msra.mxu0 %v43536_v17 }
0x122f   :  { %40436 = vmatprep.subr.bf16.mxu0 %v47343_v6 }
0x12cc   :  { %v7847_v1 = vpop.f32.mrb[28].mxu1 }
0x12cd   :  { %v7852_v5 = vrot.slane %v7847_v1, 4  ;;  %v36421_v7 = vpop.f32.mrb[29].mxu1 }
0x12cf   :  { %v7854_v42 = vadd.f32 %v43617_v39, %v7852_v5 }
0x12d1   :  { %42973 = vtanh.f32 %v7854_v42  ;;  %v7855_v41 = vmul.f32 0.5, %v7854_v42 }
0x12db   :  { %v42974_v40 = vpop.eup %42973 }
0x12dc   :  { %7865 = vrot.lane.b32.xlu0 %v42974_v40, %s43147_s11 }
0x12fc   :  { %v8367_v12 = vpop.f32.mrb[30].mxu0 }
0x12fd   :  { %v8372_v47 = vrot.slane %v8367_v12, 6  ;;  %v36487_v57 = vpop.f32.mrb[31].mxu0 }
0x12ff   :  { %v8374_v24 = vadd.f32 %v43622_v44, %v8372_v47 }
0x1301   :  { %42975 = vtanh.f32 %v8374_v24  ;;  %v8375_v14 = vmul.f32 0.5, %v8374_v24  ;;  %v8381_v24 = vrot.slane %v44282_v54, 2 }
0x1302   :  { %42977 = vtanh.f32 %v7855_v41 }
0x1303   :  { %42979 = vtanh.f32 %v8375_v14 }
0x130b   :  { %v42976_v46 = vpop.eup %42975 }
0x130c   :  { %8385 = vrot.lane.b32.xlu1 %v42976_v46, %s43147_s11  ;;  %v42978_v11 = vpop.eup %42977  ;;  %v7861_v46 = vrot.slane %v44277_v63, 6 }
0x130d   :  { %v7857_v1 = vadd.f32 1.0, %v42978_v11  ;;  %v42980_v40 = vpop.eup %42979 }
0x130e   :  { %v8377_v12 = vadd.f32 1.0, %v42980_v40 }
0x130f   :  { %v7858_v7 = vmul.f32 0.5, %v7857_v1 }
0x1310   :  { %v8378_v57 = vmul.f32 0.5, %v8377_v12 }
0x1311   :  { %v7863_v42 = vmul.f32 %v7861_v46, %v7858_v7 }
0x1312   :  { %v8383_v11 = vmul.f32 %v8381_v24, %v8378_v57 }
0x134e   :  { %v7866_v3 = vpop.permute.xlu0 %7865 }
0x134f   :  { %v7868_v5 = vmul.f32 %v7866_v3, %v7858_v7 }
0x1351   :  { %7870 = vrot.lane.b32.xlu0 %v7868_v5, %s43143_s29 }
0x137e   :  { %v8386_v19 = vpop.permute.xlu1 %8385 }
0x137f   :  { %v8388_v47 = vmul.f32 %v8386_v19, %v8378_v57 }
0x1381   :  { %8390 = vrot.lane.b32.xlu1 %v8388_v47, %s43143_s29 }
0x13c3   :  { %v7871_v41 = vpop.permute.xlu0 %7870 }
0x13c4   :  { %v44405_v18 = vadd.f32 %v7871_v41, %v7863_v42 }
0x13c6   :  { %42981 = vtanh.f32 %v44405_v18 }
0x13d0   :  { %v42982_v3 = vpop.eup %42981 }
0x13d1   :  { %7876 = vrot.lane.b32.xlu0 %v42982_v3, %s43147_s11 }
0x13f3   :  { %v8391_v14 = vpop.permute.xlu1 %8390 }
0x13f4   :  { %v44410_v1 = vadd.f32 %v8391_v14, %v8383_v11  ;;  %v9463_v14 = vld [vmem:[%s47247_s2 + $0x10] sm:$0xff] }
0x13f6   :  { %42983 = vtanh.f32 %v44410_v1 }
0x1400   :  { %v42984_v19 = vpop.eup %42983 }
0x1401   :  { %8396 = vrot.lane.b32.xlu1 %v42984_v19, %s43147_s11  ;;  %v9464_v19 = vld [vmem:[%s47247_s2 + $0x18] sm:$0xff] }
0x1443   :  { %v7877_v63 = vpop.permute.xlu0 %7876 }
0x1444   :  { %v7879_v5 = vmul.f32 %v7877_v63, %v7858_v7  ;;  %v9481_v63 = vand.u32 4294901760, %v9464_v19 }
0x1446   :  { %v8401_v40 = vrot.slane %v7879_v5, 4 }
0x1448   :  { %8402 = vrot.lane.b32.xlu0 %v8401_v40, %s43143_s29 }
0x1473   :  { %v8397_v12 = vpop.permute.xlu1 %8396 }
0x1474   :  { %v8399_v47 = vmul.f32 %v8397_v12, %v8378_v57 }
0x1476   :  { %v8921_v46 = vrot.slane %v8399_v47, 2 }
0x1478   :  { %8922 = vrot.lane.b32.xlu1 %v8921_v46, %s43143_s29  ;;  %v44522_v46 = vsub.f32 %v9464_v19, %v9481_v63 }
0x14ba   :  { %v8403_v54 = vpop.permute.xlu0 %8402 }
0x14bb   :  { %v8404_v42 = vsel %vm44_vm0, %v8403_v54, 0 }
0x14bc   :  { %v44417_v41 = vand.u32 4294901760, %v8404_v42 }
0x14be   :  { %v44420_v3 = vsub.f32 %v8404_v42, %v44417_v41 }
0x14c0   :  { %v44423_v24 = vand.u32 4294901760, %v44420_v3 }
0x14c2   :  { %47356 = vst [vmem:[#allocation37_spill] sm:$0xff] %v44423_v24  ;;  %v8478_v7 = vsub.f32 %v44420_v3, %v44423_v24 }
0x14c4   :  { %v44427_v11 = vand.u32 4294901760, %v8478_v7  ;;  %v9574_v7 = vand.u32 4294901760, %v44522_v46 }
0x14c6   :  { %47357 = vst [vmem:[#allocation38_spill] sm:$0xff] %v44427_v11  ;;  %36497 = vmatmul.mubr.f32.vlgmr.msra.gmra.mrb[30].mxu1 %v44427_v11 }
0x14c7   :  { %40396 = vmatpush3.bf16.msra.mxu1 %v43430_v21  ;;  %36507 = vmatprep.mubr.msk.f32.mxu1 %vm43145_vm1, %v47342_v43 }
0x14c8   :  { %40397 = vmatprep.subr.bf16.mxu1 %v47343_v6 }
0x14cb   :  { %40399 = vmatpush3.bf16.msra.mxu1 %v43441_v52 }
0x14cc   :  { %40400 = vmatprep.subr.bf16.mxu1 %v47343_v6 }
0x14ce   :  { %36508 = vmatmul.mubr.f32.vlgmr.msra.gmra.mrb[30].mxu1 %v44417_v41 }
0x14cf   :  { %40402 = vmatpush3.bf16.msra.mxu1 %v43445_v53  ;;  %36518 = vmatprep.mubr.msk.f32.mxu1 %vm43145_vm1, %v47342_v43 }
0x14d0   :  { %40403 = vmatprep.subr.bf16.mxu1 %v47343_v6 }
0x14d3   :  { %40405 = vmatpush3.bf16.msra.mxu1 %v43464_v56 }
0x14d4   :  { %40406 = vmatprep.subr.bf16.mxu1 %v47343_v6 }
0x14d6   :  { %36519 = vmatmul.mubr.f32.vlgmr.msra.gmra.mrb[30].mxu1 %v44420_v3 }
0x14d7   :  { %40408 = vmatpush3.bf16.msra.mxu1 %v43410_v15  ;;  %36529 = vmatprep.mubr.msk.f32.mxu1 %vm43145_vm1, %v47342_v43 }
0x14d8   :  { %40409 = vmatprep.subr.bf16.mxu1 %v47343_v6 }
0x14db   :  { %40411 = vmatpush3.bf16.msra.mxu1 %v43432_v49 }
0x14dc   :  { %40412 = vmatprep.subr.bf16.mxu1 %v47343_v6 }
0x14de   :  { %36530 = vmatmul.mubr.f32.vlgmr.msra.gmra.mrb[30].mxu1 %v44423_v24 }
0x14df   :  { %40414 = vmatpush3.bf16.msra.mxu1 %v43482_v62  ;;  %36540 = vmatprep.mubr.msk.f32.mxu1 %vm43145_vm1, %v47342_v43 }
0x14e0   :  { %40415 = vmatprep.subr.bf16.mxu1 %v47343_v6 }
0x14e3   :  { %40417 = vmatpush3.bf16.msra.mxu1 %v43501_v4  ;;  %v9461_v4 = vld [vmem:[%s47247_s2] sm:$0xff] }
0x14e4   :  { %40418 = vmatprep.subr.bf16.mxu1 %v47343_v6 }
0x14e6   :  { %36541 = vmatmul.mubr.f32.vlgmr.msra.gmra.mrb[30].mxu1 %v44417_v41 }
0x14e7   :  { %40420 = vmatpush3.bf16.msra.mxu1 %v43410_v15  ;;  %36551 = vmatprep.mubr.msk.f32.mxu1 %vm43145_vm1, %v47342_v43 }
0x14e8   :  { %40421 = vmatprep.subr.bf16.mxu1 %v47343_v6 }
0x14ea   :  { %v8923_v21 = vpop.permute.xlu1 %8922 }
0x14eb   :  { %v8924_v52 = vsel %vm44_vm0, %v8923_v21, 0  ;;  %40423 = vmatpush3.bf16.msra.mxu1 %v43432_v49 }
0x14ec   :  { %v44464_v53 = vand.u32 4294901760, %v8924_v52  ;;  %40430 = vmatprep.subr.bf16.mxu1 %v47343_v6 }
0x14ee   :  { %v44468_v56 = vsub.f32 %v8924_v52, %v44464_v53  ;;  %36552 = vmatmul.mubr.f32.vlgmr.msra.gmra.mrb[30].mxu1 %v44417_v41 }
0x14ef   :  { %40432 = vmatpush3.bf16.msra.mxu1 %v43549_v29  ;;  %36573 = vmatprep.mubr.msk.f32.mxu1 %vm43145_vm1, %v47342_v43  ;;  %v9462_v29 = vld [vmem:[%s47247_s2 + $0x8] sm:$0xff] }
0x14f0   :  { %v44475_v15 = vand.u32 4294901760, %v44468_v56  ;;  %40433 = vmatprep.subr.bf16.mxu1 %v47343_v6  ;;  %v9475_v57 = vand.u32 4294901760, %v9462_v29 }
0x14f2   :  { %v8998_v49 = vsub.f32 %v44468_v56, %v44475_v15  ;;  %v44510_v40 = vsub.f32 %v9462_v29, %v9475_v57 }
0x14f3   :  { %40435 = vmatpush3.bf16.msra.mxu1 %v43557_v32  ;;  %v9472_v32 = vand.u32 4294901760, %v9461_v4 }
0x14f4   :  { %40442 = vmatprep.subr.bf16.mxu1 %v47343_v6  ;;  %v44482_v62 = vand.u32 4294901760, %v8998_v49  ;;  %v9560_v12 = vand.u32 4294901760, %v44510_v40  ;;  %v9575_v49 = vsub.f32 %v44522_v46, %v9574_v7 }
0x14f5   :  { %v44508_v5 = vsub.f32 %v9461_v4, %v9472_v32 }
0x14f6   :  { %36574 = vmatmul.mubr.f32.vlgmr.msra.gmra.mrb[32].mxu1 %v44464_v53  ;;  %36563 = vmatmul.mubr.f32.vlgmr.msra.gmra.mrb[32].mxu0 %v44482_v62  ;;  %v9561_v54 = vsub.f32 %v44510_v40, %v9560_v12 }
0x14f7   :  { %40438 = vmatpush3.bf16.msra.mxu0 %v43567_v33  ;;  %40444 = vmatpush3.bf16.msra.mxu1 %v43520_v10  ;;  %v9478_v33 = vand.u32 4294901760, %v9463_v14 }
0x14f8   :  { %40439 = vmatprep.subr.bf16.mxu0 %v47343_v6  ;;  %40445 = vmatprep.subr.bf16.mxu1 %v47343_v6  ;;  %v9562_v21 = vand.u32 4294901760, %v9561_v54  ;;  %v9468_v54 = vld [vmem:[%s47247_s2 + $0x38] sm:$0xff] }
0x14f9   :  { %36584 = vmatprep.mubr.msk.f32.mxu0 %vm43145_vm1, %v47342_v43  ;;  %36595 = vmatprep.mubr.msk.f32.mxu1 %vm43145_vm1, %v47342_v43  ;;  %v44520_v47 = vsub.f32 %v9463_v14, %v9478_v33  ;;  %v44584_v14 = vpack.c.bf16 %v44510_v40, %v44508_v5 }
0x14fb   :  { %40441 = vmatpush3.bf16.msra.mxu0 %v43574_v34  ;;  %40447 = vmatpush3.bf16.msra.mxu1 %v43536_v17  ;;  %v9553_v34 = vand.u32 4294901760, %v44508_v5  ;;  %v9567_v42 = vand.u32 4294901760, %v44520_v47  ;;  %v44594_v19 = vpack.c.bf16 %v44522_v46, %v44520_v47  ;;  %v9975_v46 = vand.u32 4294901760, %v9468_v54 }
0x14fc   :  { %40448 = vmatprep.subr.bf16.mxu0 %v47343_v6  ;;  %40454 = vmatprep.subr.bf16.mxu1 %v47343_v6 }
0x14fd   :  { %v9568_v52 = vsub.f32 %v44520_v47, %v9567_v42 }
0x14fe   :  { %36585 = vmatmul.mubr.f32.vlgmr.msra.gmra.mrb[34].mxu0 %v44468_v56  ;;  %36596 = vmatmul.mubr.f32.vlgmr.msra.gmra.mrb[34].mxu1 %v44475_v15 }
0x14ff   :  { %40450 = vmatpush3.bf16.msra.mxu0 %v43589_v35  ;;  %40456 = vmatpush3.bf16.msra.mxu1 %v43520_v10  ;;  %v44530_v35 = vpack.c.bf16 %v9475_v57, %v9472_v32  ;;  %v9554_v10 = vsub.f32 %v44508_v5, %v9553_v34  ;;  %v9569_v29 = vand.u32 4294901760, %v9568_v52  ;;  %v9576_v32 = vand.u32 4294901760, %v9575_v49 }
0x1500   :  { %40451 = vmatprep.subr.bf16.mxu0 %v47343_v6  ;;  %40457 = vmatprep.subr.bf16.mxu1 %v47343_v6  ;;  %v44640_v5 = vpack.c.bf16 %v9574_v7, %v9567_v42  ;;  %v10067_v49 = vsub.f32 %v9468_v54, %v9975_v46 }
0x1501   :  { %36606 = vmatprep.mubr.msk.f32.mxu0 %vm43145_vm1, %v47342_v43  ;;  %36617 = vmatprep.mubr.msk.f32.mxu1 %vm43145_vm1, %v47342_v43  ;;  %v44572_v57 = vpack.c.bf16 %v9576_v32, %v9569_v29 }
0x1503   :  { %40453 = vmatpush3.bf16.msra.mxu0 %v43593_v36  ;;  %40459 = vmatpush3.bf16.msra.mxu1 %v43536_v17  ;;  %v44546_v17 = vpack.c.bf16 %v9481_v63, %v9478_v33  ;;  %v9555_v36 = vand.u32 4294901760, %v9554_v10  ;;  %v44622_v33 = vpack.c.bf16 %v9560_v12, %v9553_v34  ;;  %v9465_v63 = vld [vmem:[%s47247_s2 + $0x20] sm:$0xff]  ;;  %v9466_v10 = vld [vmem:[%s47247_s2 + $0x28] sm:$0xff]  ;;  %v9467_v12 = vld [vmem:[%s47247_s2 + $0x30] sm:$0xff] }
0x1504   :  { %40460 = vmatprep.subr.bf16.mxu0 %v47343_v6  ;;  %40532 = vmatprep.subr.bf16.mxu1 %v47343_v6  ;;  %v9966_v40 = vand.u32 4294901760, %v9465_v63  ;;  %v9969_v34 = vand.u32 4294901760, %v9466_v10  ;;  %v9972_v47 = vand.u32 4294901760, %v9467_v12 }
0x1505   :  { %v44564_v4 = vpack.c.bf16 %v9562_v21, %v9555_v36 }
0x1506   :  { %36607 = vmatmul.mubr.f32.vlgmr.msra.gmra.mrb[36].mxu0 %v44464_v53  ;;  %36618 = vmatmul.mubr.f32.vlgmr.msra.gmra.mrb[36].mxu1 %v44464_v53  ;;  %v44656_v42 = vsub.f32 %v9465_v63, %v9966_v40  ;;  %v44658_v7 = vsub.f32 %v9466_v10, %v9969_v34  ;;  %v10060_v52 = vsub.f32 %v9467_v12, %v9972_v47  ;;  %v10068_v12 = vand.u32 4294901760, %v10067_v49 }
0x1507   :  { %40462 = vmatpush3.bf16.msra.mxu0 %v44530_v35  ;;  %40534 = vmatpush3.bf16.msra.mxu1 %v44530_v35  ;;  %v44674_v29 = vpack.c.bf16 %v9969_v34, %v9966_v40  ;;  %v44684_v40 = vpack.c.bf16 %v9975_v46, %v9972_v47 }
0x1508   :  { %40463 = vmatprep.subr.bf16.mxu0 %v47343_v6  ;;  %40535 = vmatprep.subr.bf16.mxu1 %v47343_v6  ;;  %v10047_v36 = vand.u32 4294901760, %v44656_v42  ;;  %v10054_v21 = vand.u32 4294901760, %v44658_v7  ;;  %v10061_v10 = vand.u32 4294901760, %v10060_v52 }
0x1509   :  { %36628 = vmatprep.mubr.msk.f32.mxu0 %vm43145_vm1, %v47342_v43  ;;  %36760 = vmatprep.mubr.msk.f32.mxu1 %vm43145_vm1, %v47342_v43 }
0x150a   :  { %v10048_v32 = vsub.f32 %v44656_v42, %v10047_v36  ;;  %v10055_v63 = vsub.f32 %v44658_v7, %v10054_v21 }
0x150b   :  { %40465 = vmatpush3.bf16.msra.mxu0 %v44546_v17  ;;  %40537 = vmatpush3.bf16.msra.mxu1 %v44546_v17 }
0x150c   :  { %40466 = vmatprep.subr.bf16.mxu0 %v47343_v6  ;;  %40538 = vmatprep.subr.bf16.mxu1 %v47343_v6  ;;  %v10049_v34 = vand.u32 4294901760, %v10048_v32  ;;  %v10056_v54 = vand.u32 4294901760, %v10055_v63 }
0x150e   :  { %36629 = vmatmul.mubr.f32.vlgmr.msra.gmra.mrb[38].mxu0 %v43659_v2  ;;  %36761 = vmatmul.mubr.f32.vlgmr.msra.gmra.mrb[38].mxu1 %v43787_v31  ;;  %v44695_v47 = vpack.c.bf16 %v10056_v54, %v10049_v34 }
0x150f   :  { %40468 = vmatpush3.bf16.msra.mxu0 %v44564_v4  ;;  %40540 = vmatpush3.bf16.msra.mxu1 %v44564_v4 }
0x1510   :  { %40469 = vmatprep.subr.bf16.mxu0 %v47343_v6  ;;  %40541 = vmatprep.subr.bf16.mxu1 %v47343_v6 }
0x1511   :  { %36639 = vmatprep.mubr.msk.f32.mxu0 %vm43145_vm1, %v47342_v43  ;;  %36771 = vmatprep.mubr.msk.f32.mxu1 %vm43145_vm1, %v47342_v43 }
0x1513   :  { %40471 = vmatpush3.bf16.msra.mxu0 %v44572_v57  ;;  %40543 = vmatpush3.bf16.msra.mxu1 %v44572_v57 }
0x1514   :  { %40472 = vmatprep.subr.bf16.mxu0 %v47343_v6  ;;  %40544 = vmatprep.subr.bf16.mxu1 %v47343_v6 }
0x1516   :  { %36640 = vmatmul.mubr.f32.vlgmr.msra.gmra.mrb[38].mxu0 %v43649_v60  ;;  %36772 = vmatmul.mubr.f32.vlgmr.msra.gmra.mrb[38].mxu1 %v43777_v26 }
0x1517   :  { %40474 = vmatpush3.bf16.msra.mxu0 %v44584_v14  ;;  %40546 = vmatpush3.bf16.msra.mxu1 %v44584_v14 }
0x1518   :  { %40475 = vmatprep.subr.bf16.mxu0 %v47343_v6  ;;  %40547 = vmatprep.subr.bf16.mxu1 %v47343_v6 }
0x1519   :  { %36650 = vmatprep.mubr.msk.f32.mxu0 %vm43145_vm1, %v47342_v43  ;;  %36782 = vmatprep.mubr.msk.f32.mxu1 %vm43145_vm1, %v47342_v43 }
0x151b   :  { %40477 = vmatpush3.bf16.msra.mxu0 %v44594_v19  ;;  %40549 = vmatpush3.bf16.msra.mxu1 %v44594_v19 }
0x151c   :  { %40478 = vmatprep.subr.bf16.mxu0 %v47343_v6  ;;  %40550 = vmatprep.subr.bf16.mxu1 %v47343_v6 }
0x151e   :  { %36651 = vmatmul.mubr.f32.vlgmr.msra.gmra.mrb[38].mxu0 %v43652_v61  ;;  %36783 = vmatmul.mubr.f32.vlgmr.msra.gmra.mrb[38].mxu1 %v43780_v27  ;;  %v10069_v27 = vsub.f32 %v10067_v49, %v10068_v12 }
0x151f   :  { %40480 = vmatpush3.bf16.msra.mxu0 %v44530_v35  ;;  %40552 = vmatpush3.bf16.msra.mxu1 %v44530_v35 }
0x1520   :  { %40481 = vmatprep.subr.bf16.mxu0 %v47343_v6  ;;  %40553 = vmatprep.subr.bf16.mxu1 %v47343_v6 }
0x1521   :  { %36661 = vmatprep.mubr.msk.f32.mxu0 %vm43145_vm1, %v47342_v43  ;;  %36793 = vmatprep.mubr.msk.f32.mxu1 %vm43145_vm1, %v47342_v43 }
0x1523   :  { %40483 = vmatpush3.bf16.msra.mxu0 %v44546_v17  ;;  %40555 = vmatpush3.bf16.msra.mxu1 %v44546_v17 }
0x1524   :  { %40484 = vmatprep.subr.bf16.mxu0 %v47343_v6  ;;  %40556 = vmatprep.subr.bf16.mxu1 %v47343_v6 }
0x1526   :  { %36662 = vmatmul.mubr.f32.vlgmr.msra.gmra.mrb[38].mxu0 %v43655_v0  ;;  %36794 = vmatmul.mubr.f32.vlgmr.msra.gmra.mrb[38].mxu1 %v43783_v28  ;;  %v10062_v28 = vsub.f32 %v10060_v52, %v10061_v10  ;;  %v10070_v0 = vand.u32 4294901760, %v10069_v27  ;;  %v44710_v27 = vpack.c.bf16 %v44658_v7, %v44656_v42  ;;  %v44733_v42 = vpack.c.bf16 %v10068_v12, %v10061_v10 }
0x1527   :  { %40486 = vmatpush3.bf16.msra.mxu0 %v44622_v33  ;;  %40558 = vmatpush3.bf16.msra.mxu1 %v44622_v33 }
0x1528   :  { %40487 = vmatprep.subr.bf16.mxu0 %v47343_v6  ;;  %40559 = vmatprep.subr.bf16.mxu1 %v47343_v6  ;;  %v10063_v46 = vand.u32 4294901760, %v10062_v28  ;;  %v44715_v28 = vpack.c.bf16 %v10067_v49, %v10060_v52 }
0x1529   :  { %36672 = vmatprep.mubr.msk.f32.mxu0 %vm43145_vm1, %v47342_v43  ;;  %36804 = vmatprep.mubr.msk.f32.mxu1 %vm43145_vm1, %v47342_v43 }
0x152a   :  { %v44702_v32 = vpack.c.bf16 %v10070_v0, %v10063_v46  ;;  %v44728_v0 = vpack.c.bf16 %v10054_v21, %v10047_v36 }
0x152b   :  { %40489 = vmatpush3.bf16.msra.mxu0 %v44640_v5  ;;  %40561 = vmatpush3.bf16.msra.mxu1 %v44640_v5 }
0x152c   :  { %40490 = vmatprep.subr.bf16.mxu0 %v47343_v6  ;;  %40562 = vmatprep.subr.bf16.mxu1 %v47343_v6 }
0x152e   :  { %36673 = vmatmul.mubr.f32.vlgmr.msra.gmra.mrb[38].mxu0 %v43649_v60  ;;  %36805 = vmatmul.mubr.f32.vlgmr.msra.gmra.mrb[38].mxu1 %v43777_v26 }
0x152f   :  { %40492 = vmatpush3.bf16.msra.mxu0 %v44530_v35  ;;  %40564 = vmatpush3.bf16.msra.mxu1 %v44530_v35 }
0x1530   :  { %40493 = vmatprep.subr.bf16.mxu0 %v47343_v6  ;;  %40565 = vmatprep.subr.bf16.mxu1 %v47343_v6 }
0x1531   :  { %36683 = vmatprep.mubr.msk.f32.mxu0 %vm43145_vm1, %v47342_v43  ;;  %36815 = vmatprep.mubr.msk.f32.mxu1 %vm43145_vm1, %v47342_v43 }
0x1533   :  { %40495 = vmatpush3.bf16.msra.mxu0 %v44546_v17  ;;  %40567 = vmatpush3.bf16.msra.mxu1 %v44546_v17 }
0x1534   :  { %40568 = vmatprep.subr.bf16.mxu1 %v47343_v6  ;;  %40496 = vmatprep.subr.bf16.mxu0 %v47343_v6 }
0x1536   :  { %36684 = vmatmul.mubr.f32.vlgmr.msra.gmra.mrb[38].mxu0 %v43649_v60  ;;  %36816 = vmatmul.mubr.f32.vlgmr.msra.gmra.mrb[38].mxu1 %v43777_v26 }
0x1537   :  { %40570 = vmatpush3.bf16.msra.mxu1 %v44674_v29  ;;  %36826 = vmatprep.mubr.msk.f32.mxu1 %vm43145_vm1, %v47342_v43 }
0x1538   :  { %40571 = vmatprep.subr.bf16.mxu1 %v47343_v6  ;;  %40498 = vmatpush3.bf16.msra.mxu0 %v44674_v29 }
0x1539   :  { %40499 = vmatprep.subr.bf16.mxu0 %v47343_v6  ;;  %36694 = vmatprep.mubr.msk.f32.mxu0 %vm43145_vm1, %v47342_v43 }
0x153b   :  { %40573 = vmatpush3.bf16.msra.mxu1 %v44684_v40 }
0x153c   :  { %40574 = vmatprep.subr.bf16.mxu1 %v47343_v6  ;;  %40501 = vmatpush3.bf16.msra.mxu0 %v44684_v40 }
0x153d   :  { %40502 = vmatprep.subr.bf16.mxu0 %v47343_v6 }
0x153e   :  { %36827 = vmatmul.mubr.f32.vlgmr.msra.gmra.mrb[38].mxu1 %v44482_v62 }
0x153f   :  { %40576 = vmatpush3.bf16.msra.mxu1 %v44695_v47  ;;  %36837 = vmatprep.mubr.msk.f32.mxu1 %vm43145_vm1, %v47342_v43 }
0x1540   :  { %40577 = vmatprep.subr.bf16.mxu1 %v47343_v6 }
0x1543   :  { %40579 = vmatpush3.bf16.msra.mxu1 %v44702_v32 }
0x1544   :  { %40580 = vmatprep.subr.bf16.mxu1 %v47343_v6 }
0x1546   :  { %36838 = vmatmul.mubr.f32.vlgmr.msra.gmra.mrb[38].mxu1 %v44464_v53 }
0x1547   :  { %40582 = vmatpush3.bf16.msra.mxu1 %v44710_v27  ;;  %36848 = vmatprep.mubr.msk.f32.mxu1 %vm43145_vm1, %v47342_v43 }
0x1548   :  { %40583 = vmatprep.subr.bf16.mxu1 %v47343_v6 }
0x154b   :  { %40585 = vmatpush3.bf16.msra.mxu1 %v44715_v28 }
0x154c   :  { %40586 = vmatprep.subr.bf16.mxu1 %v47343_v6 }
0x154e   :  { %36849 = vmatmul.mubr.f32.vlgmr.msra.gmra.mrb[38].mxu1 %v44468_v56 }
0x154f   :  { %40588 = vmatpush3.bf16.msra.mxu1 %v44674_v29  ;;  %36859 = vmatprep.mubr.msk.f32.mxu1 %vm43145_vm1, %v47342_v43 }
0x1550   :  { %40589 = vmatprep.subr.bf16.mxu1 %v47343_v6 }
0x1553   :  { %40591 = vmatpush3.bf16.msra.mxu1 %v44684_v40 }
0x1554   :  { %40592 = vmatprep.subr.bf16.mxu1 %v47343_v6 }
0x1556   :  { %36860 = vmatmul.mubr.f32.vlgmr.msra.gmra.mrb[38].mxu1 %v44475_v15 }
0x1557   :  { %40594 = vmatpush3.bf16.msra.mxu1 %v44728_v0  ;;  %36870 = vmatprep.mubr.msk.f32.mxu1 %vm43145_vm1, %v47342_v43 }
0x1558   :  { %40595 = vmatprep.subr.bf16.mxu1 %v47343_v6 }
0x155b   :  { %40597 = vmatpush3.bf16.msra.mxu1 %v44733_v42 }
0x155c   :  { %40598 = vmatprep.subr.bf16.mxu1 %v47343_v6 }
0x155e   :  { %36871 = vmatmul.mubr.f32.vlgmr.msra.gmra.mrb[38].mxu1 %v44464_v53 }
0x155f   :  { %40600 = vmatpush3.bf16.msra.mxu1 %v44674_v29  ;;  %36881 = vmatprep.mubr.msk.f32.mxu1 %vm43145_vm1, %v47342_v43 }
0x1560   :  { %40601 = vmatprep.subr.bf16.mxu1 %v47343_v6 }
0x1563   :  { %40603 = vmatpush3.bf16.msra.mxu1 %v44684_v40 }
0x1564   :  { %40676 = vmatprep.subr.bf16.mxu1 %v47343_v6 }
0x1566   :  { %36882 = vmatmul.mubr.f32.vlgmr.msra.gmra.mrb[38].mxu1 %v44464_v53 }
0x1567   :  { %40678 = vmatpush3.bf16.msra.mxu1 %v44530_v35  ;;  %37024 = vmatprep.mubr.msk.f32.mxu1 %vm43145_vm1, %v47342_v43 }
0x1568   :  { %40679 = vmatprep.subr.bf16.mxu1 %v47343_v6 }
0x156b   :  { %40681 = vmatpush3.bf16.msra.mxu1 %v44546_v17 }
0x156c   :  { %40682 = vmatprep.subr.bf16.mxu1 %v47343_v6 }
0x156e   :  { %37025 = vmatmul.mubr.f32.vlgmr.msra.gmra.mrb[40].mxu1 %v44050_v58 }
0x156f   :  { %40684 = vmatpush3.bf16.msra.mxu1 %v44564_v4  ;;  %37035 = vmatprep.mubr.msk.f32.mxu1 %vm43145_vm1, %v47342_v43 }
0x1570   :  { %40685 = vmatprep.subr.bf16.mxu1 %v47343_v6 }
0x1573   :  { %40687 = vmatpush3.bf16.msra.mxu1 %v44572_v57 }
0x1574   :  { %40688 = vmatprep.subr.bf16.mxu1 %v47343_v6 }
0x1576   :  { %37036 = vmatmul.mubr.f32.vlgmr.msra.gmra.mrb[40].mxu1 %v44033_v22 }
0x1577   :  { %40690 = vmatpush3.bf16.msra.mxu1 %v44584_v14  ;;  %37046 = vmatprep.mubr.msk.f32.mxu1 %vm43145_vm1, %v47342_v43 }
0x1578   :  { %40691 = vmatprep.subr.bf16.mxu1 %v47343_v6 }
0x157b   :  { %40693 = vmatpush3.bf16.msra.mxu1 %v44594_v19 }
0x157c   :  { %40694 = vmatprep.subr.bf16.mxu1 %v47343_v6 }
0x157e   :  { %37047 = vmatmul.mubr.f32.vlgmr.msra.gmra.mrb[40].mxu1 %v44036_v30 }
0x157f   :  { %40696 = vmatpush3.bf16.msra.mxu1 %v44530_v35  ;;  %37057 = vmatprep.mubr.msk.f32.mxu1 %vm43145_vm1, %v47342_v43 }
0x1580   :  { %40697 = vmatprep.subr.bf16.mxu1 %v47343_v6 }
0x1583   :  { %40699 = vmatpush3.bf16.msra.mxu1 %v44546_v17 }
0x1584   :  { %40700 = vmatprep.subr.bf16.mxu1 %v47343_v6 }
0x1586   :  { %37058 = vmatmul.mubr.f32.vlgmr.msra.gmra.mrb[40].mxu1 %v44044_v23 }
0x1587   :  { %40702 = vmatpush3.bf16.msra.mxu1 %v44622_v33  ;;  %37068 = vmatprep.mubr.msk.f32.mxu1 %vm43145_vm1, %v47342_v43 }
0x1588   :  { %40703 = vmatprep.subr.bf16.mxu1 %v47343_v6 }
0x158b   :  { %40705 = vmatpush3.bf16.msra.mxu1 %v44640_v5 }
0x158c   :  { %40706 = vmatprep.subr.bf16.mxu1 %v47343_v6 }
0x158e   :  { %37069 = vmatmul.mubr.f32.vlgmr.msra.gmra.mrb[40].mxu1 %v44033_v22 }
0x158f   :  { %40708 = vmatpush3.bf16.msra.mxu1 %v44530_v35  ;;  %37079 = vmatprep.mubr.msk.f32.mxu1 %vm43145_vm1, %v47342_v43 }
0x1590   :  { %40709 = vmatprep.subr.bf16.mxu1 %v47343_v6 }
0x1593   :  { %40711 = vmatpush3.bf16.msra.mxu1 %v44546_v17 }
0x1594   :  { %40712 = vmatprep.subr.bf16.mxu1 %v47343_v6 }
0x1596   :  { %37080 = vmatmul.mubr.f32.vlgmr.msra.gmra.mrb[40].mxu1 %v44033_v22 }
0x1597   :  { %40714 = vmatpush3.bf16.msra.mxu1 %v44674_v29  ;;  %37090 = vmatprep.mubr.msk.f32.mxu1 %vm43145_vm1, %v47342_v43 }
0x1598   :  { %40715 = vmatprep.subr.bf16.mxu1 %v47343_v6 }
0x159b   :  { %40717 = vmatpush3.bf16.msra.mxu1 %v44684_v40 }
0x159c   :  { %40718 = vmatprep.subr.bf16.mxu1 %v47343_v6 }
0x159e   :  { %37091 = vmatmul.mubr.f32.vlgmr.msra.gmra.mrb[40].mxu1 %v44225_v9 }
0x159f   :  { %40720 = vmatpush3.bf16.msra.mxu1 %v44695_v47  ;;  %37101 = vmatprep.mubr.msk.f32.mxu1 %vm43145_vm1, %v47342_v43 }
0x15a0   :  { %40721 = vmatprep.subr.bf16.mxu1 %v47343_v6 }
0x15a3   :  { %40723 = vmatpush3.bf16.msra.mxu1 %v44702_v32 }
0x15a4   :  { %40724 = vmatprep.subr.bf16.mxu1 %v47343_v6 }
0x15a6   :  { %37102 = vmatmul.mubr.f32.vlgmr.msra.gmra.mrb[40].mxu1 %v44208_v13 }
0x15a7   :  { %40726 = vmatpush3.bf16.msra.mxu1 %v44710_v27  ;;  %37112 = vmatprep.mubr.msk.f32.mxu1 %vm43145_vm1, %v47342_v43 }
0x15a8   :  { %40727 = vmatprep.subr.bf16.mxu1 %v47343_v6 }
0x15ab   :  { %40729 = vmatpush3.bf16.msra.mxu1 %v44715_v28 }
0x15ac   :  { %40730 = vmatprep.subr.bf16.mxu1 %v47343_v6 }
0x15ae   :  { %37113 = vmatmul.mubr.f32.vlgmr.msra.gmra.mrb[40].mxu1 %v44212_v55 }
0x15af   :  { %40732 = vmatpush3.bf16.msra.mxu1 %v44674_v29  ;;  %37123 = vmatprep.mubr.msk.f32.mxu1 %vm43145_vm1, %v47342_v43 }
0x15b0   :  { %40733 = vmatprep.subr.bf16.mxu1 %v47343_v6 }
0x15b3   :  { %40735 = vmatpush3.bf16.msra.mxu1 %v44684_v40 }
0x15b4   :  { %40736 = vmatprep.subr.bf16.mxu1 %v47343_v6 }
0x15b6   :  { %37124 = vmatmul.mubr.f32.vlgmr.msra.gmra.mrb[40].mxu1 %v44219_v48 }
0x15b7   :  { %40738 = vmatpush3.bf16.msra.mxu1 %v44728_v0  ;;  %37134 = vmatprep.mubr.msk.f32.mxu1 %vm43145_vm1, %v47342_v43 }
0x15b8   :  { %40739 = vmatprep.subr.bf16.mxu1 %v47343_v6 }
0x15bb   :  { %40741 = vmatpush3.bf16.msra.mxu1 %v44733_v42 }
0x15bc   :  { %40742 = vmatprep.subr.bf16.mxu1 %v47343_v6 }
0x15be   :  { %37135 = vmatmul.mubr.f32.vlgmr.msra.gmra.mrb[40].mxu1 %v44208_v13 }
0x15bf   :  { %40744 = vmatpush3.bf16.msra.mxu1 %v44674_v29  ;;  %37145 = vmatprep.mubr.msk.f32.mxu1 %vm43145_vm1, %v47342_v43 }
0x15c0   :  { %40745 = vmatprep.subr.bf16.mxu1 %v47343_v6 }
0x15c1   :  { %v44829_v7 = vpop.f32.mrb[30].mxu1 }
0x15c2   :  { %v36553_v36 = vpop.f32.mrb[31].mxu1 }
0x15c3   :  { %40747 = vmatpush3.bf16.msra.mxu1 %v44684_v40 }
0x15c4   :  { %40820 = vmatprep.subr.bf16.mxu1 %v47343_v6 }
0x15c6   :  { %37146 = vmatmul.mubr.f32.vlgmr.msra.gmra.mrb[40].mxu1 %v44208_v13 }
0x15c7   :  { %40822 = vmatpush3.bf16.msra.mxu1 %v44530_v35  ;;  %37288 = vmatprep.mubr.msk.f32.mxu1 %vm43145_vm1, %v47342_v43 }
0x15c8   :  { %40823 = vmatprep.subr.bf16.mxu1 %v47343_v6 }
0x15c9   :  { %v9092_v21 = vpop.f32.mrb[32].mxu1  ;;  %v9001_v52 = vpop.f32.mrb[32].mxu0 }
0x15ca   :  { %v9093_v49 = vadd.f32 %v9092_v21, %v9001_v52  ;;  %v36575_v63 = vpop.f32.mrb[33].mxu1  ;;  %v36564_v10 = vpop.f32.mrb[33].mxu0 }
0x15cb   :  { %40825 = vmatpush3.bf16.msra.mxu1 %v44546_v17 }
0x15cc   :  { %40826 = vmatprep.subr.bf16.mxu1 %v47343_v6 }
0x15ce   :  { %37289 = vmatmul.mubr.f32.vlgmr.msra.gmra.mrb[42].mxu1 %v44299_v20 }
0x15cf   :  { %40828 = vmatpush3.bf16.msra.mxu1 %v44564_v4  ;;  %37299 = vmatprep.mubr.msk.f32.mxu1 %vm43145_vm1, %v47342_v43 }
0x15d0   :  { %40829 = vmatprep.subr.bf16.mxu1 %v47343_v6 }
0x15d1   :  { %v9172_v12 = vpop.f32.mrb[34].mxu0  ;;  %v9249_v34 = vpop.f32.mrb[34].mxu1 }
0x15d2   :  { %v9173_v54 = vadd.f32 %v9172_v12, %v9093_v49  ;;  %v36586_v46 = vpop.f32.mrb[35].mxu0  ;;  %v36597_v36 = vpop.f32.mrb[35].mxu1 }
0x15d3   :  { %40831 = vmatpush3.bf16.msra.mxu1 %v44572_v57 }
0x15d4   :  { %v9250_v21 = vadd.f32 %v9249_v34, %v9173_v54  ;;  %40832 = vmatprep.subr.bf16.mxu1 %v47343_v6 }
0x15d6   :  { %37300 = vmatmul.mubr.f32.vlgmr.msra.gmra.mrb[42].mxu1 %v44289_v8 }
0x15d7   :  { %40834 = vmatpush3.bf16.msra.mxu1 %v44584_v14  ;;  %37310 = vmatprep.mubr.msk.f32.mxu1 %vm43145_vm1, %v47342_v43 }
0x15d8   :  { %40835 = vmatprep.subr.bf16.mxu1 %v47343_v6 }
0x15d9   :  { %v9332_v52 = vpop.f32.mrb[36].mxu0  ;;  %v9407_v63 = vpop.f32.mrb[36].mxu1 }
0x15da   :  { %v9333_v10 = vadd.f32 %v9332_v52, %v9250_v21  ;;  %v36608_v49 = vpop.f32.mrb[37].mxu0  ;;  %v36619_v12 = vpop.f32.mrb[37].mxu1 }
0x15db   :  { %40837 = vmatpush3.bf16.msra.mxu1 %v44594_v19  ;;  %v9418_v49 = vrot.slane %v44410_v1, 2  ;;  %v8892_v12 = vrot.slane %v44829_v7, 2 }
0x15dc   :  { %v9408_v46 = vadd.f32 %v9407_v63, %v9333_v10  ;;  %40838 = vmatprep.subr.bf16.mxu1 %v47343_v6 }
0x15de   :  { %v44855_v34 = vadd.f32 %v43622_v44, %v9408_v46  ;;  %37311 = vmatmul.mubr.f32.vlgmr.msra.gmra.mrb[42].mxu1 %v44292_v25 }
0x15df   :  { %40840 = vmatpush3.bf16.msra.mxu1 %v44530_v35  ;;  %37321 = vmatprep.mubr.msk.f32.mxu1 %vm43145_vm1, %v47342_v43 }
0x15e0   :  { %42985 = vtanh.f32 %v44855_v34  ;;  %40841 = vmatprep.subr.bf16.mxu1 %v47343_v6  ;;  %v9412_v54 = vmul.f32 0.5, %v44855_v34 }
0x15e2   :  { %42987 = vtanh.f32 %v9412_v54 }
0x15e3   :  { %40843 = vmatpush3.bf16.msra.mxu1 %v44546_v17 }
0x15e4   :  { %40844 = vmatprep.subr.bf16.mxu1 %v47343_v6 }
0x15e6   :  { %37322 = vmatmul.mubr.f32.vlgmr.msra.gmra.mrb[42].mxu1 %v44295_v59 }
0x15e7   :  { %40846 = vmatpush3.bf16.msra.mxu1 %v44622_v33  ;;  %37332 = vmatprep.mubr.msk.f32.mxu1 %vm43145_vm1, %v47342_v43 }
0x15e8   :  { %40847 = vmatprep.subr.bf16.mxu1 %v47343_v6 }
0x15ea   :  { %v42986_v44 = vpop.eup %42985 }
0x15eb   :  { %40849 = vmatpush3.bf16.msra.mxu1 %v44640_v5  ;;  %9422 = vrot.lane.b32.xlu0 %v42986_v44, %s43147_s11 }
0x15ec   :  { %40850 = vmatprep.subr.bf16.mxu1 %v47343_v6  ;;  %v42988_v36 = vpop.eup %42987 }
0x15ed   :  { %v9414_v21 = vadd.f32 1.0, %v42988_v36 }
0x15ee   :  { %37333 = vmatmul.mubr.f32.vlgmr.msra.gmra.mrb[42].mxu1 %v44289_v8 }
0x15ef   :  { %40852 = vmatpush3.bf16.msra.mxu1 %v44530_v35  ;;  %37343 = vmatprep.mubr.msk.f32.mxu1 %vm43145_vm1, %v47342_v43  ;;  %v9415_v52 = vmul.f32 0.5, %v9414_v21 }
0x15f0   :  { %40853 = vmatprep.subr.bf16.mxu1 %v47343_v6 }
0x15f1   :  { %v9420_v46 = vmul.f32 %v9418_v49, %v9415_v52 }
0x15f3   :  { %40855 = vmatpush3.bf16.msra.mxu1 %v44546_v17 }
0x15f4   :  { %40856 = vmatprep.subr.bf16.mxu1 %v47343_v6 }
0x15f6   :  { %37344 = vmatmul.mubr.f32.vlgmr.msra.gmra.mrb[42].mxu1 %v44289_v8 }
0x15f7   :  { %40858 = vmatpush3.bf16.msra.mxu1 %v44674_v29  ;;  %37354 = vmatprep.mubr.msk.f32.mxu1 %vm43145_vm1, %v47342_v43 }
0x15f8   :  { %40859 = vmatprep.subr.bf16.mxu1 %v47343_v6 }
0x15fb   :  { %40861 = vmatpush3.bf16.msra.mxu1 %v44684_v40 }
0x15fc   :  { %40862 = vmatprep.subr.bf16.mxu1 %v47343_v6 }
0x15fe   :  { %37355 = vmatmul.mubr.f32.vlgmr.msra.gmra.mrb[42].mxu1 %v43968_v51 }
0x15ff   :  { %40864 = vmatpush3.bf16.msra.mxu1 %v44695_v47  ;;  %37365 = vmatprep.mubr.msk.f32.mxu1 %vm43145_vm1, %v47342_v43 }
0x1600   :  { %40865 = vmatprep.subr.bf16.mxu1 %v47343_v6 }
0x1603   :  { %40867 = vmatpush3.bf16.msra.mxu1 %v44702_v32 }
0x1604   :  { %40868 = vmatprep.subr.bf16.mxu1 %v47343_v6 }
0x1606   :  { %37366 = vmatmul.mubr.f32.vlgmr.msra.gmra.mrb[42].mxu1 %v43951_v37 }
0x1607   :  { %40870 = vmatpush3.bf16.msra.mxu1 %v44710_v27  ;;  %37376 = vmatprep.mubr.msk.f32.mxu1 %vm43145_vm1, %v47342_v43 }
0x1608   :  { %40871 = vmatprep.subr.bf16.mxu1 %v47343_v6 }
0x160b   :  { %40873 = vmatpush3.bf16.msra.mxu1 %v44715_v28 }
0x160c   :  { %40874 = vmatprep.subr.bf16.mxu1 %v47343_v6 }
0x160e   :  { %37377 = vmatmul.mubr.f32.vlgmr.msra.gmra.mrb[42].mxu1 %v43955_v38  ;;  %v8894_v38 = vadd.f32 %v43617_v39, %v8892_v12 }
0x160f   :  { %40876 = vmatpush3.bf16.msra.mxu1 %v44674_v29  ;;  %37387 = vmatprep.mubr.msk.f32.mxu1 %vm43145_vm1, %v47342_v43 }
0x1610   :  { %40877 = vmatprep.subr.bf16.mxu1 %v47343_v6  ;;  %v8895_v36 = vmul.f32 0.5, %v8894_v38 }
0x1613   :  { %40879 = vmatpush3.bf16.msra.mxu1 %v44684_v40 }
0x1614   :  { %40880 = vmatprep.subr.bf16.mxu1 %v47343_v6 }
0x1616   :  { %37388 = vmatmul.mubr.f32.vlgmr.msra.gmra.mrb[42].mxu1 %v43959_v45 }
0x1617   :  { %40882 = vmatpush3.bf16.msra.mxu1 %v44728_v0  ;;  %37398 = vmatprep.mubr.msk.f32.mxu1 %vm43145_vm1, %v47342_v43 }
0x1618   :  { %40883 = vmatprep.subr.bf16.mxu1 %v47343_v6 }
0x161b   :  { %40885 = vmatpush3.bf16.msra.mxu1 %v44733_v42 }
0x161c   :  { %40886 = vmatprep.subr.bf16.mxu1 %v47343_v6 }
0x161e   :  { %37399 = vmatmul.mubr.f32.vlgmr.msra.gmra.mrb[42].mxu1 %v43951_v37 }
0x161f   :  { %40888 = vmatpush3.bf16.msra.mxu1 %v44674_v29  ;;  %37409 = vmatprep.mubr.msk.f32.mxu1 %vm43145_vm1, %v47342_v43 }
0x1620   :  { %40889 = vmatprep.subr.bf16.mxu1 %v47343_v6 }
0x1623   :  { %40891 = vmatpush3.bf16.msra.mxu1 %v44684_v40 }
0x1624   :  { %40964 = vmatprep.subr.bf16.mxu1 %v47343_v6 }
0x1626   :  { %37410 = vmatmul.mubr.f32.vlgmr.msra.gmra.mrb[42].mxu1 %v43951_v37  ;;  %v47374_v37 = vld [vmem:[#allocation27_spill] sm:$0xff] }
0x1627   :  { %40966 = vmatpush3.bf16.msra.mxu1 %v44530_v35  ;;  %37552 = vmatprep.mubr.msk.f32.mxu1 %vm43145_vm1, %v47342_v43 }
0x1628   :  { %40967 = vmatprep.subr.bf16.mxu1 %v47343_v6 }
0x162b   :  { %40969 = vmatpush3.bf16.msra.mxu1 %v44546_v17 }
0x162c   :  { %40970 = vmatprep.subr.bf16.mxu1 %v47343_v6 }
0x165d   :  { %v9423_v63 = vpop.permute.xlu0 %9422 }
0x165e   :  { %v9425_v10 = vmul.f32 %v9423_v63, %v9415_v52 }
0x1660   :  { %9427 = vrot.lane.b32.xlu1 %v9425_v10, %s43143_s29 }
0x16d2   :  { %v9428_v44 = vpop.permute.xlu1 %9427 }
0x16d3   :  { %v44933_v45 = vadd.f32 %v9428_v44, %v9420_v46  ;;  %v8901_v46 = vrot.slane %v44405_v18, 6 }
0x16d5   :  { %47358 = vst [vmem:[#allocation39_spill] sm:$0xff] %v44933_v45  ;;  %42989 = vtanh.f32 %v44933_v45  ;;  %v47372_v45 = vld [vmem:[#allocation25_spill] sm:$0xff] }
0x16d6   :  { %42991 = vtanh.f32 %v8894_v38 }
0x16d7   :  { %42993 = vtanh.f32 %v8895_v36 }
0x16df   :  { %v42990_v34 = vpop.eup %42989 }
0x16e0   :  { %9433 = vrot.lane.b32.xlu0 %v42990_v34, %s43147_s11  ;;  %v42992_v54 = vpop.eup %42991 }
0x16e1   :  { %v42994_v1 = vpop.eup %42993 }
0x16e2   :  { %v8897_v21 = vadd.f32 1.0, %v42994_v1 }
0x16e4   :  { %8905 = vrot.lane.b32.xlu0 %v42992_v54, %s43147_s11  ;;  %v44940_v10 = vmul.f32 0.5, %v8897_v21 }
0x1752   :  { %v9434_v7 = vpop.permute.xlu0 %9433 }
0x1753   :  { %v9436_v63 = vmul.f32 %v9434_v7, %v9415_v52  ;;  %v8903_v52 = vmul.f32 %v8901_v46, %v44940_v10  ;;  %v47364_v46 = vld [vmem:[#allocation34_spill] sm:$0xff] }
0x1755   :  { %9449 = vrot.lane.b32.xlu1 %v9436_v63, %s43143_s29  ;;  %v47360_v63 = vld [vmem:[#allocation19_spill] sm:$0xff] }
0x1756   :  { %v8906_v39 = vpop.permute.xlu0 %8905 }
0x1757   :  { %v8908_v49 = vmul.f32 %v8906_v39, %v44940_v10  ;;  %v47361_v39 = vld [vmem:[#allocation20_spill] sm:$0xff] }
0x1759   :  { %8910 = vrot.lane.b32.xlu1 %v8908_v49, %s43143_s29  ;;  %v47362_v49 = vld [vmem:[#allocation36_spill] sm:$0xff] }
0x17c7   :  { %v9450_v12 = vpop.permute.xlu1 %9449 }
0x17c8   :  { %9454 = vst.msk [vmem:[#allocation2 + $0x2] sm:$0x3] %vm9453_vm2, %v9450_v12  ;;  %v9963_v38 = vsel %vm44_vm0, %v9450_v12, 0  ;;  %v47363_v12 = vld [vmem:[#allocation33_spill] sm:$0xff] }
0x17c9   :  { %v44947_v44 = vand.u32 4294901760, %v9963_v38 }
0x17cb   :  { %v44951_v34 = vsub.f32 %v9963_v38, %v44947_v44  ;;  %v8911_v54 = vpop.permute.xlu1 %8910  ;;  %v47365_v38 = vld [vmem:[#allocation35_spill] sm:$0xff] }
0x17cc   :  { %v44953_v36 = vadd.f32 %v8911_v54, %v8903_v52 }
0x17cd   :  { %v44956_v1 = vand.u32 4294901760, %v44951_v34 }
0x17ce   :  { %47359 = vst [vmem:[#allocation40_spill] sm:$0xff] %v44953_v36  ;;  %42995 = vtanh.f32 %v44953_v36  ;;  %v47371_v36 = vld [vmem:[#allocation28_spill] sm:$0xff] }
0x17cf   :  { %v10037_v18 = vsub.f32 %v44951_v34, %v44956_v1 }
0x17d1   :  { %v44961_v21 = vand.u32 4294901760, %v10037_v18 }
0x17d3   :  { %36695 = vmatmul.mubr.f32.vlgmr.msra.gmra.mrb[38].mxu0 %v44961_v21 }
0x17d4   :  { %40504 = vmatpush3.bf16.msra.mxu0 %v44695_v47  ;;  %36705 = vmatprep.mubr.msk.f32.mxu0 %vm43145_vm1, %v47342_v43 }
0x17d5   :  { %40505 = vmatprep.subr.bf16.mxu0 %v47343_v6 }
0x17d8   :  { %v42996_v7 = vpop.eup %42995  ;;  %40507 = vmatpush3.bf16.msra.mxu0 %v44702_v32 }
0x17d9   :  { %8916 = vrot.lane.b32.xlu0 %v42996_v7, %s43147_s11  ;;  %40508 = vmatprep.subr.bf16.mxu0 %v47343_v6  ;;  %v47368_v7 = vld [vmem:[#allocation29_spill] sm:$0xff] }
0x17db   :  { %36706 = vmatmul.mubr.f32.vlgmr.msra.gmra.mrb[38].mxu0 %v44947_v44 }
0x17dc   :  { %40510 = vmatpush3.bf16.msra.mxu0 %v44710_v27  ;;  %36716 = vmatprep.mubr.msk.f32.mxu0 %vm43145_vm1, %v47342_v43 }
0x17dd   :  { %40511 = vmatprep.subr.bf16.mxu0 %v47343_v6 }
0x17e0   :  { %40513 = vmatpush3.bf16.msra.mxu0 %v44715_v28 }
0x17e1   :  { %40514 = vmatprep.subr.bf16.mxu0 %v47343_v6 }
0x17e3   :  { %36717 = vmatmul.mubr.f32.vlgmr.msra.gmra.mrb[38].mxu0 %v44951_v34 }
0x17e4   :  { %40516 = vmatpush3.bf16.msra.mxu0 %v44674_v29  ;;  %36727 = vmatprep.mubr.msk.f32.mxu0 %vm43145_vm1, %v47342_v43 }
0x17e5   :  { %40517 = vmatprep.subr.bf16.mxu0 %v47343_v6 }
0x17e8   :  { %40519 = vmatpush3.bf16.msra.mxu0 %v44684_v40 }
0x17e9   :  { %40520 = vmatprep.subr.bf16.mxu0 %v47343_v6 }
0x17eb   :  { %36728 = vmatmul.mubr.f32.vlgmr.msra.gmra.mrb[38].mxu0 %v44956_v1 }
0x17ec   :  { %40522 = vmatpush3.bf16.msra.mxu0 %v44728_v0  ;;  %36738 = vmatprep.mubr.msk.f32.mxu0 %vm43145_vm1, %v47342_v43 }
0x17ed   :  { %40523 = vmatprep.subr.bf16.mxu0 %v47343_v6 }
0x17f0   :  { %40525 = vmatpush3.bf16.msra.mxu0 %v44733_v42 }
0x17f1   :  { %40526 = vmatprep.subr.bf16.mxu0 %v47343_v6 }
0x17f3   :  { %36739 = vmatmul.mubr.f32.vlgmr.msra.gmra.mrb[38].mxu0 %v44947_v44 }
0x17f4   :  { %40528 = vmatpush3.bf16.msra.mxu0 %v44674_v29  ;;  %36749 = vmatprep.mubr.msk.f32.mxu0 %vm43145_vm1, %v47342_v43 }
0x17f5   :  { %40529 = vmatprep.subr.bf16.mxu0 %v47343_v6 }
0x17f8   :  { %40531 = vmatpush3.bf16.msra.mxu0 %v44684_v40 }
0x17f9   :  { %40604 = vmatprep.subr.bf16.mxu0 %v47343_v6 }
0x17fb   :  { %36750 = vmatmul.mubr.f32.vlgmr.msra.gmra.mrb[38].mxu0 %v44947_v44 }
0x17fc   :  { %40606 = vmatpush3.bf16.msra.mxu0 %v44530_v35  ;;  %36892 = vmatprep.mubr.msk.f32.mxu0 %vm43145_vm1, %v47342_v43 }
0x17fd   :  { %40607 = vmatprep.subr.bf16.mxu0 %v47343_v6 }
0x1800   :  { %40609 = vmatpush3.bf16.msra.mxu0 %v44546_v17 }
0x1801   :  { %40610 = vmatprep.subr.bf16.mxu0 %v47343_v6 }
0x1803   :  { %36893 = vmatmul.mubr.f32.vlgmr.msra.gmra.mrb[40].mxu0 %v43915_v50 }
0x1804   :  { %40612 = vmatpush3.bf16.msra.mxu0 %v44564_v4  ;;  %36903 = vmatprep.mubr.msk.f32.mxu0 %vm43145_vm1, %v47342_v43 }
0x1805   :  { %40613 = vmatprep.subr.bf16.mxu0 %v47343_v6 }
0x1808   :  { %40615 = vmatpush3.bf16.msra.mxu0 %v44572_v57 }
0x1809   :  { %40616 = vmatprep.subr.bf16.mxu0 %v47343_v6 }
0x180b   :  { %36904 = vmatmul.mubr.f32.vlgmr.msra.gmra.mrb[40].mxu0 %v43905_v16 }
0x180c   :  { %40618 = vmatpush3.bf16.msra.mxu0 %v44584_v14  ;;  %36914 = vmatprep.mubr.msk.f32.mxu0 %vm43145_vm1, %v47342_v43 }
0x180d   :  { %40619 = vmatprep.subr.bf16.mxu0 %v47343_v6 }
0x1810   :  { %40621 = vmatpush3.bf16.msra.mxu0 %v44594_v19 }
0x1811   :  { %40622 = vmatprep.subr.bf16.mxu0 %v47343_v6 }
0x1813   :  { %36915 = vmatmul.mubr.f32.vlgmr.msra.gmra.mrb[40].mxu0 %v47360_v63 }
0x1814   :  { %40624 = vmatpush3.bf16.msra.mxu0 %v44530_v35  ;;  %36925 = vmatprep.mubr.msk.f32.mxu0 %vm43145_vm1, %v47342_v43 }
0x1815   :  { %40625 = vmatprep.subr.bf16.mxu0 %v47343_v6 }
0x1818   :  { %40627 = vmatpush3.bf16.msra.mxu0 %v44546_v17 }
0x1819   :  { %40628 = vmatprep.subr.bf16.mxu0 %v47343_v6 }
0x181b   :  { %36926 = vmatmul.mubr.f32.vlgmr.msra.gmra.mrb[40].mxu0 %v47361_v39 }
0x181c   :  { %40630 = vmatpush3.bf16.msra.mxu0 %v44622_v33  ;;  %36936 = vmatprep.mubr.msk.f32.mxu0 %vm43145_vm1, %v47342_v43 }
0x181d   :  { %40631 = vmatprep.subr.bf16.mxu0 %v47343_v6 }
0x1820   :  { %40633 = vmatpush3.bf16.msra.mxu0 %v44640_v5 }
0x1821   :  { %40634 = vmatprep.subr.bf16.mxu0 %v47343_v6 }
0x1823   :  { %36937 = vmatmul.mubr.f32.vlgmr.msra.gmra.mrb[40].mxu0 %v43905_v16 }
0x1824   :  { %40636 = vmatpush3.bf16.msra.mxu0 %v44530_v35  ;;  %36947 = vmatprep.mubr.msk.f32.mxu0 %vm43145_vm1, %v47342_v43 }
0x1825   :  { %40637 = vmatprep.subr.bf16.mxu0 %v47343_v6 }
0x1828   :  { %40639 = vmatpush3.bf16.msra.mxu0 %v44546_v17 }
0x1829   :  { %40640 = vmatprep.subr.bf16.mxu0 %v47343_v6 }
0x182b   :  { %36948 = vmatmul.mubr.f32.vlgmr.msra.gmra.mrb[40].mxu0 %v43905_v16 }
0x182c   :  { %40642 = vmatpush3.bf16.msra.mxu0 %v44674_v29  ;;  %36958 = vmatprep.mubr.msk.f32.mxu0 %vm43145_vm1, %v47342_v43 }
0x182d   :  { %40643 = vmatprep.subr.bf16.mxu0 %v47343_v6 }
0x1830   :  { %40645 = vmatpush3.bf16.msra.mxu0 %v44684_v40 }
0x1831   :  { %40646 = vmatprep.subr.bf16.mxu0 %v47343_v6 }
0x1833   :  { %36959 = vmatmul.mubr.f32.vlgmr.msra.gmra.mrb[40].mxu0 %v47362_v49 }
0x1834   :  { %40648 = vmatpush3.bf16.msra.mxu0 %v44695_v47  ;;  %36969 = vmatprep.mubr.msk.f32.mxu0 %vm43145_vm1, %v47342_v43 }
0x1835   :  { %40649 = vmatprep.subr.bf16.mxu0 %v47343_v6 }
0x1838   :  { %40651 = vmatpush3.bf16.msra.mxu0 %v44702_v32 }
0x1839   :  { %40652 = vmatprep.subr.bf16.mxu0 %v47343_v6 }
0x183b   :  { %36970 = vmatmul.mubr.f32.vlgmr.msra.gmra.mrb[40].mxu0 %v47363_v12 }
0x183c   :  { %40654 = vmatpush3.bf16.msra.mxu0 %v44710_v27  ;;  %36980 = vmatprep.mubr.msk.f32.mxu0 %vm43145_vm1, %v47342_v43 }
0x183d   :  { %40655 = vmatprep.subr.bf16.mxu0 %v47343_v6 }
0x1840   :  { %40657 = vmatpush3.bf16.msra.mxu0 %v44715_v28 }
0x1841   :  { %40658 = vmatprep.subr.bf16.mxu0 %v47343_v6 }
0x1843   :  { %36981 = vmatmul.mubr.f32.vlgmr.msra.gmra.mrb[40].mxu0 %v47364_v46 }
0x1844   :  { %40660 = vmatpush3.bf16.msra.mxu0 %v44674_v29  ;;  %36991 = vmatprep.mubr.msk.f32.mxu0 %vm43145_vm1, %v47342_v43 }
0x1845   :  { %40661 = vmatprep.subr.bf16.mxu0 %v47343_v6 }
0x1848   :  { %40663 = vmatpush3.bf16.msra.mxu0 %v44684_v40 }
0x1849   :  { %40664 = vmatprep.subr.bf16.mxu0 %v47343_v6 }
0x184b   :  { %36992 = vmatmul.mubr.f32.vlgmr.msra.gmra.mrb[40].mxu0 %v47365_v38  ;;  %v8917_v52 = vpop.permute.xlu0 %8916 }
0x184c   :  { %40666 = vmatpush3.bf16.msra.mxu0 %v44728_v0  ;;  %v45072_v54 = vmul.f32 %v8917_v52, %v44940_v10  ;;  %37002 = vmatprep.mubr.msk.f32.mxu0 %vm43145_vm1, %v47342_v43  ;;  %v47367_v10 = vld [vmem:[#allocation32_spill] sm:$0xff]  ;;  %v47369_v52 = vld [vmem:[#allocation30_spill] sm:$0xff] }
0x184d   :  { %40667 = vmatprep.subr.bf16.mxu0 %v47343_v6 }
0x184e   :  { %47366 = vst [vmem:[#allocation19_spill] sm:$0xff] %v45072_v54  ;;  %v16283_v18 = vrot.slane %v45072_v54, 6  ;;  %v47373_v54 = vld [vmem:[#allocation26_spill] sm:$0xff] }
0x1850   :  { %40669 = vmatpush3.bf16.msra.mxu0 %v44733_v42  ;;  %16284 = vrot.lane.b32.xlu1 %v16283_v18, %s43143_s29  ;;  %v47370_v18 = vld [vmem:[#allocation31_spill] sm:$0xff] }
0x1851   :  { %40670 = vmatprep.subr.bf16.mxu0 %v47343_v6 }
0x1853   :  { %37003 = vmatmul.mubr.f32.vlgmr.msra.gmra.mrb[40].mxu0 %v47363_v12 }
0x1854   :  { %40672 = vmatpush3.bf16.msra.mxu0 %v44674_v29  ;;  %37013 = vmatprep.mubr.msk.f32.mxu0 %vm43145_vm1, %v47342_v43 }
0x1855   :  { %40673 = vmatprep.subr.bf16.mxu0 %v47343_v6 }
0x1858   :  { %40675 = vmatpush3.bf16.msra.mxu0 %v44684_v40 }
0x1859   :  { %40748 = vmatprep.subr.bf16.mxu0 %v47343_v6 }
0x185b   :  { %37014 = vmatmul.mubr.f32.vlgmr.msra.gmra.mrb[40].mxu0 %v47363_v12 }
0x185c   :  { %40750 = vmatpush3.bf16.msra.mxu0 %v44530_v35  ;;  %37156 = vmatprep.mubr.msk.f32.mxu0 %vm43145_vm1, %v47342_v43 }
0x185d   :  { %40751 = vmatprep.subr.bf16.mxu0 %v47343_v6 }
0x1860   :  { %40753 = vmatpush3.bf16.msra.mxu0 %v44546_v17 }
0x1861   :  { %40754 = vmatprep.subr.bf16.mxu0 %v47343_v6 }
0x1863   :  { %37157 = vmatmul.mubr.f32.vlgmr.msra.gmra.mrb[42].mxu0 %v47367_v10 }
0x1864   :  { %40756 = vmatpush3.bf16.msra.mxu0 %v44564_v4  ;;  %37167 = vmatprep.mubr.msk.f32.mxu0 %vm43145_vm1, %v47342_v43 }
0x1865   :  { %40757 = vmatprep.subr.bf16.mxu0 %v47343_v6 }
0x1868   :  { %40759 = vmatpush3.bf16.msra.mxu0 %v44572_v57 }
0x1869   :  { %40760 = vmatprep.subr.bf16.mxu0 %v47343_v6 }
0x186b   :  { %37168 = vmatmul.mubr.f32.vlgmr.msra.gmra.mrb[42].mxu0 %v47368_v7 }
0x186c   :  { %40762 = vmatpush3.bf16.msra.mxu0 %v44584_v14  ;;  %37178 = vmatprep.mubr.msk.f32.mxu0 %vm43145_vm1, %v47342_v43 }
0x186d   :  { %40763 = vmatprep.subr.bf16.mxu0 %v47343_v6 }
0x1870   :  { %40765 = vmatpush3.bf16.msra.mxu0 %v44594_v19 }
0x1871   :  { %40766 = vmatprep.subr.bf16.mxu0 %v47343_v6 }
0x1873   :  { %37179 = vmatmul.mubr.f32.vlgmr.msra.gmra.mrb[42].mxu0 %v47369_v52 }
0x1874   :  { %40768 = vmatpush3.bf16.msra.mxu0 %v44530_v35  ;;  %37189 = vmatprep.mubr.msk.f32.mxu0 %vm43145_vm1, %v47342_v43 }
0x1875   :  { %40769 = vmatprep.subr.bf16.mxu0 %v47343_v6 }
0x1878   :  { %40771 = vmatpush3.bf16.msra.mxu0 %v44546_v17 }
0x1879   :  { %40772 = vmatprep.subr.bf16.mxu0 %v47343_v6 }
0x187b   :  { %37190 = vmatmul.mubr.f32.vlgmr.msra.gmra.mrb[42].mxu0 %v47370_v18 }
0x187c   :  { %40774 = vmatpush3.bf16.msra.mxu0 %v44622_v33  ;;  %37200 = vmatprep.mubr.msk.f32.mxu0 %vm43145_vm1, %v47342_v43 }
0x187d   :  { %40775 = vmatprep.subr.bf16.mxu0 %v47343_v6 }
0x1880   :  { %40777 = vmatpush3.bf16.msra.mxu0 %v44640_v5 }
0x1881   :  { %40778 = vmatprep.subr.bf16.mxu0 %v47343_v6 }
0x1883   :  { %37201 = vmatmul.mubr.f32.vlgmr.msra.gmra.mrb[42].mxu0 %v47368_v7 }
0x1884   :  { %40780 = vmatpush3.bf16.msra.mxu0 %v44530_v35  ;;  %37211 = vmatprep.mubr.msk.f32.mxu0 %vm43145_vm1, %v47342_v43 }
0x1885   :  { %40781 = vmatprep.subr.bf16.mxu0 %v47343_v6 }
0x1888   :  { %40783 = vmatpush3.bf16.msra.mxu0 %v44546_v17 }
0x1889   :  { %40784 = vmatprep.subr.bf16.mxu0 %v47343_v6 }
0x188b   :  { %37212 = vmatmul.mubr.f32.vlgmr.msra.gmra.mrb[42].mxu0 %v47368_v7 }
0x188c   :  { %40786 = vmatpush3.bf16.msra.mxu0 %v44674_v29  ;;  %37222 = vmatprep.mubr.msk.f32.mxu0 %vm43145_vm1, %v47342_v43 }
0x188d   :  { %40787 = vmatprep.subr.bf16.mxu0 %v47343_v6 }
0x1890   :  { %40789 = vmatpush3.bf16.msra.mxu0 %v44684_v40 }
0x1891   :  { %40790 = vmatprep.subr.bf16.mxu0 %v47343_v6 }
0x1893   :  { %37223 = vmatmul.mubr.f32.vlgmr.msra.gmra.mrb[42].mxu0 %v47371_v36 }
0x1894   :  { %40792 = vmatpush3.bf16.msra.mxu0 %v44695_v47  ;;  %37233 = vmatprep.mubr.msk.f32.mxu0 %vm43145_vm1, %v47342_v43 }
0x1895   :  { %40793 = vmatprep.subr.bf16.mxu0 %v47343_v6 }
0x1898   :  { %40795 = vmatpush3.bf16.msra.mxu0 %v44702_v32 }
0x1899   :  { %40796 = vmatprep.subr.bf16.mxu0 %v47343_v6 }
0x189b   :  { %37234 = vmatmul.mubr.f32.vlgmr.msra.gmra.mrb[42].mxu0 %v47372_v45 }
0x189c   :  { %40798 = vmatpush3.bf16.msra.mxu0 %v44710_v27  ;;  %37244 = vmatprep.mubr.msk.f32.mxu0 %vm43145_vm1, %v47342_v43 }
0x189d   :  { %40799 = vmatprep.subr.bf16.mxu0 %v47343_v6 }
0x18a0   :  { %40801 = vmatpush3.bf16.msra.mxu0 %v44715_v28 }
0x18a1   :  { %40802 = vmatprep.subr.bf16.mxu0 %v47343_v6 }
0x18a3   :  { %37245 = vmatmul.mubr.f32.vlgmr.msra.gmra.mrb[42].mxu0 %v47373_v54 }
0x18a4   :  { %40804 = vmatpush3.bf16.msra.mxu0 %v44674_v29  ;;  %37255 = vmatprep.mubr.msk.f32.mxu0 %vm43145_vm1, %v47342_v43 }
0x18a5   :  { %40805 = vmatprep.subr.bf16.mxu0 %v47343_v6 }
0x18a8   :  { %40807 = vmatpush3.bf16.msra.mxu0 %v44684_v40 }
0x18a9   :  { %40808 = vmatprep.subr.bf16.mxu0 %v47343_v6 }
0x18ab   :  { %37256 = vmatmul.mubr.f32.vlgmr.msra.gmra.mrb[42].mxu0 %v47374_v37 }
0x18ac   :  { %40810 = vmatpush3.bf16.msra.mxu0 %v44728_v0  ;;  %37266 = vmatprep.mubr.msk.f32.mxu0 %vm43145_vm1, %v47342_v43 }
0x18ad   :  { %40811 = vmatprep.subr.bf16.mxu0 %v47343_v6 }
0x18b0   :  { %40813 = vmatpush3.bf16.msra.mxu0 %v44733_v42 }
0x18b1   :  { %40814 = vmatprep.subr.bf16.mxu0 %v47343_v6 }
0x18b3   :  { %37267 = vmatmul.mubr.f32.vlgmr.msra.gmra.mrb[42].mxu0 %v47372_v45 }
0x18b4   :  { %40816 = vmatpush3.bf16.msra.mxu0 %v44674_v29  ;;  %37277 = vmatprep.mubr.msk.f32.mxu0 %vm43145_vm1, %v47342_v43 }
0x18b5   :  { %40817 = vmatprep.subr.bf16.mxu0 %v47343_v6 }
0x18b8   :  { %40819 = vmatpush3.bf16.msra.mxu0 %v44684_v40 }
0x18b9   :  { %40892 = vmatprep.subr.bf16.mxu0 %v47343_v6 }
0x18bb   :  { %37278 = vmatmul.mubr.f32.vlgmr.msra.gmra.mrb[42].mxu0 %v47372_v45 }
0x18bc   :  { %40894 = vmatpush3.bf16.msra.mxu0 %v44530_v35  ;;  %37420 = vmatprep.mubr.msk.f32.mxu0 %vm43145_vm1, %v47342_v43 }
0x18bd   :  { %40895 = vmatprep.subr.bf16.mxu0 %v47343_v6 }
0x18c0   :  { %40897 = vmatpush3.bf16.msra.mxu0 %v44546_v17 }
0x18c1   :  { %40898 = vmatprep.subr.bf16.mxu0 %v47343_v6 }
0x18c2   :  { %v16285_v37 = vpop.permute.xlu1 %16284 }
0x18c3   :  { %37421 = vmatmul.mubr.f32.vlgmr.msra.gmra.mrb[44].mxu0 %v44427_v11  ;;  %v16286_v54 = vsel %vm44_vm0, %v16285_v37, 0 }
0x18c4   :  { %v45181_v51 = vand.u32 4294901760, %v16286_v54  ;;  %40900 = vmatpush3.bf16.msra.mxu0 %v44564_v4  ;;  %37431 = vmatprep.mubr.msk.f32.mxu0 %vm43145_vm1, %v47342_v43 }
0x18c5   :  { %40901 = vmatprep.subr.bf16.mxu0 %v47343_v6 }
0x18c6   :  { %v45188_v45 = vsub.f32 %v16286_v54, %v45181_v51  ;;  %v33406_v54 = vld [vmem:[%s47247_s2 + $0x58] sm:$0xff] }
0x18c8   :  { %47375 = vst [vmem:[#allocation20_spill] sm:$0xff] %v45188_v45  ;;  %v45191_v36 = vand.u32 4294901760, %v45188_v45  ;;  %40903 = vmatpush3.bf16.msra.mxu0 %v44572_v57 }
0x18c9   :  { %40904 = vmatprep.subr.bf16.mxu0 %v47343_v6 }
0x18ca   :  { %47376 = vst [vmem:[#allocation36_spill] sm:$0xff] %v45191_v36  ;;  %v16360_v37 = vsub.f32 %v45188_v45, %v45191_v36 }
0x18cb   :  { %37432 = vmatmul.mubr.f32.vlgmr.msra.gmra.mrb[44].mxu0 %v44417_v41 }
0x18cc   :  { %40906 = vmatpush3.bf16.msra.mxu0 %v44584_v14  ;;  %v45199_v11 = vand.u32 4294901760, %v16360_v37  ;;  %37442 = vmatprep.mubr.msk.f32.mxu0 %vm43145_vm1, %v47342_v43 }
0x18cd   :  { %40907 = vmatprep.subr.bf16.mxu0 %v47343_v6 }
0x18ce   :  { %37553 = vmatmul.mubr.f32.vlgmr.msra.gmra.mrb[44].mxu1 %v45199_v11 }
0x18cf   :  { %40972 = vmatpush3.bf16.msra.mxu1 %v44564_v4  ;;  %37563 = vmatprep.mubr.msk.f32.mxu1 %vm43145_vm1, %v47342_v43  ;;  %v47377_v4 = vld [vmem:[#allocation18_spill] sm:$0xff] }
0x18d0   :  { %40909 = vmatpush3.bf16.msra.mxu0 %v44594_v19  ;;  %40973 = vmatprep.subr.bf16.mxu1 %v47343_v6 }
0x18d1   :  { %40910 = vmatprep.subr.bf16.mxu0 %v47343_v6 }
0x18d3   :  { %37443 = vmatmul.mubr.f32.vlgmr.msra.gmra.mrb[44].mxu0 %v44420_v3  ;;  %40975 = vmatpush3.bf16.msra.mxu1 %v44572_v57  ;;  %v47380_v57 = vld [vmem:[#allocation16_spill] sm:$0xff] }
0x18d4   :  { %40912 = vmatpush3.bf16.msra.mxu0 %v44530_v35  ;;  %40976 = vmatprep.subr.bf16.mxu1 %v47343_v6 }
0x18d5   :  { %40913 = vmatprep.subr.bf16.mxu0 %v47343_v6  ;;  %37453 = vmatprep.mubr.msk.f32.mxu0 %vm43145_vm1, %v47342_v43 }
0x18d6   :  { %37564 = vmatmul.mubr.f32.vlgmr.msra.gmra.mrb[44].mxu1 %v45181_v51 }
0x18d7   :  { %40978 = vmatpush3.bf16.msra.mxu1 %v44584_v14  ;;  %37574 = vmatprep.mubr.msk.f32.mxu1 %vm43145_vm1, %v47342_v43  ;;  %v47381_v14 = vld [vmem:[#allocation9_spill] sm:$0xff] }
0x18d8   :  { %40915 = vmatpush3.bf16.msra.mxu0 %v44546_v17  ;;  %40979 = vmatprep.subr.bf16.mxu1 %v47343_v6 }
0x18d9   :  { %40916 = vmatprep.subr.bf16.mxu0 %v47343_v6 }
0x18db   :  { %37454 = vmatmul.mubr.f32.vlgmr.msra.gmra.mrb[44].mxu0 %v44423_v24  ;;  %40981 = vmatpush3.bf16.msra.mxu1 %v44594_v19  ;;  %v33403_v19 = vld [vmem:[%s47247_s2 + $0x40] sm:$0xff] }
0x18dc   :  { %40918 = vmatpush3.bf16.msra.mxu0 %v44622_v33  ;;  %40982 = vmatprep.subr.bf16.mxu1 %v47343_v6 }
0x18dd   :  { %40919 = vmatprep.subr.bf16.mxu0 %v47343_v6  ;;  %37464 = vmatprep.mubr.msk.f32.mxu0 %vm43145_vm1, %v47342_v43 }
0x18de   :  { %37575 = vmatmul.mubr.f32.vlgmr.msra.gmra.mrb[44].mxu1 %v45188_v45 }
0x18df   :  { %40984 = vmatpush3.bf16.msra.mxu1 %v44530_v35  ;;  %37585 = vmatprep.mubr.msk.f32.mxu1 %vm43145_vm1, %v47342_v43 }
0x18e0   :  { %40921 = vmatpush3.bf16.msra.mxu0 %v44640_v5  ;;  %40985 = vmatprep.subr.bf16.mxu1 %v47343_v6 }
0x18e1   :  { %40922 = vmatprep.subr.bf16.mxu0 %v47343_v6 }
0x18e3   :  { %37465 = vmatmul.mubr.f32.vlgmr.msra.gmra.mrb[44].mxu0 %v44417_v41  ;;  %40987 = vmatpush3.bf16.msra.mxu1 %v44546_v17 }
0x18e4   :  { %40924 = vmatpush3.bf16.msra.mxu0 %v44530_v35  ;;  %40988 = vmatprep.subr.bf16.mxu1 %v47343_v6 }
0x18e5   :  { %40925 = vmatprep.subr.bf16.mxu0 %v47343_v6  ;;  %37475 = vmatprep.mubr.msk.f32.mxu0 %vm43145_vm1, %v47342_v43 }
0x18e6   :  { %37586 = vmatmul.mubr.f32.vlgmr.msra.gmra.mrb[44].mxu1 %v45191_v36 }
0x18e7   :  { %40990 = vmatpush3.bf16.msra.mxu1 %v44622_v33  ;;  %37596 = vmatprep.mubr.msk.f32.mxu1 %vm43145_vm1, %v47342_v43  ;;  %v33404_v33 = vld [vmem:[%s47247_s2 + $0x48] sm:$0xff] }
0x18e8   :  { %40927 = vmatpush3.bf16.msra.mxu0 %v44546_v17  ;;  %40991 = vmatprep.subr.bf16.mxu1 %v47343_v6 }
0x18e9   :  { %40928 = vmatprep.subr.bf16.mxu0 %v47343_v6 }
0x18eb   :  { %37476 = vmatmul.mubr.f32.vlgmr.msra.gmra.mrb[44].mxu0 %v44417_v41  ;;  %40993 = vmatpush3.bf16.msra.mxu1 %v44640_v5  ;;  %v47382_v5 = vld [vmem:[#allocation17_spill] sm:$0xff] }
0x18ec   :  { %40930 = vmatpush3.bf16.msra.mxu0 %v44674_v29  ;;  %40994 = vmatprep.subr.bf16.mxu1 %v47343_v6 }
0x18ed   :  { %40931 = vmatprep.subr.bf16.mxu0 %v47343_v6  ;;  %37486 = vmatprep.mubr.msk.f32.mxu0 %vm43145_vm1, %v47342_v43 }
0x18ee   :  { %37597 = vmatmul.mubr.f32.vlgmr.msra.gmra.mrb[44].mxu1 %v45181_v51 }
0x18ef   :  { %40996 = vmatpush3.bf16.msra.mxu1 %v44530_v35  ;;  %37607 = vmatprep.mubr.msk.f32.mxu1 %vm43145_vm1, %v47342_v43  ;;  %v47378_v35 = vld [vmem:[#allocation15_spill] sm:$0xff] }
0x18f0   :  { %40933 = vmatpush3.bf16.msra.mxu0 %v44684_v40  ;;  %40997 = vmatprep.subr.bf16.mxu1 %v47343_v6 }
0x18f1   :  { %40934 = vmatprep.subr.bf16.mxu0 %v47343_v6 }
0x18f3   :  { %37487 = vmatmul.mubr.f32.vlgmr.msra.gmra.mrb[44].mxu0 %v47377_v4  ;;  %40999 = vmatpush3.bf16.msra.mxu1 %v44546_v17  ;;  %v47379_v17 = vld [vmem:[#allocation12_spill] sm:$0xff] }
0x18f4   :  { %40936 = vmatpush3.bf16.msra.mxu0 %v44695_v47  ;;  %41000 = vmatprep.subr.bf16.mxu1 %v47343_v6 }
0x18f5   :  { %40937 = vmatprep.subr.bf16.mxu0 %v47343_v6  ;;  %37497 = vmatprep.mubr.msk.f32.mxu0 %vm43145_vm1, %v47342_v43 }
0x18f6   :  { %37608 = vmatmul.mubr.f32.vlgmr.msra.gmra.mrb[44].mxu1 %v45181_v51 }
0x18f7   :  { %41002 = vmatpush3.bf16.msra.mxu1 %v44674_v29  ;;  %37618 = vmatprep.mubr.msk.f32.mxu1 %vm43145_vm1, %v47342_v43 }
0x18f8   :  { %40939 = vmatpush3.bf16.msra.mxu0 %v44702_v32  ;;  %41003 = vmatprep.subr.bf16.mxu1 %v47343_v6 }
0x18f9   :  { %40940 = vmatprep.subr.bf16.mxu0 %v47343_v6 }
0x18fb   :  { %37498 = vmatmul.mubr.f32.vlgmr.msra.gmra.mrb[44].mxu0 %v47378_v35  ;;  %41005 = vmatpush3.bf16.msra.mxu1 %v44684_v40 }
0x18fc   :  { %40942 = vmatpush3.bf16.msra.mxu0 %v44710_v27  ;;  %41006 = vmatprep.subr.bf16.mxu1 %v47343_v6 }
0x18fd   :  { %40943 = vmatprep.subr.bf16.mxu0 %v47343_v6  ;;  %37508 = vmatprep.mubr.msk.f32.mxu0 %vm43145_vm1, %v47342_v43 }
0x18fe   :  { %37619 = vmatmul.mubr.f32.vlgmr.msra.gmra.mrb[44].mxu1 %v47379_v17 }
0x18ff   :  { %41008 = vmatpush3.bf16.msra.mxu1 %v44695_v47  ;;  %37629 = vmatprep.mubr.msk.f32.mxu1 %vm43145_vm1, %v47342_v43  ;;  %v17272_v47 = vand.u32 4294901760, %v33403_v19 }
0x1900   :  { %40945 = vmatpush3.bf16.msra.mxu0 %v44715_v28  ;;  %41009 = vmatprep.subr.bf16.mxu1 %v47343_v6 }
0x1901   :  { %40946 = vmatprep.subr.bf16.mxu0 %v47343_v6 }
0x1903   :  { %37509 = vmatmul.mubr.f32.vlgmr.msra.gmra.mrb[44].mxu0 %v47380_v57  ;;  %41011 = vmatpush3.bf16.msra.mxu1 %v44702_v32  ;;  %v17275_v32 = vand.u32 4294901760, %v33404_v33  ;;  %v45334_v57 = vsub.f32 %v33403_v19, %v17272_v47 }
0x1904   :  { %40948 = vmatpush3.bf16.msra.mxu0 %v44674_v29  ;;  %41012 = vmatprep.subr.bf16.mxu1 %v47343_v6 }
0x1905   :  { %40949 = vmatprep.subr.bf16.mxu0 %v47343_v6  ;;  %37519 = vmatprep.mubr.msk.f32.mxu0 %vm43145_vm1, %v47342_v43  ;;  %v45336_v17 = vsub.f32 %v33404_v33, %v17275_v32  ;;  %v47384_v33 = vld [vmem:[#allocation11_spill] sm:$0xff]  ;;  %v45354_v45 = vpack.c.bf16 %v17275_v32, %v17272_v47 }
0x1906   :  { %37630 = vmatmul.mubr.f32.vlgmr.msra.gmra.mrb[44].mxu1 %v47381_v14 }
0x1907   :  { %41014 = vmatpush3.bf16.msra.mxu1 %v44710_v27  ;;  %37640 = vmatprep.mubr.msk.f32.mxu1 %vm43145_vm1, %v47342_v43  ;;  %v33405_v27 = vld [vmem:[%s47247_s2 + $0x50] sm:$0xff]  ;;  %v47319_v4 = vand.u32 4294901760, %v45336_v17 }
0x1908   :  { %40951 = vmatpush3.bf16.msra.mxu0 %v44684_v40  ;;  %41015 = vmatprep.subr.bf16.mxu1 %v47343_v6  ;;  %v17278_v37 = vand.u32 4294901760, %v33405_v27 }
0x1909   :  { %40952 = vmatprep.subr.bf16.mxu0 %v47343_v6 }
0x190a   :  { %v45345_v36 = vsub.f32 %v33405_v27, %v17278_v37 }
0x190b   :  { %37520 = vmatmul.mubr.f32.vlgmr.msra.gmra.mrb[44].mxu0 %v47382_v5  ;;  %41017 = vmatpush3.bf16.msra.mxu1 %v44715_v28  ;;  %v47383_v28 = vld [vmem:[#allocation10_spill] sm:$0xff]  ;;  %v17281_v5 = vand.u32 4294901760, %v33406_v54 }
0x190c   :  { %40954 = vmatpush3.bf16.msra.mxu0 %v44728_v0  ;;  %41018 = vmatprep.subr.bf16.mxu1 %v47343_v6 }
0x190d   :  { %40955 = vmatprep.subr.bf16.mxu0 %v47343_v6  ;;  %37530 = vmatprep.mubr.msk.f32.mxu0 %vm43145_vm1, %v47342_v43  ;;  %v45347_v19 = vsub.f32 %v33406_v54, %v17281_v5  ;;  %v17361_v54 = vsub.f32 %v45336_v17, %v47319_v4  ;;  %v45371_v47 = vpack.c.bf16 %v17281_v5, %v17278_v37 }
0x190e   :  { %37641 = vmatmul.mubr.f32.vlgmr.msra.gmra.mrb[44].mxu1 %v47383_v28  ;;  %v47318_v28 = vand.u32 4294901760, %v45334_v57 }
0x190f   :  { %41020 = vmatpush3.bf16.msra.mxu1 %v44674_v29  ;;  %37651 = vmatprep.mubr.msk.f32.mxu1 %vm43145_vm1, %v47342_v43 }
0x1910   :  { %40957 = vmatpush3.bf16.msra.mxu0 %v44733_v42  ;;  %41021 = vmatprep.subr.bf16.mxu1 %v47343_v6  ;;  %v17354_v27 = vsub.f32 %v45334_v57, %v47318_v28  ;;  %v17362_v28 = vand.u32 4294901760, %v17361_v54 }
0x1911   :  { %40958 = vmatprep.subr.bf16.mxu0 %v47343_v6 }
0x1912   :  { %v17355_v32 = vand.u32 4294901760, %v17354_v27  ;;  %v47387_v27 = vld [vmem:[#allocation8_spill] sm:$0xff] }
0x1913   :  { %37531 = vmatmul.mubr.f32.vlgmr.msra.gmra.mrb[44].mxu0 %v47378_v35  ;;  %41023 = vmatpush3.bf16.msra.mxu1 %v44684_v40 }
0x1914   :  { %40960 = vmatpush3.bf16.msra.mxu0 %v44674_v29  ;;  %41024 = vmatprep.subr.bf16.mxu1 %v47343_v6 }
0x1915   :  { %40961 = vmatprep.subr.bf16.mxu0 %v47343_v6  ;;  %37541 = vmatprep.mubr.msk.f32.mxu0 %vm43145_vm1, %v47342_v43 }
0x1916   :  { %37652 = vmatmul.mubr.f32.vlgmr.msra.gmra.mrb[44].mxu1 %v47384_v33  ;;  %v17367_v33 = vand.u32 4294901760, %v45345_v36 }
0x1917   :  { %41026 = vmatpush3.bf16.msra.mxu1 %v44728_v0  ;;  %37662 = vmatprep.mubr.msk.f32.mxu1 %vm43145_vm1, %v47342_v43  ;;  %v17374_v0 = vand.u32 4294901760, %v45347_v19 }
0x1918   :  { %40963 = vmatpush3.bf16.msra.mxu0 %v44684_v40  ;;  %41027 = vmatprep.subr.bf16.mxu1 %v47343_v6  ;;  %v17368_v4 = vsub.f32 %v45345_v36, %v17367_v33 }
0x1919   :  { %41036 = vmatprep.subr.bf16.mxu0 %v47343_v6  ;;  %v17375_v24 = vsub.f32 %v45347_v19, %v17374_v0 }
0x191a   :  { %v17369_v5 = vand.u32 4294901760, %v17368_v4  ;;  %v33407_v4 = vld [vmem:[%s47247_s2 + $0x60] sm:$0xff] }
0x191b   :  { %37542 = vmatmul.mubr.f32.vlgmr.msra.gmra.mrb[44].mxu0 %v47378_v35  ;;  %41029 = vmatpush3.bf16.msra.mxu1 %v44733_v42  ;;  %v45390_v42 = vpack.c.bf16 %v17362_v28, %v17355_v32  ;;  %v17376_v37 = vand.u32 4294901760, %v17375_v24  ;;  %v45419_v24 = vpack.c.bf16 %v45347_v19, %v45345_v36  ;;  %v33408_v28 = vld [vmem:[%s47247_s2 + $0x68] sm:$0xff]  ;;  %v33409_v32 = vld [vmem:[%s47247_s2 + $0x70] sm:$0xff]  ;;  %v47388_v36 = vld [vmem:[#allocation13_spill] sm:$0xff] }
0x191c   :  { %41038 = vmatpush3.bf16.msra.mxu0 %v45354_v45  ;;  %41030 = vmatprep.subr.bf16.mxu1 %v47343_v6  ;;  %v17767_v54 = vand.u32 4294901760, %v33408_v28  ;;  %v17770_v19 = vand.u32 4294901760, %v33409_v32 }
0x191d   :  { %41039 = vmatprep.subr.bf16.mxu0 %v47343_v6  ;;  %37684 = vmatprep.mubr.msk.f32.mxu0 %vm43145_vm1, %v47342_v43 }
0x191e   :  { %37663 = vmatmul.mubr.f32.vlgmr.msra.gmra.mrb[44].mxu1 %v47381_v14 }
0x191f   :  { %41032 = vmatpush3.bf16.msra.mxu1 %v44674_v29  ;;  %37673 = vmatprep.mubr.msk.f32.mxu1 %vm43145_vm1, %v47342_v43  ;;  %v45397_v29 = vpack.c.bf16 %v17376_v37, %v17369_v5  ;;  %v33410_v5 = vld [vmem:[%s47247_s2 + $0x78] sm:$0xff]  ;;  %v45484_v37 = vsub.f32 %v33408_v28, %v17767_v54  ;;  %v47389_v28 = vld [vmem:[#allocation14_spill] sm:$0xff] }
0x1920   :  { %41041 = vmatpush3.bf16.msra.mxu0 %v45371_v47  ;;  %41033 = vmatprep.subr.bf16.mxu1 %v47343_v6 }
0x1921   :  { %41042 = vmatprep.subr.bf16.mxu0 %v47343_v6 }
0x1923   :  { %41035 = vmatpush3.bf16.msra.mxu1 %v44684_v40  ;;  %37685 = vmatmul.mubr.f32.vlgmr.msra.gmra.mrb[46].mxu0 %v43659_v2  ;;  %v45410_v2 = vpack.c.bf16 %v45336_v17, %v45334_v57 }
0x1924   :  { %41044 = vmatpush3.bf16.msra.mxu0 %v45390_v42  ;;  %41108 = vmatprep.subr.bf16.mxu1 %v47343_v6 }
0x1925   :  { %41045 = vmatprep.subr.bf16.mxu0 %v47343_v6  ;;  %37695 = vmatprep.mubr.msk.f32.mxu0 %vm43145_vm1, %v47342_v43 }
0x1926   :  { %37674 = vmatmul.mubr.f32.vlgmr.msra.gmra.mrb[44].mxu1 %v47381_v14 }
0x1927   :  { %41110 = vmatpush3.bf16.msra.mxu1 %v45354_v45  ;;  %37816 = vmatprep.mubr.msk.f32.mxu1 %vm43145_vm1, %v47342_v43 }
0x1928   :  { %41047 = vmatpush3.bf16.msra.mxu0 %v45397_v29  ;;  %41111 = vmatprep.subr.bf16.mxu1 %v47343_v6 }
0x1929   :  { %41048 = vmatprep.subr.bf16.mxu0 %v47343_v6 }
0x192b   :  { %37696 = vmatmul.mubr.f32.vlgmr.msra.gmra.mrb[46].mxu0 %v43649_v60  ;;  %41113 = vmatpush3.bf16.msra.mxu1 %v45371_v47 }
0x192c   :  { %41050 = vmatpush3.bf16.msra.mxu0 %v45410_v2  ;;  %41114 = vmatprep.subr.bf16.mxu1 %v47343_v6 }
0x192d   :  { %41051 = vmatprep.subr.bf16.mxu0 %v47343_v6  ;;  %37706 = vmatprep.mubr.msk.f32.mxu0 %vm43145_vm1, %v47342_v43 }
0x192e   :  { %37817 = vmatmul.mubr.f32.vlgmr.msra.gmra.mrb[46].mxu1 %v43787_v31  ;;  %v47386_v31 = vand.u32 4294901760, %v45336_v17  ;;  %v45465_v17 = vpack.c.bf16 %v17374_v0, %v17367_v33  ;;  %v17773_v33 = vand.u32 4294901760, %v33410_v5 }
0x192f   :  { %41116 = vmatpush3.bf16.msra.mxu1 %v45390_v42  ;;  %37827 = vmatprep.mubr.msk.f32.mxu1 %vm43145_vm1, %v47342_v43 }
0x1930   :  { %41053 = vmatpush3.bf16.msra.mxu0 %v45419_v24  ;;  %41117 = vmatprep.subr.bf16.mxu1 %v47343_v6 }
0x1931   :  { %41054 = vmatprep.subr.bf16.mxu0 %v47343_v6 }
0x1933   :  { %37707 = vmatmul.mubr.f32.vlgmr.msra.gmra.mrb[46].mxu0 %v43652_v61  ;;  %41119 = vmatpush3.bf16.msra.mxu1 %v45397_v29  ;;  %v47385_v61 = vand.u32 4294901760, %v45334_v57  ;;  %v17764_v57 = vand.u32 4294901760, %v33407_v4 }
0x1934   :  { %41056 = vmatpush3.bf16.msra.mxu0 %v45354_v45  ;;  %41120 = vmatprep.subr.bf16.mxu1 %v47343_v6 }
0x1935   :  { %41057 = vmatprep.subr.bf16.mxu0 %v47343_v6  ;;  %37717 = vmatprep.mubr.msk.f32.mxu0 %vm43145_vm1, %v47342_v43  ;;  %v45448_v40 = vpack.c.bf16 %v47386_v31, %v47385_v61  ;;  %v45482_v0 = vsub.f32 %v33407_v4, %v17764_v57  ;;  %v47323_v31 = vand.u32 4294901760, %v45484_v37  ;;  %v45495_v4 = vsub.f32 %v33410_v5, %v17773_v33 }
0x1936   :  { %37828 = vmatmul.mubr.f32.vlgmr.msra.gmra.mrb[46].mxu1 %v43777_v26 }
0x1937   :  { %41122 = vmatpush3.bf16.msra.mxu1 %v45410_v2  ;;  %37838 = vmatprep.mubr.msk.f32.mxu1 %vm43145_vm1, %v47342_v43  ;;  %v47321_v61 = vand.u32 4294901760, %v45482_v0  ;;  %v17853_v5 = vsub.f32 %v45484_v37, %v47323_v31 }
0x1938   :  { %41059 = vmatpush3.bf16.msra.mxu0 %v45371_v47  ;;  %41123 = vmatprep.subr.bf16.mxu1 %v47343_v6 }
0x1939   :  { %41060 = vmatprep.subr.bf16.mxu0 %v47343_v6  ;;  %v17854_v14 = vand.u32 4294901760, %v17853_v5 }
0x193b   :  { %37718 = vmatmul.mubr.f32.vlgmr.msra.gmra.mrb[46].mxu0 %v47387_v27  ;;  %41125 = vmatpush3.bf16.msra.mxu1 %v45419_v24  ;;  %v45493_v27 = vsub.f32 %v33409_v32, %v17770_v19  ;;  %v17846_v32 = vsub.f32 %v45482_v0, %v47321_v61 }
0x193c   :  { %41062 = vmatpush3.bf16.msra.mxu0 %v45448_v40  ;;  %41126 = vmatprep.subr.bf16.mxu1 %v47343_v6 }
0x193d   :  { %41063 = vmatprep.subr.bf16.mxu0 %v47343_v6  ;;  %37728 = vmatprep.mubr.msk.f32.mxu0 %vm43145_vm1, %v47342_v43  ;;  %v17847_v61 = vand.u32 4294901760, %v17846_v32 }
0x193e   :  { %37839 = vmatmul.mubr.f32.vlgmr.msra.gmra.mrb[46].mxu1 %v47388_v36  ;;  %v45502_v36 = vpack.c.bf16 %v17767_v54, %v17764_v57  ;;  %v17866_v57 = vand.u32 4294901760, %v45495_v4  ;;  %v45519_v54 = vpack.c.bf16 %v17773_v33, %v17770_v19 }
0x193f   :  { %41128 = vmatpush3.bf16.msra.mxu1 %v45354_v45  ;;  %37849 = vmatprep.mubr.msk.f32.mxu1 %vm43145_vm1, %v47342_v43 }
0x1940   :  { %41065 = vmatpush3.bf16.msra.mxu0 %v45465_v17  ;;  %41129 = vmatprep.subr.bf16.mxu1 %v47343_v6  ;;  %v17867_v35 = vsub.f32 %v45495_v4, %v17866_v57 }
0x1941   :  { %41066 = vmatprep.subr.bf16.mxu0 %v47343_v6 }
0x1942   :  { %v17868_v33 = vand.u32 4294901760, %v17867_v35 }
0x1943   :  { %37729 = vmatmul.mubr.f32.vlgmr.msra.gmra.mrb[46].mxu0 %v43649_v60  ;;  %41131 = vmatpush3.bf16.msra.mxu1 %v45371_v47 }
0x1944   :  { %41068 = vmatpush3.bf16.msra.mxu0 %v45354_v45  ;;  %41132 = vmatprep.subr.bf16.mxu1 %v47343_v6 }
0x1945   :  { %41069 = vmatprep.subr.bf16.mxu0 %v47343_v6  ;;  %37739 = vmatprep.mubr.msk.f32.mxu0 %vm43145_vm1, %v47342_v43 }
0x1946   :  { %37850 = vmatmul.mubr.f32.vlgmr.msra.gmra.mrb[46].mxu1 %v47389_v28  ;;  %v17859_v28 = vand.u32 4294901760, %v45493_v27 }
0x1947   :  { %41134 = vmatpush3.bf16.msra.mxu1 %v45448_v40  ;;  %37860 = vmatprep.mubr.msk.f32.mxu1 %vm43145_vm1, %v47342_v43 }
0x1948   :  { %41071 = vmatpush3.bf16.msra.mxu0 %v45371_v47  ;;  %41135 = vmatprep.subr.bf16.mxu1 %v47343_v6  ;;  %v17860_v31 = vsub.f32 %v45493_v27, %v17859_v28 }
0x1949   :  { %41072 = vmatprep.subr.bf16.mxu0 %v47343_v6 }
0x194a   :  { %v17861_v19 = vand.u32 4294901760, %v17860_v31 }
0x194b   :  { %37740 = vmatmul.mubr.f32.vlgmr.msra.gmra.mrb[46].mxu0 %v43649_v60  ;;  %41137 = vmatpush3.bf16.msra.mxu1 %v45465_v17  ;;  %v45538_v60 = vpack.c.bf16 %v17854_v14, %v17847_v61  ;;  %v45607_v14 = vpack.c.bf16 %v17866_v57, %v17859_v28 }
0x194c   :  { %41074 = vmatpush3.bf16.msra.mxu0 %v45502_v36  ;;  %41138 = vmatprep.subr.bf16.mxu1 %v47343_v6  ;;  %v45545_v32 = vpack.c.bf16 %v17868_v33, %v17861_v19  ;;  %v33420_v19 = vld [vmem:[%s47248_s3 + $0x78] sm:$0xff] }
0x194d   :  { %41075 = vmatprep.subr.bf16.mxu0 %v47343_v6  ;;  %37750 = vmatprep.mubr.msk.f32.mxu0 %vm43145_vm1, %v47342_v43 }
0x194e   :  { %37861 = vmatmul.mubr.f32.vlgmr.msra.gmra.mrb[46].mxu1 %v43777_v26 }
0x194f   :  { %41140 = vmatpush3.bf16.msra.mxu1 %v45354_v45  ;;  %37871 = vmatprep.mubr.msk.f32.mxu1 %vm43145_vm1, %v47342_v43 }
0x1950   :  { %41077 = vmatpush3.bf16.msra.mxu0 %v45519_v54  ;;  %41141 = vmatprep.subr.bf16.mxu1 %v47343_v6 }
0x1951   :  { %41078 = vmatprep.subr.bf16.mxu0 %v47343_v6 }
0x1953   :  { %37751 = vmatmul.mubr.f32.vlgmr.msra.gmra.mrb[46].mxu0 %v44961_v21  ;;  %41143 = vmatpush3.bf16.msra.mxu1 %v45371_v47  ;;  %v45558_v21 = vpack.c.bf16 %v45484_v37, %v45482_v0 }
0x1954   :  { %41080 = vmatpush3.bf16.msra.mxu0 %v45538_v60  ;;  %41144 = vmatprep.subr.bf16.mxu1 %v47343_v6 }
0x1955   :  { %41081 = vmatprep.subr.bf16.mxu0 %v47343_v6  ;;  %37761 = vmatprep.mubr.msk.f32.mxu0 %vm43145_vm1, %v47342_v43 }
0x1956   :  { %37872 = vmatmul.mubr.f32.vlgmr.msra.gmra.mrb[46].mxu1 %v43777_v26  ;;  %v45567_v26 = vpack.c.bf16 %v45495_v4, %v45493_v27 }
0x1957   :  { %41146 = vmatpush3.bf16.msra.mxu1 %v45502_v36  ;;  %37882 = vmatprep.mubr.msk.f32.mxu1 %vm43145_vm1, %v47342_v43 }
0x1958   :  { %41083 = vmatpush3.bf16.msra.mxu0 %v45545_v32  ;;  %41147 = vmatprep.subr.bf16.mxu1 %v47343_v6 }
0x1959   :  { %41084 = vmatprep.subr.bf16.mxu0 %v47343_v6 }
0x195b   :  { %37762 = vmatmul.mubr.f32.vlgmr.msra.gmra.mrb[46].mxu0 %v44947_v44  ;;  %41149 = vmatpush3.bf16.msra.mxu1 %v45519_v54 }
0x195c   :  { %41086 = vmatpush3.bf16.msra.mxu0 %v45558_v21  ;;  %41150 = vmatprep.subr.bf16.mxu1 %v47343_v6 }
0x195d   :  { %41087 = vmatprep.subr.bf16.mxu0 %v47343_v6  ;;  %37772 = vmatprep.mubr.msk.f32.mxu0 %vm43145_vm1, %v47342_v43 }
0x195e   :  { %37883 = vmatmul.mubr.f32.vlgmr.msra.gmra.mrb[46].mxu1 %v44482_v62  ;;  %v47390_v62 = vand.u32 4294901760, %v45482_v0 }
0x195f   :  { %41152 = vmatpush3.bf16.msra.mxu1 %v45538_v60  ;;  %37893 = vmatprep.mubr.msk.f32.mxu1 %vm43145_vm1, %v47342_v43 }
0x1960   :  { %41089 = vmatpush3.bf16.msra.mxu0 %v45567_v26  ;;  %41153 = vmatprep.subr.bf16.mxu1 %v47343_v6 }
0x1961   :  { %41090 = vmatprep.subr.bf16.mxu0 %v47343_v6 }
0x1963   :  { %37773 = vmatmul.mubr.f32.vlgmr.msra.gmra.mrb[46].mxu0 %v44951_v34  ;;  %41155 = vmatpush3.bf16.msra.mxu1 %v45545_v32  ;;  %v47391_v34 = vand.u32 4294901760, %v45484_v37 }
0x1964   :  { %41092 = vmatpush3.bf16.msra.mxu0 %v45502_v36  ;;  %41156 = vmatprep.subr.bf16.mxu1 %v47343_v6 }
0x1965   :  { %41093 = vmatprep.subr.bf16.mxu0 %v47343_v6  ;;  %37783 = vmatprep.mubr.msk.f32.mxu0 %vm43145_vm1, %v47342_v43  ;;  %v45596_v35 = vpack.c.bf16 %v47391_v34, %v47390_v62  ;;  %v25604_v62 = vand.u32 4294901760, %v33420_v19 }
0x1966   :  { %37894 = vmatmul.mubr.f32.vlgmr.msra.gmra.mrb[46].mxu1 %v44464_v53 }
0x1967   :  { %41158 = vmatpush3.bf16.msra.mxu1 %v45558_v21  ;;  %37904 = vmatprep.mubr.msk.f32.mxu1 %vm43145_vm1, %v47342_v43 }
0x1968   :  { %41095 = vmatpush3.bf16.msra.mxu0 %v45519_v54  ;;  %41159 = vmatprep.subr.bf16.mxu1 %v47343_v6 }
0x1969   :  { %41096 = vmatprep.subr.bf16.mxu0 %v47343_v6 }
0x196b   :  { %37784 = vmatmul.mubr.f32.vlgmr.msra.gmra.mrb[46].mxu0 %v44956_v1  ;;  %41161 = vmatpush3.bf16.msra.mxu1 %v45567_v26 }
0x196c   :  { %41098 = vmatpush3.bf16.msra.mxu0 %v45596_v35  ;;  %41162 = vmatprep.subr.bf16.mxu1 %v47343_v6 }
0x196d   :  { %41099 = vmatprep.subr.bf16.mxu0 %v47343_v6  ;;  %37794 = vmatprep.mubr.msk.f32.mxu0 %vm43145_vm1, %v47342_v43 }
0x196e   :  { %37905 = vmatmul.mubr.f32.vlgmr.msra.gmra.mrb[46].mxu1 %v44468_v56  ;;  %v47409_v56 = vld [vmem:[#allocation17_spill] sm:$0xff] }
0x196f   :  { %41164 = vmatpush3.bf16.msra.mxu1 %v45502_v36  ;;  %37915 = vmatprep.mubr.msk.f32.mxu1 %vm43145_vm1, %v47342_v43 }
0x1970   :  { %41101 = vmatpush3.bf16.msra.mxu0 %v45607_v14  ;;  %41165 = vmatprep.subr.bf16.mxu1 %v47343_v6 }
0x1971   :  { %41102 = vmatprep.subr.bf16.mxu0 %v47343_v6 }
0x1973   :  { %37795 = vmatmul.mubr.f32.vlgmr.msra.gmra.mrb[46].mxu0 %v44947_v44  ;;  %41167 = vmatpush3.bf16.msra.mxu1 %v45519_v54 }
0x1974   :  { %41104 = vmatpush3.bf16.msra.mxu0 %v45502_v36  ;;  %41168 = vmatprep.subr.bf16.mxu1 %v47343_v6 }
0x1975   :  { %41105 = vmatprep.subr.bf16.mxu0 %v47343_v6  ;;  %37805 = vmatprep.mubr.msk.f32.mxu0 %vm43145_vm1, %v47342_v43 }
0x1976   :  { %37916 = vmatmul.mubr.f32.vlgmr.msra.gmra.mrb[46].mxu1 %v44475_v15 }
0x1977   :  { %41170 = vmatpush3.bf16.msra.mxu1 %v45596_v35  ;;  %37926 = vmatprep.mubr.msk.f32.mxu1 %vm43145_vm1, %v47342_v43 }
0x1978   :  { %41107 = vmatpush3.bf16.msra.mxu0 %v45519_v54  ;;  %41171 = vmatprep.subr.bf16.mxu1 %v47343_v6 }
0x1979   :  { %41180 = vmatprep.subr.bf16.mxu0 %v47343_v6 }
0x197b   :  { %37806 = vmatmul.mubr.f32.vlgmr.msra.gmra.mrb[46].mxu0 %v44947_v44  ;;  %41173 = vmatpush3.bf16.msra.mxu1 %v45607_v14 }
0x197c   :  { %41182 = vmatpush3.bf16.msra.mxu0 %v45354_v45  ;;  %41174 = vmatprep.subr.bf16.mxu1 %v47343_v6 }
0x197d   :  { %41183 = vmatprep.subr.bf16.mxu0 %v47343_v6  ;;  %37948 = vmatprep.mubr.msk.f32.mxu0 %vm43145_vm1, %v47342_v43 }
0x197e   :  { %37927 = vmatmul.mubr.f32.vlgmr.msra.gmra.mrb[46].mxu1 %v44464_v53 }
0x197f   :  { %41176 = vmatpush3.bf16.msra.mxu1 %v45502_v36  ;;  %37937 = vmatprep.mubr.msk.f32.mxu1 %vm43145_vm1, %v47342_v43 }
0x1980   :  { %41185 = vmatpush3.bf16.msra.mxu0 %v45371_v47  ;;  %41177 = vmatprep.subr.bf16.mxu1 %v47343_v6 }
0x1981   :  { %41186 = vmatprep.subr.bf16.mxu0 %v47343_v6 }
0x1983   :  { %41179 = vmatpush3.bf16.msra.mxu1 %v45519_v54  ;;  %37949 = vmatmul.mubr.f32.vlgmr.msra.gmra.mrb[48].mxu0 %v43915_v50  ;;  %v47393_v50 = vld [vmem:[#allocation25_spill] sm:$0xff] }
0x1984   :  { %41188 = vmatpush3.bf16.msra.mxu0 %v45390_v42  ;;  %41252 = vmatprep.subr.bf16.mxu1 %v47343_v6 }
0x1985   :  { %41189 = vmatprep.subr.bf16.mxu0 %v47343_v6  ;;  %37959 = vmatprep.mubr.msk.f32.mxu0 %vm43145_vm1, %v47342_v43 }
0x1986   :  { %37938 = vmatmul.mubr.f32.vlgmr.msra.gmra.mrb[46].mxu1 %v44464_v53  ;;  %v33414_v53 = vld [vmem:[%s47248_s3 + $0x48] sm:$0xff] }
0x1987   :  { %41254 = vmatpush3.bf16.msra.mxu1 %v45354_v45  ;;  %38080 = vmatprep.mubr.msk.f32.mxu1 %vm43145_vm1, %v47342_v43  ;;  %v25078_v1 = vand.u32 4294901760, %v33414_v53 }
0x1988   :  { %41191 = vmatpush3.bf16.msra.mxu0 %v45397_v29  ;;  %41255 = vmatprep.subr.bf16.mxu1 %v47343_v6 }
0x1989   :  { %41192 = vmatprep.subr.bf16.mxu0 %v47343_v6 }
0x198b   :  { %37960 = vmatmul.mubr.f32.vlgmr.msra.gmra.mrb[48].mxu0 %v43905_v16  ;;  %41257 = vmatpush3.bf16.msra.mxu1 %v45371_v47 }
0x198c   :  { %41194 = vmatpush3.bf16.msra.mxu0 %v45410_v2  ;;  %41258 = vmatprep.subr.bf16.mxu1 %v47343_v6 }
0x198d   :  { %41195 = vmatprep.subr.bf16.mxu0 %v47343_v6  ;;  %37970 = vmatprep.mubr.msk.f32.mxu0 %vm43145_vm1, %v47342_v43 }
0x198e   :  { %38081 = vmatmul.mubr.f32.vlgmr.msra.gmra.mrb[48].mxu1 %v44050_v58  ;;  %v47397_v58 = vld [vmem:[#allocation27_spill] sm:$0xff] }
0x198f   :  { %41260 = vmatpush3.bf16.msra.mxu1 %v45390_v42  ;;  %38091 = vmatprep.mubr.msk.f32.mxu1 %vm43145_vm1, %v47342_v43 }
0x1990   :  { %41197 = vmatpush3.bf16.msra.mxu0 %v45419_v24  ;;  %41261 = vmatprep.subr.bf16.mxu1 %v47343_v6 }
0x1991   :  { %41198 = vmatprep.subr.bf16.mxu0 %v47343_v6 }
0x1993   :  { %37971 = vmatmul.mubr.f32.vlgmr.msra.gmra.mrb[48].mxu0 %v47360_v63  ;;  %41263 = vmatpush3.bf16.msra.mxu1 %v45397_v29  ;;  %v33415_v63 = vld [vmem:[%s47248_s3 + $0x50] sm:$0xff] }
0x1994   :  { %41200 = vmatpush3.bf16.msra.mxu0 %v45354_v45  ;;  %41264 = vmatprep.subr.bf16.mxu1 %v47343_v6 }
0x1995   :  { %41201 = vmatprep.subr.bf16.mxu0 %v47343_v6  ;;  %37981 = vmatprep.mubr.msk.f32.mxu0 %vm43145_vm1, %v47342_v43 }
0x1996   :  { %38092 = vmatmul.mubr.f32.vlgmr.msra.gmra.mrb[48].mxu1 %v44033_v22 }
0x1997   :  { %41266 = vmatpush3.bf16.msra.mxu1 %v45410_v2  ;;  %38102 = vmatprep.mubr.msk.f32.mxu1 %vm43145_vm1, %v47342_v43 }
0x1998   :  { %41203 = vmatpush3.bf16.msra.mxu0 %v45371_v47  ;;  %41267 = vmatprep.subr.bf16.mxu1 %v47343_v6 }
0x1999   :  { %41204 = vmatprep.subr.bf16.mxu0 %v47343_v6 }
0x199b   :  { %37982 = vmatmul.mubr.f32.vlgmr.msra.gmra.mrb[48].mxu0 %v47361_v39  ;;  %41269 = vmatpush3.bf16.msra.mxu1 %v45419_v24  ;;  %v33416_v39 = vld [vmem:[%s47248_s3 + $0x58] sm:$0xff] }
0x199c   :  { %41206 = vmatpush3.bf16.msra.mxu0 %v45448_v40  ;;  %41270 = vmatprep.subr.bf16.mxu1 %v47343_v6 }
0x199d   :  { %41207 = vmatprep.subr.bf16.mxu0 %v47343_v6  ;;  %37992 = vmatprep.mubr.msk.f32.mxu0 %vm43145_vm1, %v47342_v43 }
0x199e   :  { %38103 = vmatmul.mubr.f32.vlgmr.msra.gmra.mrb[48].mxu1 %v44036_v30  ;;  %v47395_v30 = vld [vmem:[#allocation26_spill] sm:$0xff] }
0x199f   :  { %41272 = vmatpush3.bf16.msra.mxu1 %v45354_v45  ;;  %38113 = vmatprep.mubr.msk.f32.mxu1 %vm43145_vm1, %v47342_v43 }
0x19a0   :  { %41209 = vmatpush3.bf16.msra.mxu0 %v45465_v17  ;;  %41273 = vmatprep.subr.bf16.mxu1 %v47343_v6 }
0x19a1   :  { %41210 = vmatprep.subr.bf16.mxu0 %v47343_v6 }
0x19a3   :  { %37993 = vmatmul.mubr.f32.vlgmr.msra.gmra.mrb[48].mxu0 %v43905_v16  ;;  %41275 = vmatpush3.bf16.msra.mxu1 %v45371_v47 }
0x19a4   :  { %41212 = vmatpush3.bf16.msra.mxu0 %v45354_v45  ;;  %41276 = vmatprep.subr.bf16.mxu1 %v47343_v6 }
0x19a5   :  { %41213 = vmatprep.subr.bf16.mxu0 %v47343_v6  ;;  %38003 = vmatprep.mubr.msk.f32.mxu0 %vm43145_vm1, %v47342_v43 }
0x19a6   :  { %38114 = vmatmul.mubr.f32.vlgmr.msra.gmra.mrb[48].mxu1 %v44044_v23  ;;  %v47396_v23 = vld [vmem:[#allocation21_spill] sm:$0xff] }
0x19a7   :  { %41278 = vmatpush3.bf16.msra.mxu1 %v45448_v40  ;;  %38124 = vmatprep.mubr.msk.f32.mxu1 %vm43145_vm1, %v47342_v43 }
0x19a8   :  { %41215 = vmatpush3.bf16.msra.mxu0 %v45371_v47  ;;  %41279 = vmatprep.subr.bf16.mxu1 %v47343_v6 }
0x19a9   :  { %41216 = vmatprep.subr.bf16.mxu0 %v47343_v6 }
0x19ab   :  { %38004 = vmatmul.mubr.f32.vlgmr.msra.gmra.mrb[48].mxu0 %v43905_v16  ;;  %41281 = vmatpush3.bf16.msra.mxu1 %v45465_v17  ;;  %v47392_v16 = vld [vmem:[#allocation28_spill] sm:$0xff] }
0x19ac   :  { %41218 = vmatpush3.bf16.msra.mxu0 %v45502_v36  ;;  %41282 = vmatprep.subr.bf16.mxu1 %v47343_v6 }
0x19ad   :  { %41219 = vmatprep.subr.bf16.mxu0 %v47343_v6  ;;  %38014 = vmatprep.mubr.msk.f32.mxu0 %vm43145_vm1, %v47342_v43 }
0x19ae   :  { %38125 = vmatmul.mubr.f32.vlgmr.msra.gmra.mrb[48].mxu1 %v44033_v22 }
0x19af   :  { %41284 = vmatpush3.bf16.msra.mxu1 %v45354_v45  ;;  %38135 = vmatprep.mubr.msk.f32.mxu1 %vm43145_vm1, %v47342_v43 }
0x19b0   :  { %41221 = vmatpush3.bf16.msra.mxu0 %v45519_v54  ;;  %41285 = vmatprep.subr.bf16.mxu1 %v47343_v6 }
0x19b1   :  { %41222 = vmatprep.subr.bf16.mxu0 %v47343_v6 }
0x19b3   :  { %38015 = vmatmul.mubr.f32.vlgmr.msra.gmra.mrb[48].mxu0 %v47362_v49  ;;  %41287 = vmatpush3.bf16.msra.mxu1 %v45371_v47  ;;  %v47410_v49 = vld [vmem:[#allocation10_spill] sm:$0xff] }
0x19b4   :  { %41224 = vmatpush3.bf16.msra.mxu0 %v45538_v60  ;;  %41288 = vmatprep.subr.bf16.mxu1 %v47343_v6 }
0x19b5   :  { %41225 = vmatprep.subr.bf16.mxu0 %v47343_v6  ;;  %38025 = vmatprep.mubr.msk.f32.mxu0 %vm43145_vm1, %v47342_v43 }
0x19b6   :  { %38136 = vmatmul.mubr.f32.vlgmr.msra.gmra.mrb[48].mxu1 %v44033_v22  ;;  %v47394_v22 = vld [vmem:[#allocation24_spill] sm:$0xff] }
0x19b7   :  { %41290 = vmatpush3.bf16.msra.mxu1 %v45502_v36  ;;  %38146 = vmatprep.mubr.msk.f32.mxu1 %vm43145_vm1, %v47342_v43 }
0x19b8   :  { %41227 = vmatpush3.bf16.msra.mxu0 %v45545_v32  ;;  %41291 = vmatprep.subr.bf16.mxu1 %v47343_v6 }
0x19b9   :  { %41228 = vmatprep.subr.bf16.mxu0 %v47343_v6 }
0x19bb   :  { %38026 = vmatmul.mubr.f32.vlgmr.msra.gmra.mrb[48].mxu0 %v47363_v12  ;;  %41293 = vmatpush3.bf16.msra.mxu1 %v45519_v54 }
0x19bc   :  { %41230 = vmatpush3.bf16.msra.mxu0 %v45558_v21  ;;  %41294 = vmatprep.subr.bf16.mxu1 %v47343_v6 }
0x19bd   :  { %41231 = vmatprep.subr.bf16.mxu0 %v47343_v6  ;;  %38036 = vmatprep.mubr.msk.f32.mxu0 %vm43145_vm1, %v47342_v43 }
0x19be   :  { %38147 = vmatmul.mubr.f32.vlgmr.msra.gmra.mrb[48].mxu1 %v44225_v9  ;;  %v47401_v9 = vld [vmem:[#allocation37_spill] sm:$0xff] }
0x19bf   :  { %41296 = vmatpush3.bf16.msra.mxu1 %v45538_v60  ;;  %38157 = vmatprep.mubr.msk.f32.mxu1 %vm43145_vm1, %v47342_v43 }
0x19c0   :  { %41233 = vmatpush3.bf16.msra.mxu0 %v45567_v26  ;;  %41297 = vmatprep.subr.bf16.mxu1 %v47343_v6 }
0x19c1   :  { %41234 = vmatprep.subr.bf16.mxu0 %v47343_v6 }
0x19c3   :  { %38037 = vmatmul.mubr.f32.vlgmr.msra.gmra.mrb[48].mxu0 %v47364_v46  ;;  %41299 = vmatpush3.bf16.msra.mxu1 %v45545_v32  ;;  %v25081_v46 = vand.u32 4294901760, %v33415_v63 }
0x19c4   :  { %41236 = vmatpush3.bf16.msra.mxu0 %v45502_v36  ;;  %41300 = vmatprep.subr.bf16.mxu1 %v47343_v6 }
0x19c5   :  { %41237 = vmatprep.subr.bf16.mxu0 %v47343_v6  ;;  %38047 = vmatprep.mubr.msk.f32.mxu0 %vm43145_vm1, %v47342_v43 }
0x19c6   :  { %38158 = vmatmul.mubr.f32.vlgmr.msra.gmra.mrb[48].mxu1 %v44208_v13 }
0x19c7   :  { %41302 = vmatpush3.bf16.msra.mxu1 %v45558_v21  ;;  %38168 = vmatprep.mubr.msk.f32.mxu1 %vm43145_vm1, %v47342_v43 }
0x19c8   :  { %41239 = vmatpush3.bf16.msra.mxu0 %v45519_v54  ;;  %41303 = vmatprep.subr.bf16.mxu1 %v47343_v6 }
0x19c9   :  { %41240 = vmatprep.subr.bf16.mxu0 %v47343_v6 }
0x19cb   :  { %38048 = vmatmul.mubr.f32.vlgmr.msra.gmra.mrb[48].mxu0 %v47365_v38  ;;  %41305 = vmatpush3.bf16.msra.mxu1 %v45567_v26  ;;  %v25084_v38 = vand.u32 4294901760, %v33416_v39 }
0x19cc   :  { %41242 = vmatpush3.bf16.msra.mxu0 %v45596_v35  ;;  %41306 = vmatprep.subr.bf16.mxu1 %v47343_v6 }
0x19cd   :  { %41243 = vmatprep.subr.bf16.mxu0 %v47343_v6  ;;  %38058 = vmatprep.mubr.msk.f32.mxu0 %vm43145_vm1, %v47342_v43  ;;  %v46195_v33 = vpack.c.bf16 %v25084_v38, %v25081_v46 }
0x19ce   :  { %38169 = vmatmul.mubr.f32.vlgmr.msra.gmra.mrb[48].mxu1 %v44212_v55  ;;  %v47399_v55 = vld [vmem:[#allocation23_spill] sm:$0xff] }
0x19cf   :  { %41308 = vmatpush3.bf16.msra.mxu1 %v45502_v36  ;;  %38179 = vmatprep.mubr.msk.f32.mxu1 %vm43145_vm1, %v47342_v43 }
0x19d0   :  { %41245 = vmatpush3.bf16.msra.mxu0 %v45607_v14  ;;  %41309 = vmatprep.subr.bf16.mxu1 %v47343_v6 }
0x19d1   :  { %41246 = vmatprep.subr.bf16.mxu0 %v47343_v6 }
0x19d3   :  { %38059 = vmatmul.mubr.f32.vlgmr.msra.gmra.mrb[48].mxu0 %v47363_v12  ;;  %41311 = vmatpush3.bf16.msra.mxu1 %v45519_v54 }
0x19d4   :  { %41248 = vmatpush3.bf16.msra.mxu0 %v45502_v36  ;;  %41312 = vmatprep.subr.bf16.mxu1 %v47343_v6 }
0x19d5   :  { %41249 = vmatprep.subr.bf16.mxu0 %v47343_v6  ;;  %38069 = vmatprep.mubr.msk.f32.mxu0 %vm43145_vm1, %v47342_v43 }
0x19d6   :  { %38180 = vmatmul.mubr.f32.vlgmr.msra.gmra.mrb[48].mxu1 %v44219_v48  ;;  %v47400_v48 = vld [vmem:[#allocation38_spill] sm:$0xff] }
0x19d7   :  { %41314 = vmatpush3.bf16.msra.mxu1 %v45596_v35  ;;  %38190 = vmatprep.mubr.msk.f32.mxu1 %vm43145_vm1, %v47342_v43 }
0x19d8   :  { %41251 = vmatpush3.bf16.msra.mxu0 %v45519_v54  ;;  %41315 = vmatprep.subr.bf16.mxu1 %v47343_v6 }
0x19d9   :  { %41324 = vmatprep.subr.bf16.mxu0 %v47343_v6 }
0x19db   :  { %38070 = vmatmul.mubr.f32.vlgmr.msra.gmra.mrb[48].mxu0 %v47363_v12  ;;  %41317 = vmatpush3.bf16.msra.mxu1 %v45607_v14 }
0x19dc   :  { %41326 = vmatpush3.bf16.msra.mxu0 %v45354_v45  ;;  %41318 = vmatprep.subr.bf16.mxu1 %v47343_v6 }
0x19dd   :  { %41327 = vmatprep.subr.bf16.mxu0 %v47343_v6  ;;  %38212 = vmatprep.mubr.msk.f32.mxu0 %vm43145_vm1, %v47342_v43 }
0x19de   :  { %38191 = vmatmul.mubr.f32.vlgmr.msra.gmra.mrb[48].mxu1 %v44208_v13 }
0x19df   :  { %41320 = vmatpush3.bf16.msra.mxu1 %v45502_v36  ;;  %38201 = vmatprep.mubr.msk.f32.mxu1 %vm43145_vm1, %v47342_v43 }
0x19e0   :  { %41329 = vmatpush3.bf16.msra.mxu0 %v45371_v47  ;;  %41321 = vmatprep.subr.bf16.mxu1 %v47343_v6 }
0x19e1   :  { %41330 = vmatprep.subr.bf16.mxu0 %v47343_v6 }
0x19e3   :  { %41323 = vmatpush3.bf16.msra.mxu1 %v45519_v54  ;;  %38213 = vmatmul.mubr.f32.vlgmr.msra.gmra.mrb[50].mxu0 %v47367_v10 }
0x19e4   :  { %41332 = vmatpush3.bf16.msra.mxu0 %v45390_v42  ;;  %41396 = vmatprep.subr.bf16.mxu1 %v47343_v6 }
0x19e5   :  { %41333 = vmatprep.subr.bf16.mxu0 %v47343_v6  ;;  %38223 = vmatprep.mubr.msk.f32.mxu0 %vm43145_vm1, %v47342_v43 }
0x19e6   :  { %38202 = vmatmul.mubr.f32.vlgmr.msra.gmra.mrb[48].mxu1 %v44208_v13  ;;  %v47398_v13 = vld [vmem:[#allocation22_spill] sm:$0xff] }
0x19e7   :  { %41398 = vmatpush3.bf16.msra.mxu1 %v45354_v45  ;;  %38344 = vmatprep.mubr.msk.f32.mxu1 %vm43145_vm1, %v47342_v43 }
0x19e8   :  { %41335 = vmatpush3.bf16.msra.mxu0 %v45397_v29  ;;  %41399 = vmatprep.subr.bf16.mxu1 %v47343_v6 }
0x19e9   :  { %41336 = vmatprep.subr.bf16.mxu0 %v47343_v6 }
0x19eb   :  { %38224 = vmatmul.mubr.f32.vlgmr.msra.gmra.mrb[50].mxu0 %v47368_v7  ;;  %41401 = vmatpush3.bf16.msra.mxu1 %v45371_v47 }
0x19ec   :  { %41338 = vmatpush3.bf16.msra.mxu0 %v45410_v2  ;;  %41402 = vmatprep.subr.bf16.mxu1 %v47343_v6 }
0x19ed   :  { %41339 = vmatprep.subr.bf16.mxu0 %v47343_v6  ;;  %38234 = vmatprep.mubr.msk.f32.mxu0 %vm43145_vm1, %v47342_v43 }
0x19ee   :  { %38345 = vmatmul.mubr.f32.vlgmr.msra.gmra.mrb[50].mxu1 %v44299_v20  ;;  %v47407_v20 = vld [vmem:[#allocation16_spill] sm:$0xff] }
0x19ef   :  { %41404 = vmatpush3.bf16.msra.mxu1 %v45390_v42  ;;  %38355 = vmatprep.mubr.msk.f32.mxu1 %vm43145_vm1, %v47342_v43 }
0x19f0   :  { %41341 = vmatpush3.bf16.msra.mxu0 %v45419_v24  ;;  %41405 = vmatprep.subr.bf16.mxu1 %v47343_v6 }
0x19f1   :  { %41342 = vmatprep.subr.bf16.mxu0 %v47343_v6 }
0x19f3   :  { %38235 = vmatmul.mubr.f32.vlgmr.msra.gmra.mrb[50].mxu0 %v47369_v52  ;;  %41407 = vmatpush3.bf16.msra.mxu1 %v45397_v29 }
0x19f4   :  { %41344 = vmatpush3.bf16.msra.mxu0 %v45354_v45  ;;  %41408 = vmatprep.subr.bf16.mxu1 %v47343_v6 }
0x19f5   :  { %41345 = vmatprep.subr.bf16.mxu0 %v47343_v6  ;;  %38245 = vmatprep.mubr.msk.f32.mxu0 %vm43145_vm1, %v47342_v43 }
0x19f6   :  { %38356 = vmatmul.mubr.f32.vlgmr.msra.gmra.mrb[50].mxu1 %v44289_v8 }
0x19f7   :  { %41410 = vmatpush3.bf16.msra.mxu1 %v45410_v2  ;;  %38366 = vmatprep.mubr.msk.f32.mxu1 %vm43145_vm1, %v47342_v43 }
0x19f8   :  { %41347 = vmatpush3.bf16.msra.mxu0 %v45371_v47  ;;  %41411 = vmatprep.subr.bf16.mxu1 %v47343_v6 }
0x19f9   :  { %41348 = vmatprep.subr.bf16.mxu0 %v47343_v6 }
0x19fb   :  { %38246 = vmatmul.mubr.f32.vlgmr.msra.gmra.mrb[50].mxu0 %v47370_v18  ;;  %41413 = vmatpush3.bf16.msra.mxu1 %v45419_v24 }
0x19fc   :  { %41350 = vmatpush3.bf16.msra.mxu0 %v45448_v40  ;;  %41414 = vmatprep.subr.bf16.mxu1 %v47343_v6 }
0x19fd   :  { %41351 = vmatprep.subr.bf16.mxu0 %v47343_v6  ;;  %38256 = vmatprep.mubr.msk.f32.mxu0 %vm43145_vm1, %v47342_v43 }
0x19fe   :  { %38367 = vmatmul.mubr.f32.vlgmr.msra.gmra.mrb[50].mxu1 %v44292_v25  ;;  %v47403_v25 = vld [vmem:[#allocation36_spill] sm:$0xff] }
0x19ff   :  { %41416 = vmatpush3.bf16.msra.mxu1 %v45354_v45  ;;  %38377 = vmatprep.mubr.msk.f32.mxu1 %vm43145_vm1, %v47342_v43 }
0x1a00   :  { %41353 = vmatpush3.bf16.msra.mxu0 %v45465_v17  ;;  %41417 = vmatprep.subr.bf16.mxu1 %v47343_v6 }
0x1a01   :  { %41354 = vmatprep.subr.bf16.mxu0 %v47343_v6 }
0x1a03   :  { %38257 = vmatmul.mubr.f32.vlgmr.msra.gmra.mrb[50].mxu0 %v47368_v7  ;;  %41419 = vmatpush3.bf16.msra.mxu1 %v45371_v47 }
0x1a04   :  { %41356 = vmatpush3.bf16.msra.mxu0 %v45354_v45  ;;  %41420 = vmatprep.subr.bf16.mxu1 %v47343_v6 }
0x1a05   :  { %41357 = vmatprep.subr.bf16.mxu0 %v47343_v6  ;;  %38267 = vmatprep.mubr.msk.f32.mxu0 %vm43145_vm1, %v47342_v43 }
0x1a06   :  { %38378 = vmatmul.mubr.f32.vlgmr.msra.gmra.mrb[50].mxu1 %v44295_v59  ;;  %v47404_v59 = vld [vmem:[#allocation18_spill] sm:$0xff] }
0x1a07   :  { %41422 = vmatpush3.bf16.msra.mxu1 %v45448_v40  ;;  %38388 = vmatprep.mubr.msk.f32.mxu1 %vm43145_vm1, %v47342_v43 }
0x1a08   :  { %41359 = vmatpush3.bf16.msra.mxu0 %v45371_v47  ;;  %41423 = vmatprep.subr.bf16.mxu1 %v47343_v6 }
0x1a09   :  { %41360 = vmatprep.subr.bf16.mxu0 %v47343_v6 }
0x1a0b   :  { %38268 = vmatmul.mubr.f32.vlgmr.msra.gmra.mrb[50].mxu0 %v47368_v7  ;;  %41425 = vmatpush3.bf16.msra.mxu1 %v45465_v17  ;;  %v46142_v7 = vsub.f32 %v33414_v53, %v25078_v1 }
0x1a0c   :  { %41362 = vmatpush3.bf16.msra.mxu0 %v45502_v36  ;;  %41426 = vmatprep.subr.bf16.mxu1 %v47343_v6 }
0x1a0d   :  { %41363 = vmatprep.subr.bf16.mxu0 %v47343_v6  ;;  %38278 = vmatprep.mubr.msk.f32.mxu0 %vm43145_vm1, %v47342_v43 }
0x1a0e   :  { %38389 = vmatmul.mubr.f32.vlgmr.msra.gmra.mrb[50].mxu1 %v44289_v8 }
0x1a0f   :  { %41428 = vmatpush3.bf16.msra.mxu1 %v45354_v45  ;;  %38399 = vmatprep.mubr.msk.f32.mxu1 %vm43145_vm1, %v47342_v43 }
0x1a10   :  { %41365 = vmatpush3.bf16.msra.mxu0 %v45519_v54  ;;  %41429 = vmatprep.subr.bf16.mxu1 %v47343_v6 }
0x1a11   :  { %41366 = vmatprep.subr.bf16.mxu0 %v47343_v6 }
0x1a13   :  { %38279 = vmatmul.mubr.f32.vlgmr.msra.gmra.mrb[50].mxu0 %v47392_v16  ;;  %41431 = vmatpush3.bf16.msra.mxu1 %v45371_v47 }
0x1a14   :  { %41368 = vmatpush3.bf16.msra.mxu0 %v45538_v60  ;;  %41432 = vmatprep.subr.bf16.mxu1 %v47343_v6 }
0x1a15   :  { %41369 = vmatprep.subr.bf16.mxu0 %v47343_v6  ;;  %38289 = vmatprep.mubr.msk.f32.mxu0 %vm43145_vm1, %v47342_v43 }
0x1a16   :  { %38400 = vmatmul.mubr.f32.vlgmr.msra.gmra.mrb[50].mxu1 %v44289_v8  ;;  %v47402_v8 = vld [vmem:[#allocation20_spill] sm:$0xff] }
0x1a17   :  { %41434 = vmatpush3.bf16.msra.mxu1 %v45502_v36  ;;  %38410 = vmatprep.mubr.msk.f32.mxu1 %vm43145_vm1, %v47342_v43 }
0x1a18   :  { %41371 = vmatpush3.bf16.msra.mxu0 %v45545_v32  ;;  %41435 = vmatprep.subr.bf16.mxu1 %v47343_v6 }
0x1a19   :  { %41372 = vmatprep.subr.bf16.mxu0 %v47343_v6 }
0x1a1b   :  { %38290 = vmatmul.mubr.f32.vlgmr.msra.gmra.mrb[50].mxu0 %v47393_v50  ;;  %41437 = vmatpush3.bf16.msra.mxu1 %v45519_v54 }
0x1a1c   :  { %41374 = vmatpush3.bf16.msra.mxu0 %v45558_v21  ;;  %41438 = vmatprep.subr.bf16.mxu1 %v47343_v6 }
0x1a1d   :  { %41375 = vmatprep.subr.bf16.mxu0 %v47343_v6  ;;  %38300 = vmatprep.mubr.msk.f32.mxu0 %vm43145_vm1, %v47342_v43 }
0x1a1e   :  { %38411 = vmatmul.mubr.f32.vlgmr.msra.gmra.mrb[50].mxu1 %v47394_v22 }
0x1a1f   :  { %41440 = vmatpush3.bf16.msra.mxu1 %v45538_v60  ;;  %38421 = vmatprep.mubr.msk.f32.mxu1 %vm43145_vm1, %v47342_v43 }
0x1a20   :  { %41377 = vmatpush3.bf16.msra.mxu0 %v45567_v26  ;;  %41441 = vmatprep.subr.bf16.mxu1 %v47343_v6 }
0x1a21   :  { %41378 = vmatprep.subr.bf16.mxu0 %v47343_v6 }
0x1a23   :  { %38301 = vmatmul.mubr.f32.vlgmr.msra.gmra.mrb[50].mxu0 %v47395_v30  ;;  %41443 = vmatpush3.bf16.msra.mxu1 %v45545_v32 }
0x1a24   :  { %41380 = vmatpush3.bf16.msra.mxu0 %v45502_v36  ;;  %41444 = vmatprep.subr.bf16.mxu1 %v47343_v6 }
0x1a25   :  { %41381 = vmatprep.subr.bf16.mxu0 %v47343_v6  ;;  %38311 = vmatprep.mubr.msk.f32.mxu0 %vm43145_vm1, %v47342_v43 }
0x1a26   :  { %38422 = vmatmul.mubr.f32.vlgmr.msra.gmra.mrb[50].mxu1 %v47396_v23 }
0x1a27   :  { %41446 = vmatpush3.bf16.msra.mxu1 %v45558_v21  ;;  %38432 = vmatprep.mubr.msk.f32.mxu1 %vm43145_vm1, %v47342_v43 }
0x1a28   :  { %41383 = vmatpush3.bf16.msra.mxu0 %v45519_v54  ;;  %41447 = vmatprep.subr.bf16.mxu1 %v47343_v6 }
0x1a29   :  { %41384 = vmatprep.subr.bf16.mxu0 %v47343_v6 }
0x1a2b   :  { %38312 = vmatmul.mubr.f32.vlgmr.msra.gmra.mrb[50].mxu0 %v47397_v58  ;;  %41449 = vmatpush3.bf16.msra.mxu1 %v45567_v26 }
0x1a2c   :  { %41386 = vmatpush3.bf16.msra.mxu0 %v45596_v35  ;;  %41450 = vmatprep.subr.bf16.mxu1 %v47343_v6 }
0x1a2d   :  { %41387 = vmatprep.subr.bf16.mxu0 %v47343_v6  ;;  %38322 = vmatprep.mubr.msk.f32.mxu0 %vm43145_vm1, %v47342_v43 }
0x1a2e   :  { %38433 = vmatmul.mubr.f32.vlgmr.msra.gmra.mrb[50].mxu1 %v47398_v13 }
0x1a2f   :  { %41452 = vmatpush3.bf16.msra.mxu1 %v45502_v36  ;;  %38443 = vmatprep.mubr.msk.f32.mxu1 %vm43145_vm1, %v47342_v43 }
0x1a30   :  { %41389 = vmatpush3.bf16.msra.mxu0 %v45607_v14  ;;  %41453 = vmatprep.subr.bf16.mxu1 %v47343_v6 }
0x1a31   :  { %41390 = vmatprep.subr.bf16.mxu0 %v47343_v6 }
0x1a33   :  { %38323 = vmatmul.mubr.f32.vlgmr.msra.gmra.mrb[50].mxu0 %v47393_v50  ;;  %41455 = vmatpush3.bf16.msra.mxu1 %v45519_v54 }
0x1a34   :  { %41392 = vmatpush3.bf16.msra.mxu0 %v45502_v36  ;;  %41456 = vmatprep.subr.bf16.mxu1 %v47343_v6 }
0x1a35   :  { %41393 = vmatprep.subr.bf16.mxu0 %v47343_v6  ;;  %38333 = vmatprep.mubr.msk.f32.mxu0 %vm43145_vm1, %v47342_v43 }
0x1a36   :  { %38444 = vmatmul.mubr.f32.vlgmr.msra.gmra.mrb[50].mxu1 %v47399_v55 }
0x1a37   :  { %41458 = vmatpush3.bf16.msra.mxu1 %v45596_v35  ;;  %38454 = vmatprep.mubr.msk.f32.mxu1 %vm43145_vm1, %v47342_v43 }
0x1a38   :  { %41395 = vmatpush3.bf16.msra.mxu0 %v45519_v54  ;;  %41459 = vmatprep.subr.bf16.mxu1 %v47343_v6 }
0x1a39   :  { %41468 = vmatprep.subr.bf16.mxu0 %v47343_v6 }
0x1a3b   :  { %38334 = vmatmul.mubr.f32.vlgmr.msra.gmra.mrb[50].mxu0 %v47393_v50  ;;  %41461 = vmatpush3.bf16.msra.mxu1 %v45607_v14 }
0x1a3c   :  { %41470 = vmatpush3.bf16.msra.mxu0 %v45354_v45  ;;  %41462 = vmatprep.subr.bf16.mxu1 %v47343_v6 }
0x1a3d   :  { %41471 = vmatprep.subr.bf16.mxu0 %v47343_v6  ;;  %38476 = vmatprep.mubr.msk.f32.mxu0 %vm43145_vm1, %v47342_v43 }
0x1a3e   :  { %38455 = vmatmul.mubr.f32.vlgmr.msra.gmra.mrb[50].mxu1 %v47396_v23 }
0x1a3f   :  { %41464 = vmatpush3.bf16.msra.mxu1 %v45502_v36  ;;  %38465 = vmatprep.mubr.msk.f32.mxu1 %vm43145_vm1, %v47342_v43 }
0x1a40   :  { %41473 = vmatpush3.bf16.msra.mxu0 %v45371_v47  ;;  %41465 = vmatprep.subr.bf16.mxu1 %v47343_v6 }
0x1a41   :  { %41474 = vmatprep.subr.bf16.mxu0 %v47343_v6 }
0x1a43   :  { %41467 = vmatpush3.bf16.msra.mxu1 %v45519_v54  ;;  %38477 = vmatmul.mubr.f32.vlgmr.msra.gmra.mrb[52].mxu0 %v47400_v48  ;;  %v46230_v48 = vsub.f32 %v33420_v19, %v25604_v62 }
0x1a44   :  { %41476 = vmatpush3.bf16.msra.mxu0 %v45390_v42  ;;  %41540 = vmatprep.subr.bf16.mxu1 %v47343_v6 }
0x1a45   :  { %41477 = vmatprep.subr.bf16.mxu0 %v47343_v6  ;;  %38487 = vmatprep.mubr.msk.f32.mxu0 %vm43145_vm1, %v47342_v43 }
0x1a46   :  { %38466 = vmatmul.mubr.f32.vlgmr.msra.gmra.mrb[50].mxu1 %v47396_v23 }
0x1a47   :  { %41542 = vmatpush3.bf16.msra.mxu1 %v45354_v45  ;;  %38608 = vmatprep.mubr.msk.f32.mxu1 %vm43145_vm1, %v47342_v43 }
0x1a48   :  { %41479 = vmatpush3.bf16.msra.mxu0 %v45397_v29  ;;  %41543 = vmatprep.subr.bf16.mxu1 %v47343_v6 }
0x1a49   :  { %41480 = vmatprep.subr.bf16.mxu0 %v47343_v6 }
0x1a4b   :  { %38488 = vmatmul.mubr.f32.vlgmr.msra.gmra.mrb[52].mxu0 %v44417_v41  ;;  %41545 = vmatpush3.bf16.msra.mxu1 %v45371_v47 }
0x1a4c   :  { %41482 = vmatpush3.bf16.msra.mxu0 %v45410_v2  ;;  %41546 = vmatprep.subr.bf16.mxu1 %v47343_v6 }
0x1a4d   :  { %41483 = vmatprep.subr.bf16.mxu0 %v47343_v6  ;;  %38498 = vmatprep.mubr.msk.f32.mxu0 %vm43145_vm1, %v47342_v43 }
0x1a4e   :  { %38609 = vmatmul.mubr.f32.vlgmr.msra.gmra.mrb[52].mxu1 %v45199_v11  ;;  %v33413_v11 = vld [vmem:[%s47248_s3 + $0x40] sm:$0xff] }
0x1a4f   :  { %41548 = vmatpush3.bf16.msra.mxu1 %v45390_v42  ;;  %38619 = vmatprep.mubr.msk.f32.mxu1 %vm43145_vm1, %v47342_v43  ;;  %v25075_v44 = vand.u32 4294901760, %v33413_v11  ;;  %v33417_v42 = vld [vmem:[%s47248_s3 + $0x60] sm:$0xff] }
0x1a50   :  { %41485 = vmatpush3.bf16.msra.mxu0 %v45419_v24  ;;  %41549 = vmatprep.subr.bf16.mxu1 %v47343_v6  ;;  %v25595_v61 = vand.u32 4294901760, %v33417_v42 }
0x1a51   :  { %41486 = vmatprep.subr.bf16.mxu0 %v47343_v6  ;;  %v46140_v10 = vsub.f32 %v33413_v11, %v25075_v44  ;;  %v46173_v37 = vpack.c.bf16 %v25078_v1, %v25075_v44 }
0x1a52   :  { %v46204_v34 = vsub.f32 %v33417_v42, %v25595_v61 }
0x1a53   :  { %38499 = vmatmul.mubr.f32.vlgmr.msra.gmra.mrb[52].mxu0 %v44420_v3  ;;  %41551 = vmatpush3.bf16.msra.mxu1 %v45397_v29  ;;  %v33421_v3 = vld [vmem:[%s47250_s5 + $0x4] sm:$0x3]  ;;  %v25156_v18 = vand.u32 4294901760, %v46140_v10  ;;  %v33418_v29 = vld [vmem:[%s47248_s3 + $0x68] sm:$0xff]  ;;  %v46275_v1 = vpack.c.bf16 %v46142_v7, %v46140_v10 }
0x1a54   :  { %41488 = vmatpush3.bf16.msra.mxu0 %v45354_v45  ;;  %41552 = vmatprep.subr.bf16.mxu1 %v47343_v6  ;;  %v25072_v15 = vsel %vm44_vm0, %v33421_v3, 0  ;;  %v25598_v31 = vand.u32 4294901760, %v33418_v29  ;;  %v25676_v58 = vand.u32 4294901760, %v46204_v34  ;;  %v25697_v3 = vand.u32 4294901760, %v46230_v48 }
0x1a55   :  { %41489 = vmatprep.subr.bf16.mxu0 %v47343_v6  ;;  %38509 = vmatprep.mubr.msk.f32.mxu0 %vm43145_vm1, %v47342_v43  ;;  %v46133_v12 = vand.u32 4294901760, %v25072_v15  ;;  %v25157_v4 = vsub.f32 %v46140_v10, %v25156_v18 }
0x1a56   :  { %38620 = vmatmul.mubr.f32.vlgmr.msra.gmra.mrb[52].mxu1 %v45181_v51 }
0x1a57   :  { %41554 = vmatpush3.bf16.msra.mxu1 %v45410_v2  ;;  %38630 = vmatprep.mubr.msk.f32.mxu1 %vm43145_vm1, %v47342_v43  ;;  %v46146_v52 = vsub.f32 %v25072_v15, %v46133_v12  ;;  %v46160_v2 = vsub.f32 %v33415_v63, %v25081_v46  ;;  %v25158_v16 = vand.u32 4294901760, %v25157_v4  ;;  %v33423_v4 = vld [vmem:[%s47251_s6 + $0x4] sm:$0x3] }
0x1a58   :  { %41491 = vmatpush3.bf16.msra.mxu0 %v45371_v47  ;;  %41555 = vmatprep.subr.bf16.mxu1 %v47343_v6 }
0x1a59   :  { %41492 = vmatprep.subr.bf16.mxu0 %v47343_v6  ;;  %v25145_v0 = vand.u32 4294901760, %v46146_v52  ;;  %v25170_v28 = vand.u32 4294901760, %v46160_v2 }
0x1a5b   :  { %38510 = vmatmul.mubr.f32.vlgmr.msra.gmra.mrb[52].mxu0 %v47401_v9  ;;  %41557 = vmatpush3.bf16.msra.mxu1 %v45419_v24  ;;  %v46162_v24 = vsub.f32 %v33416_v39, %v25084_v38  ;;  %v25171_v22 = vsub.f32 %v46160_v2, %v25170_v28 }
0x1a5c   :  { %41494 = vmatpush3.bf16.msra.mxu0 %v45448_v40  ;;  %41558 = vmatprep.subr.bf16.mxu1 %v47343_v6 }
0x1a5d   :  { %41495 = vmatprep.subr.bf16.mxu0 %v47343_v6  ;;  %38520 = vmatprep.mubr.msk.f32.mxu0 %vm43145_vm1, %v47342_v43  ;;  %v25177_v57 = vand.u32 4294901760, %v46162_v24  ;;  %v46286_v38 = vpack.c.bf16 %v46162_v24, %v46160_v2 }
0x1a5e   :  { %38631 = vmatmul.mubr.f32.vlgmr.msra.gmra.mrb[52].mxu1 %v47402_v8  ;;  %v25172_v8 = vand.u32 4294901760, %v25171_v22 }
0x1a5f   :  { %41560 = vmatpush3.bf16.msra.mxu1 %v45354_v45  ;;  %38641 = vmatprep.mubr.msk.f32.mxu1 %vm43145_vm1, %v47342_v43  ;;  %v46336_v10 = vpack.c.bf16 %v25177_v57, %v25170_v28  ;;  %v33424_v28 = vld [vmem:[%s47251_s6 + $0x6] sm:$0x3] }
0x1a60   :  { %41497 = vmatpush3.bf16.msra.mxu0 %v45465_v17  ;;  %41561 = vmatprep.subr.bf16.mxu1 %v47343_v6 }
0x1a61   :  { %41498 = vmatprep.subr.bf16.mxu0 %v47343_v6 }
0x1a63   :  { %38521 = vmatmul.mubr.f32.vlgmr.msra.gmra.mrb[52].mxu0 %v44417_v41  ;;  %41563 = vmatpush3.bf16.msra.mxu1 %v45371_v47 }
0x1a64   :  { %41500 = vmatpush3.bf16.msra.mxu0 %v45354_v45  ;;  %41564 = vmatprep.subr.bf16.mxu1 %v47343_v6 }
0x1a65   :  { %41501 = vmatprep.subr.bf16.mxu0 %v47343_v6  ;;  %38531 = vmatprep.mubr.msk.f32.mxu0 %vm43145_vm1, %v47342_v43 }
0x1a66   :  { %38642 = vmatmul.mubr.f32.vlgmr.msra.gmra.mrb[52].mxu1 %v47403_v25 }
0x1a67   :  { %41566 = vmatpush3.bf16.msra.mxu1 %v45448_v40  ;;  %38652 = vmatprep.mubr.msk.f32.mxu1 %vm43145_vm1, %v47342_v43  ;;  %v33422_v40 = vld [vmem:[%s47250_s5 + $0x6] sm:$0x3] }
0x1a68   :  { %41503 = vmatpush3.bf16.msra.mxu0 %v45371_v47  ;;  %41567 = vmatprep.subr.bf16.mxu1 %v47343_v6  ;;  %v25592_v27 = vsel %vm44_vm0, %v33422_v40, 0 }
0x1a69   :  { %41504 = vmatprep.subr.bf16.mxu0 %v47343_v6 }
0x1a6b   :  { %38532 = vmatmul.mubr.f32.vlgmr.msra.gmra.mrb[52].mxu0 %v44417_v41  ;;  %41569 = vmatpush3.bf16.msra.mxu1 %v45465_v17  ;;  %v47408_v41 = vld [vmem:[#allocation9_spill] sm:$0xff]  ;;  %v47411_v17 = vld [vmem:[#allocation11_spill] sm:$0xff] }
0x1a6c   :  { %41506 = vmatpush3.bf16.msra.mxu0 %v45502_v36  ;;  %41570 = vmatprep.subr.bf16.mxu1 %v47343_v6 }
0x1a6d   :  { %41507 = vmatprep.subr.bf16.mxu0 %v47343_v6  ;;  %38542 = vmatprep.mubr.msk.f32.mxu0 %vm43145_vm1, %v47342_v43 }
0x1a6e   :  { %38653 = vmatmul.mubr.f32.vlgmr.msra.gmra.mrb[52].mxu1 %v45181_v51 }
0x1a6f   :  { %41572 = vmatpush3.bf16.msra.mxu1 %v45354_v45  ;;  %38663 = vmatprep.mubr.msk.f32.mxu1 %vm43145_vm1, %v47342_v43  ;;  %v47405_v45 = vld [vmem:[#allocation15_spill] sm:$0xff] }
0x1a70   :  { %41509 = vmatpush3.bf16.msra.mxu0 %v45519_v54  ;;  %41573 = vmatprep.subr.bf16.mxu1 %v47343_v6 }
0x1a71   :  { %41510 = vmatprep.subr.bf16.mxu0 %v47343_v6 }
0x1a73   :  { %38543 = vmatmul.mubr.f32.vlgmr.msra.gmra.mrb[52].mxu0 %v47404_v59  ;;  %41575 = vmatpush3.bf16.msra.mxu1 %v45371_v47  ;;  %v25163_v47 = vand.u32 4294901760, %v46142_v7 }
0x1a74   :  { %41512 = vmatpush3.bf16.msra.mxu0 %v45538_v60  ;;  %41576 = vmatprep.subr.bf16.mxu1 %v47343_v6 }
0x1a75   :  { %41513 = vmatprep.subr.bf16.mxu0 %v47343_v6  ;;  %38553 = vmatprep.mubr.msk.f32.mxu0 %vm43145_vm1, %v47342_v43  ;;  %v25164_v5 = vsub.f32 %v46142_v7, %v25163_v47 }
0x1a76   :  { %38664 = vmatmul.mubr.f32.vlgmr.msra.gmra.mrb[52].mxu1 %v45181_v51  ;;  %v47406_v51 = vld [vmem:[#allocation12_spill] sm:$0xff] }
0x1a77   :  { %41578 = vmatpush3.bf16.msra.mxu1 %v45502_v36  ;;  %38674 = vmatprep.mubr.msk.f32.mxu1 %vm43145_vm1, %v47342_v43  ;;  %v25165_v50 = vand.u32 4294901760, %v25164_v5 }
0x1a78   :  { %41515 = vmatpush3.bf16.msra.mxu0 %v45545_v32  ;;  %41579 = vmatprep.subr.bf16.mxu1 %v47343_v6 }
0x1a79   :  { %41516 = vmatprep.subr.bf16.mxu0 %v47343_v6  ;;  %v46234_v9 = vpack.c.bf16 %v25165_v50, %v25158_v16 }
0x1a7b   :  { %38554 = vmatmul.mubr.f32.vlgmr.msra.gmra.mrb[52].mxu0 %v47405_v45  ;;  %41581 = vmatpush3.bf16.msra.mxu1 %v45519_v54 }
0x1a7c   :  { %41518 = vmatpush3.bf16.msra.mxu0 %v45558_v21  ;;  %41582 = vmatprep.subr.bf16.mxu1 %v47343_v6 }
0x1a7d   :  { %41519 = vmatprep.subr.bf16.mxu0 %v47343_v6  ;;  %38564 = vmatprep.mubr.msk.f32.mxu0 %vm43145_vm1, %v47342_v43 }
0x1a7e   :  { %38675 = vmatmul.mubr.f32.vlgmr.msra.gmra.mrb[52].mxu1 %v47406_v51 }
0x1a7f   :  { %41584 = vmatpush3.bf16.msra.mxu1 %v45538_v60  ;;  %38685 = vmatprep.mubr.msk.f32.mxu1 %vm43145_vm1, %v47342_v43  ;;  %v33419_v60 = vld [vmem:[%s47248_s3 + $0x70] sm:$0xff] }
0x1a80   :  { %41521 = vmatpush3.bf16.msra.mxu0 %v45567_v26  ;;  %41585 = vmatprep.subr.bf16.mxu1 %v47343_v6 }
0x1a81   :  { %41522 = vmatprep.subr.bf16.mxu0 %v47343_v6 }
0x1a83   :  { %38565 = vmatmul.mubr.f32.vlgmr.msra.gmra.mrb[52].mxu0 %v47407_v20  ;;  %41587 = vmatpush3.bf16.msra.mxu1 %v45545_v32  ;;  %v25146_v32 = vsub.f32 %v46146_v52, %v25145_v0 }
0x1a84   :  { %41524 = vmatpush3.bf16.msra.mxu0 %v45502_v36  ;;  %41588 = vmatprep.subr.bf16.mxu1 %v47343_v6 }
0x1a85   :  { %41525 = vmatprep.subr.bf16.mxu0 %v47343_v6  ;;  %38575 = vmatprep.mubr.msk.f32.mxu0 %vm43145_vm1, %v47342_v43  ;;  %v25147_v30 = vand.u32 4294901760, %v25146_v32 }
0x1a86   :  { %38686 = vmatmul.mubr.f32.vlgmr.msra.gmra.mrb[52].mxu1 %v47408_v41 }
0x1a87   :  { %41590 = vmatpush3.bf16.msra.mxu1 %v45558_v21  ;;  %38696 = vmatprep.mubr.msk.f32.mxu1 %vm43145_vm1, %v47342_v43  ;;  %v46200_v21 = vand.u32 4294901760, %v25592_v27 }
0x1a88   :  { %41527 = vmatpush3.bf16.msra.mxu0 %v45519_v54  ;;  %41591 = vmatprep.subr.bf16.mxu1 %v47343_v6 }
0x1a89   :  { %41528 = vmatprep.subr.bf16.mxu0 %v47343_v6  ;;  %v46221_v23 = vsub.f32 %v25592_v27, %v46200_v21 }
0x1a8b   :  { %38576 = vmatmul.mubr.f32.vlgmr.msra.gmra.mrb[52].mxu0 %v47409_v56  ;;  %41593 = vmatpush3.bf16.msra.mxu1 %v45567_v26  ;;  %v25601_v26 = vand.u32 4294901760, %v33419_v60  ;;  %v25665_v59 = vand.u32 4294901760, %v46221_v23 }
0x1a8c   :  { %41530 = vmatpush3.bf16.msra.mxu0 %v45596_v35  ;;  %41594 = vmatprep.subr.bf16.mxu1 %v47343_v6 }
0x1a8d   :  { %41531 = vmatprep.subr.bf16.mxu0 %v47343_v6  ;;  %38586 = vmatprep.mubr.msk.f32.mxu0 %vm43145_vm1, %v47342_v43  ;;  %v46228_v55 = vsub.f32 %v33419_v60, %v25601_v26  ;;  %v25666_v53 = vsub.f32 %v46221_v23, %v25665_v59 }
0x1a8e   :  { %38697 = vmatmul.mubr.f32.vlgmr.msra.gmra.mrb[52].mxu1 %v47410_v49 }
0x1a8f   :  { %41596 = vmatpush3.bf16.msra.mxu1 %v45502_v36  ;;  %38707 = vmatprep.mubr.msk.f32.mxu1 %vm43145_vm1, %v47342_v43  ;;  %v25690_v20 = vand.u32 4294901760, %v46228_v55  ;;  %v25667_v63 = vand.u32 4294901760, %v25666_v53  ;;  %v46314_v40 = vpack.c.bf16 %v46230_v48, %v46228_v55 }
0x1a90   :  { %41533 = vmatpush3.bf16.msra.mxu0 %v45607_v14  ;;  %41597 = vmatprep.subr.bf16.mxu1 %v47343_v6 }
0x1a91   :  { %41534 = vmatprep.subr.bf16.mxu0 %v47343_v6  ;;  %v25691_v44 = vsub.f32 %v46228_v55, %v25690_v20 }
0x1a93   :  { %38587 = vmatmul.mubr.f32.vlgmr.msra.gmra.mrb[52].mxu0 %v47405_v45  ;;  %41599 = vmatpush3.bf16.msra.mxu1 %v45519_v54  ;;  %v25692_v49 = vand.u32 4294901760, %v25691_v44 }
0x1a94   :  { %41536 = vmatpush3.bf16.msra.mxu0 %v45502_v36  ;;  %41600 = vmatprep.subr.bf16.mxu1 %v47343_v6 }
0x1a95   :  { %41537 = vmatprep.subr.bf16.mxu0 %v47343_v6  ;;  %38597 = vmatprep.mubr.msk.f32.mxu0 %vm43145_vm1, %v47342_v43 }
0x1a96   :  { %38708 = vmatmul.mubr.f32.vlgmr.msra.gmra.mrb[52].mxu1 %v47411_v17  ;;  %v46324_v17 = vpack.c.bf16 %v25163_v47, %v25156_v18 }
0x1a97   :  { %41602 = vmatpush3.bf16.msra.mxu1 %v45596_v35  ;;  %38718 = vmatprep.mubr.msk.f32.mxu1 %vm43145_vm1, %v47342_v43  ;;  %v46206_v35 = vsub.f32 %v33418_v29, %v25598_v31 }
0x1a98   :  { %41539 = vmatpush3.bf16.msra.mxu0 %v45519_v54  ;;  %41603 = vmatprep.subr.bf16.mxu1 %v47343_v6 }
0x1a99   :  { %41612 = vmatprep.subr.bf16.mxu0 %v47343_v6  ;;  %v25683_v13 = vand.u32 4294901760, %v46206_v35  ;;  %v46303_v29 = vpack.c.bf16 %v46206_v35, %v46204_v34 }
0x1a9b   :  { %38598 = vmatmul.mubr.f32.vlgmr.msra.gmra.mrb[52].mxu0 %v47405_v45  ;;  %41605 = vmatpush3.bf16.msra.mxu1 %v45607_v14  ;;  %v25178_v14 = vsub.f32 %v46162_v24, %v25177_v57  ;;  %v25677_v45 = vsub.f32 %v46204_v34, %v25676_v58  ;;  %v25684_v51 = vsub.f32 %v46206_v35, %v25683_v13  ;;  %v46407_v24 = vld [vmem:[%s47249_s4 + $0x3] ss:$0 sm:$0xff] }
0x1a9c   :  { %41614 = vmatpush3.bf16.msra.mxu0 %v46173_v37  ;;  %41606 = vmatprep.subr.bf16.mxu1 %v47343_v6  ;;  %v46354_v7 = vpack.c.bf16 %v25683_v13, %v25676_v58 }
0x1a9d   :  { %41615 = vmatprep.subr.bf16.mxu0 %v47343_v6  ;;  %38740 = vmatprep.mubr.msk.f32.mxu0 %vm43145_vm1, %v47342_v43  ;;  %v25179_v25 = vand.u32 4294901760, %v25178_v14  ;;  %v25678_v56 = vand.u32 4294901760, %v25677_v45  ;;  %v25685_v15 = vand.u32 4294901760, %v25684_v51 }
0x1a9e   :  { %38719 = vmatmul.mubr.f32.vlgmr.msra.gmra.mrb[52].mxu1 %v47408_v41 }
0x1a9f   :  { %41608 = vmatpush3.bf16.msra.mxu1 %v45502_v36  ;;  %38729 = vmatprep.mubr.msk.f32.mxu1 %vm43145_vm1, %v47342_v43  ;;  %v46237_v36 = vpack.c.bf16 %v25598_v31, %v25595_v61  ;;  %v46251_v11 = vpack.c.bf16 %v25179_v25, %v25172_v8  ;;  %v46280_v39 = vpack.c.bf16 %v25685_v15, %v25678_v56 }
0x1aa0   :  { %41617 = vmatpush3.bf16.msra.mxu0 %v46195_v33  ;;  %41609 = vmatprep.subr.bf16.mxu1 %v47343_v6 }
0x1aa1   :  { %41618 = vmatprep.subr.bf16.mxu0 %v47343_v6 }
0x1aa3   :  { %41611 = vmatpush3.bf16.msra.mxu1 %v45519_v54  ;;  %38741 = vmatmul.mubr.f32.vlgmr.msra.gmra.mrb[38].mxu0 %v25147_v30  ;;  %v46257_v54 = vpack.c.bf16 %v25604_v62, %v25601_v26 }
0x1aa4   :  { %41620 = vmatpush3.bf16.msra.mxu0 %v46234_v9  ;;  %41648 = vmatprep.subr.bf16.mxu1 %v47343_v6 }
0x1aa5   :  { %41621 = vmatprep.subr.bf16.mxu0 %v47343_v6  ;;  %38751 = vmatprep.mubr.msk.f32.mxu0 %vm43145_vm1, %v47342_v43 }
0x1aa6   :  { %38730 = vmatmul.mubr.f32.vlgmr.msra.gmra.mrb[52].mxu1 %v47408_v41  ;;  %v25698_v41 = vsub.f32 %v46230_v48, %v25697_v3 }
0x1aa7   :  { %41650 = vmatpush3.bf16.msra.mxu1 %v46237_v36  ;;  %38806 = vmatprep.mubr.msk.f32.mxu1 %vm43145_vm1, %v47342_v43 }
0x1aa8   :  { %41623 = vmatpush3.bf16.msra.mxu0 %v46251_v11  ;;  %41651 = vmatprep.subr.bf16.mxu1 %v47343_v6  ;;  %v25699_v46 = vand.u32 4294901760, %v25698_v41 }
0x1aa9   :  { %41624 = vmatprep.subr.bf16.mxu0 %v47343_v6 }
0x1aaa   :  { %v46292_v42 = vpack.c.bf16 %v25699_v46, %v25692_v49 }
0x1aab   :  { %38752 = vmatmul.mubr.f32.vlgmr.msra.gmra.mrb[38].mxu0 %v46133_v12  ;;  %41653 = vmatpush3.bf16.msra.mxu1 %v46257_v54 }
0x1aac   :  { %41626 = vmatpush3.bf16.msra.mxu0 %v46275_v1  ;;  %41654 = vmatprep.subr.bf16.mxu1 %v47343_v6 }
0x1aad   :  { %41627 = vmatprep.subr.bf16.mxu0 %v47343_v6  ;;  %38762 = vmatprep.mubr.msk.f32.mxu0 %vm43145_vm1, %v47342_v43 }
0x1aae   :  { %38807 = vmatmul.mubr.f32.vlgmr.msra.gmra.mrb[52].mxu1 %v25667_v63 }
0x1aaf   :  { %41656 = vmatpush3.bf16.msra.mxu1 %v46280_v39  ;;  %38817 = vmatprep.mubr.msk.f32.mxu1 %vm43145_vm1, %v47342_v43 }
0x1ab0   :  { %41629 = vmatpush3.bf16.msra.mxu0 %v46286_v38  ;;  %41657 = vmatprep.subr.bf16.mxu1 %v47343_v6 }
0x1ab1   :  { %41630 = vmatprep.subr.bf16.mxu0 %v47343_v6 }
0x1ab3   :  { %38763 = vmatmul.mubr.f32.vlgmr.msra.gmra.mrb[38].mxu0 %v46146_v52  ;;  %41659 = vmatpush3.bf16.msra.mxu1 %v46292_v42  ;;  %v46368_v52 = vpack.c.bf16 %v25697_v3, %v25690_v20 }
0x1ab4   :  { %41632 = vmatpush3.bf16.msra.mxu0 %v46173_v37  ;;  %41660 = vmatprep.subr.bf16.mxu1 %v47343_v6 }
0x1ab5   :  { %41633 = vmatprep.subr.bf16.mxu0 %v47343_v6  ;;  %38773 = vmatprep.mubr.msk.f32.mxu0 %vm43145_vm1, %v47342_v43 }
0x1ab6   :  { %38818 = vmatmul.mubr.f32.vlgmr.msra.gmra.mrb[52].mxu1 %v46200_v21 }
0x1ab7   :  { %41662 = vmatpush3.bf16.msra.mxu1 %v46303_v29  ;;  %38828 = vmatprep.mubr.msk.f32.mxu1 %vm43145_vm1, %v47342_v43 }
0x1ab8   :  { %41635 = vmatpush3.bf16.msra.mxu0 %v46195_v33  ;;  %41663 = vmatprep.subr.bf16.mxu1 %v47343_v6 }
0x1ab9   :  { %41636 = vmatprep.subr.bf16.mxu0 %v47343_v6 }
0x1abb   :  { %38774 = vmatmul.mubr.f32.vlgmr.msra.gmra.mrb[38].mxu0 %v25145_v0  ;;  %41665 = vmatpush3.bf16.msra.mxu1 %v46314_v40 }
0x1abc   :  { %41638 = vmatpush3.bf16.msra.mxu0 %v46324_v17  ;;  %41666 = vmatprep.subr.bf16.mxu1 %v47343_v6 }
0x1abd   :  { %41639 = vmatprep.subr.bf16.mxu0 %v47343_v6  ;;  %38784 = vmatprep.mubr.msk.f32.mxu0 %vm43145_vm1, %v47342_v43 }
0x1abe   :  { %38829 = vmatmul.mubr.f32.vlgmr.msra.gmra.mrb[52].mxu1 %v46221_v23 }
0x1abf   :  { %41668 = vmatpush3.bf16.msra.mxu1 %v46237_v36  ;;  %38839 = vmatprep.mubr.msk.f32.mxu1 %vm43145_vm1, %v47342_v43 }
0x1ac0   :  { %41641 = vmatpush3.bf16.msra.mxu0 %v46336_v10  ;;  %41669 = vmatprep.subr.bf16.mxu1 %v47343_v6 }
0x1ac1   :  { %41642 = vmatprep.subr.bf16.mxu0 %v47343_v6 }
0x1ac3   :  { %38785 = vmatmul.mubr.f32.vlgmr.msra.gmra.mrb[38].mxu0 %v46133_v12  ;;  %41671 = vmatpush3.bf16.msra.mxu1 %v46257_v54 }
0x1ac4   :  { %41644 = vmatpush3.bf16.msra.mxu0 %v46173_v37  ;;  %41672 = vmatprep.subr.bf16.mxu1 %v47343_v6 }
0x1ac5   :  { %41645 = vmatprep.subr.bf16.mxu0 %v47343_v6  ;;  %38795 = vmatprep.mubr.msk.f32.mxu0 %vm43145_vm1, %v47342_v43 }
0x1ac6   :  { %38840 = vmatmul.mubr.f32.vlgmr.msra.gmra.mrb[52].mxu1 %v25665_v59 }
0x1ac7   :  { %41674 = vmatpush3.bf16.msra.mxu1 %v46354_v7  ;;  %38850 = vmatprep.mubr.msk.f32.mxu1 %vm43145_vm1, %v47342_v43 }
0x1ac8   :  { %41647 = vmatpush3.bf16.msra.mxu0 %v46195_v33  ;;  %41675 = vmatprep.subr.bf16.mxu1 %v47343_v6 }
0x1ac9   :  { %41720 = vmatprep.subr.bf16.mxu0 %v47343_v6 }
0x1acb   :  { %38796 = vmatmul.mubr.f32.vlgmr.msra.gmra.mrb[38].mxu0 %v46133_v12  ;;  %41677 = vmatpush3.bf16.msra.mxu1 %v46368_v52  ;;  %v46401_v12 = vld [vmem:[%s47249_s4 + $0x2] ss:$0 sm:$0xff] }
0x1acc   :  { %41678 = vmatprep.subr.bf16.mxu1 %v47343_v6  ;;  %41722 = vmatpush3.bf16.msra.mxu0 %v46237_v36 }
0x1acd   :  { %41723 = vmatprep.subr.bf16.mxu0 %v47343_v6  ;;  %38938 = vmatprep.mubr.msk.f32.mxu0 %vm43145_vm1, %v47342_v43 }
0x1ace   :  { %38851 = vmatmul.mubr.f32.vlgmr.msra.gmra.mrb[52].mxu1 %v46200_v21 }
0x1acf   :  { %41680 = vmatpush3.bf16.msra.mxu1 %v46237_v36  ;;  %38861 = vmatprep.mubr.msk.f32.mxu1 %vm43145_vm1, %v47342_v43 }
0x1ad0   :  { %41681 = vmatprep.subr.bf16.mxu1 %v47343_v6  ;;  %41725 = vmatpush3.bf16.msra.mxu0 %v46257_v54 }
0x1ad1   :  { %41726 = vmatprep.subr.bf16.mxu0 %v47343_v6 }
0x1ad3   :  { %41683 = vmatpush3.bf16.msra.mxu1 %v46257_v54 }
0x1ad4   :  { %41684 = vmatprep.subr.bf16.mxu1 %v47343_v6 }
0x1ad6   :  { %38862 = vmatmul.mubr.f32.vlgmr.msra.gmra.mrb[52].mxu1 %v46200_v21 }
0x1ad7   :  { %41686 = vmatpush3.bf16.msra.mxu1 %v46173_v37  ;;  %38872 = vmatprep.mubr.msk.f32.mxu1 %vm43145_vm1, %v47342_v43 }
0x1ad8   :  { %41687 = vmatprep.subr.bf16.mxu1 %v47343_v6 }
0x1adb   :  { %41689 = vmatpush3.bf16.msra.mxu1 %v46195_v33 }
0x1adc   :  { %41690 = vmatprep.subr.bf16.mxu1 %v47343_v6 }
0x1b9e   :  { %v25555_v18 = vpop.f32.mrb[38].mxu0 }
0x1b9f   :  { %v42192_v47 = vadd.f32 %v46401_v12, %v25555_v18  ;;  %v38797_v2 = vpop.f32.mrb[39].mxu0 }
0x1ba1   :  { %42997 = vtanh.f32 %v42192_v47  ;;  %v25560_v57 = vmul.f32 0.5, %v42192_v47 }
0x1ba9   :  { %v26075_v0 = vpop.f32.mrb[52].mxu1 }
0x1baa   :  { %v42207_v61 = vadd.f32 %v46407_v24, %v26075_v0  ;;  %v38863_v31 = vpop.f32.mrb[53].mxu1 }
0x1bab   :  { %v42998_v27 = vpop.eup %42997 }
0x1bac   :  { %42999 = vtanh.f32 %v42207_v61  ;;  %25571 = vrot.lane.b32.xlu0 %v42998_v27, %s43147_s11  ;;  %v26080_v60 = vmul.f32 0.5, %v42207_v61 }
0x1bad   :  { %43001 = vtanh.f32 %v25560_v57 }
0x1bae   :  { %43003 = vtanh.f32 %v26080_v60 }
0x1bb0   :  { %25566 = vrot.lane.b32.xlu0 %v33423_v4, %s43143_s29 }
0x1bb6   :  { %v43000_v5 = vpop.eup %42999 }
0x1bb7   :  { %26091 = vrot.lane.b32.xlu1 %v43000_v5, %s43147_s11  ;;  %v43002_v19 = vpop.eup %43001 }
0x1bb8   :  { %v25562_v32 = vadd.f32 1.0, %v43002_v19  ;;  %v43004_v34 = vpop.eup %43003 }
0x1bb9   :  { %v26082_v35 = vadd.f32 1.0, %v43004_v34 }
0x1bba   :  { %v25563_v21 = vmul.f32 0.5, %v25562_v32 }
0x1bbb   :  { %26086 = vrot.lane.b32.xlu1 %v33424_v28, %s43143_s29  ;;  %v26083_v16 = vmul.f32 0.5, %v26082_v35 }
0x1c1e   :  { %v25572_v26 = vpop.permute.xlu0 %25571 }
0x1c1f   :  { %v25574_v62 = vmul.f32 %v25572_v26, %v25563_v21 }
0x1c21   :  { %25576 = vrot.lane.b32.xlu0 %v25574_v62, %s43143_s29 }
0x1c22   :  { %v25567_v14 = vpop.permute.xlu0 %25566 }
0x1c23   :  { %v25569_v30 = vmul.f32 %v25567_v14, %v25563_v21 }
0x1c29   :  { %v26092_v50 = vpop.permute.xlu1 %26091 }
0x1c2a   :  { %v26094_v22 = vmul.f32 %v26092_v50, %v26083_v16 }
0x1c2c   :  { %26096 = vrot.lane.b32.xlu1 %v26094_v22, %s43143_s29 }
0x1c2d   :  { %v26087_v13 = vpop.permute.xlu1 %26086 }
0x1c2e   :  { %v26089_v55 = vmul.f32 %v26087_v13, %v26083_v16 }
0x1c93   :  { %v25577_v23 = vpop.permute.xlu0 %25576 }
0x1c94   :  { %v46422_v58 = vadd.f32 %v25577_v23, %v25569_v30 }
0x1c96   :  { %43005 = vtanh.f32 %v46422_v58 }
0x1c9e   :  { %v26097_v48 = vpop.permute.xlu1 %26096 }
0x1c9f   :  { %v46425_v8 = vadd.f32 %v26097_v48, %v26089_v55 }
0x1ca0   :  { %v43006_v25 = vpop.eup %43005 }
0x1ca1   :  { %43007 = vtanh.f32 %v46425_v8  ;;  %25582 = vrot.lane.b32.xlu0 %v43006_v25, %s43147_s11 }
0x1cab   :  { %v43008_v59 = vpop.eup %43007 }
0x1cac   :  { %26102 = vrot.lane.b32.xlu1 %v43008_v59, %s43147_s11 }
0x1d13   :  { %v25583_v45 = vpop.permute.xlu0 %25582 }
0x1d14   :  { %v25585_v51 = vmul.f32 %v25583_v45, %v25563_v21 }
0x1d16   :  { %25587 = vrot.lane.b32.xlu0 %v25585_v51, %s43143_s29 }
0x1d1e   :  { %v26103_v20 = vpop.permute.xlu1 %26102 }
0x1d1f   :  { %v26105_v3 = vmul.f32 %v26103_v20, %v26083_v16 }
0x1d21   :  { %26107 = vrot.lane.b32.xlu1 %v26105_v3, %s43143_s29 }
0x1d88   :  { %v25588_v53 = vpop.permute.xlu0 %25587 }
0x1d89   :  { %25590 = vst.msk [vmem:[%s47252_s7] sm:$0x3] %vm9453_vm2, %v25588_v53  ;;  %v26112_v56 = vsel %vm44_vm0, %v25588_v53, 0 }
0x1d8a   :  { %v46437_v15 = vand.u32 4294901760, %v26112_v56 }
0x1d8c   :  { %v26184_v44 = vsub.f32 %v26112_v56, %v46437_v15 }
0x1d8e   :  { %v26185_v41 = vand.u32 4294901760, %v26184_v44 }
0x1d90   :  { %v26186_v63 = vsub.f32 %v26184_v44, %v26185_v41 }
0x1d92   :  { %v26187_v49 = vand.u32 4294901760, %v26186_v63 }
0x1d93   :  { %v26108_v46 = vpop.permute.xlu1 %26107 }
0x1d94   :  { %33425 = vst.msk [vmem:[%s47252_s7 + $0x1e] sm:$0x3] %vm9453_vm2, %v26108_v46  ;;  %v26628_v18 = vsel %vm44_vm0, %v26108_v46, 0  ;;  %38873 = vmatmul.mubr.f32.vlgmr.msra.gmra.mrb[38].mxu1 %v26187_v49 }
0x1d95   :  { %v46445_v47 = vand.u32 4294901760, %v26628_v18  ;;  %41692 = vmatpush3.bf16.msra.mxu1 %v46234_v9  ;;  %38883 = vmatprep.mubr.msk.f32.mxu1 %vm43145_vm1, %v47342_v43 }
0x1d96   :  { %41693 = vmatprep.subr.bf16.mxu1 %v47343_v6 }
0x1d97   :  { %v26700_v2 = vsub.f32 %v26628_v18, %v46445_v47 }
0x1d99   :  { %v26701_v0 = vand.u32 4294901760, %v26700_v2  ;;  %41695 = vmatpush3.bf16.msra.mxu1 %v46251_v11 }
0x1d9a   :  { %41696 = vmatprep.subr.bf16.mxu1 %v47343_v6 }
0x1d9b   :  { %v26702_v61 = vsub.f32 %v26700_v2, %v26701_v0 }
0x1d9c   :  { %38884 = vmatmul.mubr.f32.vlgmr.msra.gmra.mrb[38].mxu1 %v46437_v15 }
0x1d9d   :  { %41698 = vmatpush3.bf16.msra.mxu1 %v46275_v1  ;;  %v26703_v31 = vand.u32 4294901760, %v26702_v61  ;;  %38894 = vmatprep.mubr.msk.f32.mxu1 %vm43145_vm1, %v47342_v43 }
0x1d9e   :  { %41699 = vmatprep.subr.bf16.mxu1 %v47343_v6 }
0x1d9f   :  { %38939 = vmatmul.mubr.f32.vlgmr.msra.gmra.mrb[52].mxu0 %v26703_v31 }
0x1da0   :  { %41728 = vmatpush3.bf16.msra.mxu0 %v46280_v39  ;;  %38949 = vmatprep.mubr.msk.f32.mxu0 %vm43145_vm1, %v47342_v43 }
0x1da1   :  { %41701 = vmatpush3.bf16.msra.mxu1 %v46286_v38  ;;  %41729 = vmatprep.subr.bf16.mxu0 %v47343_v6 }
0x1da2   :  { %41702 = vmatprep.subr.bf16.mxu1 %v47343_v6 }
0x1da4   :  { %38895 = vmatmul.mubr.f32.vlgmr.msra.gmra.mrb[38].mxu1 %v26184_v44  ;;  %41731 = vmatpush3.bf16.msra.mxu0 %v46292_v42 }
0x1da5   :  { %41704 = vmatpush3.bf16.msra.mxu1 %v46173_v37  ;;  %41732 = vmatprep.subr.bf16.mxu0 %v47343_v6 }
0x1da6   :  { %41705 = vmatprep.subr.bf16.mxu1 %v47343_v6  ;;  %38905 = vmatprep.mubr.msk.f32.mxu1 %vm43145_vm1, %v47342_v43 }
0x1da7   :  { %38950 = vmatmul.mubr.f32.vlgmr.msra.gmra.mrb[52].mxu0 %v46445_v47 }
0x1da8   :  { %41734 = vmatpush3.bf16.msra.mxu0 %v46303_v29  ;;  %38960 = vmatprep.mubr.msk.f32.mxu0 %vm43145_vm1, %v47342_v43 }
0x1da9   :  { %41707 = vmatpush3.bf16.msra.mxu1 %v46195_v33  ;;  %41735 = vmatprep.subr.bf16.mxu0 %v47343_v6 }
0x1daa   :  { %41708 = vmatprep.subr.bf16.mxu1 %v47343_v6 }
0x1dac   :  { %38906 = vmatmul.mubr.f32.vlgmr.msra.gmra.mrb[38].mxu1 %v26185_v41  ;;  %41737 = vmatpush3.bf16.msra.mxu0 %v46314_v40 }
0x1dad   :  { %41710 = vmatpush3.bf16.msra.mxu1 %v46324_v17  ;;  %41738 = vmatprep.subr.bf16.mxu0 %v47343_v6 }
0x1dae   :  { %41711 = vmatprep.subr.bf16.mxu1 %v47343_v6  ;;  %38916 = vmatprep.mubr.msk.f32.mxu1 %vm43145_vm1, %v47342_v43 }
0x1daf   :  { %38961 = vmatmul.mubr.f32.vlgmr.msra.gmra.mrb[52].mxu0 %v26700_v2 }
0x1db0   :  { %41740 = vmatpush3.bf16.msra.mxu0 %v46237_v36  ;;  %38971 = vmatprep.mubr.msk.f32.mxu0 %vm43145_vm1, %v47342_v43 }
0x1db1   :  { %41713 = vmatpush3.bf16.msra.mxu1 %v46336_v10  ;;  %41741 = vmatprep.subr.bf16.mxu0 %v47343_v6 }
0x1db2   :  { %41714 = vmatprep.subr.bf16.mxu1 %v47343_v6 }
0x1db4   :  { %38917 = vmatmul.mubr.f32.vlgmr.msra.gmra.mrb[38].mxu1 %v46437_v15  ;;  %41743 = vmatpush3.bf16.msra.mxu0 %v46257_v54 }
0x1db5   :  { %41716 = vmatpush3.bf16.msra.mxu1 %v46173_v37  ;;  %41744 = vmatprep.subr.bf16.mxu0 %v47343_v6 }
0x1db6   :  { %41717 = vmatprep.subr.bf16.mxu1 %v47343_v6  ;;  %38927 = vmatprep.mubr.msk.f32.mxu1 %vm43145_vm1, %v47342_v43 }
0x1db7   :  { %38972 = vmatmul.mubr.f32.vlgmr.msra.gmra.mrb[52].mxu0 %v26701_v0 }
0x1db8   :  { %41746 = vmatpush3.bf16.msra.mxu0 %v46354_v7  ;;  %38982 = vmatprep.mubr.msk.f32.mxu0 %vm43145_vm1, %v47342_v43 }
0x1db9   :  { %41719 = vmatpush3.bf16.msra.mxu1 %v46195_v33  ;;  %41747 = vmatprep.subr.bf16.mxu0 %v47343_v6 }
0x1dba   :  { %41792 = vmatprep.subr.bf16.mxu1 %v47343_v6 }
0x1dbc   :  { %38928 = vmatmul.mubr.f32.vlgmr.msra.gmra.mrb[38].mxu1 %v46437_v15  ;;  %41749 = vmatpush3.bf16.msra.mxu0 %v46368_v52 }
0x1dbd   :  { %41750 = vmatprep.subr.bf16.mxu0 %v47343_v6  ;;  %41794 = vmatpush3.bf16.msra.mxu1 %v46237_v36 }
0x1dbe   :  { %41795 = vmatprep.subr.bf16.mxu1 %v47343_v6  ;;  %39070 = vmatprep.mubr.msk.f32.mxu1 %vm43145_vm1, %v47342_v43 }
0x1dbf   :  { %38983 = vmatmul.mubr.f32.vlgmr.msra.gmra.mrb[52].mxu0 %v46445_v47 }
0x1dc0   :  { %41752 = vmatpush3.bf16.msra.mxu0 %v46237_v36  ;;  %38993 = vmatprep.mubr.msk.f32.mxu0 %vm43145_vm1, %v47342_v43 }
0x1dc1   :  { %41753 = vmatprep.subr.bf16.mxu0 %v47343_v6  ;;  %41797 = vmatpush3.bf16.msra.mxu1 %v46257_v54 }
0x1dc2   :  { %41798 = vmatprep.subr.bf16.mxu1 %v47343_v6 }
0x1dc4   :  { %41755 = vmatpush3.bf16.msra.mxu0 %v46257_v54 }
0x1dc5   :  { %41756 = vmatprep.subr.bf16.mxu0 %v47343_v6 }
0x1dc7   :  { %38994 = vmatmul.mubr.f32.vlgmr.msra.gmra.mrb[52].mxu0 %v46445_v47 }
0x1dc8   :  { %41758 = vmatpush3.bf16.msra.mxu0 %v46173_v37  ;;  %39004 = vmatprep.mubr.msk.f32.mxu0 %vm43145_vm1, %v47342_v43 }
0x1dc9   :  { %41759 = vmatprep.subr.bf16.mxu0 %v47343_v6 }
0x1dcc   :  { %41761 = vmatpush3.bf16.msra.mxu0 %v46195_v33 }
0x1dcd   :  { %41762 = vmatprep.subr.bf16.mxu0 %v47343_v6 }
0x1e8f   :  { %v26595_v27 = vpop.f32.mrb[38].mxu1 }
0x1e90   :  { %v42193_v4 = vadd.f32 %v46401_v12, %v26595_v27  ;;  %v38929_v5 = vpop.f32.mrb[39].mxu1 }
0x1e92   :  { %43009 = vtanh.f32 %v42193_v4  ;;  %v26600_v21 = vmul.f32 0.5, %v42193_v4 }
0x1e9a   :  { %v27111_v28 = vpop.f32.mrb[52].mxu0 }
0x1e9b   :  { %v42206_v57 = vadd.f32 %v46407_v24, %v27111_v28  ;;  %v38995_v60 = vpop.f32.mrb[53].mxu0 }
0x1e9c   :  { %v43010_v19 = vpop.eup %43009 }
0x1e9d   :  { %43011 = vtanh.f32 %v42206_v57  ;;  %26607 = vrot.lane.b32.xlu0 %v43010_v19, %s43147_s11  ;;  %v27116_v26 = vmul.f32 0.5, %v42206_v57 }
0x1e9e   :  { %43013 = vtanh.f32 %v26600_v21 }
0x1e9f   :  { %43015 = vtanh.f32 %v27116_v26 }
0x1ea7   :  { %v43012_v32 = vpop.eup %43011 }
0x1ea8   :  { %27123 = vrot.lane.b32.xlu1 %v43012_v32, %s43147_s11  ;;  %v43014_v62 = vpop.eup %43013 }
0x1ea9   :  { %v26602_v34 = vadd.f32 1.0, %v43014_v62  ;;  %v43016_v22 = vpop.eup %43015 }
0x1eaa   :  { %v27118_v14 = vadd.f32 1.0, %v43016_v22 }
0x1eab   :  { %v26603_v35 = vmul.f32 0.5, %v26602_v34 }
0x1eac   :  { %v27119_v30 = vmul.f32 0.5, %v27118_v14 }
0x1ead   :  { %v26605_v55 = vmul.f32 %v26603_v35, %v46422_v58 }
0x1eae   :  { %v27121_v59 = vmul.f32 %v27119_v30, %v46425_v8 }
0x1f0f   :  { %v26608_v16 = vpop.permute.xlu0 %26607 }
0x1f10   :  { %v26610_v50 = vmul.f32 %v26608_v16, %v26603_v35 }
0x1f12   :  { %26612 = vrot.lane.b32.xlu0 %v26610_v50, %s43143_s29 }
0x1f1a   :  { %v27124_v23 = vpop.permute.xlu1 %27123 }
0x1f1b   :  { %v27126_v13 = vmul.f32 %v27124_v23, %v27119_v30 }
0x1f1d   :  { %27128 = vrot.lane.b32.xlu1 %v27126_v13, %s43143_s29 }
0x1f84   :  { %v26613_v48 = vpop.permute.xlu0 %26612 }
0x1f85   :  { %v46533_v25 = vadd.f32 %v26613_v48, %v26605_v55 }
0x1f87   :  { %43017 = vtanh.f32 %v46533_v25 }
0x1f8f   :  { %v27129_v45 = vpop.permute.xlu1 %27128 }
0x1f90   :  { %v46537_v51 = vadd.f32 %v27129_v45, %v27121_v59 }
0x1f91   :  { %v43018_v20 = vpop.eup %43017 }
0x1f92   :  { %43019 = vtanh.f32 %v46537_v51  ;;  %26618 = vrot.lane.b32.xlu0 %v43018_v20, %s43147_s11 }
0x1f9c   :  { %v43020_v3 = vpop.eup %43019 }
0x1f9d   :  { %27134 = vrot.lane.b32.xlu1 %v43020_v3, %s43147_s11 }
0x2004   :  { %v26619_v53 = vpop.permute.xlu0 %26618 }
0x2005   :  { %v26621_v58 = vmul.f32 %v26619_v53, %v26603_v35 }
0x2007   :  { %26623 = vrot.lane.b32.xlu0 %v26621_v58, %s43143_s29 }
0x200f   :  { %v27135_v56 = vpop.permute.xlu1 %27134 }
0x2010   :  { %v27137_v15 = vmul.f32 %v27135_v56, %v27119_v30 }
0x2012   :  { %27139 = vrot.lane.b32.xlu1 %v27137_v15, %s43143_s29 }
0x2079   :  { %v26624_v8 = vpop.permute.xlu0 %26623 }
0x207a   :  { %33426 = vst.msk [vmem:[%s47252_s7 + $0x2] sm:$0x3] %vm9453_vm2, %v26624_v8  ;;  %v27144_v44 = vsel %vm44_vm0, %v26624_v8, 0 }
0x207b   :  { %v46549_v41 = vand.u32 4294901760, %v27144_v44 }
0x207d   :  { %v27216_v63 = vsub.f32 %v27144_v44, %v46549_v41 }
0x207f   :  { %v27217_v49 = vand.u32 4294901760, %v27216_v63 }
0x2081   :  { %v27218_v46 = vsub.f32 %v27216_v63, %v27217_v49 }
0x2083   :  { %v27219_v18 = vand.u32 4294901760, %v27218_v46 }
0x2084   :  { %v27140_v47 = vpop.permute.xlu1 %27139 }
0x2085   :  { %33427 = vst.msk [vmem:[%s47252_s7 + $0x1c] sm:$0x3] %vm9453_vm2, %v27140_v47  ;;  %v27660_v2 = vsel %vm44_vm0, %v27140_v47, 0  ;;  %39005 = vmatmul.mubr.f32.vlgmr.msra.gmra.mrb[40].mxu0 %v27219_v18 }
0x2086   :  { %v46557_v0 = vand.u32 4294901760, %v27660_v2  ;;  %41764 = vmatpush3.bf16.msra.mxu0 %v46234_v9  ;;  %39015 = vmatprep.mubr.msk.f32.mxu0 %vm43145_vm1, %v47342_v43 }
0x2087   :  { %41765 = vmatprep.subr.bf16.mxu0 %v47343_v6 }
0x2088   :  { %v27732_v61 = vsub.f32 %v27660_v2, %v46557_v0 }
0x208a   :  { %v27733_v31 = vand.u32 4294901760, %v27732_v61  ;;  %41767 = vmatpush3.bf16.msra.mxu0 %v46251_v11 }
0x208b   :  { %41768 = vmatprep.subr.bf16.mxu0 %v47343_v6 }
0x208c   :  { %v27734_v27 = vsub.f32 %v27732_v61, %v27733_v31 }
0x208d   :  { %39016 = vmatmul.mubr.f32.vlgmr.msra.gmra.mrb[40].mxu0 %v46549_v41 }
0x208e   :  { %41770 = vmatpush3.bf16.msra.mxu0 %v46275_v1  ;;  %v27735_v4 = vand.u32 4294901760, %v27734_v27  ;;  %39026 = vmatprep.mubr.msk.f32.mxu0 %vm43145_vm1, %v47342_v43 }
0x208f   :  { %41771 = vmatprep.subr.bf16.mxu0 %v47343_v6 }
0x2090   :  { %39071 = vmatmul.mubr.f32.vlgmr.msra.gmra.mrb[50].mxu1 %v27735_v4 }
0x2091   :  { %41800 = vmatpush3.bf16.msra.mxu1 %v46280_v39  ;;  %39081 = vmatprep.mubr.msk.f32.mxu1 %vm43145_vm1, %v47342_v43 }
0x2092   :  { %41773 = vmatpush3.bf16.msra.mxu0 %v46286_v38  ;;  %41801 = vmatprep.subr.bf16.mxu1 %v47343_v6 }
0x2093   :  { %41774 = vmatprep.subr.bf16.mxu0 %v47343_v6 }
0x2095   :  { %39027 = vmatmul.mubr.f32.vlgmr.msra.gmra.mrb[40].mxu0 %v27216_v63  ;;  %41803 = vmatpush3.bf16.msra.mxu1 %v46292_v42 }
0x2096   :  { %41776 = vmatpush3.bf16.msra.mxu0 %v46173_v37  ;;  %41804 = vmatprep.subr.bf16.mxu1 %v47343_v6 }
0x2097   :  { %41777 = vmatprep.subr.bf16.mxu0 %v47343_v6  ;;  %39037 = vmatprep.mubr.msk.f32.mxu0 %vm43145_vm1, %v47342_v43 }
0x2098   :  { %39082 = vmatmul.mubr.f32.vlgmr.msra.gmra.mrb[50].mxu1 %v46557_v0 }
0x2099   :  { %41806 = vmatpush3.bf16.msra.mxu1 %v46303_v29  ;;  %39092 = vmatprep.mubr.msk.f32.mxu1 %vm43145_vm1, %v47342_v43 }
0x209a   :  { %41779 = vmatpush3.bf16.msra.mxu0 %v46195_v33  ;;  %41807 = vmatprep.subr.bf16.mxu1 %v47343_v6 }
0x209b   :  { %41780 = vmatprep.subr.bf16.mxu0 %v47343_v6 }
0x209d   :  { %39038 = vmatmul.mubr.f32.vlgmr.msra.gmra.mrb[40].mxu0 %v27217_v49  ;;  %41809 = vmatpush3.bf16.msra.mxu1 %v46314_v40 }
0x209e   :  { %41782 = vmatpush3.bf16.msra.mxu0 %v46324_v17  ;;  %41810 = vmatprep.subr.bf16.mxu1 %v47343_v6 }
0x209f   :  { %41783 = vmatprep.subr.bf16.mxu0 %v47343_v6  ;;  %39048 = vmatprep.mubr.msk.f32.mxu0 %vm43145_vm1, %v47342_v43 }
0x20a0   :  { %39093 = vmatmul.mubr.f32.vlgmr.msra.gmra.mrb[50].mxu1 %v27732_v61 }
0x20a1   :  { %41812 = vmatpush3.bf16.msra.mxu1 %v46237_v36  ;;  %39103 = vmatprep.mubr.msk.f32.mxu1 %vm43145_vm1, %v47342_v43 }
0x20a2   :  { %41785 = vmatpush3.bf16.msra.mxu0 %v46336_v10  ;;  %41813 = vmatprep.subr.bf16.mxu1 %v47343_v6 }
0x20a3   :  { %41786 = vmatprep.subr.bf16.mxu0 %v47343_v6 }
0x20a5   :  { %39049 = vmatmul.mubr.f32.vlgmr.msra.gmra.mrb[40].mxu0 %v46549_v41  ;;  %41815 = vmatpush3.bf16.msra.mxu1 %v46257_v54 }
0x20a6   :  { %41788 = vmatpush3.bf16.msra.mxu0 %v46173_v37  ;;  %41816 = vmatprep.subr.bf16.mxu1 %v47343_v6 }
0x20a7   :  { %41789 = vmatprep.subr.bf16.mxu0 %v47343_v6  ;;  %39059 = vmatprep.mubr.msk.f32.mxu0 %vm43145_vm1, %v47342_v43 }
0x20a8   :  { %39104 = vmatmul.mubr.f32.vlgmr.msra.gmra.mrb[50].mxu1 %v27733_v31 }
0x20a9   :  { %41818 = vmatpush3.bf16.msra.mxu1 %v46354_v7  ;;  %39114 = vmatprep.mubr.msk.f32.mxu1 %vm43145_vm1, %v47342_v43 }
0x20aa   :  { %41791 = vmatpush3.bf16.msra.mxu0 %v46195_v33  ;;  %41819 = vmatprep.subr.bf16.mxu1 %v47343_v6 }
0x20ab   :  { %41864 = vmatprep.subr.bf16.mxu0 %v47343_v6 }
0x20ad   :  { %39060 = vmatmul.mubr.f32.vlgmr.msra.gmra.mrb[40].mxu0 %v46549_v41  ;;  %41821 = vmatpush3.bf16.msra.mxu1 %v46368_v52 }
0x20ae   :  { %41822 = vmatprep.subr.bf16.mxu1 %v47343_v6  ;;  %41866 = vmatpush3.bf16.msra.mxu0 %v46237_v36 }
0x20af   :  { %41867 = vmatprep.subr.bf16.mxu0 %v47343_v6  ;;  %39202 = vmatprep.mubr.msk.f32.mxu0 %vm43145_vm1, %v47342_v43 }
0x20b0   :  { %39115 = vmatmul.mubr.f32.vlgmr.msra.gmra.mrb[50].mxu1 %v46557_v0 }
0x20b1   :  { %41824 = vmatpush3.bf16.msra.mxu1 %v46237_v36  ;;  %39125 = vmatprep.mubr.msk.f32.mxu1 %vm43145_vm1, %v47342_v43 }
0x20b2   :  { %41825 = vmatprep.subr.bf16.mxu1 %v47343_v6  ;;  %41869 = vmatpush3.bf16.msra.mxu0 %v46257_v54 }
0x20b3   :  { %41870 = vmatprep.subr.bf16.mxu0 %v47343_v6 }
0x20b5   :  { %41827 = vmatpush3.bf16.msra.mxu1 %v46257_v54 }
0x20b6   :  { %41828 = vmatprep.subr.bf16.mxu1 %v47343_v6 }
0x20b8   :  { %39126 = vmatmul.mubr.f32.vlgmr.msra.gmra.mrb[50].mxu1 %v46557_v0 }
0x20b9   :  { %41830 = vmatpush3.bf16.msra.mxu1 %v46173_v37  ;;  %39136 = vmatprep.mubr.msk.f32.mxu1 %vm43145_vm1, %v47342_v43 }
0x20ba   :  { %41831 = vmatprep.subr.bf16.mxu1 %v47343_v6 }
0x20bd   :  { %41833 = vmatpush3.bf16.msra.mxu1 %v46195_v33 }
0x20be   :  { %41834 = vmatprep.subr.bf16.mxu1 %v47343_v6 }
0x2180   :  { %v27627_v5 = vpop.f32.mrb[40].mxu0 }
0x2181   :  { %v42194_v28 = vadd.f32 %v46401_v12, %v27627_v5  ;;  %v39061_v57 = vpop.f32.mrb[41].mxu0 }
0x2183   :  { %43021 = vtanh.f32 %v42194_v28  ;;  %v27632_v62 = vmul.f32 0.5, %v42194_v28 }
0x218b   :  { %v28143_v60 = vpop.f32.mrb[50].mxu1 }
0x218c   :  { %v42205_v19 = vadd.f32 %v46407_v24, %v28143_v60  ;;  %v39127_v32 = vpop.f32.mrb[51].mxu1 }
0x218d   :  { %v43022_v21 = vpop.eup %43021 }
0x218e   :  { %43023 = vtanh.f32 %v42205_v19  ;;  %27639 = vrot.lane.b32.xlu0 %v43022_v21, %s43147_s11  ;;  %v28148_v34 = vmul.f32 0.5, %v42205_v19 }
0x218f   :  { %43025 = vtanh.f32 %v27632_v62 }
0x2190   :  { %43027 = vtanh.f32 %v28148_v34 }
0x2198   :  { %v43024_v26 = vpop.eup %43023 }
0x2199   :  { %28155 = vrot.lane.b32.xlu1 %v43024_v26, %s43147_s11  ;;  %v43026_v35 = vpop.eup %43025 }
0x219a   :  { %v27634_v16 = vadd.f32 1.0, %v43026_v35  ;;  %v43028_v30 = vpop.eup %43027 }
0x219b   :  { %v28150_v23 = vadd.f32 1.0, %v43028_v30 }
0x219c   :  { %v27635_v50 = vmul.f32 0.5, %v27634_v16 }
0x219d   :  { %v28151_v13 = vmul.f32 0.5, %v28150_v23 }
0x219e   :  { %v27637_v59 = vmul.f32 %v27635_v50, %v46533_v25 }
0x219f   :  { %v28153_v3 = vmul.f32 %v28151_v13, %v46537_v51 }
0x2200   :  { %v27640_v22 = vpop.permute.xlu0 %27639 }
0x2201   :  { %v27642_v14 = vmul.f32 %v27640_v22, %v27635_v50 }
0x2203   :  { %27644 = vrot.lane.b32.xlu0 %v27642_v14, %s43143_s29 }
0x220b   :  { %v28156_v55 = vpop.permute.xlu1 %28155 }
0x220c   :  { %v28158_v48 = vmul.f32 %v28156_v55, %v28151_v13 }
0x220e   :  { %28160 = vrot.lane.b32.xlu1 %v28158_v48, %s43143_s29 }
0x2275   :  { %v27645_v45 = vpop.permute.xlu0 %27644 }
0x2276   :  { %v46645_v20 = vadd.f32 %v27645_v45, %v27637_v59 }
0x2278   :  { %43029 = vtanh.f32 %v46645_v20 }
0x2280   :  { %v28161_v53 = vpop.permute.xlu1 %28160 }
0x2281   :  { %v46649_v58 = vadd.f32 %v28161_v53, %v28153_v3 }
0x2282   :  { %v43030_v56 = vpop.eup %43029 }
0x2283   :  { %43031 = vtanh.f32 %v46649_v58  ;;  %27650 = vrot.lane.b32.xlu0 %v43030_v56, %s43147_s11 }
0x228d   :  { %v43032_v15 = vpop.eup %43031 }
0x228e   :  { %28166 = vrot.lane.b32.xlu1 %v43032_v15, %s43147_s11 }
0x22f5   :  { %v27651_v8 = vpop.permute.xlu0 %27650 }
0x22f6   :  { %v27653_v25 = vmul.f32 %v27651_v8, %v27635_v50 }
0x22f8   :  { %27655 = vrot.lane.b32.xlu0 %v27653_v25, %s43143_s29 }
0x2300   :  { %v28167_v44 = vpop.permute.xlu1 %28166 }
0x2301   :  { %v28169_v41 = vmul.f32 %v28167_v44, %v28151_v13 }
0x2303   :  { %28171 = vrot.lane.b32.xlu1 %v28169_v41, %s43143_s29 }
0x236a   :  { %v27656_v51 = vpop.permute.xlu0 %27655 }
0x236b   :  { %33428 = vst.msk [vmem:[%s47252_s7 + $0x4] sm:$0x3] %vm9453_vm2, %v27656_v51  ;;  %v28176_v63 = vsel %vm44_vm0, %v27656_v51, 0 }
0x236c   :  { %v46661_v49 = vand.u32 4294901760, %v28176_v63 }
0x236e   :  { %v28248_v46 = vsub.f32 %v28176_v63, %v46661_v49 }
0x2370   :  { %v28249_v18 = vand.u32 4294901760, %v28248_v46 }
0x2372   :  { %v28250_v47 = vsub.f32 %v28248_v46, %v28249_v18 }
0x2374   :  { %v28251_v2 = vand.u32 4294901760, %v28250_v47 }
0x2375   :  { %v28172_v0 = vpop.permute.xlu1 %28171 }
0x2376   :  { %33429 = vst.msk [vmem:[%s47252_s7 + $0x1a] sm:$0x3] %vm9453_vm2, %v28172_v0  ;;  %v28692_v61 = vsel %vm44_vm0, %v28172_v0, 0  ;;  %39137 = vmatmul.mubr.f32.vlgmr.msra.gmra.mrb[40].mxu1 %v28251_v2 }
0x2377   :  { %v46669_v31 = vand.u32 4294901760, %v28692_v61  ;;  %41836 = vmatpush3.bf16.msra.mxu1 %v46234_v9  ;;  %39147 = vmatprep.mubr.msk.f32.mxu1 %vm43145_vm1, %v47342_v43 }
0x2378   :  { %41837 = vmatprep.subr.bf16.mxu1 %v47343_v6 }
0x2379   :  { %v28764_v27 = vsub.f32 %v28692_v61, %v46669_v31 }
0x237b   :  { %v28765_v4 = vand.u32 4294901760, %v28764_v27  ;;  %41839 = vmatpush3.bf16.msra.mxu1 %v46251_v11 }
0x237c   :  { %41840 = vmatprep.subr.bf16.mxu1 %v47343_v6 }
0x237d   :  { %v28766_v5 = vsub.f32 %v28764_v27, %v28765_v4 }
0x237e   :  { %39148 = vmatmul.mubr.f32.vlgmr.msra.gmra.mrb[40].mxu1 %v46661_v49 }
0x237f   :  { %41842 = vmatpush3.bf16.msra.mxu1 %v46275_v1  ;;  %v28767_v28 = vand.u32 4294901760, %v28766_v5  ;;  %39158 = vmatprep.mubr.msk.f32.mxu1 %vm43145_vm1, %v47342_v43 }
0x2380   :  { %41843 = vmatprep.subr.bf16.mxu1 %v47343_v6 }
0x2381   :  { %39203 = vmatmul.mubr.f32.vlgmr.msra.gmra.mrb[50].mxu0 %v28767_v28 }
0x2382   :  { %41872 = vmatpush3.bf16.msra.mxu0 %v46280_v39  ;;  %39213 = vmatprep.mubr.msk.f32.mxu0 %vm43145_vm1, %v47342_v43 }
0x2383   :  { %41845 = vmatpush3.bf16.msra.mxu1 %v46286_v38  ;;  %41873 = vmatprep.subr.bf16.mxu0 %v47343_v6 }
0x2384   :  { %41846 = vmatprep.subr.bf16.mxu1 %v47343_v6 }
0x2386   :  { %39159 = vmatmul.mubr.f32.vlgmr.msra.gmra.mrb[40].mxu1 %v28248_v46  ;;  %41875 = vmatpush3.bf16.msra.mxu0 %v46292_v42 }
0x2387   :  { %41848 = vmatpush3.bf16.msra.mxu1 %v46173_v37  ;;  %41876 = vmatprep.subr.bf16.mxu0 %v47343_v6 }
0x2388   :  { %41849 = vmatprep.subr.bf16.mxu1 %v47343_v6  ;;  %39169 = vmatprep.mubr.msk.f32.mxu1 %vm43145_vm1, %v47342_v43 }
0x2389   :  { %39214 = vmatmul.mubr.f32.vlgmr.msra.gmra.mrb[50].mxu0 %v46669_v31 }
0x238a   :  { %41878 = vmatpush3.bf16.msra.mxu0 %v46303_v29  ;;  %39224 = vmatprep.mubr.msk.f32.mxu0 %vm43145_vm1, %v47342_v43 }
0x238b   :  { %41851 = vmatpush3.bf16.msra.mxu1 %v46195_v33  ;;  %41879 = vmatprep.subr.bf16.mxu0 %v47343_v6 }
0x238c   :  { %41852 = vmatprep.subr.bf16.mxu1 %v47343_v6 }
0x238e   :  { %39170 = vmatmul.mubr.f32.vlgmr.msra.gmra.mrb[40].mxu1 %v28249_v18  ;;  %41881 = vmatpush3.bf16.msra.mxu0 %v46314_v40 }
0x238f   :  { %41854 = vmatpush3.bf16.msra.mxu1 %v46324_v17  ;;  %41882 = vmatprep.subr.bf16.mxu0 %v47343_v6 }
0x2390   :  { %41855 = vmatprep.subr.bf16.mxu1 %v47343_v6  ;;  %39180 = vmatprep.mubr.msk.f32.mxu1 %vm43145_vm1, %v47342_v43 }
0x2391   :  { %39225 = vmatmul.mubr.f32.vlgmr.msra.gmra.mrb[50].mxu0 %v28764_v27 }
0x2392   :  { %41884 = vmatpush3.bf16.msra.mxu0 %v46237_v36  ;;  %39235 = vmatprep.mubr.msk.f32.mxu0 %vm43145_vm1, %v47342_v43 }
0x2393   :  { %41857 = vmatpush3.bf16.msra.mxu1 %v46336_v10  ;;  %41885 = vmatprep.subr.bf16.mxu0 %v47343_v6 }
0x2394   :  { %41858 = vmatprep.subr.bf16.mxu1 %v47343_v6 }
0x2396   :  { %39181 = vmatmul.mubr.f32.vlgmr.msra.gmra.mrb[40].mxu1 %v46661_v49  ;;  %41887 = vmatpush3.bf16.msra.mxu0 %v46257_v54 }
0x2397   :  { %41860 = vmatpush3.bf16.msra.mxu1 %v46173_v37  ;;  %41888 = vmatprep.subr.bf16.mxu0 %v47343_v6 }
0x2398   :  { %41861 = vmatprep.subr.bf16.mxu1 %v47343_v6  ;;  %39191 = vmatprep.mubr.msk.f32.mxu1 %vm43145_vm1, %v47342_v43 }
0x2399   :  { %39236 = vmatmul.mubr.f32.vlgmr.msra.gmra.mrb[50].mxu0 %v28765_v4 }
0x239a   :  { %41890 = vmatpush3.bf16.msra.mxu0 %v46354_v7  ;;  %39246 = vmatprep.mubr.msk.f32.mxu0 %vm43145_vm1, %v47342_v43 }
0x239b   :  { %41863 = vmatpush3.bf16.msra.mxu1 %v46195_v33  ;;  %41891 = vmatprep.subr.bf16.mxu0 %v47343_v6 }
0x239c   :  { %41936 = vmatprep.subr.bf16.mxu1 %v47343_v6 }
0x239e   :  { %39192 = vmatmul.mubr.f32.vlgmr.msra.gmra.mrb[40].mxu1 %v46661_v49  ;;  %41893 = vmatpush3.bf16.msra.mxu0 %v46368_v52 }
0x239f   :  { %41894 = vmatprep.subr.bf16.mxu0 %v47343_v6  ;;  %41938 = vmatpush3.bf16.msra.mxu1 %v46237_v36 }
0x23a0   :  { %41939 = vmatprep.subr.bf16.mxu1 %v47343_v6  ;;  %39334 = vmatprep.mubr.msk.f32.mxu1 %vm43145_vm1, %v47342_v43 }
0x23a1   :  { %39247 = vmatmul.mubr.f32.vlgmr.msra.gmra.mrb[50].mxu0 %v46669_v31 }
0x23a2   :  { %41896 = vmatpush3.bf16.msra.mxu0 %v46237_v36  ;;  %39257 = vmatprep.mubr.msk.f32.mxu0 %vm43145_vm1, %v47342_v43 }
0x23a3   :  { %41897 = vmatprep.subr.bf16.mxu0 %v47343_v6  ;;  %41941 = vmatpush3.bf16.msra.mxu1 %v46257_v54 }
0x23a4   :  { %41942 = vmatprep.subr.bf16.mxu1 %v47343_v6 }
0x23a6   :  { %41899 = vmatpush3.bf16.msra.mxu0 %v46257_v54 }
0x23a7   :  { %41900 = vmatprep.subr.bf16.mxu0 %v47343_v6 }
0x23a9   :  { %39258 = vmatmul.mubr.f32.vlgmr.msra.gmra.mrb[50].mxu0 %v46669_v31 }
0x23aa   :  { %41902 = vmatpush3.bf16.msra.mxu0 %v46173_v37  ;;  %39268 = vmatprep.mubr.msk.f32.mxu0 %vm43145_vm1, %v47342_v43 }
0x23ab   :  { %41903 = vmatprep.subr.bf16.mxu0 %v47343_v6 }
0x23ae   :  { %41905 = vmatpush3.bf16.msra.mxu0 %v46195_v33 }
0x23af   :  { %41906 = vmatprep.subr.bf16.mxu0 %v47343_v6 }
0x2471   :  { %v28659_v57 = vpop.f32.mrb[40].mxu1 }
0x2472   :  { %v42195_v60 = vadd.f32 %v46401_v12, %v28659_v57  ;;  %v39193_v19 = vpop.f32.mrb[41].mxu1 }
0x2474   :  { %43033 = vtanh.f32 %v42195_v60  ;;  %v28664_v35 = vmul.f32 0.5, %v42195_v60  ;;  %v46865_v60 = vld [vmem:[%s47249_s4 + $0x2] ss:$0 sm:$0xff] }
0x247c   :  { %v29175_v32 = vpop.f32.mrb[50].mxu0 }
0x247d   :  { %v42204_v21 = vadd.f32 %v46407_v24, %v29175_v32  ;;  %v39259_v26 = vpop.f32.mrb[51].mxu0 }
0x247e   :  { %v43034_v62 = vpop.eup %43033  ;;  %v46871_v26 = vld [vmem:[%s47249_s4 + $0x3] ss:$0 sm:$0xff] }
0x247f   :  { %43035 = vtanh.f32 %v42204_v21  ;;  %28671 = vrot.lane.b32.xlu0 %v43034_v62, %s43147_s11  ;;  %v29180_v16 = vmul.f32 0.5, %v42204_v21 }
0x2480   :  { %43037 = vtanh.f32 %v28664_v35 }
0x2481   :  { %43039 = vtanh.f32 %v29180_v16 }
0x2489   :  { %v43036_v34 = vpop.eup %43035 }
0x248a   :  { %29187 = vrot.lane.b32.xlu1 %v43036_v34, %s43147_s11  ;;  %v43038_v50 = vpop.eup %43037 }
0x248b   :  { %v28666_v22 = vadd.f32 1.0, %v43038_v50  ;;  %v43040_v23 = vpop.eup %43039 }
0x248c   :  { %v29182_v24 = vadd.f32 1.0, %v43040_v23 }
0x248d   :  { %v28667_v12 = vmul.f32 0.5, %v28666_v22 }
0x248e   :  { %v29183_v13 = vmul.f32 0.5, %v29182_v24 }
0x248f   :  { %v28669_v59 = vmul.f32 %v28667_v12, %v46645_v20 }
0x2490   :  { %v29185_v53 = vmul.f32 %v29183_v13, %v46649_v58 }
0x24f1   :  { %v28672_v14 = vpop.permute.xlu0 %28671 }
0x24f2   :  { %v28674_v30 = vmul.f32 %v28672_v14, %v28667_v12 }
0x24f4   :  { %28676 = vrot.lane.b32.xlu0 %v28674_v30, %s43143_s29 }
0x24fc   :  { %v29188_v55 = vpop.permute.xlu1 %29187 }
0x24fd   :  { %v29190_v48 = vmul.f32 %v29188_v55, %v29183_v13 }
0x24ff   :  { %29192 = vrot.lane.b32.xlu1 %v29190_v48, %s43143_s29 }
0x2566   :  { %v28677_v45 = vpop.permute.xlu0 %28676 }
0x2567   :  { %v46757_v3 = vadd.f32 %v28677_v45, %v28669_v59 }
0x2569   :  { %43041 = vtanh.f32 %v46757_v3 }
0x2571   :  { %v29193_v56 = vpop.permute.xlu1 %29192 }
0x2572   :  { %v46761_v15 = vadd.f32 %v29193_v56, %v29185_v53 }
0x2573   :  { %v43042_v8 = vpop.eup %43041 }
0x2574   :  { %43043 = vtanh.f32 %v46761_v15  ;;  %28682 = vrot.lane.b32.xlu0 %v43042_v8, %s43147_s11 }
0x257e   :  { %v43044_v25 = vpop.eup %43043 }
0x257f   :  { %29198 = vrot.lane.b32.xlu1 %v43044_v25, %s43147_s11 }
0x25e6   :  { %v28683_v44 = vpop.permute.xlu0 %28682 }
0x25e7   :  { %v28685_v20 = vmul.f32 %v28683_v44, %v28667_v12 }
0x25e9   :  { %28687 = vrot.lane.b32.xlu0 %v28685_v20, %s43143_s29 }
0x25f1   :  { %v29199_v41 = vpop.permute.xlu1 %29198 }
0x25f2   :  { %v29201_v51 = vmul.f32 %v29199_v41, %v29183_v13 }
0x25f4   :  { %29203 = vrot.lane.b32.xlu1 %v29201_v51, %s43143_s29 }
0x265b   :  { %v28688_v58 = vpop.permute.xlu0 %28687 }
0x265c   :  { %33430 = vst.msk [vmem:[%s47252_s7 + $0x6] sm:$0x3] %vm9453_vm2, %v28688_v58  ;;  %v29208_v63 = vsel %vm44_vm0, %v28688_v58, 0 }
0x265d   :  { %v46773_v49 = vand.u32 4294901760, %v29208_v63 }
0x265f   :  { %v29280_v46 = vsub.f32 %v29208_v63, %v46773_v49 }
0x2661   :  { %v29281_v18 = vand.u32 4294901760, %v29280_v46 }
0x2663   :  { %v29282_v47 = vsub.f32 %v29280_v46, %v29281_v18 }
0x2665   :  { %v29283_v2 = vand.u32 4294901760, %v29282_v47 }
0x2666   :  { %v29204_v0 = vpop.permute.xlu1 %29203 }
0x2667   :  { %33431 = vst.msk [vmem:[%s47252_s7 + $0x18] sm:$0x3] %vm9453_vm2, %v29204_v0  ;;  %v29724_v61 = vsel %vm44_vm0, %v29204_v0, 0  ;;  %39269 = vmatmul.mubr.f32.vlgmr.msra.gmra.mrb[42].mxu0 %v29283_v2 }
0x2668   :  { %v46781_v31 = vand.u32 4294901760, %v29724_v61  ;;  %41908 = vmatpush3.bf16.msra.mxu0 %v46234_v9  ;;  %39279 = vmatprep.mubr.msk.f32.mxu0 %vm43145_vm1, %v47342_v43 }
0x2669   :  { %41909 = vmatprep.subr.bf16.mxu0 %v47343_v6 }
0x266a   :  { %v29796_v27 = vsub.f32 %v29724_v61, %v46781_v31 }
0x266c   :  { %v29797_v4 = vand.u32 4294901760, %v29796_v27  ;;  %41911 = vmatpush3.bf16.msra.mxu0 %v46251_v11 }
0x266d   :  { %41912 = vmatprep.subr.bf16.mxu0 %v47343_v6 }
0x266e   :  { %v29798_v5 = vsub.f32 %v29796_v27, %v29797_v4 }
0x266f   :  { %39280 = vmatmul.mubr.f32.vlgmr.msra.gmra.mrb[42].mxu0 %v46773_v49 }
0x2670   :  { %41914 = vmatpush3.bf16.msra.mxu0 %v46275_v1  ;;  %v29799_v28 = vand.u32 4294901760, %v29798_v5  ;;  %39290 = vmatprep.mubr.msk.f32.mxu0 %vm43145_vm1, %v47342_v43 }
0x2671   :  { %41915 = vmatprep.subr.bf16.mxu0 %v47343_v6 }
0x2672   :  { %39335 = vmatmul.mubr.f32.vlgmr.msra.gmra.mrb[48].mxu1 %v29799_v28 }
0x2673   :  { %41944 = vmatpush3.bf16.msra.mxu1 %v46280_v39  ;;  %39345 = vmatprep.mubr.msk.f32.mxu1 %vm43145_vm1, %v47342_v43 }
0x2674   :  { %41917 = vmatpush3.bf16.msra.mxu0 %v46286_v38  ;;  %41945 = vmatprep.subr.bf16.mxu1 %v47343_v6 }
0x2675   :  { %41918 = vmatprep.subr.bf16.mxu0 %v47343_v6 }
0x2677   :  { %39291 = vmatmul.mubr.f32.vlgmr.msra.gmra.mrb[42].mxu0 %v29280_v46  ;;  %41947 = vmatpush3.bf16.msra.mxu1 %v46292_v42 }
0x2678   :  { %41920 = vmatpush3.bf16.msra.mxu0 %v46173_v37  ;;  %41948 = vmatprep.subr.bf16.mxu1 %v47343_v6 }
0x2679   :  { %41921 = vmatprep.subr.bf16.mxu0 %v47343_v6  ;;  %39301 = vmatprep.mubr.msk.f32.mxu0 %vm43145_vm1, %v47342_v43 }
0x267a   :  { %39346 = vmatmul.mubr.f32.vlgmr.msra.gmra.mrb[48].mxu1 %v46781_v31 }
0x267b   :  { %41950 = vmatpush3.bf16.msra.mxu1 %v46303_v29  ;;  %39356 = vmatprep.mubr.msk.f32.mxu1 %vm43145_vm1, %v47342_v43 }
0x267c   :  { %41923 = vmatpush3.bf16.msra.mxu0 %v46195_v33  ;;  %41951 = vmatprep.subr.bf16.mxu1 %v47343_v6 }
0x267d   :  { %41924 = vmatprep.subr.bf16.mxu0 %v47343_v6 }
0x267f   :  { %39302 = vmatmul.mubr.f32.vlgmr.msra.gmra.mrb[42].mxu0 %v29281_v18  ;;  %41953 = vmatpush3.bf16.msra.mxu1 %v46314_v40 }
0x2680   :  { %41926 = vmatpush3.bf16.msra.mxu0 %v46324_v17  ;;  %41954 = vmatprep.subr.bf16.mxu1 %v47343_v6 }
0x2681   :  { %41927 = vmatprep.subr.bf16.mxu0 %v47343_v6  ;;  %39312 = vmatprep.mubr.msk.f32.mxu0 %vm43145_vm1, %v47342_v43 }
0x2682   :  { %39357 = vmatmul.mubr.f32.vlgmr.msra.gmra.mrb[48].mxu1 %v29796_v27 }
0x2683   :  { %41956 = vmatpush3.bf16.msra.mxu1 %v46237_v36  ;;  %39367 = vmatprep.mubr.msk.f32.mxu1 %vm43145_vm1, %v47342_v43 }
0x2684   :  { %41929 = vmatpush3.bf16.msra.mxu0 %v46336_v10  ;;  %41957 = vmatprep.subr.bf16.mxu1 %v47343_v6 }
0x2685   :  { %41930 = vmatprep.subr.bf16.mxu0 %v47343_v6 }
0x2687   :  { %39313 = vmatmul.mubr.f32.vlgmr.msra.gmra.mrb[42].mxu0 %v46773_v49  ;;  %41959 = vmatpush3.bf16.msra.mxu1 %v46257_v54 }
0x2688   :  { %41932 = vmatpush3.bf16.msra.mxu0 %v46173_v37  ;;  %41960 = vmatprep.subr.bf16.mxu1 %v47343_v6 }
0x2689   :  { %41933 = vmatprep.subr.bf16.mxu0 %v47343_v6  ;;  %39323 = vmatprep.mubr.msk.f32.mxu0 %vm43145_vm1, %v47342_v43 }
0x268a   :  { %39368 = vmatmul.mubr.f32.vlgmr.msra.gmra.mrb[48].mxu1 %v29797_v4 }
0x268b   :  { %41962 = vmatpush3.bf16.msra.mxu1 %v46354_v7  ;;  %39378 = vmatprep.mubr.msk.f32.mxu1 %vm43145_vm1, %v47342_v43 }
0x268c   :  { %41935 = vmatpush3.bf16.msra.mxu0 %v46195_v33  ;;  %41963 = vmatprep.subr.bf16.mxu1 %v47343_v6 }
0x268d   :  { %42008 = vmatprep.subr.bf16.mxu0 %v47343_v6 }
0x268f   :  { %39324 = vmatmul.mubr.f32.vlgmr.msra.gmra.mrb[42].mxu0 %v46773_v49  ;;  %41965 = vmatpush3.bf16.msra.mxu1 %v46368_v52 }
0x2690   :  { %41966 = vmatprep.subr.bf16.mxu1 %v47343_v6  ;;  %42010 = vmatpush3.bf16.msra.mxu0 %v46237_v36 }
0x2691   :  { %42011 = vmatprep.subr.bf16.mxu0 %v47343_v6  ;;  %39466 = vmatprep.mubr.msk.f32.mxu0 %vm43145_vm1, %v47342_v43 }
0x2692   :  { %39379 = vmatmul.mubr.f32.vlgmr.msra.gmra.mrb[48].mxu1 %v46781_v31 }
0x2693   :  { %41968 = vmatpush3.bf16.msra.mxu1 %v46237_v36  ;;  %39389 = vmatprep.mubr.msk.f32.mxu1 %vm43145_vm1, %v47342_v43 }
0x2694   :  { %41969 = vmatprep.subr.bf16.mxu1 %v47343_v6  ;;  %42013 = vmatpush3.bf16.msra.mxu0 %v46257_v54 }
0x2695   :  { %42014 = vmatprep.subr.bf16.mxu0 %v47343_v6 }
0x2697   :  { %41971 = vmatpush3.bf16.msra.mxu1 %v46257_v54 }
0x2698   :  { %41972 = vmatprep.subr.bf16.mxu1 %v47343_v6 }
0x269a   :  { %39390 = vmatmul.mubr.f32.vlgmr.msra.gmra.mrb[48].mxu1 %v46781_v31 }
0x269b   :  { %41974 = vmatpush3.bf16.msra.mxu1 %v46173_v37  ;;  %39400 = vmatprep.mubr.msk.f32.mxu1 %vm43145_vm1, %v47342_v43 }
0x269c   :  { %41975 = vmatprep.subr.bf16.mxu1 %v47343_v6 }
0x269f   :  { %41977 = vmatpush3.bf16.msra.mxu1 %v46195_v33 }
0x26a0   :  { %41978 = vmatprep.subr.bf16.mxu1 %v47343_v6 }
0x2762   :  { %v29691_v57 = vpop.f32.mrb[42].mxu0 }
0x2763   :  { %v42196_v19 = vadd.f32 %v46865_v60, %v29691_v57  ;;  %v39325_v32 = vpop.f32.mrb[43].mxu0 }
0x2765   :  { %43045 = vtanh.f32 %v42196_v19  ;;  %v29696_v50 = vmul.f32 0.5, %v42196_v19 }
0x276d   :  { %v30207_v21 = vpop.f32.mrb[48].mxu1 }
0x276e   :  { %v42203_v62 = vadd.f32 %v46871_v26, %v30207_v21  ;;  %v39391_v34 = vpop.f32.mrb[49].mxu1 }
0x276f   :  { %v43046_v35 = vpop.eup %43045 }
0x2770   :  { %43047 = vtanh.f32 %v42203_v62  ;;  %29703 = vrot.lane.b32.xlu0 %v43046_v35, %s43147_s11  ;;  %v30212_v22 = vmul.f32 0.5, %v42203_v62 }
0x2771   :  { %43049 = vtanh.f32 %v29696_v50 }
0x2772   :  { %43051 = vtanh.f32 %v30212_v22 }
0x277a   :  { %v43048_v16 = vpop.eup %43047 }
0x277b   :  { %30219 = vrot.lane.b32.xlu1 %v43048_v16, %s43147_s11  ;;  %v43050_v12 = vpop.eup %43049 }
0x277c   :  { %v29698_v14 = vadd.f32 1.0, %v43050_v12  ;;  %v43052_v13 = vpop.eup %43051 }
0x277d   :  { %v30214_v55 = vadd.f32 1.0, %v43052_v13 }
0x277e   :  { %v29699_v30 = vmul.f32 0.5, %v29698_v14 }
0x277f   :  { %v30215_v48 = vmul.f32 0.5, %v30214_v55 }
0x2780   :  { %v29701_v53 = vmul.f32 %v29699_v30, %v46757_v3 }
0x2781   :  { %v30217_v25 = vmul.f32 %v30215_v48, %v46761_v15 }
0x27e2   :  { %v29704_v23 = vpop.permute.xlu0 %29703 }
0x27e3   :  { %v29706_v24 = vmul.f32 %v29704_v23, %v29699_v30 }
0x27e5   :  { %29708 = vrot.lane.b32.xlu0 %v29706_v24, %s43143_s29 }
0x27ed   :  { %v30220_v59 = vpop.permute.xlu1 %30219 }
0x27ee   :  { %v30222_v45 = vmul.f32 %v30220_v59, %v30215_v48 }
0x27f0   :  { %30224 = vrot.lane.b32.xlu1 %v30222_v45, %s43143_s29 }
0x2857   :  { %v29709_v56 = vpop.permute.xlu0 %29708 }
0x2858   :  { %v46879_v8 = vadd.f32 %v29709_v56, %v29701_v53 }
0x285a   :  { %43053 = vtanh.f32 %v46879_v8 }
0x2862   :  { %v30225_v44 = vpop.permute.xlu1 %30224 }
0x2863   :  { %v46883_v20 = vadd.f32 %v30225_v44, %v30217_v25 }
0x2864   :  { %v43054_v41 = vpop.eup %43053 }
0x2865   :  { %43055 = vtanh.f32 %v46883_v20  ;;  %29714 = vrot.lane.b32.xlu0 %v43054_v41, %s43147_s11 }
0x286f   :  { %v43056_v51 = vpop.eup %43055 }
0x2870   :  { %30230 = vrot.lane.b32.xlu1 %v43056_v51, %s43147_s11 }
0x28d7   :  { %v29715_v58 = vpop.permute.xlu0 %29714 }
0x28d8   :  { %v29717_v3 = vmul.f32 %v29715_v58, %v29699_v30 }
0x28da   :  { %29719 = vrot.lane.b32.xlu0 %v29717_v3, %s43143_s29 }
0x28e2   :  { %v30231_v63 = vpop.permute.xlu1 %30230 }
0x28e3   :  { %v30233_v49 = vmul.f32 %v30231_v63, %v30215_v48 }
0x28e5   :  { %30235 = vrot.lane.b32.xlu1 %v30233_v49, %s43143_s29 }
0x294c   :  { %v29720_v15 = vpop.permute.xlu0 %29719 }
0x294d   :  { %33432 = vst.msk [vmem:[%s47252_s7 + $0x8] sm:$0x3] %vm9453_vm2, %v29720_v15  ;;  %v30240_v46 = vsel %vm44_vm0, %v29720_v15, 0 }
0x294e   :  { %v46895_v18 = vand.u32 4294901760, %v30240_v46 }
0x2950   :  { %v30312_v47 = vsub.f32 %v30240_v46, %v46895_v18 }
0x2952   :  { %v30313_v2 = vand.u32 4294901760, %v30312_v47 }
0x2954   :  { %v30314_v0 = vsub.f32 %v30312_v47, %v30313_v2 }
0x2956   :  { %v30315_v61 = vand.u32 4294901760, %v30314_v0 }
0x2957   :  { %v30236_v31 = vpop.permute.xlu1 %30235 }
0x2958   :  { %33433 = vst.msk [vmem:[%s47252_s7 + $0x16] sm:$0x3] %vm9453_vm2, %v30236_v31  ;;  %v30756_v27 = vsel %vm44_vm0, %v30236_v31, 0  ;;  %39401 = vmatmul.mubr.f32.vlgmr.msra.gmra.mrb[42].mxu1 %v30315_v61 }
0x2959   :  { %v46903_v4 = vand.u32 4294901760, %v30756_v27  ;;  %41980 = vmatpush3.bf16.msra.mxu1 %v46234_v9  ;;  %39411 = vmatprep.mubr.msk.f32.mxu1 %vm43145_vm1, %v47342_v43 }
0x295a   :  { %41981 = vmatprep.subr.bf16.mxu1 %v47343_v6 }
0x295b   :  { %v30828_v5 = vsub.f32 %v30756_v27, %v46903_v4 }
0x295d   :  { %v30829_v28 = vand.u32 4294901760, %v30828_v5  ;;  %41983 = vmatpush3.bf16.msra.mxu1 %v46251_v11 }
0x295e   :  { %41984 = vmatprep.subr.bf16.mxu1 %v47343_v6 }
0x295f   :  { %v30830_v57 = vsub.f32 %v30828_v5, %v30829_v28 }
0x2960   :  { %39412 = vmatmul.mubr.f32.vlgmr.msra.gmra.mrb[42].mxu1 %v46895_v18 }
0x2961   :  { %41986 = vmatpush3.bf16.msra.mxu1 %v46275_v1  ;;  %v30831_v19 = vand.u32 4294901760, %v30830_v57  ;;  %39422 = vmatprep.mubr.msk.f32.mxu1 %vm43145_vm1, %v47342_v43 }
0x2962   :  { %41987 = vmatprep.subr.bf16.mxu1 %v47343_v6 }
0x2963   :  { %39467 = vmatmul.mubr.f32.vlgmr.msra.gmra.mrb[48].mxu0 %v30831_v19 }
0x2964   :  { %42016 = vmatpush3.bf16.msra.mxu0 %v46280_v39  ;;  %39477 = vmatprep.mubr.msk.f32.mxu0 %vm43145_vm1, %v47342_v43 }
0x2965   :  { %41989 = vmatpush3.bf16.msra.mxu1 %v46286_v38  ;;  %42017 = vmatprep.subr.bf16.mxu0 %v47343_v6 }
0x2966   :  { %41990 = vmatprep.subr.bf16.mxu1 %v47343_v6 }
0x2968   :  { %39423 = vmatmul.mubr.f32.vlgmr.msra.gmra.mrb[42].mxu1 %v30312_v47  ;;  %42019 = vmatpush3.bf16.msra.mxu0 %v46292_v42 }
0x2969   :  { %41992 = vmatpush3.bf16.msra.mxu1 %v46173_v37  ;;  %42020 = vmatprep.subr.bf16.mxu0 %v47343_v6 }
0x296a   :  { %41993 = vmatprep.subr.bf16.mxu1 %v47343_v6  ;;  %39433 = vmatprep.mubr.msk.f32.mxu1 %vm43145_vm1, %v47342_v43 }
0x296b   :  { %39478 = vmatmul.mubr.f32.vlgmr.msra.gmra.mrb[48].mxu0 %v46903_v4 }
0x296c   :  { %42022 = vmatpush3.bf16.msra.mxu0 %v46303_v29  ;;  %39488 = vmatprep.mubr.msk.f32.mxu0 %vm43145_vm1, %v47342_v43 }
0x296d   :  { %41995 = vmatpush3.bf16.msra.mxu1 %v46195_v33  ;;  %42023 = vmatprep.subr.bf16.mxu0 %v47343_v6 }
0x296e   :  { %41996 = vmatprep.subr.bf16.mxu1 %v47343_v6 }
0x2970   :  { %39434 = vmatmul.mubr.f32.vlgmr.msra.gmra.mrb[42].mxu1 %v30313_v2  ;;  %42025 = vmatpush3.bf16.msra.mxu0 %v46314_v40 }
0x2971   :  { %41998 = vmatpush3.bf16.msra.mxu1 %v46324_v17  ;;  %42026 = vmatprep.subr.bf16.mxu0 %v47343_v6 }
0x2972   :  { %41999 = vmatprep.subr.bf16.mxu1 %v47343_v6  ;;  %39444 = vmatprep.mubr.msk.f32.mxu1 %vm43145_vm1, %v47342_v43 }
0x2973   :  { %39489 = vmatmul.mubr.f32.vlgmr.msra.gmra.mrb[48].mxu0 %v30828_v5 }
0x2974   :  { %42028 = vmatpush3.bf16.msra.mxu0 %v46237_v36  ;;  %39499 = vmatprep.mubr.msk.f32.mxu0 %vm43145_vm1, %v47342_v43 }
0x2975   :  { %42001 = vmatpush3.bf16.msra.mxu1 %v46336_v10  ;;  %42029 = vmatprep.subr.bf16.mxu0 %v47343_v6 }
0x2976   :  { %42002 = vmatprep.subr.bf16.mxu1 %v47343_v6 }
0x2978   :  { %39445 = vmatmul.mubr.f32.vlgmr.msra.gmra.mrb[42].mxu1 %v46895_v18  ;;  %42031 = vmatpush3.bf16.msra.mxu0 %v46257_v54 }
0x2979   :  { %42004 = vmatpush3.bf16.msra.mxu1 %v46173_v37  ;;  %42032 = vmatprep.subr.bf16.mxu0 %v47343_v6 }
0x297a   :  { %42005 = vmatprep.subr.bf16.mxu1 %v47343_v6  ;;  %39455 = vmatprep.mubr.msk.f32.mxu1 %vm43145_vm1, %v47342_v43 }
0x297b   :  { %39500 = vmatmul.mubr.f32.vlgmr.msra.gmra.mrb[48].mxu0 %v30829_v28 }
0x297c   :  { %42034 = vmatpush3.bf16.msra.mxu0 %v46354_v7  ;;  %39510 = vmatprep.mubr.msk.f32.mxu0 %vm43145_vm1, %v47342_v43 }
0x297d   :  { %42007 = vmatpush3.bf16.msra.mxu1 %v46195_v33  ;;  %42035 = vmatprep.subr.bf16.mxu0 %v47343_v6 }
0x297e   :  { %42080 = vmatprep.subr.bf16.mxu1 %v47343_v6 }
0x2980   :  { %39456 = vmatmul.mubr.f32.vlgmr.msra.gmra.mrb[42].mxu1 %v46895_v18  ;;  %42037 = vmatpush3.bf16.msra.mxu0 %v46368_v52 }
0x2981   :  { %42038 = vmatprep.subr.bf16.mxu0 %v47343_v6  ;;  %42082 = vmatpush3.bf16.msra.mxu1 %v46237_v36 }
0x2982   :  { %42083 = vmatprep.subr.bf16.mxu1 %v47343_v6  ;;  %39598 = vmatprep.mubr.msk.f32.mxu1 %vm43145_vm1, %v47342_v43 }
0x2983   :  { %39511 = vmatmul.mubr.f32.vlgmr.msra.gmra.mrb[48].mxu0 %v46903_v4 }
0x2984   :  { %42040 = vmatpush3.bf16.msra.mxu0 %v46237_v36  ;;  %39521 = vmatprep.mubr.msk.f32.mxu0 %vm43145_vm1, %v47342_v43 }
0x2985   :  { %42041 = vmatprep.subr.bf16.mxu0 %v47343_v6  ;;  %42085 = vmatpush3.bf16.msra.mxu1 %v46257_v54 }
0x2986   :  { %42086 = vmatprep.subr.bf16.mxu1 %v47343_v6 }
0x2988   :  { %42043 = vmatpush3.bf16.msra.mxu0 %v46257_v54 }
0x2989   :  { %42044 = vmatprep.subr.bf16.mxu0 %v47343_v6 }
0x298b   :  { %39522 = vmatmul.mubr.f32.vlgmr.msra.gmra.mrb[48].mxu0 %v46903_v4 }
0x298c   :  { %42046 = vmatpush3.bf16.msra.mxu0 %v46173_v37  ;;  %39532 = vmatprep.mubr.msk.f32.mxu0 %vm43145_vm1, %v47342_v43 }
0x298d   :  { %42047 = vmatprep.subr.bf16.mxu0 %v47343_v6 }
0x2990   :  { %42049 = vmatpush3.bf16.msra.mxu0 %v46195_v33 }
0x2991   :  { %42050 = vmatprep.subr.bf16.mxu0 %v47343_v6 }
0x2a53   :  { %v30723_v32 = vpop.f32.mrb[42].mxu1 }
0x2a54   :  { %v42197_v21 = vadd.f32 %v46865_v60, %v30723_v32  ;;  %v39457_v62 = vpop.f32.mrb[43].mxu1 }
0x2a56   :  { %43057 = vtanh.f32 %v42197_v21  ;;  %v30728_v12 = vmul.f32 0.5, %v42197_v21 }
0x2a5e   :  { %v31239_v34 = vpop.f32.mrb[48].mxu0 }
0x2a5f   :  { %v42202_v35 = vadd.f32 %v46871_v26, %v31239_v34  ;;  %v39523_v16 = vpop.f32.mrb[49].mxu0 }
0x2a60   :  { %v43058_v50 = vpop.eup %43057 }
0x2a61   :  { %43059 = vtanh.f32 %v42202_v35  ;;  %30735 = vrot.lane.b32.xlu0 %v43058_v50, %s43147_s11  ;;  %v31244_v14 = vmul.f32 0.5, %v42202_v35 }
0x2a62   :  { %43061 = vtanh.f32 %v30728_v12 }
0x2a63   :  { %43063 = vtanh.f32 %v31244_v14 }
0x2a6b   :  { %v43060_v22 = vpop.eup %43059 }
0x2a6c   :  { %31251 = vrot.lane.b32.xlu1 %v43060_v22, %s43147_s11  ;;  %v43062_v30 = vpop.eup %43061 }
0x2a6d   :  { %v30730_v23 = vadd.f32 1.0, %v43062_v30  ;;  %v43064_v48 = vpop.eup %43063 }
0x2a6e   :  { %v31246_v59 = vadd.f32 1.0, %v43064_v48 }
0x2a6f   :  { %v30731_v24 = vmul.f32 0.5, %v30730_v23 }
0x2a70   :  { %v31247_v45 = vmul.f32 0.5, %v31246_v59 }
0x2a71   :  { %v30733_v25 = vmul.f32 %v30731_v24, %v46879_v8 }
0x2a72   :  { %v31249_v51 = vmul.f32 %v31247_v45, %v46883_v20 }
0x2ad3   :  { %v30736_v13 = vpop.permute.xlu0 %30735 }
0x2ad4   :  { %v30738_v55 = vmul.f32 %v30736_v13, %v30731_v24 }
0x2ad6   :  { %30740 = vrot.lane.b32.xlu0 %v30738_v55, %s43143_s29 }
0x2ade   :  { %v31252_v53 = vpop.permute.xlu1 %31251 }
0x2adf   :  { %v31254_v56 = vmul.f32 %v31252_v53, %v31247_v45 }
0x2ae1   :  { %31256 = vrot.lane.b32.xlu1 %v31254_v56, %s43143_s29 }
0x2b48   :  { %v30741_v44 = vpop.permute.xlu0 %30740 }
0x2b49   :  { %v46991_v41 = vadd.f32 %v30741_v44, %v30733_v25 }
0x2b4b   :  { %43065 = vtanh.f32 %v46991_v41 }
0x2b53   :  { %v31257_v58 = vpop.permute.xlu1 %31256 }
0x2b54   :  { %v46995_v3 = vadd.f32 %v31257_v58, %v31249_v51 }
0x2b55   :  { %v43066_v63 = vpop.eup %43065 }
0x2b56   :  { %43067 = vtanh.f32 %v46995_v3  ;;  %30746 = vrot.lane.b32.xlu0 %v43066_v63, %s43147_s11 }
0x2b60   :  { %v43068_v49 = vpop.eup %43067 }
0x2b61   :  { %31262 = vrot.lane.b32.xlu1 %v43068_v49, %s43147_s11 }
0x2bc8   :  { %v30747_v15 = vpop.permute.xlu0 %30746 }
0x2bc9   :  { %v30749_v8 = vmul.f32 %v30747_v15, %v30731_v24 }
0x2bcb   :  { %30751 = vrot.lane.b32.xlu0 %v30749_v8, %s43143_s29 }
0x2bd3   :  { %v31263_v46 = vpop.permute.xlu1 %31262 }
0x2bd4   :  { %v31265_v18 = vmul.f32 %v31263_v46, %v31247_v45 }
0x2bd6   :  { %31267 = vrot.lane.b32.xlu1 %v31265_v18, %s43143_s29 }
0x2c3d   :  { %v30752_v20 = vpop.permute.xlu0 %30751 }
0x2c3e   :  { %33434 = vst.msk [vmem:[%s47252_s7 + $0xa] sm:$0x3] %vm9453_vm2, %v30752_v20  ;;  %v31272_v47 = vsel %vm44_vm0, %v30752_v20, 0 }
0x2c3f   :  { %v47007_v2 = vand.u32 4294901760, %v31272_v47 }
0x2c41   :  { %v31344_v0 = vsub.f32 %v31272_v47, %v47007_v2 }
0x2c43   :  { %v31345_v61 = vand.u32 4294901760, %v31344_v0 }
0x2c45   :  { %v31346_v31 = vsub.f32 %v31344_v0, %v31345_v61 }
0x2c47   :  { %v31347_v27 = vand.u32 4294901760, %v31346_v31 }
0x2c48   :  { %v31268_v4 = vpop.permute.xlu1 %31267 }
0x2c49   :  { %33435 = vst.msk [vmem:[%s47252_s7 + $0x14] sm:$0x3] %vm9453_vm2, %v31268_v4  ;;  %v31788_v5 = vsel %vm44_vm0, %v31268_v4, 0  ;;  %39533 = vmatmul.mubr.f32.vlgmr.msra.gmra.mrb[44].mxu0 %v31347_v27 }
0x2c4a   :  { %v47015_v28 = vand.u32 4294901760, %v31788_v5  ;;  %42052 = vmatpush3.bf16.msra.mxu0 %v46234_v9  ;;  %39543 = vmatprep.mubr.msk.f32.mxu0 %vm43145_vm1, %v47342_v43 }
0x2c4b   :  { %42053 = vmatprep.subr.bf16.mxu0 %v47343_v6 }
0x2c4c   :  { %v31860_v57 = vsub.f32 %v31788_v5, %v47015_v28 }
0x2c4e   :  { %v31861_v19 = vand.u32 4294901760, %v31860_v57  ;;  %42055 = vmatpush3.bf16.msra.mxu0 %v46251_v11 }
0x2c4f   :  { %42056 = vmatprep.subr.bf16.mxu0 %v47343_v6 }
0x2c50   :  { %v31862_v32 = vsub.f32 %v31860_v57, %v31861_v19 }
0x2c51   :  { %39544 = vmatmul.mubr.f32.vlgmr.msra.gmra.mrb[44].mxu0 %v47007_v2 }
0x2c52   :  { %42058 = vmatpush3.bf16.msra.mxu0 %v46275_v1  ;;  %v31863_v21 = vand.u32 4294901760, %v31862_v32  ;;  %39554 = vmatprep.mubr.msk.f32.mxu0 %vm43145_vm1, %v47342_v43 }
0x2c53   :  { %42059 = vmatprep.subr.bf16.mxu0 %v47343_v6 }
0x2c54   :  { %39599 = vmatmul.mubr.f32.vlgmr.msra.gmra.mrb[46].mxu1 %v31863_v21 }
0x2c55   :  { %42088 = vmatpush3.bf16.msra.mxu1 %v46280_v39  ;;  %39609 = vmatprep.mubr.msk.f32.mxu1 %vm43145_vm1, %v47342_v43 }
0x2c56   :  { %42061 = vmatpush3.bf16.msra.mxu0 %v46286_v38  ;;  %42089 = vmatprep.subr.bf16.mxu1 %v47343_v6 }
0x2c57   :  { %42062 = vmatprep.subr.bf16.mxu0 %v47343_v6 }
0x2c59   :  { %39555 = vmatmul.mubr.f32.vlgmr.msra.gmra.mrb[44].mxu0 %v31344_v0  ;;  %42091 = vmatpush3.bf16.msra.mxu1 %v46292_v42 }
0x2c5a   :  { %42064 = vmatpush3.bf16.msra.mxu0 %v46173_v37  ;;  %42092 = vmatprep.subr.bf16.mxu1 %v47343_v6 }
0x2c5b   :  { %42065 = vmatprep.subr.bf16.mxu0 %v47343_v6  ;;  %39565 = vmatprep.mubr.msk.f32.mxu0 %vm43145_vm1, %v47342_v43 }
0x2c5c   :  { %39610 = vmatmul.mubr.f32.vlgmr.msra.gmra.mrb[46].mxu1 %v47015_v28 }
0x2c5d   :  { %42094 = vmatpush3.bf16.msra.mxu1 %v46303_v29  ;;  %39620 = vmatprep.mubr.msk.f32.mxu1 %vm43145_vm1, %v47342_v43 }
0x2c5e   :  { %42067 = vmatpush3.bf16.msra.mxu0 %v46195_v33  ;;  %42095 = vmatprep.subr.bf16.mxu1 %v47343_v6 }
0x2c5f   :  { %42068 = vmatprep.subr.bf16.mxu0 %v47343_v6 }
0x2c61   :  { %39566 = vmatmul.mubr.f32.vlgmr.msra.gmra.mrb[44].mxu0 %v31345_v61  ;;  %42097 = vmatpush3.bf16.msra.mxu1 %v46314_v40 }
0x2c62   :  { %42070 = vmatpush3.bf16.msra.mxu0 %v46324_v17  ;;  %42098 = vmatprep.subr.bf16.mxu1 %v47343_v6 }
0x2c63   :  { %42071 = vmatprep.subr.bf16.mxu0 %v47343_v6  ;;  %39576 = vmatprep.mubr.msk.f32.mxu0 %vm43145_vm1, %v47342_v43 }
0x2c64   :  { %39621 = vmatmul.mubr.f32.vlgmr.msra.gmra.mrb[46].mxu1 %v31860_v57 }
0x2c65   :  { %42100 = vmatpush3.bf16.msra.mxu1 %v46237_v36  ;;  %39631 = vmatprep.mubr.msk.f32.mxu1 %vm43145_vm1, %v47342_v43 }
0x2c66   :  { %42073 = vmatpush3.bf16.msra.mxu0 %v46336_v10  ;;  %42101 = vmatprep.subr.bf16.mxu1 %v47343_v6 }
0x2c67   :  { %42074 = vmatprep.subr.bf16.mxu0 %v47343_v6 }
0x2c69   :  { %39577 = vmatmul.mubr.f32.vlgmr.msra.gmra.mrb[44].mxu0 %v47007_v2  ;;  %42103 = vmatpush3.bf16.msra.mxu1 %v46257_v54 }
0x2c6a   :  { %42076 = vmatpush3.bf16.msra.mxu0 %v46173_v37  ;;  %42104 = vmatprep.subr.bf16.mxu1 %v47343_v6 }
0x2c6b   :  { %42077 = vmatprep.subr.bf16.mxu0 %v47343_v6  ;;  %39587 = vmatprep.mubr.msk.f32.mxu0 %vm43145_vm1, %v47342_v43 }
0x2c6c   :  { %39632 = vmatmul.mubr.f32.vlgmr.msra.gmra.mrb[46].mxu1 %v31861_v19 }
0x2c6d   :  { %42106 = vmatpush3.bf16.msra.mxu1 %v46354_v7  ;;  %39642 = vmatprep.mubr.msk.f32.mxu1 %vm43145_vm1, %v47342_v43 }
0x2c6e   :  { %42079 = vmatpush3.bf16.msra.mxu0 %v46195_v33  ;;  %42107 = vmatprep.subr.bf16.mxu1 %v47343_v6 }
0x2c6f   :  { %42152 = vmatprep.subr.bf16.mxu0 %v47343_v6 }
0x2c71   :  { %39588 = vmatmul.mubr.f32.vlgmr.msra.gmra.mrb[44].mxu0 %v47007_v2  ;;  %42109 = vmatpush3.bf16.msra.mxu1 %v46368_v52 }
0x2c72   :  { %42110 = vmatprep.subr.bf16.mxu1 %v47343_v6  ;;  %42154 = vmatpush3.bf16.msra.mxu0 %v46237_v36 }
0x2c73   :  { %42155 = vmatprep.subr.bf16.mxu0 %v47343_v6  ;;  %39730 = vmatprep.mubr.msk.f32.mxu0 %vm43145_vm1, %v47342_v43 }
0x2c74   :  { %39643 = vmatmul.mubr.f32.vlgmr.msra.gmra.mrb[46].mxu1 %v47015_v28 }
0x2c75   :  { %42112 = vmatpush3.bf16.msra.mxu1 %v46237_v36  ;;  %39653 = vmatprep.mubr.msk.f32.mxu1 %vm43145_vm1, %v47342_v43 }
0x2c76   :  { %42113 = vmatprep.subr.bf16.mxu1 %v47343_v6  ;;  %42157 = vmatpush3.bf16.msra.mxu0 %v46257_v54 }
0x2c77   :  { %42158 = vmatprep.subr.bf16.mxu0 %v47343_v6 }
0x2c79   :  { %42115 = vmatpush3.bf16.msra.mxu1 %v46257_v54 }
0x2c7a   :  { %42116 = vmatprep.subr.bf16.mxu1 %v47343_v6 }
0x2c7c   :  { %39654 = vmatmul.mubr.f32.vlgmr.msra.gmra.mrb[46].mxu1 %v47015_v28 }
0x2c7d   :  { %42118 = vmatpush3.bf16.msra.mxu1 %v46173_v37  ;;  %39664 = vmatprep.mubr.msk.f32.mxu1 %vm43145_vm1, %v47342_v43 }
0x2c7e   :  { %42119 = vmatprep.subr.bf16.mxu1 %v47343_v6 }
0x2c81   :  { %42121 = vmatpush3.bf16.msra.mxu1 %v46195_v33 }
0x2c82   :  { %42122 = vmatprep.subr.bf16.mxu1 %v47343_v6 }
0x2d44   :  { %v31755_v62 = vpop.f32.mrb[44].mxu0 }
0x2d45   :  { %v42198_v34 = vadd.f32 %v46865_v60, %v31755_v62  ;;  %v39589_v35 = vpop.f32.mrb[45].mxu0 }
0x2d47   :  { %43069 = vtanh.f32 %v42198_v34  ;;  %v31760_v30 = vmul.f32 0.5, %v42198_v34 }
0x2d4f   :  { %v32271_v16 = vpop.f32.mrb[46].mxu1 }
0x2d50   :  { %v42201_v50 = vadd.f32 %v46871_v26, %v32271_v16  ;;  %v39655_v22 = vpop.f32.mrb[47].mxu1 }
0x2d51   :  { %v43070_v12 = vpop.eup %43069 }
0x2d52   :  { %43071 = vtanh.f32 %v42201_v50  ;;  %31767 = vrot.lane.b32.xlu0 %v43070_v12, %s43147_s11  ;;  %v32276_v23 = vmul.f32 0.5, %v42201_v50 }
0x2d53   :  { %43073 = vtanh.f32 %v31760_v30 }
0x2d54   :  { %43075 = vtanh.f32 %v32276_v23  ;;  %v47412_v23 = vld [vmem:[#allocation19_spill] sm:$0xff] }
0x2d5c   :  { %v43072_v14 = vpop.eup %43071 }
0x2d5d   :  { %32283 = vrot.lane.b32.xlu1 %v43072_v14, %s43147_s11  ;;  %v43074_v24 = vpop.eup %43073 }
0x2d5e   :  { %v31762_v13 = vadd.f32 1.0, %v43074_v24  ;;  %v43076_v45 = vpop.eup %43075  ;;  %v47413_v24 = vld [vmem:[#allocation39_spill] sm:$0xff] }
0x2d5f   :  { %v32278_v53 = vadd.f32 1.0, %v43076_v45 }
0x2d60   :  { %v31763_v55 = vmul.f32 0.5, %v31762_v13 }
0x2d61   :  { %v32279_v56 = vmul.f32 0.5, %v32278_v53 }
0x2d62   :  { %v31765_v51 = vmul.f32 %v31763_v55, %v46991_v41 }
0x2d63   :  { %v32281_v49 = vmul.f32 %v32279_v56, %v46995_v3 }
0x2dc4   :  { %v31768_v48 = vpop.permute.xlu0 %31767 }
0x2dc5   :  { %v31770_v59 = vmul.f32 %v31768_v48, %v31763_v55 }
0x2dc7   :  { %31772 = vrot.lane.b32.xlu0 %v31770_v59, %s43143_s29 }
0x2dcf   :  { %v32284_v25 = vpop.permute.xlu1 %32283 }
0x2dd0   :  { %v32286_v44 = vmul.f32 %v32284_v25, %v32279_v56 }
0x2dd2   :  { %32288 = vrot.lane.b32.xlu1 %v32286_v44, %s43143_s29 }
0x2e39   :  { %v31773_v58 = vpop.permute.xlu0 %31772 }
0x2e3a   :  { %v47103_v63 = vadd.f32 %v31773_v58, %v31765_v51 }
0x2e3c   :  { %43077 = vtanh.f32 %v47103_v63 }
0x2e44   :  { %v32289_v15 = vpop.permute.xlu1 %32288 }
0x2e45   :  { %v47107_v8 = vadd.f32 %v32289_v15, %v32281_v49 }
0x2e46   :  { %v43078_v46 = vpop.eup %43077 }
0x2e47   :  { %43079 = vtanh.f32 %v47107_v8  ;;  %31778 = vrot.lane.b32.xlu0 %v43078_v46, %s43147_s11 }
0x2e51   :  { %v43080_v18 = vpop.eup %43079 }
0x2e52   :  { %32294 = vrot.lane.b32.xlu1 %v43080_v18, %s43147_s11 }
0x2eb9   :  { %v31779_v20 = vpop.permute.xlu0 %31778 }
0x2eba   :  { %v31781_v41 = vmul.f32 %v31779_v20, %v31763_v55  ;;  %v47414_v55 = vld [vmem:[#allocation40_spill] sm:$0xff] }
0x2ebc   :  { %31783 = vrot.lane.b32.xlu0 %v31781_v41, %s43143_s29 }
0x2ec4   :  { %v32295_v47 = vpop.permute.xlu1 %32294 }
0x2ec5   :  { %v32297_v2 = vmul.f32 %v32295_v47, %v32279_v56 }
0x2ec7   :  { %32299 = vrot.lane.b32.xlu1 %v32297_v2, %s43143_s29 }
0x2f2e   :  { %v31784_v3 = vpop.permute.xlu0 %31783 }
0x2f2f   :  { %33436 = vst.msk [vmem:[%s47252_s7 + $0xc] sm:$0x3] %vm9453_vm2, %v31784_v3  ;;  %v32304_v0 = vsel %vm44_vm0, %v31784_v3, 0 }
0x2f30   :  { %v47119_v61 = vand.u32 4294901760, %v32304_v0 }
0x2f32   :  { %v32376_v31 = vsub.f32 %v32304_v0, %v47119_v61 }
0x2f34   :  { %v32377_v27 = vand.u32 4294901760, %v32376_v31 }
0x2f36   :  { %v32378_v4 = vsub.f32 %v32376_v31, %v32377_v27 }
0x2f38   :  { %v32379_v5 = vand.u32 4294901760, %v32378_v4 }
0x2f39   :  { %v32300_v28 = vpop.permute.xlu1 %32299 }
0x2f3a   :  { %33437 = vst.msk [vmem:[%s47252_s7 + $0x12] sm:$0x3] %vm9453_vm2, %v32300_v28  ;;  %v32820_v57 = vsel %vm44_vm0, %v32300_v28, 0  ;;  %39665 = vmatmul.mubr.f32.vlgmr.msra.gmra.mrb[44].mxu1 %v32379_v5 }
0x2f3b   :  { %v32891_v19 = vand.u32 4294901760, %v32820_v57  ;;  %42124 = vmatpush3.bf16.msra.mxu1 %v46234_v9  ;;  %39675 = vmatprep.mubr.msk.f32.mxu1 %vm43145_vm1, %v47342_v43 }
0x2f3c   :  { %42125 = vmatprep.subr.bf16.mxu1 %v47343_v6 }
0x2f3d   :  { %v32892_v32 = vsub.f32 %v32820_v57, %v32891_v19 }
0x2f3f   :  { %v32893_v21 = vand.u32 4294901760, %v32892_v32  ;;  %42127 = vmatpush3.bf16.msra.mxu1 %v46251_v11 }
0x2f40   :  { %42128 = vmatprep.subr.bf16.mxu1 %v47343_v6 }
0x2f41   :  { %v32894_v62 = vsub.f32 %v32892_v32, %v32893_v21 }
0x2f42   :  { %39676 = vmatmul.mubr.f32.vlgmr.msra.gmra.mrb[44].mxu1 %v47119_v61 }
0x2f43   :  { %42130 = vmatpush3.bf16.msra.mxu1 %v46275_v1  ;;  %v32895_v34 = vand.u32 4294901760, %v32894_v62  ;;  %39686 = vmatprep.mubr.msk.f32.mxu1 %vm43145_vm1, %v47342_v43 }
0x2f44   :  { %42131 = vmatprep.subr.bf16.mxu1 %v47343_v6 }
0x2f45   :  { %39731 = vmatmul.mubr.f32.vlgmr.msra.gmra.mrb[46].mxu0 %v32895_v34 }
0x2f46   :  { %42160 = vmatpush3.bf16.msra.mxu0 %v46280_v39  ;;  %39741 = vmatprep.mubr.msk.f32.mxu0 %vm43145_vm1, %v47342_v43 }
0x2f47   :  { %42133 = vmatpush3.bf16.msra.mxu1 %v46286_v38  ;;  %42161 = vmatprep.subr.bf16.mxu0 %v47343_v6 }
0x2f48   :  { %42134 = vmatprep.subr.bf16.mxu1 %v47343_v6 }
0x2f4a   :  { %39687 = vmatmul.mubr.f32.vlgmr.msra.gmra.mrb[44].mxu1 %v32376_v31  ;;  %42163 = vmatpush3.bf16.msra.mxu0 %v46292_v42 }
0x2f4b   :  { %42136 = vmatpush3.bf16.msra.mxu1 %v46173_v37  ;;  %42164 = vmatprep.subr.bf16.mxu0 %v47343_v6 }
0x2f4c   :  { %42137 = vmatprep.subr.bf16.mxu1 %v47343_v6  ;;  %39697 = vmatprep.mubr.msk.f32.mxu1 %vm43145_vm1, %v47342_v43 }
0x2f4d   :  { %39742 = vmatmul.mubr.f32.vlgmr.msra.gmra.mrb[46].mxu0 %v32891_v19 }
0x2f4e   :  { %42166 = vmatpush3.bf16.msra.mxu0 %v46303_v29  ;;  %39752 = vmatprep.mubr.msk.f32.mxu0 %vm43145_vm1, %v47342_v43 }
0x2f4f   :  { %42139 = vmatpush3.bf16.msra.mxu1 %v46195_v33  ;;  %42167 = vmatprep.subr.bf16.mxu0 %v47343_v6 }
0x2f50   :  { %42140 = vmatprep.subr.bf16.mxu1 %v47343_v6 }
0x2f52   :  { %39698 = vmatmul.mubr.f32.vlgmr.msra.gmra.mrb[44].mxu1 %v32377_v27  ;;  %42169 = vmatpush3.bf16.msra.mxu0 %v46314_v40 }
0x2f53   :  { %42142 = vmatpush3.bf16.msra.mxu1 %v46324_v17  ;;  %42170 = vmatprep.subr.bf16.mxu0 %v47343_v6 }
0x2f54   :  { %42143 = vmatprep.subr.bf16.mxu1 %v47343_v6  ;;  %39708 = vmatprep.mubr.msk.f32.mxu1 %vm43145_vm1, %v47342_v43 }
0x2f55   :  { %39753 = vmatmul.mubr.f32.vlgmr.msra.gmra.mrb[46].mxu0 %v32892_v32 }
0x2f56   :  { %42172 = vmatpush3.bf16.msra.mxu0 %v46237_v36  ;;  %39763 = vmatprep.mubr.msk.f32.mxu0 %vm43145_vm1, %v47342_v43 }
0x2f57   :  { %42145 = vmatpush3.bf16.msra.mxu1 %v46336_v10  ;;  %42173 = vmatprep.subr.bf16.mxu0 %v47343_v6 }
0x2f58   :  { %42146 = vmatprep.subr.bf16.mxu1 %v47343_v6 }
0x2f5a   :  { %39709 = vmatmul.mubr.f32.vlgmr.msra.gmra.mrb[44].mxu1 %v47119_v61  ;;  %42175 = vmatpush3.bf16.msra.mxu0 %v46257_v54 }
0x2f5b   :  { %42148 = vmatpush3.bf16.msra.mxu1 %v46173_v37  ;;  %42176 = vmatprep.subr.bf16.mxu0 %v47343_v6 }
0x2f5c   :  { %42149 = vmatprep.subr.bf16.mxu1 %v47343_v6  ;;  %39719 = vmatprep.mubr.msk.f32.mxu1 %vm43145_vm1, %v47342_v43 }
0x2f5d   :  { %39764 = vmatmul.mubr.f32.vlgmr.msra.gmra.mrb[46].mxu0 %v32893_v21 }
0x2f5e   :  { %42178 = vmatpush3.bf16.msra.mxu0 %v46354_v7  ;;  %39774 = vmatprep.mubr.msk.f32.mxu0 %vm43145_vm1, %v47342_v43 }
0x2f5f   :  { %42151 = vmatpush3.bf16.msra.mxu1 %v46195_v33  ;;  %42179 = vmatprep.subr.bf16.mxu0 %v47343_v6 }
0x2f62   :  { %39720 = vmatmul.mubr.f32.vlgmr.msra.gmra.mrb[44].mxu1 %v47119_v61  ;;  %42181 = vmatpush3.bf16.msra.mxu0 %v46368_v52 }
0x2f63   :  { %42182 = vmatprep.subr.bf16.mxu0 %v47343_v6 }
0x2f65   :  { %39775 = vmatmul.mubr.f32.vlgmr.msra.gmra.mrb[46].mxu0 %v32891_v19 }
0x2f66   :  { %42184 = vmatpush3.bf16.msra.mxu0 %v46237_v36  ;;  %39785 = vmatprep.mubr.msk.f32.mxu0 %vm43145_vm1, %v47342_v43 }
0x2f67   :  { %42185 = vmatprep.subr.bf16.mxu0 %v47343_v6 }
0x2f6a   :  { %42187 = vmatpush3.bf16.msra.mxu0 %v46257_v54 }
0x2f6d   :  { %39786 = vmatmul.mubr.f32.vlgmr.msra.gmra.mrb[46].mxu0 %v32891_v19 }
0x3035   :  { %v32787_v37 = vpop.f32.mrb[44].mxu1 }
0x3036   :  { %v42199_v33 = vadd.f32 %v46865_v60, %v32787_v37  ;;  %v39721_v9 = vpop.f32.mrb[45].mxu1 }
0x3038   :  { %43081 = vtanh.f32 %v42199_v33  ;;  %v32792_v43 = vmul.f32 0.5, %v42199_v33 }
0x3040   :  { %v33303_v11 = vpop.f32.mrb[46].mxu0 }
0x3041   :  { %v42200_v1 = vadd.f32 %v46871_v26, %v33303_v11  ;;  %v39787_v39 = vpop.f32.mrb[47].mxu0 }
0x3042   :  { %v43082_v38 = vpop.eup %43081 }
0x3043   :  { %43083 = vtanh.f32 %v42200_v1  ;;  %32799 = vrot.lane.b32.xlu0 %v43082_v38, %s43147_s11  ;;  %v33308_v6 = vmul.f32 0.5, %v42200_v1 }
0x3044   :  { %43085 = vtanh.f32 %v32792_v43 }
0x3045   :  { %43087 = vtanh.f32 %v33308_v6 }
0x304d   :  { %v43084_v36 = vpop.eup %43083 }
0x304e   :  { %33315 = vrot.lane.b32.xlu1 %v43084_v36, %s43147_s11  ;;  %v43086_v54 = vpop.eup %43085 }
0x304f   :  { %v32794_v42 = vadd.f32 1.0, %v43086_v54  ;;  %v43088_v10 = vpop.eup %43087 }
0x3050   :  { %v33310_v7 = vadd.f32 1.0, %v43088_v10 }
0x3051   :  { %v32795_v29 = vmul.f32 0.5, %v32794_v42 }
0x3052   :  { %v33311_v52 = vmul.f32 0.5, %v33310_v7 }
0x3053   :  { %v32797_v35 = vmul.f32 %v32795_v29, %v47103_v63 }
0x3054   :  { %v33313_v22 = vmul.f32 %v33311_v52, %v47107_v8 }
0x30b5   :  { %v32800_v40 = vpop.permute.xlu0 %32799 }
0x30b6   :  { %v32802_v17 = vmul.f32 %v32800_v40, %v32795_v29 }
0x30b8   :  { %32804 = vrot.lane.b32.xlu0 %v32802_v17, %s43143_s29 }
0x30c0   :  { %v33316_v60 = vpop.permute.xlu1 %33315 }
0x30c1   :  { %v33318_v26 = vmul.f32 %v33316_v60, %v33311_v52 }
0x30c3   :  { %33320 = vrot.lane.b32.xlu1 %v33318_v26, %s43143_s29 }
0x312a   :  { %v32805_v16 = vpop.permute.xlu0 %32804 }
0x312b   :  { %v32807_v50 = vadd.f32 %v32805_v16, %v32797_v35 }
0x312d   :  { %43089 = vtanh.f32 %v32807_v50 }
0x3135   :  { %v33321_v12 = vpop.permute.xlu1 %33320 }
0x3136   :  { %v33323_v14 = vadd.f32 %v33321_v12, %v33313_v22 }
0x3137   :  { %v43090_v30 = vpop.eup %43089 }
0x3138   :  { %43091 = vtanh.f32 %v33323_v14  ;;  %32810 = vrot.lane.b32.xlu0 %v43090_v30, %s43147_s11 }
0x313c   :  { %9438 = vrot.lane.b32.xlu0 %v47412_v23, %s43143_s29 }
0x3140   :  { %9456 = vrot.lane.b32.xlu0 %v47413_v24, %s43148_s12 }
0x3142   :  { %v43092_v13 = vpop.eup %43091 }
0x3143   :  { %33326 = vrot.lane.b32.xlu1 %v43092_v13, %s43147_s11 }
0x3147   :  { %9444 = vrot.lane.b32.xlu1 %v47414_v55, %s43148_s12 }
0x31aa   :  { %v32811_v48 = vpop.permute.xlu0 %32810 }
0x31ab   :  { %v32813_v59 = vmul.f32 %v32811_v48, %v32795_v29 }
0x31ad   :  { %32815 = vrot.lane.b32.xlu1 %v32813_v59, %s43143_s29 }
0x31ae   :  { %v9439_v45 = vpop.permute.xlu0 %9438 }
0x31af   :  { %9442 = vst.msk [vmem:[#allocation2 - $0x6] sm:$0xc0] %vm9441_vm3, %v9439_v45 }
0x31b1   :  { %33339 = vrot.lane.b32.xlu1 %v32807_v50, %s43148_s12 }
0x31b2   :  { %v9457_v53 = vpop.permute.xlu0 %9456 }
0x31b3   :  { %9460 = vst.msk [vmem:[#allocation4 + $0x2] sm:$0x3] %vm9453_vm2, %v9457_v53 }
0x31b5   :  { %v33327_v56 = vpop.permute.xlu1 %33326 }
0x31b6   :  { %v33329_v25 = vmul.f32 %v33327_v56, %v33311_v52 }
0x31b8   :  { %33331 = vrot.lane.b32.xlu0 %v33329_v25, %s43143_s29 }
0x31b9   :  { %v9445_v44 = vpop.permute.xlu1 %9444 }
0x31ba   :  { %9447 = vst.msk [vmem:[#allocation4 - $0x6] sm:$0xc0] %vm9441_vm3, %v9445_v44 }
0x31bc   :  { %33347 = vrot.lane.b32.xlu0 %v33323_v14, %s43148_s12 }
0x321f   :  { %v32816_v51 = vpop.permute.xlu1 %32815 }
0x3220   :  { %33438 = vst.msk [vmem:[%s47252_s7 + $0xe] sm:$0x3] %vm9453_vm2, %v32816_v51  ;;  %33337 = vst.msk [vmem:[#allocation2 + $0x4] sm:$0x3] %vm9453_vm2, %v32816_v51 }
0x3223   :  { %v33340_v58 = vpop.permute.xlu1 %33339 }
0x3224   :  { %33343 = vst.msk [vmem:[#allocation4 + $0x4] sm:$0x3] %vm9453_vm2, %v33340_v58 }
0x322a   :  { %v33332_v63 = vpop.permute.xlu0 %33331 }
0x322b   :  { %33439 = vst.msk [vmem:[%s47252_s7 + $0x10] sm:$0x3] %vm9453_vm2, %v33332_v63  ;;  %33345 = vst.msk [vmem:[#allocation2 + $0x6] sm:$0x3] %vm9453_vm2, %v33332_v63 }
0x322c   :  { %43106 = shalt.err (!%p43103_p4)
}
0x322d   :  { %s43107_s3 = scalar_lea.hbm %s47253_s8, 128 }
0x322e   :  { %p43108_p5 = scmp.ne.s32.totalorder %s47253_s8, %s43107_s3  ;;  %p43111_p6 = scmp.lt.u32.totalorder %s43107_s3, %s47253_s8 }
0x3230   :  { %p43113_p7 = pnand %p43111_p6, %p43108_p5 }
0x3232   :  { %43116 = shalt.err (!%p43113_p7)
}
0x3233   :  { %s43151_s7 = smov 2   ;;  %v33348_v49 = vpop.permute.xlu0 %33347  ;;  %s43117_s26 = scalar_lea.vmem %s33372_s17, 128 }
0x3234   :  { %33365 = dma.vmem_to_hbm [thread:$0]  %s33360_s15, 128, %s47253_s8, [#allocation3], %s43143_s29, %s43143_s29, %s43151_s7   ;;  %33351 = vst.msk [vmem:[#allocation4 + $0x6] sm:$0x3] %vm9453_vm2, %v33348_v49 }
0x3235   :  { %p43118_p8 = scmp.ne.s32.totalorder %s33372_s17, %s43117_s26  ;;  %p43122_p9 = scmp.lt.s32.totalorder %s33372_s17, %s33372_s17 }
0x3236   :  { %p43123_p10 = scmp.lt.s32.totalorder %s43117_s26, %s43117_s26 }
0x3238   :  { %p43124_p11 = por %p43123_p10, %p43122_p9 }
0x323a   :  { %p43125_p12 = pnand %p43124_p11, %p43118_p8 }
0x323c   :  { %43128 = shalt.err (!%p43125_p12)
}
0x323d   :  { %s43129_s28 = scalar_lea.hbm %s47254_s9, 128 }
0x323e   :  { %p43130_p13 = scmp.ne.s32.totalorder %s47254_s9, %s43129_s28  ;;  %p43133_p0 = scmp.lt.u32.totalorder %s43129_s28, %s47254_s9 }
0x3240   :  { %p43135_p1 = pnand %p43133_p0, %p43130_p13 }
0x3242   :  { %43138 = shalt.err (!%p43135_p1)
}
0x3243   :  { %33377 = dma.vmem_to_hbm [thread:$0]  %s33372_s17, 128, %s47254_s9, [#allocation5], %s43143_s29, %s43143_s29, %s43151_s7  }
0x3244   :  { %43139 = dma.done.wait [#allocation3], 128  }
0x3245   :  { %43140 = vsyncadd [#allocation3], 4294967168 }
0x3246   :  { %43141 = dma.done.wait [#allocation5], 128  }
0x3247   :  { %43142 = vsyncadd [#allocation5], 4294967168 }
0x3248   :  { %33386 = vsyncpa [#allocation3], 1 }
0x3249   :  { %33387 = vsyncpa [#allocation5], 1 }

</bundles_post_ra>
